<compile_context>
chip_gen: v7x
topology: tpu7x:2x2x1
jax: 0.10.0
libtpu: 0.0.40
codegen_flags: <defaults>
</compile_context>

<pallas_src>
import jax
import jax.numpy as jnp
from jax.experimental import pallas as pl
from jax.experimental.pallas import tpu as pltpu


# ------------------------------ fused kernel -------------------------------

def _cm_block_kernel(x_ref, w3_ref, wb_ref, b_ref, a_ref, o_ref, pad_ref):
    # x_ref:  (1, H, W, C)  input image (NHWC block)
    # w3_ref: (4*9*C, C)    per-conv, per-tap (Cin, Cout) weight rows
    # wb_ref: (3C, C)       1x1 bottleneck weight
    # b_ref:  (5, C)        biases b1..b4, bb
    # a_ref:  (1, 1) SMEM   PReLU shared alpha
    # o_ref:  (1, H, W, C)  output
    # pad_ref:(H+2, W+2, C) VMEM scratch for reflection padding
    _, H, W, C = x_ref.shape
    HW = H * W
    alpha = a_ref[0, 0]

    def conv3x3(t_flat, idx):
        """Reflect-padded 3x3 conv + bias. t_flat: (HW, C) -> (HW, C)."""
        t = t_flat.reshape(H, W, C)
        # reflection pad (pad=1) into VMEM scratch; columns first, then rows
        # (row copies then carry the already-reflected corner values).
        pad_ref[1:H + 1, 1:W + 1, :] = t
        pad_ref[1:H + 1, 0:1, :] = pad_ref[1:H + 1, 2:3, :]
        pad_ref[1:H + 1, W + 1:W + 2, :] = pad_ref[1:H + 1, W - 1:W, :]
        pad_ref[0:1, :, :] = pad_ref[2:3, :, :]
        pad_ref[H + 1:H + 2, :, :] = pad_ref[H - 1:H, :, :]

        acc = jnp.zeros((HW, C), jnp.float32)
        for dy in range(3):
            for dx in range(3):
                r0 = (idx * 9 + dy * 3 + dx) * C
                w_tap = w3_ref[r0:r0 + C, :]                           # (Cin, Cout)
                patch = pad_ref[dy:dy + H, dx:dx + W, :].reshape(HW, C)
                acc = acc + jnp.dot(patch, w_tap,
                                    preferred_element_type=jnp.float32)
        return acc + b_ref[idx:idx + 1, :]

    def prelu(t):
        return jnp.where(t >= 0.0, t, alpha * t)

    x_flat = x_ref[0].reshape(HW, C)

    # out1 = conv2(prelu(conv1(x))) + x
    t = prelu(conv3x3(x_flat, 0))
    out1 = conv3x3(t, 1) + x_flat

    # out2 = conv4(prelu(conv3(out1))) + out1
    t = prelu(conv3x3(out1, 2))
    out2 = conv3x3(t, 3) + out1

    # out = bottleneck(cat(x, out1, out2)) + x   -- 3 partial dots, no concat
    y = jnp.dot(x_flat, wb_ref[0:C, :], preferred_element_type=jnp.float32)
    y = y + jnp.dot(out1, wb_ref[C:2 * C, :], preferred_element_type=jnp.float32)
    y = y + jnp.dot(out2, wb_ref[2 * C:3 * C, :], preferred_element_type=jnp.float32)
    out = y + b_ref[4:5, :] + x_flat

    o_ref[0] = out.reshape(H, W, C)


# ------------------------------- glue (JAX) --------------------------------

def _w3x3_to_taps(w):
    # PyTorch OIHW (Cout, Cin, 3, 3) -> (9*Cin, Cout), row order (dy, dx, cin)
    cout, cin = w.shape[0], w.shape[1]
    return jnp.transpose(w, (2, 3, 1, 0)).reshape(9 * cin, cout)


def cm_residual_block(x_nchw, params):
    """Forward pass of CMResidualBlock. Input/output NCHW, float32."""
    N, C, H, W = x_nchw.shape
    x = jnp.transpose(x_nchw, (0, 2, 3, 1)).astype(jnp.float32)            # NHWC

    w3_mat = jnp.concatenate(
        [_w3x3_to_taps(params[k]) for k in ("w1", "w2", "w3", "w4")], axis=0)  # (36C, C)
    wb_mat = jnp.transpose(params["wb"][:, :, 0, 0], (1, 0))                   # (3C, C)
    b_all = jnp.stack(
        [params["b1"], params["b2"], params["b3"], params["b4"], params["bb"]])  # (5, C)
    alpha = jnp.asarray(params["alpha"], jnp.float32).reshape(1, 1)

    out = pl.pallas_call(
        _cm_block_kernel,
        out_shape=jax.ShapeDtypeStruct((N, H, W, C), jnp.float32),
        grid=(N,),
        in_specs=[
            pl.BlockSpec((1, H, W, C), lambda n: (n, 0, 0, 0)),
            pl.BlockSpec((36 * C, C), lambda n: (0, 0)),
            pl.BlockSpec((3 * C, C), lambda n: (0, 0)),
            pl.BlockSpec((5, C), lambda n: (0, 0)),
            pl.BlockSpec(memory_space=pltpu.MemorySpace.SMEM),
        ],
        out_specs=pl.BlockSpec((1, H, W, C), lambda n: (n, 0, 0, 0)),
        scratch_shapes=[pltpu.VMEM((H + 2, W + 2, C), jnp.float32)],
        compiler_params=pltpu.CompilerParams(dimension_semantics=("parallel",)),
    )(x, w3_mat, wb_mat, b_all, alpha)

    return jnp.transpose(out, (0, 3, 1, 2))                                # NCHW


# --------------------------- pure-JAX reference -----------------------------

def _conv_ref(x, w, b, pad):
    if pad:
        x = jnp.pad(x, ((0, 0), (0, 0), (pad, pad), (pad, pad)), mode="reflect")
    y = jax.lax.conv_general_dilated(
        x, w, window_strides=(1, 1), padding="VALID",
        dimension_numbers=("NCHW", "OIHW", "NCHW"))
    return y + b[None, :, None, None]


def _prelu_ref(x, a):
    return jnp.where(x >= 0.0, x, a * x)


def cm_residual_block_ref(x, p):
    out1 = _prelu_ref(_conv_ref(x, p["w1"], p["b1"], 1), p["alpha"])
    out1 = _conv_ref(out1, p["w2"], p["b2"], 1) + x
    out2 = _prelu_ref(_conv_ref(out1, p["w3"], p["b3"], 1), p["alpha"])
    out2 = _conv_ref(out2, p["w4"], p["b4"], 1) + out1
    cat = jnp.concatenate([x, out1, out2], axis=1)
    return _conv_ref(cat, p["wb"], p["bb"], 0) + x


# ---------------------------------- main ------------------------------------

def _init_params(key, channels):
    ks = jax.random.split(key, 11)
    C = channels
    return {
        "w1": 0.1 * jax.random.normal(ks[0], (C, C, 3, 3), jnp.float32),
        "b1": 0.1 * jax.random.normal(ks[1], (C,), jnp.float32),
        "w2": 0.1 * jax.random.normal(ks[2], (C, C, 3, 3), jnp.float32),
        "b2": 0.1 * jax.random.normal(ks[3], (C,), jnp.float32),
        "w3": 0.1 * jax.random.normal(ks[4], (C, C, 3, 3), jnp.float32),
        "b3": 0.1 * jax.random.normal(ks[5], (C,), jnp.float32),
        "w4": 0.1 * jax.random.normal(ks[6], (C, C, 3, 3), jnp.float32),
        "b4": 0.1 * jax.random.normal(ks[7], (C,), jnp.float32),
        "wb": 0.1 * jax.random.normal(ks[8], (C, 3 * C, 1, 1), jnp.float32),
        "bb": 0.1 * jax.random.normal(ks[9], (C,), jnp.float32),
        "alpha": jnp.asarray(0.25, jnp.float32),  # nn.PReLU() default (shared)
    }


if __name__ == "__main__":
    key = jax.random.PRNGKey(0)
    k_x, k_p = jax.random.split(key)

    N, C, H, W = 2, 4, 16, 16
    x = jax.random.normal(k_x, (N, C, H, W), jnp.float32)
    params = _init_params(k_p, C)

    out = jax.jit(cm_residual_block)(x, params)
    out = jax.block_until_ready(out)

    ref = cm_residual_block_ref(x, params)
    assert out.shape == (N, C, H, W)
    assert jnp.allclose(out, ref, atol=1e-4, rtol=1e-4), (
        float(jnp.max(jnp.abs(out - ref))))

    print("KERNEL_OK")
</pallas_src>

<mosaic_0001>
module attributes {stable_mosaic.version = 11 : i64} {
  func.func @_cm_block_kernel(%arg0: i32, %arg1: memref<1x16x16x4xf32, #tpu.memory_space<vmem>>, %arg2: memref<144x4xf32, #tpu.memory_space<vmem>>, %arg3: memref<12x4xf32, #tpu.memory_space<vmem>>, %arg4: memref<5x4xf32, #tpu.memory_space<vmem>>, %arg5: memref<1x1xf32, #tpu.memory_space<smem>>, %arg6: memref<1x16x16x4xf32, #tpu.memory_space<vmem>>, %arg7: memref<18x18x4xf32, #tpu.memory_space<vmem>>) attributes {dimension_semantics = [#tpu.dimension_semantics<parallel>], iteration_bounds = array<i64: 2>, scalar_prefetch = 0 : i64, scratch_operands = 1 : i64, tpu.core_type = #tpu.core_type<tc>, window_params = [{transform_indices = @transform_0, window_bounds = array<i64: 1, 16, 16, 4>}, {pipeline_mode = #tpu.pipeline_mode<synchronous>, transform_indices = @transform_1, window_bounds = array<i64: 144, 4>}, {pipeline_mode = #tpu.pipeline_mode<synchronous>, transform_indices = @transform_2, window_bounds = array<i64: 12, 4>}, {pipeline_mode = #tpu.pipeline_mode<synchronous>, transform_indices = @transform_3, window_bounds = array<i64: 5, 4>}, {transform_indices = @transform_4, window_bounds = array<i64: 1, 1>}, {transform_indices = @transform_5, window_bounds = array<i64: 1, 16, 16, 4>}]} {
    %c0 = arith.constant 0 : index
    %c0_0 = arith.constant 0 : index
    %0 = memref.load %arg5[%c0, %c0_0] : memref<1x1xf32, #tpu.memory_space<smem>>
    %c0_1 = arith.constant 0 : index
    %c0_2 = arith.constant 0 : index
    %c0_3 = arith.constant 0 : index
    %c0_4 = arith.constant 0 : index
    %1 = vector.load %arg1[%c0_1, %c0_2, %c0_3, %c0_4] : memref<1x16x16x4xf32, #tpu.memory_space<vmem>>, vector<1x16x16x4xf32>
    %2 = vector.shape_cast %1 : vector<1x16x16x4xf32> to vector<16x16x4xf32>
    %3 = vector.shape_cast %2 : vector<16x16x4xf32> to vector<256x4xf32>
    %4 = vector.shape_cast %3 : vector<256x4xf32> to vector<16x16x4xf32>
    %c1 = arith.constant 1 : index
    %c1_5 = arith.constant 1 : index
    %c0_6 = arith.constant 0 : index
    %5 = vector.load %arg7[%c1, %c1_5, %c0_6] : memref<18x18x4xf32, #tpu.memory_space<vmem>>, vector<16x16x4xf32>
    tpu.vector_store %arg7[%c1, %c1_5, %c0_6], %4 {strides = array<i32>} : memref<18x18x4xf32, #tpu.memory_space<vmem>>, vector<16x16x4xf32>,
    %c1_7 = arith.constant 1 : index
    %c2 = arith.constant 2 : index
    %c0_8 = arith.constant 0 : index
    %6 = vector.load %arg7[%c1_7, %c2, %c0_8] : memref<18x18x4xf32, #tpu.memory_space<vmem>>, vector<16x1x4xf32>
    %c1_9 = arith.constant 1 : index
    %c0_10 = arith.constant 0 : index
    %c0_11 = arith.constant 0 : index
    %7 = vector.load %arg7[%c1_9, %c0_10, %c0_11] : memref<18x18x4xf32, #tpu.memory_space<vmem>>, vector<16x1x4xf32>
    tpu.vector_store %arg7[%c1_9, %c0_10, %c0_11], %6 {strides = array<i32>} : memref<18x18x4xf32, #tpu.memory_space<vmem>>, vector<16x1x4xf32>,
    %c1_12 = arith.constant 1 : index
    %c15 = arith.constant 15 : index
    %c0_13 = arith.constant 0 : index
    %8 = vector.load %arg7[%c1_12, %c15, %c0_13] : memref<18x18x4xf32, #tpu.memory_space<vmem>>, vector<16x1x4xf32>
    %c1_14 = arith.constant 1 : index
    %c17 = arith.constant 17 : index
    %c0_15 = arith.constant 0 : index
    %9 = vector.load %arg7[%c1_14, %c17, %c0_15] : memref<18x18x4xf32, #tpu.memory_space<vmem>>, vector<16x1x4xf32>
    tpu.vector_store %arg7[%c1_14, %c17, %c0_15], %8 {strides = array<i32>} : memref<18x18x4xf32, #tpu.memory_space<vmem>>, vector<16x1x4xf32>,
    %c2_16 = arith.constant 2 : index
    %c0_17 = arith.constant 0 : index
    %c0_18 = arith.constant 0 : index
    %10 = vector.load %arg7[%c2_16, %c0_17, %c0_18] : memref<18x18x4xf32, #tpu.memory_space<vmem>>, vector<1x18x4xf32>
    %c0_19 = arith.constant 0 : index
    %c0_20 = arith.constant 0 : index
    %c0_21 = arith.constant 0 : index
    %11 = vector.load %arg7[%c0_19, %c0_20, %c0_21] : memref<18x18x4xf32, #tpu.memory_space<vmem>>, vector<1x18x4xf32>
    tpu.vector_store %arg7[%c0_19, %c0_20, %c0_21], %10 {strides = array<i32>} : memref<18x18x4xf32, #tpu.memory_space<vmem>>, vector<1x18x4xf32>,
    %c15_22 = arith.constant 15 : index
    %c0_23 = arith.constant 0 : index
    %c0_24 = arith.constant 0 : index
    %12 = vector.load %arg7[%c15_22, %c0_23, %c0_24] : memref<18x18x4xf32, #tpu.memory_space<vmem>>, vector<1x18x4xf32>
    %c17_25 = arith.constant 17 : index
    %c0_26 = arith.constant 0 : index
    %c0_27 = arith.constant 0 : index
    %13 = vector.load %arg7[%c17_25, %c0_26, %c0_27] : memref<18x18x4xf32, #tpu.memory_space<vmem>>, vector<1x18x4xf32>
    tpu.vector_store %arg7[%c17_25, %c0_26, %c0_27], %12 {strides = array<i32>} : memref<18x18x4xf32, #tpu.memory_space<vmem>>, vector<1x18x4xf32>,
    %cst = arith.constant 0.000000e+00 : f32
    %14 = vector.broadcast %cst : f32 to vector<256x4xf32>
    %c0_28 = arith.constant 0 : index
    %c0_29 = arith.constant 0 : index
    %15 = vector.load %arg2[%c0_28, %c0_29] : memref<144x4xf32, #tpu.memory_space<vmem>>, vector<4x4xf32>
    %c0_30 = arith.constant 0 : index
    %c0_31 = arith.constant 0 : index
    %c0_32 = arith.constant 0 : index
    %16 = vector.load %arg7[%c0_30, %c0_31, %c0_32] : memref<18x18x4xf32, #tpu.memory_space<vmem>>, vector<16x16x4xf32>
    %17 = vector.shape_cast %16 : vector<16x16x4xf32> to vector<256x4xf32>
    %cst_33 = arith.constant dense<0.000000e+00> : vector<256x4xf32>
    %18 = tpu.matmul %17, %15, %cst_33 {dimension_numbers = #tpu.dot_dimension_numbers<[1], [0], [0], [1], [0, 0, 1, 1], [], []>} : vector<256x4xf32>, vector<4x4xf32>, vector<256x4xf32> -> vector<256x4xf32>
    %19 = arith.addf %14, %18 : vector<256x4xf32>
    %c4 = arith.constant 4 : index
    %c0_34 = arith.constant 0 : index
    %20 = vector.load %arg2[%c4, %c0_34] : memref<144x4xf32, #tpu.memory_space<vmem>>, vector<4x4xf32>
    %c0_35 = arith.constant 0 : index
    %c1_36 = arith.constant 1 : index
    %c0_37 = arith.constant 0 : index
    %21 = vector.load %arg7[%c0_35, %c1_36, %c0_37] : memref<18x18x4xf32, #tpu.memory_space<vmem>>, vector<16x16x4xf32>
    %22 = vector.shape_cast %21 : vector<16x16x4xf32> to vector<256x4xf32>
    %cst_38 = arith.constant dense<0.000000e+00> : vector<256x4xf32>
    %23 = tpu.matmul %22, %20, %cst_38 {dimension_numbers = #tpu.dot_dimension_numbers<[1], [0], [0], [1], [0, 0, 1, 1], [], []>} : vector<256x4xf32>, vector<4x4xf32>, vector<256x4xf32> -> vector<256x4xf32>
    %24 = arith.addf %19, %23 : vector<256x4xf32>
    %c8 = arith.constant 8 : index
    %c0_39 = arith.constant 0 : index
    %25 = vector.load %arg2[%c8, %c0_39] : memref<144x4xf32, #tpu.memory_space<vmem>>, vector<4x4xf32>
    %c0_40 = arith.constant 0 : index
    %c2_41 = arith.constant 2 : index
    %c0_42 = arith.constant 0 : index
    %26 = vector.load %arg7[%c0_40, %c2_41, %c0_42] : memref<18x18x4xf32, #tpu.memory_space<vmem>>, vector<16x16x4xf32>
    %27 = vector.shape_cast %26 : vector<16x16x4xf32> to vector<256x4xf32>
    %cst_43 = arith.constant dense<0.000000e+00> : vector<256x4xf32>
    %28 = tpu.matmul %27, %25, %cst_43 {dimension_numbers = #tpu.dot_dimension_numbers<[1], [0], [0], [1], [0, 0, 1, 1], [], []>} : vector<256x4xf32>, vector<4x4xf32>, vector<256x4xf32> -> vector<256x4xf32>
    %29 = arith.addf %24, %28 : vector<256x4xf32>
    %c12 = arith.constant 12 : index
    %c0_44 = arith.constant 0 : index
    %30 = vector.load %arg2[%c12, %c0_44] : memref<144x4xf32, #tpu.memory_space<vmem>>, vector<4x4xf32>
    %c1_45 = arith.constant 1 : index
    %c0_46 = arith.constant 0 : index
    %c0_47 = arith.constant 0 : index
    %31 = vector.load %arg7[%c1_45, %c0_46, %c0_47] : memref<18x18x4xf32, #tpu.memory_space<vmem>>, vector<16x16x4xf32>
    %32 = vector.shape_cast %31 : vector<16x16x4xf32> to vector<256x4xf32>
    %cst_48 = arith.constant dense<0.000000e+00> : vector<256x4xf32>
    %33 = tpu.matmul %32, %30, %cst_48 {dimension_numbers = #tpu.dot_dimension_numbers<[1], [0], [0], [1], [0, 0, 1, 1], [], []>} : vector<256x4xf32>, vector<4x4xf32>, vector<256x4xf32> -> vector<256x4xf32>
    %34 = arith.addf %29, %33 : vector<256x4xf32>
    %c16 = arith.constant 16 : index
    %c0_49 = arith.constant 0 : index
    %35 = vector.load %arg2[%c16, %c0_49] : memref<144x4xf32, #tpu.memory_space<vmem>>, vector<4x4xf32>
    %c1_50 = arith.constant 1 : index
    %c1_51 = arith.constant 1 : index
    %c0_52 = arith.constant 0 : index
    %36 = vector.load %arg7[%c1_50, %c1_51, %c0_52] : memref<18x18x4xf32, #tpu.memory_space<vmem>>, vector<16x16x4xf32>
    %37 = vector.shape_cast %36 : vector<16x16x4xf32> to vector<256x4xf32>
    %cst_53 = arith.constant dense<0.000000e+00> : vector<256x4xf32>
    %38 = tpu.matmul %37, %35, %cst_53 {dimension_numbers = #tpu.dot_dimension_numbers<[1], [0], [0], [1], [0, 0, 1, 1], [], []>} : vector<256x4xf32>, vector<4x4xf32>, vector<256x4xf32> -> vector<256x4xf32>
    %39 = arith.addf %34, %38 : vector<256x4xf32>
    %c20 = arith.constant 20 : index
    %c0_54 = arith.constant 0 : index
    %40 = vector.load %arg2[%c20, %c0_54] : memref<144x4xf32, #tpu.memory_space<vmem>>, vector<4x4xf32>
    %c1_55 = arith.constant 1 : index
    %c2_56 = arith.constant 2 : index
    %c0_57 = arith.constant 0 : index
    %41 = vector.load %arg7[%c1_55, %c2_56, %c0_57] : memref<18x18x4xf32, #tpu.memory_space<vmem>>, vector<16x16x4xf32>
    %42 = vector.shape_cast %41 : vector<16x16x4xf32> to vector<256x4xf32>
    %cst_58 = arith.constant dense<0.000000e+00> : vector<256x4xf32>
    %43 = tpu.matmul %42, %40, %cst_58 {dimension_numbers = #tpu.dot_dimension_numbers<[1], [0], [0], [1], [0, 0, 1, 1], [], []>} : vector<256x4xf32>, vector<4x4xf32>, vector<256x4xf32> -> vector<256x4xf32>
    %44 = arith.addf %39, %43 : vector<256x4xf32>
    %c24 = arith.constant 24 : index
    %c0_59 = arith.constant 0 : index
    %45 = vector.load %arg2[%c24, %c0_59] : memref<144x4xf32, #tpu.memory_space<vmem>>, vector<4x4xf32>
    %c2_60 = arith.constant 2 : index
    %c0_61 = arith.constant 0 : index
    %c0_62 = arith.constant 0 : index
    %46 = vector.load %arg7[%c2_60, %c0_61, %c0_62] : memref<18x18x4xf32, #tpu.memory_space<vmem>>, vector<16x16x4xf32>
    %47 = vector.shape_cast %46 : vector<16x16x4xf32> to vector<256x4xf32>
    %cst_63 = arith.constant dense<0.000000e+00> : vector<256x4xf32>
    %48 = tpu.matmul %47, %45, %cst_63 {dimension_numbers = #tpu.dot_dimension_numbers<[1], [0], [0], [1], [0, 0, 1, 1], [], []>} : vector<256x4xf32>, vector<4x4xf32>, vector<256x4xf32> -> vector<256x4xf32>
    %49 = arith.addf %44, %48 : vector<256x4xf32>
    %c28 = arith.constant 28 : index
    %c0_64 = arith.constant 0 : index
    %50 = vector.load %arg2[%c28, %c0_64] : memref<144x4xf32, #tpu.memory_space<vmem>>, vector<4x4xf32>
    %c2_65 = arith.constant 2 : index
    %c1_66 = arith.constant 1 : index
    %c0_67 = arith.constant 0 : index
    %51 = vector.load %arg7[%c2_65, %c1_66, %c0_67] : memref<18x18x4xf32, #tpu.memory_space<vmem>>, vector<16x16x4xf32>
    %52 = vector.shape_cast %51 : vector<16x16x4xf32> to vector<256x4xf32>
    %cst_68 = arith.constant dense<0.000000e+00> : vector<256x4xf32>
    %53 = tpu.matmul %52, %50, %cst_68 {dimension_numbers = #tpu.dot_dimension_numbers<[1], [0], [0], [1], [0, 0, 1, 1], [], []>} : vector<256x4xf32>, vector<4x4xf32>, vector<256x4xf32> -> vector<256x4xf32>
    %54 = arith.addf %49, %53 : vector<256x4xf32>
    %c32 = arith.constant 32 : index
    %c0_69 = arith.constant 0 : index
    %55 = vector.load %arg2[%c32, %c0_69] : memref<144x4xf32, #tpu.memory_space<vmem>>, vector<4x4xf32>
    %c2_70 = arith.constant 2 : index
    %c2_71 = arith.constant 2 : index
    %c0_72 = arith.constant 0 : index
    %56 = vector.load %arg7[%c2_70, %c2_71, %c0_72] : memref<18x18x4xf32, #tpu.memory_space<vmem>>, vector<16x16x4xf32>
    %57 = vector.shape_cast %56 : vector<16x16x4xf32> to vector<256x4xf32>
    %cst_73 = arith.constant dense<0.000000e+00> : vector<256x4xf32>
    %58 = tpu.matmul %57, %55, %cst_73 {dimension_numbers = #tpu.dot_dimension_numbers<[1], [0], [0], [1], [0, 0, 1, 1], [], []>} : vector<256x4xf32>, vector<4x4xf32>, vector<256x4xf32> -> vector<256x4xf32>
    %59 = arith.addf %54, %58 : vector<256x4xf32>
    %c0_74 = arith.constant 0 : index
    %c0_75 = arith.constant 0 : index
    %60 = vector.load %arg4[%c0_74, %c0_75] : memref<5x4xf32, #tpu.memory_space<vmem>>, vector<1x4xf32>
    %61 = vector.broadcast %60 : vector<1x4xf32> to vector<256x4xf32>
    %62 = arith.addf %59, %61 : vector<256x4xf32>
    %cst_76 = arith.constant 0.000000e+00 : f32
    %63 = vector.broadcast %cst_76 : f32 to vector<256x4xf32>
    %64 = arith.cmpf oge, %62, %63 : vector<256x4xf32>
    %65 = vector.broadcast %0 : f32 to vector<256x4xf32>
    %66 = arith.mulf %65, %62 : vector<256x4xf32>
    %67 = arith.select %64, %62, %66 : vector<256x4xi1>, vector<256x4xf32>
    %68 = vector.shape_cast %67 : vector<256x4xf32> to vector<16x16x4xf32>
    %c1_77 = arith.constant 1 : index
    %c1_78 = arith.constant 1 : index
    %c0_79 = arith.constant 0 : index
    %69 = vector.load %arg7[%c1_77, %c1_78, %c0_79] : memref<18x18x4xf32, #tpu.memory_space<vmem>>, vector<16x16x4xf32>
    tpu.vector_store %arg7[%c1_77, %c1_78, %c0_79], %68 {strides = array<i32>} : memref<18x18x4xf32, #tpu.memory_space<vmem>>, vector<16x16x4xf32>,
    %c1_80 = arith.constant 1 : index
    %c2_81 = arith.constant 2 : index
    %c0_82 = arith.constant 0 : index
    %70 = vector.load %arg7[%c1_80, %c2_81, %c0_82] : memref<18x18x4xf32, #tpu.memory_space<vmem>>, vector<16x1x4xf32>
    %c1_83 = arith.constant 1 : index
    %c0_84 = arith.constant 0 : index
    %c0_85 = arith.constant 0 : index
    %71 = vector.load %arg7[%c1_83, %c0_84, %c0_85] : memref<18x18x4xf32, #tpu.memory_space<vmem>>, vector<16x1x4xf32>
    tpu.vector_store %arg7[%c1_83, %c0_84, %c0_85], %70 {strides = array<i32>} : memref<18x18x4xf32, #tpu.memory_space<vmem>>, vector<16x1x4xf32>,
    %c1_86 = arith.constant 1 : index
    %c15_87 = arith.constant 15 : index
    %c0_88 = arith.constant 0 : index
    %72 = vector.load %arg7[%c1_86, %c15_87, %c0_88] : memref<18x18x4xf32, #tpu.memory_space<vmem>>, vector<16x1x4xf32>
    %c1_89 = arith.constant 1 : index
    %c17_90 = arith.constant 17 : index
    %c0_91 = arith.constant 0 : index
    %73 = vector.load %arg7[%c1_89, %c17_90, %c0_91] : memref<18x18x4xf32, #tpu.memory_space<vmem>>, vector<16x1x4xf32>
    tpu.vector_store %arg7[%c1_89, %c17_90, %c0_91], %72 {strides = array<i32>} : memref<18x18x4xf32, #tpu.memory_space<vmem>>, vector<16x1x4xf32>,
    %c2_92 = arith.constant 2 : index
    %c0_93 = arith.constant 0 : index
    %c0_94 = arith.constant 0 : index
    %74 = vector.load %arg7[%c2_92, %c0_93, %c0_94] : memref<18x18x4xf32, #tpu.memory_space<vmem>>, vector<1x18x4xf32>
    %c0_95 = arith.constant 0 : index
    %c0_96 = arith.constant 0 : index
    %c0_97 = arith.constant 0 : index
    %75 = vector.load %arg7[%c0_95, %c0_96, %c0_97] : memref<18x18x4xf32, #tpu.memory_space<vmem>>, vector<1x18x4xf32>
    tpu.vector_store %arg7[%c0_95, %c0_96, %c0_97], %74 {strides = array<i32>} : memref<18x18x4xf32, #tpu.memory_space<vmem>>, vector<1x18x4xf32>,
    %c15_98 = arith.constant 15 : index
    %c0_99 = arith.constant 0 : index
    %c0_100 = arith.constant 0 : index
    %76 = vector.load %arg7[%c15_98, %c0_99, %c0_100] : memref<18x18x4xf32, #tpu.memory_space<vmem>>, vector<1x18x4xf32>
    %c17_101 = arith.constant 17 : index
    %c0_102 = arith.constant 0 : index
    %c0_103 = arith.constant 0 : index
    %77 = vector.load %arg7[%c17_101, %c0_102, %c0_103] : memref<18x18x4xf32, #tpu.memory_space<vmem>>, vector<1x18x4xf32>
    tpu.vector_store %arg7[%c17_101, %c0_102, %c0_103], %76 {strides = array<i32>} : memref<18x18x4xf32, #tpu.memory_space<vmem>>, vector<1x18x4xf32>,
    %cst_104 = arith.constant 0.000000e+00 : f32
    %78 = vector.broadcast %cst_104 : f32 to vector<256x4xf32>
    %c36 = arith.constant 36 : index
    %c0_105 = arith.constant 0 : index
    %79 = vector.load %arg2[%c36, %c0_105] : memref<144x4xf32, #tpu.memory_space<vmem>>, vector<4x4xf32>
    %c0_106 = arith.constant 0 : index
    %c0_107 = arith.constant 0 : index
    %c0_108 = arith.constant 0 : index
    %80 = vector.load %arg7[%c0_106, %c0_107, %c0_108] : memref<18x18x4xf32, #tpu.memory_space<vmem>>, vector<16x16x4xf32>
    %81 = vector.shape_cast %80 : vector<16x16x4xf32> to vector<256x4xf32>
    %cst_109 = arith.constant dense<0.000000e+00> : vector<256x4xf32>
    %82 = tpu.matmul %81, %79, %cst_109 {dimension_numbers = #tpu.dot_dimension_numbers<[1], [0], [0], [1], [0, 0, 1, 1], [], []>} : vector<256x4xf32>, vector<4x4xf32>, vector<256x4xf32> -> vector<256x4xf32>
    %83 = arith.addf %78, %82 : vector<256x4xf32>
    %c40 = arith.constant 40 : index
    %c0_110 = arith.constant 0 : index
    %84 = vector.load %arg2[%c40, %c0_110] : memref<144x4xf32, #tpu.memory_space<vmem>>, vector<4x4xf32>
    %c0_111 = arith.constant 0 : index
    %c1_112 = arith.constant 1 : index
    %c0_113 = arith.constant 0 : index
    %85 = vector.load %arg7[%c0_111, %c1_112, %c0_113] : memref<18x18x4xf32, #tpu.memory_space<vmem>>, vector<16x16x4xf32>
    %86 = vector.shape_cast %85 : vector<16x16x4xf32> to vector<256x4xf32>
    %cst_114 = arith.constant dense<0.000000e+00> : vector<256x4xf32>
    %87 = tpu.matmul %86, %84, %cst_114 {dimension_numbers = #tpu.dot_dimension_numbers<[1], [0], [0], [1], [0, 0, 1, 1], [], []>} : vector<256x4xf32>, vector<4x4xf32>, vector<256x4xf32> -> vector<256x4xf32>
    %88 = arith.addf %83, %87 : vector<256x4xf32>
    %c44 = arith.constant 44 : index
    %c0_115 = arith.constant 0 : index
    %89 = vector.load %arg2[%c44, %c0_115] : memref<144x4xf32, #tpu.memory_space<vmem>>, vector<4x4xf32>
    %c0_116 = arith.constant 0 : index
    %c2_117 = arith.constant 2 : index
    %c0_118 = arith.constant 0 : index
    %90 = vector.load %arg7[%c0_116, %c2_117, %c0_118] : memref<18x18x4xf32, #tpu.memory_space<vmem>>, vector<16x16x4xf32>
    %91 = vector.shape_cast %90 : vector<16x16x4xf32> to vector<256x4xf32>
    %cst_119 = arith.constant dense<0.000000e+00> : vector<256x4xf32>
    %92 = tpu.matmul %91, %89, %cst_119 {dimension_numbers = #tpu.dot_dimension_numbers<[1], [0], [0], [1], [0, 0, 1, 1], [], []>} : vector<256x4xf32>, vector<4x4xf32>, vector<256x4xf32> -> vector<256x4xf32>
    %93 = arith.addf %88, %92 : vector<256x4xf32>
    %c48 = arith.constant 48 : index
    %c0_120 = arith.constant 0 : index
    %94 = vector.load %arg2[%c48, %c0_120] : memref<144x4xf32, #tpu.memory_space<vmem>>, vector<4x4xf32>
    %c1_121 = arith.constant 1 : index
    %c0_122 = arith.constant 0 : index
    %c0_123 = arith.constant 0 : index
    %95 = vector.load %arg7[%c1_121, %c0_122, %c0_123] : memref<18x18x4xf32, #tpu.memory_space<vmem>>, vector<16x16x4xf32>
    %96 = vector.shape_cast %95 : vector<16x16x4xf32> to vector<256x4xf32>
    %cst_124 = arith.constant dense<0.000000e+00> : vector<256x4xf32>
    %97 = tpu.matmul %96, %94, %cst_124 {dimension_numbers = #tpu.dot_dimension_numbers<[1], [0], [0], [1], [0, 0, 1, 1], [], []>} : vector<256x4xf32>, vector<4x4xf32>, vector<256x4xf32> -> vector<256x4xf32>
    %98 = arith.addf %93, %97 : vector<256x4xf32>
    %c52 = arith.constant 52 : index
    %c0_125 = arith.constant 0 : index
    %99 = vector.load %arg2[%c52, %c0_125] : memref<144x4xf32, #tpu.memory_space<vmem>>, vector<4x4xf32>
    %c1_126 = arith.constant 1 : index
    %c1_127 = arith.constant 1 : index
    %c0_128 = arith.constant 0 : index
    %100 = vector.load %arg7[%c1_126, %c1_127, %c0_128] : memref<18x18x4xf32, #tpu.memory_space<vmem>>, vector<16x16x4xf32>
    %101 = vector.shape_cast %100 : vector<16x16x4xf32> to vector<256x4xf32>
    %cst_129 = arith.constant dense<0.000000e+00> : vector<256x4xf32>
    %102 = tpu.matmul %101, %99, %cst_129 {dimension_numbers = #tpu.dot_dimension_numbers<[1], [0], [0], [1], [0, 0, 1, 1], [], []>} : vector<256x4xf32>, vector<4x4xf32>, vector<256x4xf32> -> vector<256x4xf32>
    %103 = arith.addf %98, %102 : vector<256x4xf32>
    %c56 = arith.constant 56 : index
    %c0_130 = arith.constant 0 : index
    %104 = vector.load %arg2[%c56, %c0_130] : memref<144x4xf32, #tpu.memory_space<vmem>>, vector<4x4xf32>
    %c1_131 = arith.constant 1 : index
    %c2_132 = arith.constant 2 : index
    %c0_133 = arith.constant 0 : index
    %105 = vector.load %arg7[%c1_131, %c2_132, %c0_133] : memref<18x18x4xf32, #tpu.memory_space<vmem>>, vector<16x16x4xf32>
    %106 = vector.shape_cast %105 : vector<16x16x4xf32> to vector<256x4xf32>
    %cst_134 = arith.constant dense<0.000000e+00> : vector<256x4xf32>
    %107 = tpu.matmul %106, %104, %cst_134 {dimension_numbers = #tpu.dot_dimension_numbers<[1], [0], [0], [1], [0, 0, 1, 1], [], []>} : vector<256x4xf32>, vector<4x4xf32>, vector<256x4xf32> -> vector<256x4xf32>
    %108 = arith.addf %103, %107 : vector<256x4xf32>
    %c60 = arith.constant 60 : index
    %c0_135 = arith.constant 0 : index
    %109 = vector.load %arg2[%c60, %c0_135] : memref<144x4xf32, #tpu.memory_space<vmem>>, vector<4x4xf32>
    %c2_136 = arith.constant 2 : index
    %c0_137 = arith.constant 0 : index
    %c0_138 = arith.constant 0 : index
    %110 = vector.load %arg7[%c2_136, %c0_137, %c0_138] : memref<18x18x4xf32, #tpu.memory_space<vmem>>, vector<16x16x4xf32>
    %111 = vector.shape_cast %110 : vector<16x16x4xf32> to vector<256x4xf32>
    %cst_139 = arith.constant dense<0.000000e+00> : vector<256x4xf32>
    %112 = tpu.matmul %111, %109, %cst_139 {dimension_numbers = #tpu.dot_dimension_numbers<[1], [0], [0], [1], [0, 0, 1, 1], [], []>} : vector<256x4xf32>, vector<4x4xf32>, vector<256x4xf32> -> vector<256x4xf32>
    %113 = arith.addf %108, %112 : vector<256x4xf32>
    %c64 = arith.constant 64 : index
    %c0_140 = arith.constant 0 : index
    %114 = vector.load %arg2[%c64, %c0_140] : memref<144x4xf32, #tpu.memory_space<vmem>>, vector<4x4xf32>
    %c2_141 = arith.constant 2 : index
    %c1_142 = arith.constant 1 : index
    %c0_143 = arith.constant 0 : index
    %115 = vector.load %arg7[%c2_141, %c1_142, %c0_143] : memref<18x18x4xf32, #tpu.memory_space<vmem>>, vector<16x16x4xf32>
    %116 = vector.shape_cast %115 : vector<16x16x4xf32> to vector<256x4xf32>
    %cst_144 = arith.constant dense<0.000000e+00> : vector<256x4xf32>
    %117 = tpu.matmul %116, %114, %cst_144 {dimension_numbers = #tpu.dot_dimension_numbers<[1], [0], [0], [1], [0, 0, 1, 1], [], []>} : vector<256x4xf32>, vector<4x4xf32>, vector<256x4xf32> -> vector<256x4xf32>
    %118 = arith.addf %113, %117 : vector<256x4xf32>
    %c68 = arith.constant 68 : index
    %c0_145 = arith.constant 0 : index
    %119 = vector.load %arg2[%c68, %c0_145] : memref<144x4xf32, #tpu.memory_space<vmem>>, vector<4x4xf32>
    %c2_146 = arith.constant 2 : index
    %c2_147 = arith.constant 2 : index
    %c0_148 = arith.constant 0 : index
    %120 = vector.load %arg7[%c2_146, %c2_147, %c0_148] : memref<18x18x4xf32, #tpu.memory_space<vmem>>, vector<16x16x4xf32>
    %121 = vector.shape_cast %120 : vector<16x16x4xf32> to vector<256x4xf32>
    %cst_149 = arith.constant dense<0.000000e+00> : vector<256x4xf32>
    %122 = tpu.matmul %121, %119, %cst_149 {dimension_numbers = #tpu.dot_dimension_numbers<[1], [0], [0], [1], [0, 0, 1, 1], [], []>} : vector<256x4xf32>, vector<4x4xf32>, vector<256x4xf32> -> vector<256x4xf32>
    %123 = arith.addf %118, %122 : vector<256x4xf32>
    %c1_150 = arith.constant 1 : index
    %c0_151 = arith.constant 0 : index
    %124 = vector.load %arg4[%c1_150, %c0_151] : memref<5x4xf32, #tpu.memory_space<vmem>>, vector<1x4xf32>
    %125 = vector.broadcast %124 : vector<1x4xf32> to vector<256x4xf32>
    %126 = arith.addf %123, %125 : vector<256x4xf32>
    %127 = arith.addf %126, %3 : vector<256x4xf32>
    %128 = vector.shape_cast %127 : vector<256x4xf32> to vector<16x16x4xf32>
    %c1_152 = arith.constant 1 : index
    %c1_153 = arith.constant 1 : index
    %c0_154 = arith.constant 0 : index
    %129 = vector.load %arg7[%c1_152, %c1_153, %c0_154] : memref<18x18x4xf32, #tpu.memory_space<vmem>>, vector<16x16x4xf32>
    tpu.vector_store %arg7[%c1_152, %c1_153, %c0_154], %128 {strides = array<i32>} : memref<18x18x4xf32, #tpu.memory_space<vmem>>, vector<16x16x4xf32>,
    %c1_155 = arith.constant 1 : index
    %c2_156 = arith.constant 2 : index
    %c0_157 = arith.constant 0 : index
    %130 = vector.load %arg7[%c1_155, %c2_156, %c0_157] : memref<18x18x4xf32, #tpu.memory_space<vmem>>, vector<16x1x4xf32>
    %c1_158 = arith.constant 1 : index
    %c0_159 = arith.constant 0 : index
    %c0_160 = arith.constant 0 : index
    %131 = vector.load %arg7[%c1_158, %c0_159, %c0_160] : memref<18x18x4xf32, #tpu.memory_space<vmem>>, vector<16x1x4xf32>
    tpu.vector_store %arg7[%c1_158, %c0_159, %c0_160], %130 {strides = array<i32>} : memref<18x18x4xf32, #tpu.memory_space<vmem>>, vector<16x1x4xf32>,
    %c1_161 = arith.constant 1 : index
    %c15_162 = arith.constant 15 : index
    %c0_163 = arith.constant 0 : index
    %132 = vector.load %arg7[%c1_161, %c15_162, %c0_163] : memref<18x18x4xf32, #tpu.memory_space<vmem>>, vector<16x1x4xf32>
    %c1_164 = arith.constant 1 : index
    %c17_165 = arith.constant 17 : index
    %c0_166 = arith.constant 0 : index
    %133 = vector.load %arg7[%c1_164, %c17_165, %c0_166] : memref<18x18x4xf32, #tpu.memory_space<vmem>>, vector<16x1x4xf32>
    tpu.vector_store %arg7[%c1_164, %c17_165, %c0_166], %132 {strides = array<i32>} : memref<18x18x4xf32, #tpu.memory_space<vmem>>, vector<16x1x4xf32>,
    %c2_167 = arith.constant 2 : index
    %c0_168 = arith.constant 0 : index
    %c0_169 = arith.constant 0 : index
    %134 = vector.load %arg7[%c2_167, %c0_168, %c0_169] : memref<18x18x4xf32, #tpu.memory_space<vmem>>, vector<1x18x4xf32>
    %c0_170 = arith.constant 0 : index
    %c0_171 = arith.constant 0 : index
    %c0_172 = arith.constant 0 : index
    %135 = vector.load %arg7[%c0_170, %c0_171, %c0_172] : memref<18x18x4xf32, #tpu.memory_space<vmem>>, vector<1x18x4xf32>
    tpu.vector_store %arg7[%c0_170, %c0_171, %c0_172], %134 {strides = array<i32>} : memref<18x18x4xf32, #tpu.memory_space<vmem>>, vector<1x18x4xf32>,
    %c15_173 = arith.constant 15 : index
    %c0_174 = arith.constant 0 : index
    %c0_175 = arith.constant 0 : index
    %136 = vector.load %arg7[%c15_173, %c0_174, %c0_175] : memref<18x18x4xf32, #tpu.memory_space<vmem>>, vector<1x18x4xf32>
    %c17_176 = arith.constant 17 : index
    %c0_177 = arith.constant 0 : index
    %c0_178 = arith.constant 0 : index
    %137 = vector.load %arg7[%c17_176, %c0_177, %c0_178] : memref<18x18x4xf32, #tpu.memory_space<vmem>>, vector<1x18x4xf32>
    tpu.vector_store %arg7[%c17_176, %c0_177, %c0_178], %136 {strides = array<i32>} : memref<18x18x4xf32, #tpu.memory_space<vmem>>, vector<1x18x4xf32>,
    %cst_179 = arith.constant 0.000000e+00 : f32
    %138 = vector.broadcast %cst_179 : f32 to vector<256x4xf32>
    %c72 = arith.constant 72 : index
    %c0_180 = arith.constant 0 : index
    %139 = vector.load %arg2[%c72, %c0_180] : memref<144x4xf32, #tpu.memory_space<vmem>>, vector<4x4xf32>
    %c0_181 = arith.constant 0 : index
    %c0_182 = arith.constant 0 : index
    %c0_183 = arith.constant 0 : index
    %140 = vector.load %arg7[%c0_181, %c0_182, %c0_183] : memref<18x18x4xf32, #tpu.memory_space<vmem>>, vector<16x16x4xf32>
    %141 = vector.shape_cast %140 : vector<16x16x4xf32> to vector<256x4xf32>
    %cst_184 = arith.constant dense<0.000000e+00> : vector<256x4xf32>
    %142 = tpu.matmul %141, %139, %cst_184 {dimension_numbers = #tpu.dot_dimension_numbers<[1], [0], [0], [1], [0, 0, 1, 1], [], []>} : vector<256x4xf32>, vector<4x4xf32>, vector<256x4xf32> -> vector<256x4xf32>
    %143 = arith.addf %138, %142 : vector<256x4xf32>
    %c76 = arith.constant 76 : index
    %c0_185 = arith.constant 0 : index
    %144 = vector.load %arg2[%c76, %c0_185] : memref<144x4xf32, #tpu.memory_space<vmem>>, vector<4x4xf32>
    %c0_186 = arith.constant 0 : index
    %c1_187 = arith.constant 1 : index
    %c0_188 = arith.constant 0 : index
    %145 = vector.load %arg7[%c0_186, %c1_187, %c0_188] : memref<18x18x4xf32, #tpu.memory_space<vmem>>, vector<16x16x4xf32>
    %146 = vector.shape_cast %145 : vector<16x16x4xf32> to vector<256x4xf32>
    %cst_189 = arith.constant dense<0.000000e+00> : vector<256x4xf32>
    %147 = tpu.matmul %146, %144, %cst_189 {dimension_numbers = #tpu.dot_dimension_numbers<[1], [0], [0], [1], [0, 0, 1, 1], [], []>} : vector<256x4xf32>, vector<4x4xf32>, vector<256x4xf32> -> vector<256x4xf32>
    %148 = arith.addf %143, %147 : vector<256x4xf32>
    %c80 = arith.constant 80 : index
    %c0_190 = arith.constant 0 : index
    %149 = vector.load %arg2[%c80, %c0_190] : memref<144x4xf32, #tpu.memory_space<vmem>>, vector<4x4xf32>
    %c0_191 = arith.constant 0 : index
    %c2_192 = arith.constant 2 : index
    %c0_193 = arith.constant 0 : index
    %150 = vector.load %arg7[%c0_191, %c2_192, %c0_193] : memref<18x18x4xf32, #tpu.memory_space<vmem>>, vector<16x16x4xf32>
    %151 = vector.shape_cast %150 : vector<16x16x4xf32> to vector<256x4xf32>
    %cst_194 = arith.constant dense<0.000000e+00> : vector<256x4xf32>
    %152 = tpu.matmul %151, %149, %cst_194 {dimension_numbers = #tpu.dot_dimension_numbers<[1], [0], [0], [1], [0, 0, 1, 1], [], []>} : vector<256x4xf32>, vector<4x4xf32>, vector<256x4xf32> -> vector<256x4xf32>
    %153 = arith.addf %148, %152 : vector<256x4xf32>
    %c84 = arith.constant 84 : index
    %c0_195 = arith.constant 0 : index
    %154 = vector.load %arg2[%c84, %c0_195] : memref<144x4xf32, #tpu.memory_space<vmem>>, vector<4x4xf32>
    %c1_196 = arith.constant 1 : index
    %c0_197 = arith.constant 0 : index
    %c0_198 = arith.constant 0 : index
    %155 = vector.load %arg7[%c1_196, %c0_197, %c0_198] : memref<18x18x4xf32, #tpu.memory_space<vmem>>, vector<16x16x4xf32>
    %156 = vector.shape_cast %155 : vector<16x16x4xf32> to vector<256x4xf32>
    %cst_199 = arith.constant dense<0.000000e+00> : vector<256x4xf32>
    %157 = tpu.matmul %156, %154, %cst_199 {dimension_numbers = #tpu.dot_dimension_numbers<[1], [0], [0], [1], [0, 0, 1, 1], [], []>} : vector<256x4xf32>, vector<4x4xf32>, vector<256x4xf32> -> vector<256x4xf32>
    %158 = arith.addf %153, %157 : vector<256x4xf32>
    %c88 = arith.constant 88 : index
    %c0_200 = arith.constant 0 : index
    %159 = vector.load %arg2[%c88, %c0_200] : memref<144x4xf32, #tpu.memory_space<vmem>>, vector<4x4xf32>
    %c1_201 = arith.constant 1 : index
    %c1_202 = arith.constant 1 : index
    %c0_203 = arith.constant 0 : index
    %160 = vector.load %arg7[%c1_201, %c1_202, %c0_203] : memref<18x18x4xf32, #tpu.memory_space<vmem>>, vector<16x16x4xf32>
    %161 = vector.shape_cast %160 : vector<16x16x4xf32> to vector<256x4xf32>
    %cst_204 = arith.constant dense<0.000000e+00> : vector<256x4xf32>
    %162 = tpu.matmul %161, %159, %cst_204 {dimension_numbers = #tpu.dot_dimension_numbers<[1], [0], [0], [1], [0, 0, 1, 1], [], []>} : vector<256x4xf32>, vector<4x4xf32>, vector<256x4xf32> -> vector<256x4xf32>
    %163 = arith.addf %158, %162 : vector<256x4xf32>
    %c92 = arith.constant 92 : index
    %c0_205 = arith.constant 0 : index
    %164 = vector.load %arg2[%c92, %c0_205] : memref<144x4xf32, #tpu.memory_space<vmem>>, vector<4x4xf32>
    %c1_206 = arith.constant 1 : index
    %c2_207 = arith.constant 2 : index
    %c0_208 = arith.constant 0 : index
    %165 = vector.load %arg7[%c1_206, %c2_207, %c0_208] : memref<18x18x4xf32, #tpu.memory_space<vmem>>, vector<16x16x4xf32>
    %166 = vector.shape_cast %165 : vector<16x16x4xf32> to vector<256x4xf32>
    %cst_209 = arith.constant dense<0.000000e+00> : vector<256x4xf32>
    %167 = tpu.matmul %166, %164, %cst_209 {dimension_numbers = #tpu.dot_dimension_numbers<[1], [0], [0], [1], [0, 0, 1, 1], [], []>} : vector<256x4xf32>, vector<4x4xf32>, vector<256x4xf32> -> vector<256x4xf32>
    %168 = arith.addf %163, %167 : vector<256x4xf32>
    %c96 = arith.constant 96 : index
    %c0_210 = arith.constant 0 : index
    %169 = vector.load %arg2[%c96, %c0_210] : memref<144x4xf32, #tpu.memory_space<vmem>>, vector<4x4xf32>
    %c2_211 = arith.constant 2 : index
    %c0_212 = arith.constant 0 : index
    %c0_213 = arith.constant 0 : index
    %170 = vector.load %arg7[%c2_211, %c0_212, %c0_213] : memref<18x18x4xf32, #tpu.memory_space<vmem>>, vector<16x16x4xf32>
    %171 = vector.shape_cast %170 : vector<16x16x4xf32> to vector<256x4xf32>
    %cst_214 = arith.constant dense<0.000000e+00> : vector<256x4xf32>
    %172 = tpu.matmul %171, %169, %cst_214 {dimension_numbers = #tpu.dot_dimension_numbers<[1], [0], [0], [1], [0, 0, 1, 1], [], []>} : vector<256x4xf32>, vector<4x4xf32>, vector<256x4xf32> -> vector<256x4xf32>
    %173 = arith.addf %168, %172 : vector<256x4xf32>
    %c100 = arith.constant 100 : index
    %c0_215 = arith.constant 0 : index
    %174 = vector.load %arg2[%c100, %c0_215] : memref<144x4xf32, #tpu.memory_space<vmem>>, vector<4x4xf32>
    %c2_216 = arith.constant 2 : index
    %c1_217 = arith.constant 1 : index
    %c0_218 = arith.constant 0 : index
    %175 = vector.load %arg7[%c2_216, %c1_217, %c0_218] : memref<18x18x4xf32, #tpu.memory_space<vmem>>, vector<16x16x4xf32>
    %176 = vector.shape_cast %175 : vector<16x16x4xf32> to vector<256x4xf32>
    %cst_219 = arith.constant dense<0.000000e+00> : vector<256x4xf32>
    %177 = tpu.matmul %176, %174, %cst_219 {dimension_numbers = #tpu.dot_dimension_numbers<[1], [0], [0], [1], [0, 0, 1, 1], [], []>} : vector<256x4xf32>, vector<4x4xf32>, vector<256x4xf32> -> vector<256x4xf32>
    %178 = arith.addf %173, %177 : vector<256x4xf32>
    %c104 = arith.constant 104 : index
    %c0_220 = arith.constant 0 : index
    %179 = vector.load %arg2[%c104, %c0_220] : memref<144x4xf32, #tpu.memory_space<vmem>>, vector<4x4xf32>
    %c2_221 = arith.constant 2 : index
    %c2_222 = arith.constant 2 : index
    %c0_223 = arith.constant 0 : index
    %180 = vector.load %arg7[%c2_221, %c2_222, %c0_223] : memref<18x18x4xf32, #tpu.memory_space<vmem>>, vector<16x16x4xf32>
    %181 = vector.shape_cast %180 : vector<16x16x4xf32> to vector<256x4xf32>
    %cst_224 = arith.constant dense<0.000000e+00> : vector<256x4xf32>
    %182 = tpu.matmul %181, %179, %cst_224 {dimension_numbers = #tpu.dot_dimension_numbers<[1], [0], [0], [1], [0, 0, 1, 1], [], []>} : vector<256x4xf32>, vector<4x4xf32>, vector<256x4xf32> -> vector<256x4xf32>
    %183 = arith.addf %178, %182 : vector<256x4xf32>
    %c2_225 = arith.constant 2 : index
    %c0_226 = arith.constant 0 : index
    %184 = vector.load %arg4[%c2_225, %c0_226] : memref<5x4xf32, #tpu.memory_space<vmem>>, vector<1x4xf32>
    %185 = vector.broadcast %184 : vector<1x4xf32> to vector<256x4xf32>
    %186 = arith.addf %183, %185 : vector<256x4xf32>
    %cst_227 = arith.constant 0.000000e+00 : f32
    %187 = vector.broadcast %cst_227 : f32 to vector<256x4xf32>
    %188 = arith.cmpf oge, %186, %187 : vector<256x4xf32>
    %189 = vector.broadcast %0 : f32 to vector<256x4xf32>
    %190 = arith.mulf %189, %186 : vector<256x4xf32>
    %191 = arith.select %188, %186, %190 : vector<256x4xi1>, vector<256x4xf32>
    %192 = vector.shape_cast %191 : vector<256x4xf32> to vector<16x16x4xf32>
    %c1_228 = arith.constant 1 : index
    %c1_229 = arith.constant 1 : index
    %c0_230 = arith.constant 0 : index
    %193 = vector.load %arg7[%c1_228, %c1_229, %c0_230] : memref<18x18x4xf32, #tpu.memory_space<vmem>>, vector<16x16x4xf32>
    tpu.vector_store %arg7[%c1_228, %c1_229, %c0_230], %192 {strides = array<i32>} : memref<18x18x4xf32, #tpu.memory_space<vmem>>, vector<16x16x4xf32>,
    %c1_231 = arith.constant 1 : index
    %c2_232 = arith.constant 2 : index
    %c0_233 = arith.constant 0 : index
    %194 = vector.load %arg7[%c1_231, %c2_232, %c0_233] : memref<18x18x4xf32, #tpu.memory_space<vmem>>, vector<16x1x4xf32>
    %c1_234 = arith.constant 1 : index
    %c0_235 = arith.constant 0 : index
    %c0_236 = arith.constant 0 : index
    %195 = vector.load %arg7[%c1_234, %c0_235, %c0_236] : memref<18x18x4xf32, #tpu.memory_space<vmem>>, vector<16x1x4xf32>
    tpu.vector_store %arg7[%c1_234, %c0_235, %c0_236], %194 {strides = array<i32>} : memref<18x18x4xf32, #tpu.memory_space<vmem>>, vector<16x1x4xf32>,
    %c1_237 = arith.constant 1 : index
    %c15_238 = arith.constant 15 : index
    %c0_239 = arith.constant 0 : index
    %196 = vector.load %arg7[%c1_237, %c15_238, %c0_239] : memref<18x18x4xf32, #tpu.memory_space<vmem>>, vector<16x1x4xf32>
    %c1_240 = arith.constant 1 : index
    %c17_241 = arith.constant 17 : index
    %c0_242 = arith.constant 0 : index
    %197 = vector.load %arg7[%c1_240, %c17_241, %c0_242] : memref<18x18x4xf32, #tpu.memory_space<vmem>>, vector<16x1x4xf32>
    tpu.vector_store %arg7[%c1_240, %c17_241, %c0_242], %196 {strides = array<i32>} : memref<18x18x4xf32, #tpu.memory_space<vmem>>, vector<16x1x4xf32>,
    %c2_243 = arith.constant 2 : index
    %c0_244 = arith.constant 0 : index
    %c0_245 = arith.constant 0 : index
    %198 = vector.load %arg7[%c2_243, %c0_244, %c0_245] : memref<18x18x4xf32, #tpu.memory_space<vmem>>, vector<1x18x4xf32>
    %c0_246 = arith.constant 0 : index
    %c0_247 = arith.constant 0 : index
    %c0_248 = arith.constant 0 : index
    %199 = vector.load %arg7[%c0_246, %c0_247, %c0_248] : memref<18x18x4xf32, #tpu.memory_space<vmem>>, vector<1x18x4xf32>
    tpu.vector_store %arg7[%c0_246, %c0_247, %c0_248], %198 {strides = array<i32>} : memref<18x18x4xf32, #tpu.memory_space<vmem>>, vector<1x18x4xf32>,
    %c15_249 = arith.constant 15 : index
    %c0_250 = arith.constant 0 : index
    %c0_251 = arith.constant 0 : index
    %200 = vector.load %arg7[%c15_249, %c0_250, %c0_251] : memref<18x18x4xf32, #tpu.memory_space<vmem>>, vector<1x18x4xf32>
    %c17_252 = arith.constant 17 : index
    %c0_253 = arith.constant 0 : index
    %c0_254 = arith.constant 0 : index
    %201 = vector.load %arg7[%c17_252, %c0_253, %c0_254] : memref<18x18x4xf32, #tpu.memory_space<vmem>>, vector<1x18x4xf32>
    tpu.vector_store %arg7[%c17_252, %c0_253, %c0_254], %200 {strides = array<i32>} : memref<18x18x4xf32, #tpu.memory_space<vmem>>, vector<1x18x4xf32>,
    %cst_255 = arith.constant 0.000000e+00 : f32
    %202 = vector.broadcast %cst_255 : f32 to vector<256x4xf32>
    %c108 = arith.constant 108 : index
    %c0_256 = arith.constant 0 : index
    %203 = vector.load %arg2[%c108, %c0_256] : memref<144x4xf32, #tpu.memory_space<vmem>>, vector<4x4xf32>
    %c0_257 = arith.constant 0 : index
    %c0_258 = arith.constant 0 : index
    %c0_259 = arith.constant 0 : index
    %204 = vector.load %arg7[%c0_257, %c0_258, %c0_259] : memref<18x18x4xf32, #tpu.memory_space<vmem>>, vector<16x16x4xf32>
    %205 = vector.shape_cast %204 : vector<16x16x4xf32> to vector<256x4xf32>
    %cst_260 = arith.constant dense<0.000000e+00> : vector<256x4xf32>
    %206 = tpu.matmul %205, %203, %cst_260 {dimension_numbers = #tpu.dot_dimension_numbers<[1], [0], [0], [1], [0, 0, 1, 1], [], []>} : vector<256x4xf32>, vector<4x4xf32>, vector<256x4xf32> -> vector<256x4xf32>
    %207 = arith.addf %202, %206 : vector<256x4xf32>
    %c112 = arith.constant 112 : index
    %c0_261 = arith.constant 0 : index
    %208 = vector.load %arg2[%c112, %c0_261] : memref<144x4xf32, #tpu.memory_space<vmem>>, vector<4x4xf32>
    %c0_262 = arith.constant 0 : index
    %c1_263 = arith.constant 1 : index
    %c0_264 = arith.constant 0 : index
    %209 = vector.load %arg7[%c0_262, %c1_263, %c0_264] : memref<18x18x4xf32, #tpu.memory_space<vmem>>, vector<16x16x4xf32>
    %210 = vector.shape_cast %209 : vector<16x16x4xf32> to vector<256x4xf32>
    %cst_265 = arith.constant dense<0.000000e+00> : vector<256x4xf32>
    %211 = tpu.matmul %210, %208, %cst_265 {dimension_numbers = #tpu.dot_dimension_numbers<[1], [0], [0], [1], [0, 0, 1, 1], [], []>} : vector<256x4xf32>, vector<4x4xf32>, vector<256x4xf32> -> vector<256x4xf32>
    %212 = arith.addf %207, %211 : vector<256x4xf32>
    %c116 = arith.constant 116 : index
    %c0_266 = arith.constant 0 : index
    %213 = vector.load %arg2[%c116, %c0_266] : memref<144x4xf32, #tpu.memory_space<vmem>>, vector<4x4xf32>
    %c0_267 = arith.constant 0 : index
    %c2_268 = arith.constant 2 : index
    %c0_269 = arith.constant 0 : index
    %214 = vector.load %arg7[%c0_267, %c2_268, %c0_269] : memref<18x18x4xf32, #tpu.memory_space<vmem>>, vector<16x16x4xf32>
    %215 = vector.shape_cast %214 : vector<16x16x4xf32> to vector<256x4xf32>
    %cst_270 = arith.constant dense<0.000000e+00> : vector<256x4xf32>
    %216 = tpu.matmul %215, %213, %cst_270 {dimension_numbers = #tpu.dot_dimension_numbers<[1], [0], [0], [1], [0, 0, 1, 1], [], []>} : vector<256x4xf32>, vector<4x4xf32>, vector<256x4xf32> -> vector<256x4xf32>
    %217 = arith.addf %212, %216 : vector<256x4xf32>
    %c120 = arith.constant 120 : index
    %c0_271 = arith.constant 0 : index
    %218 = vector.load %arg2[%c120, %c0_271] : memref<144x4xf32, #tpu.memory_space<vmem>>, vector<4x4xf32>
    %c1_272 = arith.constant 1 : index
    %c0_273 = arith.constant 0 : index
    %c0_274 = arith.constant 0 : index
    %219 = vector.load %arg7[%c1_272, %c0_273, %c0_274] : memref<18x18x4xf32, #tpu.memory_space<vmem>>, vector<16x16x4xf32>
    %220 = vector.shape_cast %219 : vector<16x16x4xf32> to vector<256x4xf32>
    %cst_275 = arith.constant dense<0.000000e+00> : vector<256x4xf32>
    %221 = tpu.matmul %220, %218, %cst_275 {dimension_numbers = #tpu.dot_dimension_numbers<[1], [0], [0], [1], [0, 0, 1, 1], [], []>} : vector<256x4xf32>, vector<4x4xf32>, vector<256x4xf32> -> vector<256x4xf32>
    %222 = arith.addf %217, %221 : vector<256x4xf32>
    %c124 = arith.constant 124 : index
    %c0_276 = arith.constant 0 : index
    %223 = vector.load %arg2[%c124, %c0_276] : memref<144x4xf32, #tpu.memory_space<vmem>>, vector<4x4xf32>
    %c1_277 = arith.constant 1 : index
    %c1_278 = arith.constant 1 : index
    %c0_279 = arith.constant 0 : index
    %224 = vector.load %arg7[%c1_277, %c1_278, %c0_279] : memref<18x18x4xf32, #tpu.memory_space<vmem>>, vector<16x16x4xf32>
    %225 = vector.shape_cast %224 : vector<16x16x4xf32> to vector<256x4xf32>
    %cst_280 = arith.constant dense<0.000000e+00> : vector<256x4xf32>
    %226 = tpu.matmul %225, %223, %cst_280 {dimension_numbers = #tpu.dot_dimension_numbers<[1], [0], [0], [1], [0, 0, 1, 1], [], []>} : vector<256x4xf32>, vector<4x4xf32>, vector<256x4xf32> -> vector<256x4xf32>
    %227 = arith.addf %222, %226 : vector<256x4xf32>
    %c128 = arith.constant 128 : index
    %c0_281 = arith.constant 0 : index
    %228 = vector.load %arg2[%c128, %c0_281] : memref<144x4xf32, #tpu.memory_space<vmem>>, vector<4x4xf32>
    %c1_282 = arith.constant 1 : index
    %c2_283 = arith.constant 2 : index
    %c0_284 = arith.constant 0 : index
    %229 = vector.load %arg7[%c1_282, %c2_283, %c0_284] : memref<18x18x4xf32, #tpu.memory_space<vmem>>, vector<16x16x4xf32>
    %230 = vector.shape_cast %229 : vector<16x16x4xf32> to vector<256x4xf32>
    %cst_285 = arith.constant dense<0.000000e+00> : vector<256x4xf32>
    %231 = tpu.matmul %230, %228, %cst_285 {dimension_numbers = #tpu.dot_dimension_numbers<[1], [0], [0], [1], [0, 0, 1, 1], [], []>} : vector<256x4xf32>, vector<4x4xf32>, vector<256x4xf32> -> vector<256x4xf32>
    %232 = arith.addf %227, %231 : vector<256x4xf32>
    %c132 = arith.constant 132 : index
    %c0_286 = arith.constant 0 : index
    %233 = vector.load %arg2[%c132, %c0_286] : memref<144x4xf32, #tpu.memory_space<vmem>>, vector<4x4xf32>
    %c2_287 = arith.constant 2 : index
    %c0_288 = arith.constant 0 : index
    %c0_289 = arith.constant 0 : index
    %234 = vector.load %arg7[%c2_287, %c0_288, %c0_289] : memref<18x18x4xf32, #tpu.memory_space<vmem>>, vector<16x16x4xf32>
    %235 = vector.shape_cast %234 : vector<16x16x4xf32> to vector<256x4xf32>
    %cst_290 = arith.constant dense<0.000000e+00> : vector<256x4xf32>
    %236 = tpu.matmul %235, %233, %cst_290 {dimension_numbers = #tpu.dot_dimension_numbers<[1], [0], [0], [1], [0, 0, 1, 1], [], []>} : vector<256x4xf32>, vector<4x4xf32>, vector<256x4xf32> -> vector<256x4xf32>
    %237 = arith.addf %232, %236 : vector<256x4xf32>
    %c136 = arith.constant 136 : index
    %c0_291 = arith.constant 0 : index
    %238 = vector.load %arg2[%c136, %c0_291] : memref<144x4xf32, #tpu.memory_space<vmem>>, vector<4x4xf32>
    %c2_292 = arith.constant 2 : index
    %c1_293 = arith.constant 1 : index
    %c0_294 = arith.constant 0 : index
    %239 = vector.load %arg7[%c2_292, %c1_293, %c0_294] : memref<18x18x4xf32, #tpu.memory_space<vmem>>, vector<16x16x4xf32>
    %240 = vector.shape_cast %239 : vector<16x16x4xf32> to vector<256x4xf32>
    %cst_295 = arith.constant dense<0.000000e+00> : vector<256x4xf32>
    %241 = tpu.matmul %240, %238, %cst_295 {dimension_numbers = #tpu.dot_dimension_numbers<[1], [0], [0], [1], [0, 0, 1, 1], [], []>} : vector<256x4xf32>, vector<4x4xf32>, vector<256x4xf32> -> vector<256x4xf32>
    %242 = arith.addf %237, %241 : vector<256x4xf32>
    %c140 = arith.constant 140 : index
    %c0_296 = arith.constant 0 : index
    %243 = vector.load %arg2[%c140, %c0_296] : memref<144x4xf32, #tpu.memory_space<vmem>>, vector<4x4xf32>
    %c2_297 = arith.constant 2 : index
    %c2_298 = arith.constant 2 : index
    %c0_299 = arith.constant 0 : index
    %244 = vector.load %arg7[%c2_297, %c2_298, %c0_299] : memref<18x18x4xf32, #tpu.memory_space<vmem>>, vector<16x16x4xf32>
    %245 = vector.shape_cast %244 : vector<16x16x4xf32> to vector<256x4xf32>
    %cst_300 = arith.constant dense<0.000000e+00> : vector<256x4xf32>
    %246 = tpu.matmul %245, %243, %cst_300 {dimension_numbers = #tpu.dot_dimension_numbers<[1], [0], [0], [1], [0, 0, 1, 1], [], []>} : vector<256x4xf32>, vector<4x4xf32>, vector<256x4xf32> -> vector<256x4xf32>
    %247 = arith.addf %242, %246 : vector<256x4xf32>
    %c3 = arith.constant 3 : index
    %c0_301 = arith.constant 0 : index
    %248 = vector.load %arg4[%c3, %c0_301] : memref<5x4xf32, #tpu.memory_space<vmem>>, vector<1x4xf32>
    %249 = vector.broadcast %248 : vector<1x4xf32> to vector<256x4xf32>
    %250 = arith.addf %247, %249 : vector<256x4xf32>
    %251 = arith.addf %250, %127 : vector<256x4xf32>
    %c0_302 = arith.constant 0 : index
    %c0_303 = arith.constant 0 : index
    %252 = vector.load %arg3[%c0_302, %c0_303] : memref<12x4xf32, #tpu.memory_space<vmem>>, vector<4x4xf32>
    %cst_304 = arith.constant dense<0.000000e+00> : vector<256x4xf32>
    %253 = tpu.matmul %3, %252, %cst_304 {dimension_numbers = #tpu.dot_dimension_numbers<[1], [0], [0], [1], [0, 0, 1, 1], [], []>} : vector<256x4xf32>, vector<4x4xf32>, vector<256x4xf32> -> vector<256x4xf32>
    %c4_305 = arith.constant 4 : index
    %c0_306 = arith.constant 0 : index
    %254 = vector.load %arg3[%c4_305, %c0_306] : memref<12x4xf32, #tpu.memory_space<vmem>>, vector<4x4xf32>
    %cst_307 = arith.constant dense<0.000000e+00> : vector<256x4xf32>
    %255 = tpu.matmul %127, %254, %cst_307 {dimension_numbers = #tpu.dot_dimension_numbers<[1], [0], [0], [1], [0, 0, 1, 1], [], []>} : vector<256x4xf32>, vector<4x4xf32>, vector<256x4xf32> -> vector<256x4xf32>
    %256 = arith.addf %253, %255 : vector<256x4xf32>
    %c8_308 = arith.constant 8 : index
    %c0_309 = arith.constant 0 : index
    %257 = vector.load %arg3[%c8_308, %c0_309] : memref<12x4xf32, #tpu.memory_space<vmem>>, vector<4x4xf32>
    %cst_310 = arith.constant dense<0.000000e+00> : vector<256x4xf32>
    %258 = tpu.matmul %251, %257, %cst_310 {dimension_numbers = #tpu.dot_dimension_numbers<[1], [0], [0], [1], [0, 0, 1, 1], [], []>} : vector<256x4xf32>, vector<4x4xf32>, vector<256x4xf32> -> vector<256x4xf32>
    %259 = arith.addf %256, %258 : vector<256x4xf32>
    %c4_311 = arith.constant 4 : index
    %c0_312 = arith.constant 0 : index
    %260 = vector.load %arg4[%c4_311, %c0_312] : memref<5x4xf32, #tpu.memory_space<vmem>>, vector<1x4xf32>
    %261 = vector.broadcast %260 : vector<1x4xf32> to vector<256x4xf32>
    %262 = arith.addf %259, %261 : vector<256x4xf32>
    %263 = arith.addf %262, %3 : vector<256x4xf32>
    %264 = vector.shape_cast %263 : vector<256x4xf32> to vector<16x16x4xf32>
    %c0_313 = arith.constant 0 : index
    %c0_314 = arith.constant 0 : index
    %c0_315 = arith.constant 0 : index
    %c0_316 = arith.constant 0 : index
    %265 = vector.load %arg6[%c0_313, %c0_314, %c0_315, %c0_316] : memref<1x16x16x4xf32, #tpu.memory_space<vmem>>, vector<1x16x16x4xf32>
    %266 = vector.shape_cast %265 : vector<1x16x16x4xf32> to vector<16x16x4xf32>
    %267 = vector.shape_cast %264 : vector<16x16x4xf32> to vector<1x16x16x4xf32>
    tpu.vector_store %arg6[%c0_313, %c0_314, %c0_315, %c0_316], %267 {strides = array<i32>} : memref<1x16x16x4xf32, #tpu.memory_space<vmem>>, vector<1x16x16x4xf32>,
    return
  }
  func.func @transform_0(%arg0: i32) -> (i32, i32, i32, i32) {
    %c0_i32 = arith.constant 0 : i32
    %c0_i32_0 = arith.constant 0 : i32
    %c0_i32_1 = arith.constant 0 : i32
    %c0_i32_2 = arith.constant 0 : i32
    return %arg0, %c0_i32, %c0_i32_0, %c0_i32_1 : i32, i32, i32, i32
  }
  func.func @transform_1(%arg0: i32) -> (i32, i32) {
    %c0_i32 = arith.constant 0 : i32
    %c0_i32_0 = arith.constant 0 : i32
    %c0_i32_1 = arith.constant 0 : i32
    return %c0_i32, %c0_i32_0 : i32, i32
  }
  func.func @transform_2(%arg0: i32) -> (i32, i32) {
    %c0_i32 = arith.constant 0 : i32
    %c0_i32_0 = arith.constant 0 : i32
    %c0_i32_1 = arith.constant 0 : i32
    return %c0_i32, %c0_i32_0 : i32, i32
  }
  func.func @transform_3(%arg0: i32) -> (i32, i32) {
    %c0_i32 = arith.constant 0 : i32
    %c0_i32_0 = arith.constant 0 : i32
    %c0_i32_1 = arith.constant 0 : i32
    return %c0_i32, %c0_i32_0 : i32, i32
  }
  func.func @transform_4(%arg0: i32) -> (i32, i32) {
    %c0_i32 = arith.constant 0 : i32
    %c0_i32_0 = arith.constant 0 : i32
    %c0_i32_1 = arith.constant 0 : i32
    return %c0_i32, %c0_i32_0 : i32, i32
  }
  func.func @transform_5(%arg0: i32) -> (i32, i32, i32, i32) {
    %c0_i32 = arith.constant 0 : i32
    %c0_i32_0 = arith.constant 0 : i32
    %c0_i32_1 = arith.constant 0 : i32
    %c0_i32_2 = arith.constant 0 : i32
    return %arg0, %c0_i32, %c0_i32_0, %c0_i32_1 : i32, i32, i32, i32
  }
}

</mosaic_0001>

<bundles_post_ra>
// kernel: cm_residual_block.1
= control target key start
LH: loop header
LB: loop body
LE: loop exit
PB: predicated region body
PF: predicated region fallthrough
CT: control target
= control target key end

     0   :  { %s21696_s20 = smov 0   ;;  %s26084_s0 = inlined_call_operand.vmem [shape: f32[2,16,16,4], index: 0, kind: input, shape index: {}]   ;;  %s26085_s1 = inlined_call_operand.vmem [shape: f32[144,4], index: 1, kind: input, shape index: {}]   ;;  %s26086_s2 = inlined_call_operand.vmem [shape: f32[12,4], index: 2, kind: input, shape index: {}]   ;;  %s26087_s3 = inlined_call_operand.vmem [shape: f32[5,4], index: 3, kind: input, shape index: {}]   ;;  %s26088_s4 = inlined_call_operand.<no memory space> [shape: f32[1,1], index: 4, kind: input, shape index: {}]   ;;  %s26089_s5 = inlined_call_operand.vmem [shape: f32[2,16,16,4], index: 5, kind: output, shape index: {}]  }
   0x1   :  { %10 = sst [smem:[#allocation3]] %s26088_s4 }
   0x2 LB: > { %s16015_s21 = sadd.s32 4294967295, %s21661_s20   ;;  %p16019_p0 = scmp.ge.s32.totalorder %s21661_s20, 1  ;;  %s21661_s20 = sphi %s21696_s20, %s16_s20  }
   0x3   : > { %p188_p1 = scmp.lt.s32.totalorder %s21661_s20, 3 }
   0x5   : > { %p189_p2 = pnand %p16019_p0, %p188_p1 }
   0x7   : > { %192 = sbr.rel (%p189_p2) target bundleno = 3255 (0xcb7), region = 40 }
   0xe   : > { %v21707_v0 = vld [vmem:[%s26085_s1] sm:$0xf]  ;;  %vm536_vm0 = vcmask 1043456   ;;  %p216_p3 = scmp.lt.s32.totalorder %s16015_s21, 1  ;;  %v21714_v1 = vld [vmem:[%s26085_s1 + $0x8] sm:$0xf] }
   0xf   : > { %18657 = vmatprep.subr.msk.mxu0 %vm536_vm0, %v21707_v0  ;;  %vm260_vm1 = vcmask 31744   ;;  %vm309_vm2 = vcmask 24576   ;;  %vm364_vm3 = vcmask 25600   ;;  %v21882_v49 = vld [vmem:[%s26085_s1 + $0xc] sm:$0xf]  ;;  %s226_s4 = sld [smem:[#allocation3]] }
  0x10   : > { %18658 = vmatpush3.msk.msra.mxu0 %vm536_vm0, %v21707_v0  ;;  %s26855_s21 = smov (!%p216_p3, %s16015_s21), 1 }
  0x11   : > { %18707 = vmatprep.subr.msk.mxu0 %vm536_vm0, %v21714_v1  ;;  %s17318_s25 = sshll.u32 %s26855_s21, 8 }
  0x12   : > { %s21728_s28 = scalar_lea.vmem %s26084_s0, %s17318_s25 }
  0x13   : > { %v21731_v2 = vld [vmem:[%s21728_s28 + $0x10] sm:$0xff]  ;;  %v21734_v3 = vld [vmem:[%s21728_s28 + $0x18] sm:$0xff]  ;;  %v21737_v4 = vld [vmem:[%s21728_s28] sm:$0xff] }
  0x14   : > { %26428 = vst [vmem:[#allocation4_spill] sm:$0xff] %v21731_v2  ;;  %26429 = vst [vmem:[#allocation5_spill] sm:$0xff] %v21734_v3  ;;  %v21746_v5 = vld [vmem:[%s21728_s28 + $0x8] sm:$0xff]  ;;  %v21749_v6 = vld [vmem:[%s21728_s28 + $0x20] sm:$0xff] }
  0x15   : > { %26430 = vst [vmem:[#allocation6_spill] sm:$0xff] %v21737_v4  ;;  %263 = vst.msk [vmem:[#allocation2 + $0x31] sm:$0xff] %vm260_vm1, %v21731_v2  ;;  %v21752_v7 = vld [vmem:[%s21728_s28 + $0x28] sm:$0xff]  ;;  %v21761_v8 = vld [vmem:[%s21728_s28 + $0x30] sm:$0xff] }
  0x16   : > { %264 = vst.msk [vmem:[#allocation2 + $0x39] sm:$0xff] %vm260_vm1, %v21734_v3  ;;  %261 = vst.msk [vmem:[#allocation2 + $0x19] sm:$0xff] %vm260_vm1, %v21737_v4  ;;  %v21764_v9 = vld [vmem:[%s21728_s28 + $0x38] sm:$0xff]  ;;  %v21767_v10 = vld [vmem:[%s21728_s28 + $0x40] sm:$0xff] }
  0x17   : > { %26431 = vst [vmem:[#allocation7_spill] sm:$0xff] %v21746_v5  ;;  %26432 = vst [vmem:[#allocation8_spill] sm:$0xff] %v21749_v6  ;;  %v21776_v11 = vld [vmem:[%s21728_s28 + $0x48] sm:$0xff]  ;;  %v21779_v12 = vld [vmem:[%s21728_s28 + $0x50] sm:$0xff] }
  0x18   : > { %26433 = vst [vmem:[#allocation9_spill] sm:$0xff] %v21752_v7  ;;  %262 = vst.msk [vmem:[#allocation2 + $0x21] sm:$0xff] %vm260_vm1, %v21746_v5  ;;  %v21782_v13 = vld [vmem:[%s21728_s28 + $0x58] sm:$0xff]  ;;  %v21791_v14 = vld [vmem:[%s21728_s28 + $0x60] sm:$0xff] }
  0x19   : > { %265 = vst.msk [vmem:[#allocation2 + $0x49] sm:$0xff] %vm260_vm1, %v21749_v6  ;;  %266 = vst.msk [vmem:[#allocation2 + $0x51] sm:$0xff] %vm260_vm1, %v21752_v7  ;;  %v21794_v15 = vld [vmem:[%s21728_s28 + $0x68] sm:$0xff]  ;;  %v21797_v16 = vld [vmem:[%s21728_s28 + $0x70] sm:$0xff] }
  0x1a   : > { %26434 = vst [vmem:[#allocation10_spill] sm:$0xff] %v21761_v8  ;;  %26435 = vst [vmem:[#allocation11_spill] sm:$0xff] %v21764_v9  ;;  %v21804_v17 = vld [vmem:[%s21728_s28 + $0x78] sm:$0xff]  ;;  %v21809_v18 = vld [vmem:[%s21728_s28 + $0x80] sm:$0xff] }
  0x1b   : > { %26436 = vst [vmem:[#allocation12_spill] sm:$0xff] %v21767_v10  ;;  %267 = vst.msk [vmem:[#allocation2 + $0x61] sm:$0xff] %vm260_vm1, %v21761_v8  ;;  %v21812_v19 = vld [vmem:[%s21728_s28 + $0x88] sm:$0xff]  ;;  %v21821_v20 = vld [vmem:[%s21728_s28 + $0x90] sm:$0xff] }
  0x1c   : > { %268 = vst.msk [vmem:[#allocation2 + $0x69] sm:$0xff] %vm260_vm1, %v21764_v9  ;;  %269 = vst.msk [vmem:[#allocation2 + $0x79] sm:$0xff] %vm260_vm1, %v21767_v10  ;;  %v21824_v21 = vld [vmem:[%s21728_s28 + $0x98] sm:$0xff]  ;;  %v21827_v22 = vld [vmem:[%s21728_s28 + $0xa0] sm:$0xff] }
  0x1d   : > { %26437 = vst [vmem:[#allocation13_spill] sm:$0xff] %v21776_v11  ;;  %26438 = vst [vmem:[#allocation14_spill] sm:$0xff] %v21779_v12  ;;  %v21834_v23 = vld [vmem:[%s21728_s28 + $0xa8] sm:$0xff]  ;;  %v21839_v24 = vld [vmem:[%s21728_s28 + $0xb0] sm:$0xff] }
  0x1e   : > { %26439 = vst [vmem:[#allocation15_spill] sm:$0xff] %v21782_v13  ;;  %270 = vst.msk [vmem:[#allocation2 + $0x81] sm:$0xff] %vm260_vm1, %v21776_v11  ;;  %v21842_v25 = vld [vmem:[%s21728_s28 + $0xb8] sm:$0xff]  ;;  %v294_v26 = vld [vmem:[#allocation2 + $0x32] sm:$0x1] }
  0x1f   : > { %271 = vst.msk [vmem:[#allocation2 + $0x91] sm:$0xff] %vm260_vm1, %v21779_v12  ;;  %272 = vst.msk [vmem:[#allocation2 + $0x99] sm:$0xff] %vm260_vm1, %v21782_v13  ;;  %v21844_v27 = vld [vmem:[#allocation2 + $0x38] sm:$0xff]  ;;  %v326_v35 = vld [vmem:[#allocation2 + $0x27] sm:$0x1] }
  0x20   : > { %26440 = vst [vmem:[#allocation16_spill] sm:$0xff] %v21791_v14  ;;  %26441 = vst [vmem:[#allocation17_spill] sm:$0xff] %v21794_v15  ;;  %v293_v28 = vld [vmem:[#allocation2 + $0x1a] sm:$0x1]  ;;  %v295_v29 = vld [vmem:[#allocation2 + $0x4a] sm:$0x1] }
  0x21   : > { %26442 = vst [vmem:[#allocation18_spill] sm:$0xff] %v21797_v16  ;;  %273 = vst.msk [vmem:[#allocation2 + $0xa9] sm:$0xff] %vm260_vm1, %v21791_v14  ;;  %v327_v34 = vld [vmem:[#allocation2 + $0x3f] sm:$0x1]  ;;  %v328_v36 = vld [vmem:[#allocation2 + $0x57] sm:$0x1] }
  0x22   : > { %274 = vst.msk [vmem:[#allocation2 + $0xb1] sm:$0xff] %vm260_vm1, %v21794_v15  ;;  %26443 = vst [vmem:[#allocation19_spill] sm:$0xff] %v21804_v17  ;;  %v296_v30 = vld [vmem:[#allocation2 + $0x62] sm:$0x1]  ;;  %v21890_v53 = vld [vmem:[%s21728_s28 + $0xc8] sm:$0xff] }
  0x23   : > { %275 = vst.msk [vmem:[#allocation2 + $0xc1] sm:$0xff] %vm260_vm1, %v21797_v16  ;;  %26444 = vst [vmem:[#allocation20_spill] sm:$0xff] %v21809_v18  ;;  %v297_v31 = vld [vmem:[#allocation2 + $0x7a] sm:$0x1]  ;;  %v329_v37 = vld [vmem:[#allocation2 + $0x6f] sm:$0x1] }
  0x24   : > { %26445 = vst [vmem:[#allocation21_spill] sm:$0xff] %v21812_v19  ;;  %276 = vst.msk [vmem:[#allocation2 + $0xc9] sm:$0xff] %vm260_vm1, %v21804_v17  ;;  %v21887_v52 = vld [vmem:[%s21728_s28 + $0xc0] sm:$0xff]  ;;  %v21904_v55 = vld [vmem:[%s21728_s28 + $0xd0] sm:$0xff] }
  0x25   : > { %277 = vst.msk [vmem:[#allocation2 + $0xd9] sm:$0xff] %vm260_vm1, %v21809_v18  ;;  %278 = vst.msk [vmem:[#allocation2 + $0xe1] sm:$0xff] %vm260_vm1, %v21812_v19  ;;  %v330_v38 = vld [vmem:[#allocation2 + $0x87] sm:$0x1]  ;;  %v21907_v56 = vld [vmem:[%s21728_s28 + $0xd8] sm:$0xff] }
  0x26   : > { %26446 = vst [vmem:[#allocation22_spill] sm:$0xff] %v21821_v20  ;;  %26447 = vst [vmem:[#allocation23_spill] sm:$0xff] %v21824_v21  ;;  %v298_v32 = vld [vmem:[#allocation2 + $0x92] sm:$0x1]  ;;  %v331_v40 = vld [vmem:[#allocation2 + $0x9f] sm:$0x1] }
  0x27   : > { %26448 = vst [vmem:[#allocation24_spill] sm:$0xff] %v21827_v22  ;;  %279 = vst.msk [vmem:[#allocation2 + $0xf1] sm:$0xff] %vm260_vm1, %v21821_v20  ;;  %v21896_v54 = vld [vmem:[#allocation2 + $0x20] sm:$0xff]  ;;  %v21919_v58 = vld [vmem:[%s21728_s28 + $0xe8] sm:$0xff] }
  0x28   : > { %280 = vst.msk [vmem:[#allocation2 + $0xf9] sm:$0xff] %vm260_vm1, %v21824_v21  ;;  %26449 = vst [vmem:[#allocation25_spill] sm:$0xff] %v21834_v23  ;;  %v299_v33 = vld [vmem:[#allocation2 + $0xaa] sm:$0x1]  ;;  %v21916_v57 = vld [vmem:[%s21728_s28 + $0xe0] sm:$0xff] }
  0x29   : > { %281 = vst.msk [vmem:[#allocation2 + $0x109] sm:$0xff] %vm260_vm1, %v21827_v22  ;;  %26450 = vst [vmem:[#allocation26_spill] sm:$0xff] %v21839_v24  ;;  %v332_v41 = vld [vmem:[#allocation2 + $0xb7] sm:$0x1]  ;;  %v22233_v5 = vld [vmem:[#allocation2 + $0x19] sm:$0xff] }
  0x2a   : > { %26451 = vst [vmem:[#allocation27_spill] sm:$0xff] %v21842_v25  ;;  %282 = vst.msk [vmem:[#allocation2 + $0x111] sm:$0xff] %vm260_vm1, %v21834_v23  ;;  %v300_v59 = vld [vmem:[#allocation2 + $0xc2] sm:$0x1]  ;;  %v2256_v16 = vld [vmem:[%s26085_s1 + $0x14] sm:$0xf] }
  0x2b   : > { %283 = vst.msk [vmem:[#allocation2 + $0x121] sm:$0xff] %vm260_vm1, %v21839_v24  ;;  %284 = vst.msk [vmem:[#allocation2 + $0x129] sm:$0xff] %vm260_vm1, %v21842_v25  ;;  %v333_v43 = vld [vmem:[#allocation2 + $0xcf] sm:$0x1] }
  0x2c   : > { %311 = vst.msk [vmem:[#allocation2 + $0x30] sm:$0x1] %vm309_vm2, %v294_v26  ;;  %310 = vst.msk [vmem:[#allocation2 + $0x18] sm:$0x1] %vm309_vm2, %v293_v28  ;;  %v334_v44 = vld [vmem:[#allocation2 + $0xe7] sm:$0x1] }
  0x2d   : > { %363 = vst.msk [vmem:[#allocation2 + $0x8] sm:$0xff] %vm260_vm1, %v21844_v27  ;;  %26452 = vst [vmem:[#allocation28_spill] sm:$0xff] %v21887_v52  ;;  %v301_v60 = vld [vmem:[#allocation2 + $0xda] sm:$0x1]  ;;  %v21940_v28 = vld [vmem:[#allocation2 + $0x50] sm:$0xff] }
  0x2e   : > { %312 = vst.msk [vmem:[#allocation2 + $0x48] sm:$0x1] %vm309_vm2, %v295_v29  ;;  %313 = vst.msk [vmem:[#allocation2 + $0x60] sm:$0x1] %vm309_vm2, %v296_v30  ;;  %v302_v61 = vld [vmem:[#allocation2 + $0xf2] sm:$0x1] }
  0x2f   : > { %314 = vst.msk [vmem:[#allocation2 + $0x78] sm:$0x1] %vm309_vm2, %v297_v31  ;;  %315 = vst.msk [vmem:[#allocation2 + $0x90] sm:$0x1] %vm309_vm2, %v298_v32  ;;  %v335_v46 = vld [vmem:[#allocation2 + $0xff] sm:$0x1] }
  0x30   : > { %316 = vst.msk [vmem:[#allocation2 + $0xa8] sm:$0x1] %vm309_vm2, %v299_v33  ;;  %343 = vst.msk [vmem:[#allocation2 + $0x41] sm:$0x1] %vm309_vm2, %v327_v34  ;;  %v303_v63 = vld [vmem:[#allocation2 + $0x10a] sm:$0x1] }
  0x31   : > { %342 = vst.msk [vmem:[#allocation2 + $0x29] sm:$0x1] %vm309_vm2, %v326_v35  ;;  %344 = vst.msk [vmem:[#allocation2 + $0x59] sm:$0x1] %vm309_vm2, %v328_v36  ;;  %v336_v50 = vld [vmem:[#allocation2 + $0x117] sm:$0x1] }
  0x32   : > { %345 = vst.msk [vmem:[#allocation2 + $0x71] sm:$0x1] %vm309_vm2, %v329_v37  ;;  %346 = vst.msk [vmem:[#allocation2 + $0x89] sm:$0x1] %vm309_vm2, %v330_v38  ;;  %v337_v51 = vld [vmem:[#allocation2 + $0x12f] sm:$0x1] }
  0x33   : > { %v21864_v39 = vld [vmem:[#allocation2 + $0x30] sm:$0xff]  ;;  %347 = vst.msk [vmem:[#allocation2 + $0xa1] sm:$0x1] %vm309_vm2, %v331_v40  ;;  %348 = vst.msk [vmem:[#allocation2 + $0xb9] sm:$0x1] %vm309_vm2, %v332_v41  ;;  %v21875_v48 = vld [vmem:[#allocation2 + $0x18] sm:$0xff] }
  0x34   : > { %362 = vst.msk [vmem:[#allocation2] sm:$0xff] %vm260_vm1, %v21864_v39  ;;  %v376_v45 = vld [vmem:[#allocation2 + $0x8] sm:$0xff]  ;;  %26453 = vst [vmem:[#allocation29_spill] sm:$0xff] %v21890_v53  ;;  %v21949_v34 = vld [vmem:[%s21728_s28 + $0xf0] sm:$0xff] }
  0x35   : > { %349 = vst.msk [vmem:[#allocation2 + $0xd1] sm:$0x1] %vm309_vm2, %v333_v43  ;;  %350 = vst.msk [vmem:[#allocation2 + $0xe9] sm:$0x1] %vm309_vm2, %v334_v44  ;;  %v21931_v62 = vld [vmem:[#allocation2 + $0x48] sm:$0xff]  ;;  %v21943_v30 = vld [vmem:[#allocation2 + $0x60] sm:$0xff] }
  0x36   : > { %351 = vst.msk [vmem:[#allocation2 + $0x101] sm:$0x1] %vm309_vm2, %v335_v46  ;;  %352 = vst.msk [vmem:[#allocation2 + $0x119] sm:$0x1] %vm309_vm2, %v336_v50  ;;  %v21958_v35 = vld [vmem:[#allocation2 + $0x68] sm:$0xff]  ;;  %v21960_v36 = vld [vmem:[#allocation2 + $0x78] sm:$0xff] }
  0x37   : > { %v361_v42 = vld [vmem:[#allocation2 + $0x40] sm:$0x3]  ;;  %353 = vst.msk [vmem:[#allocation2 + $0x131] sm:$0x1] %vm309_vm2, %v337_v51  ;;  %26454 = vst [vmem:[#allocation30_spill] sm:$0xff] %v21904_v55  ;;  %v21969_v40 = vld [vmem:[#allocation2 + $0x90] sm:$0xff] }
  0x38   : > { %365 = vst.msk [vmem:[#allocation2 + $0x10] sm:$0x3] %vm364_vm3, %v361_v42  ;;  %26455 = vst [vmem:[#allocation31_spill] sm:$0xff] %v21907_v56  ;;  %v21967_v38 = vld [vmem:[#allocation2 + $0x80] sm:$0xff]  ;;  %v21972_v42 = vld [vmem:[%s21728_s28 + $0xf8] sm:$0xff] }
  0x39   : > { %285 = vst.msk [vmem:[#allocation2 + $0x139] sm:$0xff] %vm260_vm1, %v21887_v52  ;;  %286 = vst.msk [vmem:[#allocation2 + $0x141] sm:$0xff] %vm260_vm1, %v21890_v53  ;;  %v21981_v43 = vld [vmem:[#allocation2 + $0x98] sm:$0xff]  ;;  %v22090_v52 = vld [vmem:[#allocation2 + $0x10a] sm:$0xff] }
  0x3a   : > { %287 = vst.msk [vmem:[#allocation2 + $0x151] sm:$0xff] %vm260_vm1, %v21904_v55  ;;  %288 = vst.msk [vmem:[#allocation2 + $0x159] sm:$0xff] %vm260_vm1, %v21907_v56  ;;  %v22082_v55 = vld [vmem:[#allocation2 + $0xf2] sm:$0xff]  ;;  %v22098_v24 = vld [vmem:[#allocation2 + $0x122] sm:$0xff] }
  0x3b   : > { %v375_v47 = vld [vmem:[#allocation2] sm:$0xff]  ;;  %26456 = vst [vmem:[#allocation32_spill] sm:$0xff] %v21916_v57  ;;  %26457 = vst [vmem:[#allocation33_spill] sm:$0xff] %v21919_v58  ;;  %v22186_v15 = vld [vmem:[#allocation2 + $0xf8] sm:$0xff] }
  0x3c   : > { %18659 = vmatprep.mubr.msk.f32.mxu0 %vm260_vm1, %v375_v47  ;;  %289 = vst.msk [vmem:[#allocation2 + $0x169] sm:$0xff] %vm260_vm1, %v21916_v57  ;;  %290 = vst.msk [vmem:[#allocation2 + $0x171] sm:$0xff] %vm260_vm1, %v21919_v58  ;;  %v21997_v47 = vld [vmem:[#allocation2 + $0xb0] sm:$0xff]  ;;  %v1090_v50 = vld [vmem:[#allocation2 + $0x2] sm:$0xff] }
  0x3d   : > { %18660 = vmatmul.mubr.msk.f32.vlgmr.msra.gmra.mrb[0].mxu0 %vm260_vm1, %v376_v45  ;;  %317 = vst.msk [vmem:[#allocation2 + $0xc0] sm:$0x1] %vm309_vm2, %v300_v59  ;;  %318 = vst.msk [vmem:[#allocation2 + $0xd8] sm:$0x1] %vm309_vm2, %v301_v60  ;;  %v21985_v45 = vld [vmem:[#allocation2 + $0xa8] sm:$0xff]  ;;  %v22002_v59 = vld [vmem:[#allocation2 + $0x1a] sm:$0xff] }
  0x3e   : > { %18708 = vmatpush3.msk.msra.mxu0 %vm536_vm0, %v21714_v1  ;;  %18662 = vmatprep.mubr.msk.f32.mxu0 %vm260_vm1, %v21875_v48  ;;  %319 = vst.msk [vmem:[#allocation2 + $0xf0] sm:$0x1] %vm309_vm2, %v302_v61  ;;  %v304_v1 = vld [vmem:[#allocation2 + $0x122] sm:$0x1]  ;;  %320 = vst.msk [vmem:[#allocation2 + $0x108] sm:$0x1] %vm309_vm2, %v303_v63 }
  0x3f   : > { %18757 = vmatprep.subr.msk.mxu0 %vm536_vm0, %v21882_v49  ;;  %321 = vst.msk [vmem:[#allocation2 + $0x120] sm:$0x1] %vm309_vm2, %v304_v1  ;;  %26458 = vst [vmem:[#allocation34_spill] sm:$0xff] %v21943_v30  ;;  %v1091_v51 = vld [vmem:[#allocation2 + $0xa] sm:$0xff]  ;;  %v22014_v61 = vld [vmem:[#allocation2 + $0x22] sm:$0xff] }
  0x40   : > { %v338_v26 = vld [vmem:[#allocation2 + $0x147] sm:$0x1]  ;;  %v305_v32 = vld [vmem:[#allocation2 + $0x13a] sm:$0x1]  ;;  %26459 = vst [vmem:[#allocation35_spill] sm:$0xff] %v21949_v34  ;;  %291 = vst.msk [vmem:[#allocation2 + $0x181] sm:$0xff] %vm260_vm1, %v21949_v34 }
  0x41   : > { %18663 = vmatmul.mubr.msk.f32.gmra.mrb[2].mxu0 %vm260_vm1, %v21896_v54  ;;  %354 = vst.msk [vmem:[#allocation2 + $0x149] sm:$0x1] %vm309_vm2, %v338_v26  ;;  %v339_v29 = vld [vmem:[#allocation2 + $0x15f] sm:$0x1]  ;;  %322 = vst.msk [vmem:[#allocation2 + $0x138] sm:$0x1] %vm309_vm2, %v305_v32 }
  0x42   : > { %18665 = vmatprep.mubr.msk.f32.mxu0 %vm260_vm1, %v21864_v39  ;;  %355 = vst.msk [vmem:[#allocation2 + $0x161] sm:$0x1] %vm309_vm2, %v339_v29  ;;  %v306_v33 = vld [vmem:[#allocation2 + $0x152] sm:$0x1]  ;;  %26460 = vst [vmem:[#allocation36_spill] sm:$0xff] %v21958_v35  ;;  %v22024_v1 = vld [vmem:[#allocation2 + $0x3a] sm:$0xff] }
  0x43   : > { %v340_v31 = vld [vmem:[#allocation2 + $0x177] sm:$0x1]  ;;  %323 = vst.msk [vmem:[#allocation2 + $0x150] sm:$0x1] %vm309_vm2, %v306_v33  ;;  %26461 = vst [vmem:[#allocation37_spill] sm:$0xff] %v21960_v36  ;;  %v22026_v26 = vld [vmem:[#allocation2 + $0x4a] sm:$0xff] }
  0x44   : > { %356 = vst.msk [vmem:[#allocation2 + $0x179] sm:$0x1] %vm309_vm2, %v340_v31  ;;  %v307_v37 = vld [vmem:[#allocation2 + $0x16a] sm:$0x1]  ;;  %26462 = vst [vmem:[#allocation38_spill] sm:$0xff] %v21967_v38  ;;  %v21983_v44 = vld [vmem:[#allocation2 + $0x170] sm:$0xff] }
  0x45   : > { %18666 = vmatmul.mubr.msk.f32.gmra.mrb[4].mxu0 %vm260_vm1, %v21844_v27  ;;  %324 = vst.msk [vmem:[#allocation2 + $0x168] sm:$0x1] %vm309_vm2, %v307_v37  ;;  %26463 = vst [vmem:[#allocation39_spill] sm:$0xff] %v21969_v40  ;;  %v22007_v60 = vld [vmem:[%s26085_s1 + $0x10] sm:$0xf]  ;;  %v22034_v29 = vld [vmem:[#allocation2 + $0x62] sm:$0xff] }
  0x46   : > { %18668 = vmatprep.mubr.msk.f32.mxu0 %vm260_vm1, %v21931_v62  ;;  %26464 = vst [vmem:[#allocation40_spill] sm:$0xff] %v21972_v42  ;;  %292 = vst.msk [vmem:[#allocation2 + $0x189] sm:$0xff] %vm260_vm1, %v21972_v42  ;;  %v22016_v63 = vld [vmem:[#allocation2 + $0x32] sm:$0xff]  ;;  %v22040_v31 = vld [vmem:[#allocation2 + $0x6a] sm:$0xff] }
  0x47   : > { %v308_v41 = vld [vmem:[#allocation2 + $0x182] sm:$0x1]  ;;  %26465 = vst [vmem:[#allocation41_spill] sm:$0xff] %v21981_v43  ;;  %26466 = vst [vmem:[#allocation42_spill] sm:$0xff] %v21983_v44  ;;  %v22042_v32 = vld [vmem:[#allocation2 + $0x7a] sm:$0xff] }
  0x48   : > { %325 = vst.msk [vmem:[#allocation2 + $0x180] sm:$0x1] %vm309_vm2, %v308_v41  ;;  %26467 = vst [vmem:[#allocation43_spill] sm:$0xff] %v21985_v45  ;;  %v22048_v33 = vld [vmem:[#allocation2 + $0x82] sm:$0xff]  ;;  %v22050_v37 = vld [vmem:[#allocation2 + $0x92] sm:$0xff] }
  0x49   : > { %18669 = vmatmul.mubr.msk.f32.gmra.mrb[6].mxu0 %vm260_vm1, %v21940_v28  ;;  %372 = vst.msk [vmem:[#allocation2 + $0x1a0] sm:$0xff] %vm260_vm1, %v21983_v44  ;;  %26469 = vst [vmem:[#allocation45_spill] sm:$0xff] %v21997_v47  ;;  %v22056_v41 = vld [vmem:[#allocation2 + $0x9a] sm:$0xff]  ;;  %v22066_v34 = vld [vmem:[#allocation2 + $0xc2] sm:$0xff] }
  0x4a   : > { %18671 = vmatprep.mubr.msk.f32.mxu0 %vm260_vm1, %v21943_v30  ;;  %v22072_v42 = vld [vmem:[#allocation2 + $0xca] sm:$0xff]  ;;  %v22074_v57 = vld [vmem:[#allocation2 + $0xda] sm:$0xff]  ;;  %v22080_v58 = vld [vmem:[#allocation2 + $0xe2] sm:$0xff]  ;;  %26475 = vst [vmem:[#allocation51_spill] sm:$0xff] %v22186_v15 }
  0x4b   : > { %v22088_v56 = vld [vmem:[#allocation2 + $0xfa] sm:$0xff]  ;;  %v22096_v53 = vld [vmem:[#allocation2 + $0x112] sm:$0xff]  ;;  %v22104_v25 = vld [vmem:[#allocation2 + $0x12a] sm:$0xff] }
  0x4c   : > { %v21987_v46 = vld [vmem:[#allocation2 + $0x168] sm:$0xff]  ;;  %v22106_v22 = vld [vmem:[#allocation2 + $0x13a] sm:$0xff]  ;;  %v22114_v20 = vld [vmem:[#allocation2 + $0x152] sm:$0xff] }
  0x4d   : > { %18672 = vmatmul.mubr.msk.f32.gmra.mrb[8].mxu0 %vm260_vm1, %v21958_v35  ;;  %26468 = vst [vmem:[#allocation44_spill] sm:$0xff] %v21987_v46  ;;  %371 = vst.msk [vmem:[#allocation2 + $0x198] sm:$0xff] %vm260_vm1, %v21987_v46  ;;  %v22112_v23 = vld [vmem:[#allocation2 + $0x142] sm:$0xff]  ;;  %v22120_v21 = vld [vmem:[#allocation2 + $0x15a] sm:$0xff] }
  0x4e   : > { %18674 = vmatprep.mubr.msk.f32.mxu0 %vm260_vm1, %v21960_v36  ;;  %v22122_v18 = vld [vmem:[#allocation2 + $0x16a] sm:$0xff]  ;;  %v22128_v19 = vld [vmem:[#allocation2 + $0x172] sm:$0xff]  ;;  %v22178_v17 = vld [vmem:[#allocation2 + $0xe0] sm:$0xff] }
  0x4f   : > { %26473 = vst [vmem:[#allocation49_spill] sm:$0xff] %v22178_v17  ;;  %v22180_v14 = vld [vmem:[#allocation2 + $0xf0] sm:$0xff]  ;;  %v22188_v12 = vld [vmem:[#allocation2 + $0x108] sm:$0xff]  ;;  %v22196_v10 = vld [vmem:[#allocation2 + $0x120] sm:$0xff] }
  0x50   : > { %26474 = vst [vmem:[#allocation50_spill] sm:$0xff] %v22180_v14  ;;  %26476 = vst [vmem:[#allocation52_spill] sm:$0xff] %v22188_v12  ;;  %v22194_v13 = vld [vmem:[#allocation2 + $0x110] sm:$0xff]  ;;  %v22202_v11 = vld [vmem:[#allocation2 + $0x128] sm:$0xff] }
  0x51   : > { %18675 = vmatmul.mubr.msk.f32.gmra.mrb[10].mxu0 %vm260_vm1, %v21967_v38  ;;  %26477 = vst [vmem:[#allocation53_spill] sm:$0xff] %v22194_v13  ;;  %26478 = vst [vmem:[#allocation54_spill] sm:$0xff] %v22196_v10  ;;  %v22204_v8 = vld [vmem:[#allocation2 + $0x138] sm:$0xff]  ;;  %v22210_v9 = vld [vmem:[#allocation2 + $0x140] sm:$0xff] }
  0x52   : > { %18677 = vmatprep.mubr.msk.f32.mxu0 %vm260_vm1, %v21969_v40  ;;  %26479 = vst [vmem:[#allocation55_spill] sm:$0xff] %v22202_v11  ;;  %26480 = vst [vmem:[#allocation56_spill] sm:$0xff] %v22204_v8  ;;  %v22212_v6 = vld [vmem:[#allocation2 + $0x150] sm:$0xff]  ;;  %v22218_v7 = vld [vmem:[#allocation2 + $0x158] sm:$0xff] }
  0x53   : > { %26481 = vst [vmem:[#allocation57_spill] sm:$0xff] %v22210_v9  ;;  %26482 = vst [vmem:[#allocation58_spill] sm:$0xff] %v22212_v6  ;;  %v341_v2 = vld [vmem:[#allocation2 + $0x18f] sm:$0x1]  ;;  %v22225_v3 = vld [vmem:[#allocation2 + $0x180] sm:$0xff] }
  0x54   : > { %26483 = vst [vmem:[#allocation59_spill] sm:$0xff] %v22218_v7  ;;  %357 = vst.msk [vmem:[#allocation2 + $0x191] sm:$0x1] %vm309_vm2, %v341_v2  ;;  %v22231_v4 = vld [vmem:[#allocation2 + $0x188] sm:$0xff] }
  0x55   : > { %18678 = vmatmul.mubr.msk.f32.gmra.mrb[12].mxu0 %vm260_vm1, %v21981_v43  ;;  %26484 = vst [vmem:[#allocation60_spill] sm:$0xff] %v22225_v3  ;;  %26485 = vst [vmem:[#allocation61_spill] sm:$0xff] %v22231_v4  ;;  %v22239_v2 = vld [vmem:[#allocation2 + $0x21] sm:$0xff] }
  0x56   : > { %18680 = vmatprep.mubr.msk.f32.mxu0 %vm260_vm1, %v21985_v45 }
  0x59   : > { %18681 = vmatmul.mubr.msk.f32.gmra.mrb[14].mxu0 %vm260_vm1, %v21997_v47 }
  0x5a   : > { %18709 = vmatprep.mubr.msk.f32.mxu0 %vm260_vm1, %v1090_v50  ;;  %v22058_v50 = vld [vmem:[#allocation2 + $0xaa] sm:$0xff] }
  0x5d   : > { %18710 = vmatmul.mubr.msk.f32.vlgmr.msra.gmra.mrb[0].mxu0 %vm260_vm1, %v1091_v51  ;;  %v22064_v51 = vld [vmem:[#allocation2 + $0xb2] sm:$0xff] }
  0x5e   : > { %18758 = vmatpush3.msk.msra.mxu0 %vm536_vm0, %v21882_v49  ;;  %18712 = vmatprep.mubr.msk.f32.mxu0 %vm260_vm1, %v22002_v59  ;;  %v22032_v49 = vld [vmem:[#allocation2 + $0x52] sm:$0xff] }
  0x5f   : > { %18807 = vmatprep.subr.msk.mxu0 %vm536_vm0, %v22007_v60 }
  0x61   : > { %18713 = vmatmul.mubr.msk.f32.gmra.mrb[2].mxu0 %vm260_vm1, %v22014_v61 }
  0x62   : > { %18715 = vmatprep.mubr.msk.f32.mxu0 %vm260_vm1, %v22016_v63 }
  0x65   : > { %18716 = vmatmul.mubr.msk.f32.gmra.mrb[4].mxu0 %vm260_vm1, %v22024_v1 }
  0x66   : > { %18718 = vmatprep.mubr.msk.f32.mxu0 %vm260_vm1, %v22026_v26 }
  0x69   : > { %18719 = vmatmul.mubr.msk.f32.gmra.mrb[6].mxu0 %vm260_vm1, %v22032_v49 }
  0x6a   : > { %18721 = vmatprep.mubr.msk.f32.mxu0 %vm260_vm1, %v22034_v29 }
  0x6d   : > { %18722 = vmatmul.mubr.msk.f32.gmra.mrb[8].mxu0 %vm260_vm1, %v22040_v31 }
  0x6e   : > { %18724 = vmatprep.mubr.msk.f32.mxu0 %vm260_vm1, %v22042_v32 }
  0x71   : > { %18725 = vmatmul.mubr.msk.f32.gmra.mrb[10].mxu0 %vm260_vm1, %v22048_v33 }
  0x72   : > { %18727 = vmatprep.mubr.msk.f32.mxu0 %vm260_vm1, %v22050_v37 }
  0x75   : > { %18728 = vmatmul.mubr.msk.f32.gmra.mrb[12].mxu0 %vm260_vm1, %v22056_v41 }
  0x76   : > { %18730 = vmatprep.mubr.msk.f32.mxu0 %vm260_vm1, %v22058_v50 }
  0x79   : > { %18731 = vmatmul.mubr.msk.f32.gmra.mrb[14].mxu0 %vm260_vm1, %v22064_v51 }
  0x7a   : > { %18733 = vmatprep.mubr.msk.f32.mxu0 %vm260_vm1, %v22066_v34 }
  0x7d   : > { %18734 = vmatmul.mubr.msk.f32.gmra.mrb[16].mxu0 %vm260_vm1, %v22072_v42 }
  0x7e   : > { %18736 = vmatprep.mubr.msk.f32.mxu0 %vm260_vm1, %v22074_v57 }
  0x81   : > { %18737 = vmatmul.mubr.msk.f32.gmra.mrb[18].mxu0 %vm260_vm1, %v22080_v58 }
  0x82   : > { %18739 = vmatprep.mubr.msk.f32.mxu0 %vm260_vm1, %v22082_v55 }
  0x85   : > { %18740 = vmatmul.mubr.msk.f32.gmra.mrb[20].mxu0 %vm260_vm1, %v22088_v56 }
  0x86   : > { %18742 = vmatprep.mubr.msk.f32.mxu0 %vm260_vm1, %v22090_v52 }
  0x89   : > { %18743 = vmatmul.mubr.msk.f32.gmra.mrb[22].mxu0 %vm260_vm1, %v22096_v53 }
  0x8a   : > { %18745 = vmatprep.mubr.msk.f32.mxu0 %vm260_vm1, %v22098_v24 }
  0x8d   : > { %18746 = vmatmul.mubr.msk.f32.gmra.mrb[24].mxu0 %vm260_vm1, %v22104_v25 }
  0x8e   : > { %18748 = vmatprep.mubr.msk.f32.mxu0 %vm260_vm1, %v22106_v22 }
  0x91   : > { %18749 = vmatmul.mubr.msk.f32.gmra.mrb[26].mxu0 %vm260_vm1, %v22112_v23 }
  0x92   : > { %18751 = vmatprep.mubr.msk.f32.mxu0 %vm260_vm1, %v22114_v20 }
  0x95   : > { %18752 = vmatmul.mubr.msk.f32.gmra.mrb[28].mxu0 %vm260_vm1, %v22120_v21 }
  0x96   : > { %18754 = vmatprep.mubr.msk.f32.mxu0 %vm260_vm1, %v22122_v18 }
  0x99   : > { %18755 = vmatmul.mubr.msk.f32.gmra.mrb[30].mxu0 %vm260_vm1, %v22128_v19 }
  0x9a   : > { %18759 = vmatprep.mubr.msk.f32.mxu0 %vm260_vm1, %v21875_v48  ;;  %v22164_v48 = vld [vmem:[#allocation2 + $0xc0] sm:$0xff] }
  0x9b   : > { %26470 = vst [vmem:[#allocation46_spill] sm:$0xff] %v22164_v48 }
  0x9d   : > { %18760 = vmatmul.mubr.msk.f32.vlgmr.msra.gmra.mrb[0].mxu0 %vm260_vm1, %v21896_v54  ;;  %v22170_v54 = vld [vmem:[#allocation2 + $0xc8] sm:$0xff] }
  0x9e   : > { %18808 = vmatpush3.msk.msra.mxu0 %vm536_vm0, %v22007_v60  ;;  %18762 = vmatprep.mubr.msk.f32.mxu0 %vm260_vm1, %v21864_v39  ;;  %26471 = vst [vmem:[#allocation47_spill] sm:$0xff] %v22170_v54  ;;  %v22172_v60 = vld [vmem:[#allocation2 + $0xd8] sm:$0xff] }
  0x9f   : > { %18857 = vmatprep.subr.msk.mxu0 %vm536_vm0, %v2256_v16  ;;  %26472 = vst [vmem:[#allocation48_spill] sm:$0xff] %v22172_v60 }
  0xa1   : > { %18763 = vmatmul.mubr.msk.f32.gmra.mrb[2].mxu0 %vm260_vm1, %v21844_v27 }
  0xa2   : > { %18765 = vmatprep.mubr.msk.f32.mxu0 %vm260_vm1, %v21931_v62 }
  0xa5   : > { %18766 = vmatmul.mubr.msk.f32.gmra.mrb[4].mxu0 %vm260_vm1, %v21940_v28 }
  0xa6   : > { %18768 = vmatprep.mubr.msk.f32.mxu0 %vm260_vm1, %v21943_v30  ;;  %v22351_v30 = vld [vmem:[#allocation2 + $0x159] sm:$0xff] }
  0xa9   : > { %18769 = vmatmul.mubr.msk.f32.gmra.mrb[6].mxu0 %vm260_vm1, %v21958_v35  ;;  %v22345_v35 = vld [vmem:[#allocation2 + $0x151] sm:$0xff] }
  0xaa   : > { %18771 = vmatprep.mubr.msk.f32.mxu0 %vm260_vm1, %v21960_v36  ;;  %v22343_v36 = vld [vmem:[#allocation2 + $0x141] sm:$0xff]  ;;  %26489 = vst [vmem:[#allocation65_spill] sm:$0xff] %v22345_v35 }
  0xad   : > { %18772 = vmatmul.mubr.msk.f32.gmra.mrb[8].mxu0 %vm260_vm1, %v21967_v38  ;;  %v22337_v38 = vld [vmem:[#allocation2 + $0x139] sm:$0xff] }
  0xae   : > { %18774 = vmatprep.mubr.msk.f32.mxu0 %vm260_vm1, %v21969_v40  ;;  %v22335_v40 = vld [vmem:[#allocation2 + $0x129] sm:$0xff]  ;;  %26488 = vst [vmem:[#allocation64_spill] sm:$0xff] %v22337_v38 }
  0xaf   : > { %26487 = vst [vmem:[#allocation63_spill] sm:$0xff] %v22335_v40 }
  0xb1   : > { %18775 = vmatmul.mubr.msk.f32.gmra.mrb[10].mxu0 %vm260_vm1, %v21981_v43  ;;  %v22329_v43 = vld [vmem:[#allocation2 + $0x121] sm:$0xff] }
  0xb2   : > { %18777 = vmatprep.mubr.msk.f32.mxu0 %vm260_vm1, %v21985_v45  ;;  %v22327_v45 = vld [vmem:[#allocation2 + $0x111] sm:$0xff]  ;;  %26486 = vst [vmem:[#allocation62_spill] sm:$0xff] %v22329_v43 }
  0xb5   : > { %18778 = vmatmul.mubr.msk.f32.gmra.mrb[12].mxu0 %vm260_vm1, %v21997_v47  ;;  %v22321_v47 = vld [vmem:[#allocation2 + $0x109] sm:$0xff] }
  0xb6   : > { %18780 = vmatprep.mubr.msk.f32.mxu0 %vm260_vm1, %v22164_v48  ;;  %v22319_v48 = vld [vmem:[#allocation2 + $0xf9] sm:$0xff] }
  0xb9   : > { %18781 = vmatmul.mubr.msk.f32.gmra.mrb[14].mxu0 %vm260_vm1, %v22170_v54  ;;  %v22313_v54 = vld [vmem:[#allocation2 + $0xf1] sm:$0xff] }
  0xba   : > { %18783 = vmatprep.mubr.msk.f32.mxu0 %vm260_vm1, %v22172_v60  ;;  %v22311_v60 = vld [vmem:[#allocation2 + $0xe1] sm:$0xff] }
  0xbd   : > { %18784 = vmatmul.mubr.msk.f32.gmra.mrb[16].mxu0 %vm260_vm1, %v22178_v17  ;;  %v22305_v17 = vld [vmem:[#allocation2 + $0xd9] sm:$0xff] }
  0xbe   : > { %18786 = vmatprep.mubr.msk.f32.mxu0 %vm260_vm1, %v22180_v14  ;;  %v22303_v14 = vld [vmem:[#allocation2 + $0xc9] sm:$0xff] }
  0xc1   : > { %18787 = vmatmul.mubr.msk.f32.gmra.mrb[18].mxu0 %vm260_vm1, %v22186_v15  ;;  %v22297_v15 = vld [vmem:[#allocation2 + $0xc1] sm:$0xff] }
  0xc2   : > { %18789 = vmatprep.mubr.msk.f32.mxu0 %vm260_vm1, %v22188_v12  ;;  %v22295_v12 = vld [vmem:[#allocation2 + $0xb1] sm:$0xff] }
  0xc5   : > { %18790 = vmatmul.mubr.msk.f32.gmra.mrb[20].mxu0 %vm260_vm1, %v22194_v13  ;;  %v22289_v13 = vld [vmem:[#allocation2 + $0xa9] sm:$0xff] }
  0xc6   : > { %18792 = vmatprep.mubr.msk.f32.mxu0 %vm260_vm1, %v22196_v10  ;;  %v22287_v10 = vld [vmem:[#allocation2 + $0x99] sm:$0xff] }
  0xc9   : > { %18793 = vmatmul.mubr.msk.f32.gmra.mrb[22].mxu0 %vm260_vm1, %v22202_v11  ;;  %v22281_v11 = vld [vmem:[#allocation2 + $0x91] sm:$0xff] }
  0xca   : > { %18795 = vmatprep.mubr.msk.f32.mxu0 %vm260_vm1, %v22204_v8  ;;  %v22279_v8 = vld [vmem:[#allocation2 + $0x81] sm:$0xff] }
  0xcd   : > { %18796 = vmatmul.mubr.msk.f32.gmra.mrb[24].mxu0 %vm260_vm1, %v22210_v9  ;;  %v22273_v9 = vld [vmem:[#allocation2 + $0x79] sm:$0xff] }
  0xce   : > { %18798 = vmatprep.mubr.msk.f32.mxu0 %vm260_vm1, %v22212_v6  ;;  %v22265_v6 = vld [vmem:[#allocation2 + $0x61] sm:$0xff] }
  0xd1   : > { %18799 = vmatmul.mubr.msk.f32.gmra.mrb[26].mxu0 %vm260_vm1, %v22218_v7  ;;  %v22263_v7 = vld [vmem:[#allocation2 + $0x51] sm:$0xff] }
  0xd2   : > { %18801 = vmatprep.mubr.msk.f32.mxu0 %vm260_vm1, %v21987_v46  ;;  %v22241_v46 = vld [vmem:[#allocation2 + $0x31] sm:$0xff] }
  0xd5   : > { %18802 = vmatmul.mubr.msk.f32.gmra.mrb[28].mxu0 %vm260_vm1, %v21983_v44  ;;  %v22246_v44 = vld [vmem:[%s26085_s1 + $0x18] sm:$0xf] }
  0xd6   : > { %18804 = vmatprep.mubr.msk.f32.mxu0 %vm260_vm1, %v22225_v3  ;;  %v22255_v3 = vld [vmem:[#allocation2 + $0x49] sm:$0xff] }
  0xd9   : > { %18805 = vmatmul.mubr.msk.f32.gmra.mrb[30].mxu0 %vm260_vm1, %v22231_v4  ;;  %v22253_v4 = vld [vmem:[#allocation2 + $0x39] sm:$0xff] }
  0xda   : > { %18809 = vmatprep.mubr.msk.f32.mxu0 %vm260_vm1, %v22233_v5 }
  0xdd   : > { %18810 = vmatmul.mubr.msk.f32.vlgmr.msra.gmra.mrb[0].mxu0 %vm260_vm1, %v22239_v2 }
  0xde   : > { %18858 = vmatpush3.msk.msra.mxu0 %vm536_vm0, %v2256_v16  ;;  %18812 = vmatprep.mubr.msk.f32.mxu0 %vm260_vm1, %v22241_v46  ;;  %v22271_v16 = vld [vmem:[#allocation2 + $0x69] sm:$0xff] }
  0xdf   : > { %18907 = vmatprep.subr.msk.mxu0 %vm536_vm0, %v22246_v44 }
  0xe1   : > { %18813 = vmatmul.mubr.msk.f32.gmra.mrb[2].mxu0 %vm260_vm1, %v22253_v4 }
  0xe2   : > { %18815 = vmatprep.mubr.msk.f32.mxu0 %vm260_vm1, %v22255_v3 }
  0xe5   : > { %18816 = vmatmul.mubr.msk.f32.gmra.mrb[4].mxu0 %vm260_vm1, %v22263_v7 }
  0xe6   : > { %18818 = vmatprep.mubr.msk.f32.mxu0 %vm260_vm1, %v22265_v6 }
  0xe9   : > { %18819 = vmatmul.mubr.msk.f32.gmra.mrb[6].mxu0 %vm260_vm1, %v22271_v16 }
  0xea   : > { %18821 = vmatprep.mubr.msk.f32.mxu0 %vm260_vm1, %v22273_v9 }
  0xed   : > { %18822 = vmatmul.mubr.msk.f32.gmra.mrb[8].mxu0 %vm260_vm1, %v22279_v8 }
  0xee   : > { %18824 = vmatprep.mubr.msk.f32.mxu0 %vm260_vm1, %v22281_v11 }
  0xf1   : > { %18825 = vmatmul.mubr.msk.f32.gmra.mrb[10].mxu0 %vm260_vm1, %v22287_v10 }
  0xf2   : > { %18827 = vmatprep.mubr.msk.f32.mxu0 %vm260_vm1, %v22289_v13 }
  0xf5   : > { %18828 = vmatmul.mubr.msk.f32.gmra.mrb[12].mxu0 %vm260_vm1, %v22295_v12 }
  0xf6   : > { %18830 = vmatprep.mubr.msk.f32.mxu0 %vm260_vm1, %v22297_v15 }
  0xf9   : > { %18831 = vmatmul.mubr.msk.f32.gmra.mrb[14].mxu0 %vm260_vm1, %v22303_v14 }
  0xfa   : > { %18833 = vmatprep.mubr.msk.f32.mxu0 %vm260_vm1, %v22305_v17 }
  0xfd   : > { %18834 = vmatmul.mubr.msk.f32.gmra.mrb[16].mxu0 %vm260_vm1, %v22311_v60 }
  0xfe   : > { %18836 = vmatprep.mubr.msk.f32.mxu0 %vm260_vm1, %v22313_v54 }
 0x101   : > { %18837 = vmatmul.mubr.msk.f32.gmra.mrb[18].mxu0 %vm260_vm1, %v22319_v48 }
 0x102   : > { %18839 = vmatprep.mubr.msk.f32.mxu0 %vm260_vm1, %v22321_v47 }
 0x105   : > { %18840 = vmatmul.mubr.msk.f32.gmra.mrb[20].mxu0 %vm260_vm1, %v22327_v45 }
 0x106   : > { %18842 = vmatprep.mubr.msk.f32.mxu0 %vm260_vm1, %v22329_v43  ;;  %v22353_v43 = vld [vmem:[#allocation2 + $0x169] sm:$0xff] }
 0x107   : > { %26490 = vst [vmem:[#allocation66_spill] sm:$0xff] %v22353_v43 }
 0x109   : > { %18843 = vmatmul.mubr.msk.f32.gmra.mrb[22].mxu0 %vm260_vm1, %v22335_v40  ;;  %v22361_v40 = vld [vmem:[#allocation2 + $0x181] sm:$0xff] }
 0x10a   : > { %18845 = vmatprep.mubr.msk.f32.mxu0 %vm260_vm1, %v22337_v38  ;;  %v22359_v38 = vld [vmem:[#allocation2 + $0x171] sm:$0xff] }
 0x10d   : > { %18846 = vmatmul.mubr.msk.f32.gmra.mrb[24].mxu0 %vm260_vm1, %v22343_v36 }
 0x10e   : > { %18848 = vmatprep.mubr.msk.f32.mxu0 %vm260_vm1, %v22345_v35  ;;  %v22367_v35 = vld [vmem:[#allocation2 + $0x189] sm:$0xff] }
 0x111   : > { %18849 = vmatmul.mubr.msk.f32.gmra.mrb[26].mxu0 %vm260_vm1, %v22351_v30 }
 0x112   : > { %18851 = vmatprep.mubr.msk.f32.mxu0 %vm260_vm1, %v22353_v43  ;;  %v22376_v43 = vld [vmem:[%s26085_s1 + $0x1c] sm:$0xf] }
 0x115   : > { %18852 = vmatmul.mubr.msk.f32.gmra.mrb[28].mxu0 %vm260_vm1, %v22359_v38 }
 0x116   : > { %18854 = vmatprep.mubr.msk.f32.mxu0 %vm260_vm1, %v22361_v40 }
 0x119   : > { %18855 = vmatmul.mubr.msk.f32.gmra.mrb[30].mxu0 %vm260_vm1, %v22367_v35 }
 0x11a   : > { %18859 = vmatprep.mubr.msk.f32.mxu0 %vm260_vm1, %v22002_v59  ;;  %v408_v59 = vld [vmem:[#allocation2 + $0x1] sm:$0xff] }
 0x11b   : > { %18609 = vmatprep.mubr.msk.f32.mxu1 %vm260_vm1, %v408_v59  ;;  %v3447_v59 = vld [vmem:[#allocation2 + $0x142] sm:$0xff] }
 0x11d   : > { %18860 = vmatmul.mubr.msk.f32.vlgmr.msra.gmra.mrb[0].mxu0 %vm260_vm1, %v22014_v61  ;;  %v409_v61 = vld [vmem:[#allocation2 + $0x9] sm:$0xff] }
 0x11e   : > { %18908 = vmatpush3.msk.msra.mxu0 %vm536_vm0, %v22246_v44  ;;  %18862 = vmatprep.mubr.msk.f32.mxu0 %vm260_vm1, %v22016_v63  ;;  %v407_v44 = vld [vmem:[%s26085_s1 + $0x4] sm:$0xf]  ;;  %v26510_v63 = vld [vmem:[#allocation52_spill] sm:$0xff] }
 0x11f   : > { %18957 = vmatprep.subr.msk.mxu0 %vm536_vm0, %v22376_v43  ;;  %18607 = vmatprep.subr.msk.mxu1 %vm536_vm0, %v407_v44 }
 0x120   : > { %18608 = vmatpush3.msk.msra.mxu1 %vm536_vm0, %v407_v44  ;;  %v2677_v44 = vld [vmem:[#allocation2 + $0x1a0] sm:$0xff] }
 0x121   : > { %18863 = vmatmul.mubr.msk.f32.gmra.mrb[2].mxu0 %vm260_vm1, %v22024_v1  ;;  %18610 = vmatmul.mubr.msk.f32.vlgmr.msra.gmra.mrb[0].mxu1 %vm260_vm1, %v409_v61  ;;  %v26511_v1 = vld [vmem:[#allocation53_spill] sm:$0xff] }
 0x122   : > { %18865 = vmatprep.mubr.msk.f32.mxu0 %vm260_vm1, %v22026_v26  ;;  %20557 = vmatprep.subr.msk.mxu1 %vm536_vm0, %v21707_v0  ;;  %v26512_v26 = vld [vmem:[#allocation54_spill] sm:$0xff]  ;;  %v3448_v61 = vld [vmem:[#allocation2 + $0x152] sm:$0xff] }
 0x123   : > { %18612 = vmatprep.mubr.msk.f32.mxu1 %vm260_vm1, %v22233_v5  ;;  %20558 = vmatpush3.msk.msra.mxu1 %vm536_vm0, %v21707_v0  ;;  %v369_v0 = vld [vmem:[#allocation2 + $0x178] sm:$0x3]  ;;  %v22480_v5 = vld [vmem:[#allocation2 + $0x182] sm:$0xff] }
 0x124   : > { %373 = vst.msk [vmem:[#allocation2 + $0x1a8] sm:$0x3] %vm364_vm3, %v369_v0 }
 0x125   : > { %18866 = vmatmul.mubr.msk.f32.gmra.mrb[4].mxu0 %vm260_vm1, %v22032_v49  ;;  %18613 = vmatmul.mubr.msk.f32.gmra.mrb[2].mxu1 %vm260_vm1, %v22239_v2  ;;  %v26513_v49 = vld [vmem:[#allocation55_spill] sm:$0xff]  ;;  %v26521_v2 = vld [vmem:[#allocation61_spill] sm:$0xff] }
 0x126   : > { %18868 = vmatprep.mubr.msk.f32.mxu0 %vm260_vm1, %v22034_v29  ;;  %18615 = vmatprep.mubr.msk.f32.mxu1 %vm260_vm1, %v22241_v46  ;;  %v26514_v29 = vld [vmem:[#allocation56_spill] sm:$0xff] }
 0x129   : > { %18869 = vmatmul.mubr.msk.f32.gmra.mrb[6].mxu0 %vm260_vm1, %v22040_v31  ;;  %18616 = vmatmul.mubr.msk.f32.gmra.mrb[4].mxu1 %vm260_vm1, %v22253_v4  ;;  %v26515_v31 = vld [vmem:[#allocation57_spill] sm:$0xff] }
 0x12a   : > { %18871 = vmatprep.mubr.msk.f32.mxu0 %vm260_vm1, %v22042_v32  ;;  %18618 = vmatprep.mubr.msk.f32.mxu1 %vm260_vm1, %v22255_v3  ;;  %v26516_v32 = vld [vmem:[#allocation58_spill] sm:$0xff] }
 0x12d   : > { %18872 = vmatmul.mubr.msk.f32.gmra.mrb[8].mxu0 %vm260_vm1, %v22048_v33  ;;  %18619 = vmatmul.mubr.msk.f32.gmra.mrb[6].mxu1 %vm260_vm1, %v22263_v7  ;;  %v26517_v33 = vld [vmem:[#allocation59_spill] sm:$0xff] }
 0x12e   : > { %18874 = vmatprep.mubr.msk.f32.mxu0 %vm260_vm1, %v22050_v37  ;;  %18621 = vmatprep.mubr.msk.f32.mxu1 %vm260_vm1, %v22265_v6  ;;  %v26518_v37 = vld [vmem:[#allocation44_spill] sm:$0xff] }
 0x131   : > { %18875 = vmatmul.mubr.msk.f32.gmra.mrb[10].mxu0 %vm260_vm1, %v22056_v41  ;;  %18622 = vmatmul.mubr.msk.f32.gmra.mrb[8].mxu1 %vm260_vm1, %v22271_v16  ;;  %v26519_v41 = vld [vmem:[#allocation42_spill] sm:$0xff] }
 0x132   : > { %18877 = vmatprep.mubr.msk.f32.mxu0 %vm260_vm1, %v22058_v50  ;;  %18624 = vmatprep.mubr.msk.f32.mxu1 %vm260_vm1, %v22273_v9  ;;  %v26520_v50 = vld [vmem:[#allocation60_spill] sm:$0xff] }
 0x135   : > { %18878 = vmatmul.mubr.msk.f32.gmra.mrb[12].mxu0 %vm260_vm1, %v22064_v51  ;;  %18625 = vmatmul.mubr.msk.f32.gmra.mrb[10].mxu1 %vm260_vm1, %v22279_v8  ;;  %v2676_v51 = vld [vmem:[#allocation2 + $0x198] sm:$0xff] }
 0x136   : > { %18880 = vmatprep.mubr.msk.f32.mxu0 %vm260_vm1, %v22066_v34  ;;  %18627 = vmatprep.mubr.msk.f32.mxu1 %vm260_vm1, %v22281_v11  ;;  %v26507_v34 = vld [vmem:[#allocation49_spill] sm:$0xff] }
 0x139   : > { %18881 = vmatmul.mubr.msk.f32.gmra.mrb[14].mxu0 %vm260_vm1, %v22072_v42  ;;  %18628 = vmatmul.mubr.msk.f32.gmra.mrb[12].mxu1 %vm260_vm1, %v22287_v10  ;;  %v26508_v42 = vld [vmem:[#allocation50_spill] sm:$0xff] }
 0x13a   : > { %18883 = vmatprep.mubr.msk.f32.mxu0 %vm260_vm1, %v22074_v57  ;;  %18630 = vmatprep.mubr.msk.f32.mxu1 %vm260_vm1, %v22289_v13  ;;  %v26503_v57 = vld [vmem:[#allocation45_spill] sm:$0xff] }
 0x13d   : > { %18884 = vmatmul.mubr.msk.f32.gmra.mrb[16].mxu0 %vm260_vm1, %v22080_v58  ;;  %18631 = vmatmul.mubr.msk.f32.gmra.mrb[14].mxu1 %vm260_vm1, %v22295_v12  ;;  %v26504_v58 = vld [vmem:[#allocation46_spill] sm:$0xff] }
 0x13e   : > { %18886 = vmatprep.mubr.msk.f32.mxu0 %vm260_vm1, %v22082_v55  ;;  %18633 = vmatprep.mubr.msk.f32.mxu1 %vm260_vm1, %v22297_v15  ;;  %v26501_v55 = vld [vmem:[#allocation66_spill] sm:$0xff] }
 0x141   : > { %18887 = vmatmul.mubr.msk.f32.gmra.mrb[18].mxu0 %vm260_vm1, %v22088_v56  ;;  %18634 = vmatmul.mubr.msk.f32.gmra.mrb[16].mxu1 %vm260_vm1, %v22303_v14  ;;  %v26502_v56 = vld [vmem:[#allocation43_spill] sm:$0xff] }
 0x142   : > { %18889 = vmatprep.mubr.msk.f32.mxu0 %vm260_vm1, %v22090_v52  ;;  %18636 = vmatprep.mubr.msk.f32.mxu1 %vm260_vm1, %v22305_v17  ;;  %v26499_v52 = vld [vmem:[#allocation39_spill] sm:$0xff] }
 0x145   : > { %18890 = vmatmul.mubr.msk.f32.gmra.mrb[20].mxu0 %vm260_vm1, %v22096_v53  ;;  %18637 = vmatmul.mubr.msk.f32.gmra.mrb[18].mxu1 %vm260_vm1, %v22311_v60  ;;  %v26500_v53 = vld [vmem:[#allocation41_spill] sm:$0xff] }
 0x146   : > { %18892 = vmatprep.mubr.msk.f32.mxu0 %vm260_vm1, %v22098_v24  ;;  %18639 = vmatprep.mubr.msk.f32.mxu1 %vm260_vm1, %v22313_v54  ;;  %v26495_v24 = vld [vmem:[#allocation64_spill] sm:$0xff] }
 0x149   : > { %18893 = vmatmul.mubr.msk.f32.gmra.mrb[22].mxu0 %vm260_vm1, %v22104_v25  ;;  %18640 = vmatmul.mubr.msk.f32.gmra.mrb[20].mxu1 %vm260_vm1, %v22319_v48  ;;  %v26496_v25 = vld [vmem:[#allocation37_spill] sm:$0xff] }
 0x14a   : > { %18895 = vmatprep.mubr.msk.f32.mxu0 %vm260_vm1, %v22106_v22  ;;  %18642 = vmatprep.mubr.msk.f32.mxu1 %vm260_vm1, %v22321_v47  ;;  %v26493_v22 = vld [vmem:[#allocation63_spill] sm:$0xff] }
 0x14d   : > { %18896 = vmatmul.mubr.msk.f32.gmra.mrb[24].mxu0 %vm260_vm1, %v22112_v23  ;;  %18643 = vmatmul.mubr.msk.f32.gmra.mrb[22].mxu1 %vm260_vm1, %v22327_v45  ;;  %v26494_v23 = vld [vmem:[#allocation36_spill] sm:$0xff] }
 0x14e   : > { %18898 = vmatprep.mubr.msk.f32.mxu0 %vm260_vm1, %v22114_v20  ;;  %v22490_v20 = vld [vmem:[#allocation2 + $0x18a] sm:$0xff] }
 0x151   : > { %18899 = vmatmul.mubr.msk.f32.gmra.mrb[26].mxu0 %vm260_vm1, %v22120_v21  ;;  %v26492_v21 = vld [vmem:[#allocation34_spill] sm:$0xff] }
 0x152   : > { %18901 = vmatprep.mubr.msk.f32.mxu0 %vm260_vm1, %v22122_v18  ;;  %v22503_v18 = vld [vmem:[%s26085_s1 + $0x20] sm:$0xf] }
 0x155   : > { %18902 = vmatmul.mubr.msk.f32.gmra.mrb[28].mxu0 %vm260_vm1, %v22128_v19  ;;  %v26491_v19 = vld [vmem:[#allocation62_spill] sm:$0xff] }
 0x156   : > { %18904 = vmatprep.mubr.msk.f32.mxu0 %vm260_vm1, %v22480_v5  ;;  %18645 = vmatprep.mubr.msk.f32.mxu1 %vm260_vm1, %v26491_v19 }
 0x157   : > { %18646 = vmatmul.mubr.msk.f32.gmra.mrb[24].mxu1 %vm260_vm1, %v26493_v22 }
 0x158   : > { %18648 = vmatprep.mubr.msk.f32.mxu1 %vm260_vm1, %v26495_v24 }
 0x159   : > { %18905 = vmatmul.mubr.msk.f32.gmra.mrb[30].mxu0 %vm260_vm1, %v22490_v20 }
 0x15a   : > { %18909 = vmatprep.mubr.msk.f32.mxu0 %vm260_vm1, %v21864_v39  ;;  %v26498_v39 = vld [vmem:[#allocation65_spill] sm:$0xff] }
 0x15b   : > { %18649 = vmatmul.mubr.msk.f32.gmra.mrb[26].mxu1 %vm260_vm1, %v22343_v36 }
 0x15c   : > { %18651 = vmatprep.mubr.msk.f32.mxu1 %vm260_vm1, %v26498_v39 }
 0x15d   : > { %18910 = vmatmul.mubr.msk.f32.vlgmr.msra.gmra.mrb[0].mxu0 %vm260_vm1, %v21844_v27  ;;  %v26497_v27 = vld [vmem:[#allocation38_spill] sm:$0xff] }
 0x15e   : > { %18958 = vmatpush3.msk.msra.mxu0 %vm536_vm0, %v22376_v43  ;;  %18912 = vmatprep.mubr.msk.f32.mxu0 %vm260_vm1, %v21931_v62  ;;  %v26505_v62 = vld [vmem:[#allocation47_spill] sm:$0xff] }
 0x15f   : > { %19007 = vmatprep.subr.msk.mxu0 %vm536_vm0, %v22503_v18  ;;  %18652 = vmatmul.mubr.msk.f32.gmra.mrb[28].mxu1 %vm260_vm1, %v22351_v30  ;;  %v26509_v43 = vld [vmem:[#allocation51_spill] sm:$0xff] }
 0x160   : > { %18654 = vmatprep.mubr.msk.f32.mxu1 %vm260_vm1, %v26501_v55 }
 0x161   : > { %18913 = vmatmul.mubr.msk.f32.gmra.mrb[2].mxu0 %vm260_vm1, %v21940_v28  ;;  %v26506_v28 = vld [vmem:[#allocation48_spill] sm:$0xff] }
 0x162   : > { %18915 = vmatprep.mubr.msk.f32.mxu0 %vm260_vm1, %v26492_v21  ;;  %v3450_v21 = vld [vmem:[#allocation2 + $0x16a] sm:$0xff] }
 0x163   : > { %18655 = vmatmul.mubr.msk.f32.gmra.mrb[30].mxu1 %vm260_vm1, %v22359_v38 }
 0x164   : > { %18683 = vmatprep.mubr.msk.f32.mxu1 %vm260_vm1, %v26504_v58 }
 0x165   : > { %18916 = vmatmul.mubr.msk.f32.gmra.mrb[4].mxu0 %vm260_vm1, %v26494_v23 }
 0x166   : > { %18918 = vmatprep.mubr.msk.f32.mxu0 %vm260_vm1, %v26496_v25 }
 0x167   : > { %18684 = vmatmul.mubr.msk.f32.vlgmr.msra.gmra.mrb[16].mxu1 %vm260_vm1, %v26505_v62 }
 0x168   : > { %18686 = vmatprep.mubr.msk.f32.mxu1 %vm260_vm1, %v26506_v28 }
 0x169   : > { %18919 = vmatmul.mubr.msk.f32.gmra.mrb[6].mxu0 %vm260_vm1, %v26497_v27 }
 0x16a   : > { %18921 = vmatprep.mubr.msk.f32.mxu0 %vm260_vm1, %v26499_v52  ;;  %v3455_v52 = vld [vmem:[#allocation2 + $0x1a2] sm:$0xff] }
 0x16b   : > { %18687 = vmatmul.mubr.msk.f32.gmra.mrb[18].mxu1 %vm260_vm1, %v26507_v34 }
 0x16c   : > { %18689 = vmatprep.mubr.msk.f32.mxu1 %vm260_vm1, %v26508_v42 }
 0x16d   : > { %18922 = vmatmul.mubr.msk.f32.gmra.mrb[8].mxu0 %vm260_vm1, %v26500_v53 }
 0x16e   : > { %18924 = vmatprep.mubr.msk.f32.mxu0 %vm260_vm1, %v26502_v56 }
 0x16f   : > { %18690 = vmatmul.mubr.msk.f32.gmra.mrb[20].mxu1 %vm260_vm1, %v26509_v43 }
 0x170   : > { %18692 = vmatprep.mubr.msk.f32.mxu1 %vm260_vm1, %v26510_v63 }
 0x171   : > { %18925 = vmatmul.mubr.msk.f32.gmra.mrb[10].mxu0 %vm260_vm1, %v26503_v57 }
 0x172   : > { %18927 = vmatprep.mubr.msk.f32.mxu0 %vm260_vm1, %v26504_v58 }
 0x173   : > { %18693 = vmatmul.mubr.msk.f32.gmra.mrb[22].mxu1 %vm260_vm1, %v26511_v1 }
 0x174   : > { %18695 = vmatprep.mubr.msk.f32.mxu1 %vm260_vm1, %v26512_v26 }
 0x175   : > { %18928 = vmatmul.mubr.msk.f32.gmra.mrb[12].mxu0 %vm260_vm1, %v26505_v62 }
 0x176   : > { %18930 = vmatprep.mubr.msk.f32.mxu0 %vm260_vm1, %v26506_v28 }
 0x177   : > { %18696 = vmatmul.mubr.msk.f32.gmra.mrb[24].mxu1 %vm260_vm1, %v26513_v49 }
 0x178   : > { %18698 = vmatprep.mubr.msk.f32.mxu1 %vm260_vm1, %v26514_v29 }
 0x179   : > { %18931 = vmatmul.mubr.msk.f32.gmra.mrb[14].mxu0 %vm260_vm1, %v26507_v34 }
 0x17a   : > { %18933 = vmatprep.mubr.msk.f32.mxu0 %vm260_vm1, %v26508_v42 }
 0x17b   : > { %18699 = vmatmul.mubr.msk.f32.gmra.mrb[26].mxu1 %vm260_vm1, %v26515_v31 }
 0x17c   : > { %18701 = vmatprep.mubr.msk.f32.mxu1 %vm260_vm1, %v26516_v32 }
 0x17d   : > { %18934 = vmatmul.mubr.msk.f32.gmra.mrb[16].mxu0 %vm260_vm1, %v26509_v43 }
 0x17e   : > { %18936 = vmatprep.mubr.msk.f32.mxu0 %vm260_vm1, %v26510_v63 }
 0x17f   : > { %18702 = vmatmul.mubr.msk.f32.gmra.mrb[28].mxu1 %vm260_vm1, %v26517_v33 }
 0x180   : > { %18704 = vmatprep.mubr.msk.f32.mxu1 %vm260_vm1, %v26518_v37 }
 0x181   : > { %18937 = vmatmul.mubr.msk.f32.gmra.mrb[18].mxu0 %vm260_vm1, %v26511_v1 }
 0x182   : > { %18939 = vmatprep.mubr.msk.f32.mxu0 %vm260_vm1, %v26512_v26 }
 0x183   : > { %18705 = vmatmul.mubr.msk.f32.gmra.mrb[30].mxu1 %vm260_vm1, %v26519_v41 }
 0x185   : > { %18940 = vmatmul.mubr.msk.f32.gmra.mrb[20].mxu0 %vm260_vm1, %v26513_v49 }
 0x186   : > { %18942 = vmatprep.mubr.msk.f32.mxu0 %vm260_vm1, %v26514_v29 }
 0x189   : > { %18943 = vmatmul.mubr.msk.f32.gmra.mrb[22].mxu0 %vm260_vm1, %v26515_v31 }
 0x18a   : > { %18945 = vmatprep.mubr.msk.f32.mxu0 %vm260_vm1, %v26516_v32 }
 0x18d   : > { %18946 = vmatmul.mubr.msk.f32.gmra.mrb[24].mxu0 %vm260_vm1, %v26517_v33 }
 0x18e   : > { %18948 = vmatprep.mubr.msk.f32.mxu0 %vm260_vm1, %v26518_v37 }
 0x191   : > { %18949 = vmatmul.mubr.msk.f32.gmra.mrb[26].mxu0 %vm260_vm1, %v26519_v41 }
 0x192   : > { %18951 = vmatprep.mubr.msk.f32.mxu0 %vm260_vm1, %v26520_v50 }
 0x195   : > { %18952 = vmatmul.mubr.msk.f32.gmra.mrb[28].mxu0 %vm260_vm1, %v26521_v2 }
 0x196   : > { %18954 = vmatprep.mubr.msk.f32.mxu0 %vm260_vm1, %v2676_v51  ;;  %v22777_v51 = vld [vmem:[%s26085_s1 + $0x24] sm:$0xf] }
 0x199   : > { %18955 = vmatmul.mubr.msk.f32.gmra.mrb[30].mxu0 %vm260_vm1, %v2677_v44 }
 0x19a   : > { %18959 = vmatprep.mubr.msk.f32.mxu0 %vm260_vm1, %v22241_v46  ;;  %v3441_v46 = vld [vmem:[#allocation2 + $0xfa] sm:$0xff] }
 0x19d   : > { %18960 = vmatmul.mubr.msk.f32.vlgmr.msra.gmra.mrb[0].mxu0 %vm260_vm1, %v22253_v4  ;;  %v3066_v4 = vld [vmem:[#allocation2 + $0x1a1] sm:$0xff] }
 0x19e   : > { %19008 = vmatpush3.msk.msra.mxu0 %vm536_vm0, %v22503_v18  ;;  %18962 = vmatprep.mubr.msk.f32.mxu0 %vm260_vm1, %v22255_v3  ;;  %v3065_v3 = vld [vmem:[#allocation2 + $0x199] sm:$0xff] }
 0x1a1   : > { %18963 = vmatmul.mubr.msk.f32.gmra.mrb[2].mxu0 %vm260_vm1, %v22263_v7  ;;  %v3425_v7 = vld [vmem:[#allocation2 + $0x3a] sm:$0xff] }
 0x1a2   : > { %18965 = vmatprep.mubr.msk.f32.mxu0 %vm260_vm1, %v22265_v6  ;;  %v3424_v6 = vld [vmem:[#allocation2 + $0x32] sm:$0xff] }
 0x1a5   : > { %18966 = vmatmul.mubr.msk.f32.gmra.mrb[4].mxu0 %vm260_vm1, %v22271_v16  ;;  %v3446_v16 = vld [vmem:[#allocation2 + $0x13a] sm:$0xff] }
 0x1a6   : > { %18968 = vmatprep.mubr.msk.f32.mxu0 %vm260_vm1, %v22273_v9  ;;  %v3427_v9 = vld [vmem:[#allocation2 + $0x52] sm:$0xff] }
 0x1a9   : > { %18969 = vmatmul.mubr.msk.f32.gmra.mrb[6].mxu0 %vm260_vm1, %v22279_v8  ;;  %v3426_v8 = vld [vmem:[#allocation2 + $0x4a] sm:$0xff] }
 0x1aa   : > { %18971 = vmatprep.mubr.msk.f32.mxu0 %vm260_vm1, %v22281_v11  ;;  %v3429_v11 = vld [vmem:[#allocation2 + $0x6a] sm:$0xff] }
 0x1ad   : > { %18972 = vmatmul.mubr.msk.f32.gmra.mrb[8].mxu0 %vm260_vm1, %v22287_v10  ;;  %v3428_v10 = vld [vmem:[#allocation2 + $0x62] sm:$0xff] }
 0x1ae   : > { %18974 = vmatprep.mubr.msk.f32.mxu0 %vm260_vm1, %v22289_v13  ;;  %v3431_v13 = vld [vmem:[#allocation2 + $0x82] sm:$0xff] }
 0x1b1   : > { %18975 = vmatmul.mubr.msk.f32.gmra.mrb[10].mxu0 %vm260_vm1, %v22295_v12  ;;  %v3430_v12 = vld [vmem:[#allocation2 + $0x7a] sm:$0xff] }
 0x1b2   : > { %18977 = vmatprep.mubr.msk.f32.mxu0 %vm260_vm1, %v22297_v15  ;;  %v3433_v15 = vld [vmem:[#allocation2 + $0x9a] sm:$0xff] }
 0x1b5   : > { %18978 = vmatmul.mubr.msk.f32.gmra.mrb[12].mxu0 %vm260_vm1, %v22303_v14  ;;  %v3432_v14 = vld [vmem:[#allocation2 + $0x92] sm:$0xff] }
 0x1b6   : > { %18980 = vmatprep.mubr.msk.f32.mxu0 %vm260_vm1, %v22305_v17  ;;  %v3434_v17 = vld [vmem:[#allocation2 + $0xaa] sm:$0xff] }
 0x1b9   : > { %18981 = vmatmul.mubr.msk.f32.gmra.mrb[14].mxu0 %vm260_vm1, %v22311_v60  ;;  %v3445_v60 = vld [vmem:[#allocation2 + $0x12a] sm:$0xff] }
 0x1ba   : > { %18983 = vmatprep.mubr.msk.f32.mxu0 %vm260_vm1, %v22313_v54  ;;  %v3444_v54 = vld [vmem:[#allocation2 + $0x122] sm:$0xff] }
 0x1bd   : > { %18984 = vmatmul.mubr.msk.f32.gmra.mrb[16].mxu0 %vm260_vm1, %v22319_v48  ;;  %v3443_v48 = vld [vmem:[#allocation2 + $0x112] sm:$0xff] }
 0x1be   : > { %18986 = vmatprep.mubr.msk.f32.mxu0 %vm260_vm1, %v22321_v47  ;;  %v3442_v47 = vld [vmem:[#allocation2 + $0x10a] sm:$0xff] }
 0x1c1   : > { %18987 = vmatmul.mubr.msk.f32.gmra.mrb[18].mxu0 %vm260_vm1, %v22327_v45  ;;  %v3440_v45 = vld [vmem:[#allocation2 + $0xf2] sm:$0xff] }
 0x1c2   : > { %18989 = vmatprep.mubr.msk.f32.mxu0 %vm260_vm1, %v26491_v19  ;;  %v3449_v19 = vld [vmem:[#allocation2 + $0x15a] sm:$0xff] }
 0x1c5   : > { %18990 = vmatmul.mubr.msk.f32.gmra.mrb[20].mxu0 %vm260_vm1, %v26493_v22 }
 0x1c6   : > { %18992 = vmatprep.mubr.msk.f32.mxu0 %vm260_vm1, %v26495_v24  ;;  %v3451_v24 = vld [vmem:[#allocation2 + $0x172] sm:$0xff] }
 0x1c9   : > { %18993 = vmatmul.mubr.msk.f32.gmra.mrb[22].mxu0 %vm260_vm1, %v22343_v36  ;;  %v3437_v36 = vld [vmem:[#allocation2 + $0xca] sm:$0xff] }
 0x1ca   : > { %18995 = vmatprep.mubr.msk.f32.mxu0 %vm260_vm1, %v26498_v39  ;;  %v3454_v39 = vld [vmem:[#allocation2 + $0x19a] sm:$0xff] }
 0x1cd   : > { %18996 = vmatmul.mubr.msk.f32.gmra.mrb[24].mxu0 %vm260_vm1, %v22351_v30  ;;  %v3435_v30 = vld [vmem:[#allocation2 + $0xb2] sm:$0xff] }
 0x1ce   : > { %18998 = vmatprep.mubr.msk.f32.mxu0 %vm260_vm1, %v26501_v55 }
 0x1d1   : > { %18999 = vmatmul.mubr.msk.f32.gmra.mrb[26].mxu0 %vm260_vm1, %v22359_v38  ;;  %v3438_v38 = vld [vmem:[#allocation2 + $0xda] sm:$0xff] }
 0x1d2   : > { %19001 = vmatprep.mubr.msk.f32.mxu0 %vm260_vm1, %v22361_v40  ;;  %v3439_v40 = vld [vmem:[#allocation2 + $0xe2] sm:$0xff] }
 0x1d5   : > { %19002 = vmatmul.mubr.msk.f32.gmra.mrb[28].mxu0 %vm260_vm1, %v22367_v35  ;;  %v3436_v35 = vld [vmem:[#allocation2 + $0xc2] sm:$0xff] }
 0x1d6   : > { %19004 = vmatprep.mubr.msk.f32.mxu0 %vm260_vm1, %v3065_v3 }
 0x1d9   : > { %19005 = vmatmul.mubr.msk.f32.gmra.mrb[30].mxu0 %vm260_vm1, %v3066_v4 }
 0x1da   : > { %19009 = vmatprep.mubr.msk.f32.mxu0 %vm260_vm1, %v3424_v6 }
 0x1dd   : > { %19010 = vmatmul.mubr.msk.f32.vlgmr.msra.gmra.mrb[0].mxu0 %vm260_vm1, %v3425_v7  ;;  %v22792_v7 = vld [vmem:[%s26087_s3] ss:$0 sm:$0xff] }
 0x1de   : > { %19012 = vmatprep.mubr.msk.f32.mxu0 %vm260_vm1, %v3426_v8 }
 0x1e1   : > { %19013 = vmatmul.mubr.msk.f32.gmra.mrb[2].mxu0 %vm260_vm1, %v3427_v9 }
 0x1e2   : > { %19015 = vmatprep.mubr.msk.f32.mxu0 %vm260_vm1, %v3428_v10  ;;  %v22794_v10 = vstv %s226_s4  ;;  %s25952_s4 = scalar_lea.vmem %s26089_s5, %s17318_s25 }
 0x1e3   : > { %26522 = vst [vmem:[#allocation62_spill] sm:$0xff] %v22794_v10 }
 0x1e5   : > { %19016 = vmatmul.mubr.msk.f32.gmra.mrb[4].mxu0 %vm260_vm1, %v3429_v11 }
 0x1e6   : > { %19018 = vmatprep.mubr.msk.f32.mxu0 %vm260_vm1, %v3430_v12 }
 0x1e9   : > { %19019 = vmatmul.mubr.msk.f32.gmra.mrb[6].mxu0 %vm260_vm1, %v3431_v13 }
 0x1ea   : > { %19021 = vmatprep.mubr.msk.f32.mxu0 %vm260_vm1, %v3432_v14 }
 0x1ed   : > { %19022 = vmatmul.mubr.msk.f32.gmra.mrb[8].mxu0 %vm260_vm1, %v3433_v15 }
 0x1ee   : > { %19024 = vmatprep.mubr.msk.f32.mxu0 %vm260_vm1, %v3434_v17 }
 0x1f1   : > { %19025 = vmatmul.mubr.msk.f32.gmra.mrb[10].mxu0 %vm260_vm1, %v3435_v30 }
 0x1f2   : > { %19027 = vmatprep.mubr.msk.f32.mxu0 %vm260_vm1, %v3436_v35 }
 0x1f4   : > { %v18611_v0 = vpop.f32.mrb[0].mxu1 }
 0x1f5   : > { %19028 = vmatmul.mubr.msk.f32.gmra.mrb[12].mxu0 %vm260_vm1, %v3437_v36  ;;  %v606_v18 = vpop.f32.mrb[1].mxu1 }
 0x1f6   : > { %19030 = vmatprep.mubr.msk.f32.mxu0 %vm260_vm1, %v3438_v38 }
 0x1f8   : > { %v18614_v22 = vpop.f32.mrb[2].mxu1 }
 0x1f9   : > { %19031 = vmatmul.mubr.msk.f32.gmra.mrb[14].mxu0 %vm260_vm1, %v3439_v40  ;;  %v616_v23 = vpop.f32.mrb[3].mxu1 }
 0x1fa   : > { %19033 = vmatprep.mubr.msk.f32.mxu0 %vm260_vm1, %v3440_v45 }
 0x1fc   : > { %v22714_v25 = vpop.f32.mrb[4].mxu1 }
 0x1fd   : > { %19034 = vmatmul.mubr.msk.f32.gmra.mrb[16].mxu0 %vm260_vm1, %v3441_v46  ;;  %v22716_v27 = vpop.f32.mrb[5].mxu1 }
 0x1fe   : > { %19036 = vmatprep.mubr.msk.f32.mxu0 %vm260_vm1, %v3442_v47 }
 0x200   : > { %v22725_v53 = vpop.f32.mrb[6].mxu1 }
 0x201   : > { %19037 = vmatmul.mubr.msk.f32.gmra.mrb[18].mxu0 %vm260_vm1, %v3443_v48  ;;  %v22727_v55 = vpop.f32.mrb[7].mxu1 }
 0x202   : > { %19039 = vmatprep.mubr.msk.f32.mxu0 %vm260_vm1, %v3444_v54 }
 0x204   : > { %v22729_v56 = vpop.f32.mrb[8].mxu1 }
 0x205   : > { %19040 = vmatmul.mubr.msk.f32.gmra.mrb[20].mxu0 %vm260_vm1, %v3445_v60  ;;  %v22731_v57 = vpop.f32.mrb[9].mxu1 }
 0x206   : > { %19042 = vmatprep.mubr.msk.f32.mxu0 %vm260_vm1, %v3446_v16 }
 0x208   : > { %v22733_v58 = vpop.f32.mrb[10].mxu1 }
 0x209   : > { %19043 = vmatmul.mubr.msk.f32.gmra.mrb[22].mxu0 %vm260_vm1, %v3447_v59 }
 0x20a   : > { %19045 = vmatprep.mubr.msk.f32.mxu0 %vm260_vm1, %v3448_v61 }
 0x20d   : > { %19046 = vmatmul.mubr.msk.f32.gmra.mrb[24].mxu0 %vm260_vm1, %v3449_v19 }
 0x20e   : > { %19048 = vmatprep.mubr.msk.f32.mxu0 %vm260_vm1, %v3450_v21 }
 0x211   : > { %19049 = vmatmul.mubr.msk.f32.gmra.mrb[26].mxu0 %vm260_vm1, %v3451_v24 }
 0x212   : > { %19051 = vmatprep.mubr.msk.f32.mxu0 %vm260_vm1, %v22480_v5  ;;  %v22735_v5 = vpop.f32.mrb[11].mxu1 }
 0x213   : > { %v22742_v62 = vpop.f32.mrb[12].mxu1 }
 0x214   : > { %v22744_v28 = vpop.f32.mrb[13].mxu1 }
 0x215   : > { %19052 = vmatmul.mubr.msk.f32.gmra.mrb[28].mxu0 %vm260_vm1, %v22490_v20  ;;  %v4087_v20 = vld [vmem:[%s26085_s1 + $0x28] sm:$0xf]  ;;  %v22746_v34 = vpop.f32.mrb[14].mxu1 }
 0x216   : > { %19054 = vmatprep.mubr.msk.f32.mxu0 %vm260_vm1, %v3454_v39  ;;  %19057 = vmatprep.subr.msk.mxu1 %vm536_vm0, %v4087_v20  ;;  %v22748_v42 = vpop.f32.mrb[15].mxu1 }
 0x217   : > { %19058 = vmatpush3.msk.msra.mxu1 %vm536_vm0, %v4087_v20 }
 0x218   : > { %19107 = vmatprep.subr.msk.mxu1 %vm536_vm0, %v22777_v51 }
 0x219   : > { %19055 = vmatmul.mubr.msk.f32.gmra.mrb[30].mxu0 %vm260_vm1, %v3455_v52 }
 0x23a   : > { %v22750_v43 = vpop.f32.mrb[16].mxu1 }
 0x23b   : > { %v22752_v63 = vpop.f32.mrb[17].mxu1 }
 0x23e   : > { %v22754_v1 = vpop.f32.mrb[18].mxu1 }
 0x23f   : > { %v22756_v26 = vpop.f32.mrb[19].mxu1 }
 0x242   : > { %v22758_v49 = vpop.f32.mrb[20].mxu1 }
 0x243   : > { %v22760_v29 = vpop.f32.mrb[21].mxu1 }
 0x246   : > { %v22762_v31 = vpop.f32.mrb[22].mxu1 }
 0x247   : > { %v22764_v32 = vpop.f32.mrb[23].mxu1 }
 0x24a   : > { %v22766_v33 = vpop.f32.mrb[24].mxu1 }
 0x24b   : > { %v22768_v37 = vpop.f32.mrb[25].mxu1 }
 0x24e   : > { %v22770_v41 = vpop.f32.mrb[26].mxu1 }
 0x24f   : > { %v22772_v50 = vpop.f32.mrb[27].mxu1 }
 0x252   : > { %v22781_v2 = vpop.f32.mrb[28].mxu1 }
 0x253   : > { %v22783_v44 = vpop.f32.mrb[29].mxu1 }
 0x256   : > { %v22785_v3 = vpop.f32.mrb[30].mxu1 }
 0x257   : > { %v22787_v4 = vpop.f32.mrb[31].mxu1 }
 0x2b0   : > { %v19011_v6 = vpop.f32.mrb[0].mxu0 }
 0x2b1   : > { %v20559_v8 = vadd.f32 %v19011_v6, %v18611_v0  ;;  %v3621_v9 = vpop.f32.mrb[1].mxu0 }
 0x2b2   : > { %v20560_v11 = vadd.f32 %v3621_v9, %v606_v18 }
 0x2b3   : > { %v3818_v12 = vadd.f32 %v20559_v8, %v22792_v7 }
 0x2b4   : > { %v3817_v13 = vadd.f32 %v20560_v11, %v22792_v7  ;;  %v19014_v14 = vpop.f32.mrb[2].mxu0 }
 0x2b5   : > { %vm3850_vm4 = vcmp.ge.f32.partialorder %v3818_v12, 0.0  ;;  %v3883_v15 = vmul.f32 %v22794_v10, %v3818_v12  ;;  %v20561_v17 = vadd.f32 %v19014_v14, %v18614_v22  ;;  %v3631_v30 = vpop.f32.mrb[3].mxu0 }
 0x2b6   : > { %vm3849_vm5 = vcmp.ge.f32.partialorder %v3817_v13, 0.0  ;;  %v3882_v35 = vmul.f32 %v22794_v10, %v3817_v13  ;;  %v20562_v36 = vadd.f32 %v3631_v30, %v616_v23 }
 0x2b7   : > { %v3915_v38 = vsel %vm3850_vm4, %v3818_v12, %v3883_v15  ;;  %v3820_v40 = vadd.f32 %v20561_v17, %v22792_v7 }
 0x2b8   : > { %3947 = vst.msk [vmem:[#allocation2 + $0x21] sm:$0xff] %vm260_vm1, %v3915_v38  ;;  %v3914_v45 = vsel %vm3849_vm5, %v3817_v13, %v3882_v35  ;;  %v3819_v46 = vadd.f32 %v20562_v36, %v22792_v7  ;;  %v19017_v47 = vpop.f32.mrb[4].mxu0 }
 0x2b9   : > { %3946 = vst.msk [vmem:[#allocation2 + $0x19] sm:$0xff] %vm260_vm1, %v3914_v45  ;;  %vm3852_vm6 = vcmp.ge.f32.partialorder %v3820_v40, 0.0  ;;  %v3885_v48 = vmul.f32 %v22794_v10, %v3820_v40  ;;  %v20563_v54 = vadd.f32 %v19017_v47, %v22714_v25  ;;  %v3641_v60 = vpop.f32.mrb[5].mxu0 }
 0x2ba   : > { %vm3851_vm7 = vcmp.ge.f32.partialorder %v3819_v46, 0.0  ;;  %v3884_v16 = vmul.f32 %v22794_v10, %v3819_v46  ;;  %v20564_v59 = vadd.f32 %v3641_v60, %v22716_v27 }
 0x2bb   : > { %v3917_v61 = vsel %vm3852_vm6, %v3820_v40, %v3885_v48  ;;  %v3822_v0 = vadd.f32 %v20563_v54, %v22792_v7 }
 0x2bc   : > { %3949 = vst.msk [vmem:[#allocation2 + $0x39] sm:$0xff] %vm260_vm1, %v3917_v61  ;;  %v3916_v18 = vsel %vm3851_vm7, %v3819_v46, %v3884_v16  ;;  %v3821_v19 = vadd.f32 %v20564_v59, %v22792_v7  ;;  %v19020_v21 = vpop.f32.mrb[6].mxu0 }
 0x2bd   : > { %3948 = vst.msk [vmem:[#allocation2 + $0x31] sm:$0xff] %vm260_vm1, %v3916_v18  ;;  %vm3854_vm8 = vcmp.ge.f32.partialorder %v3822_v0, 0.0  ;;  %v3887_v22 = vmul.f32 %v22794_v10, %v3822_v0  ;;  %v20565_v23 = vadd.f32 %v19020_v21, %v22725_v53  ;;  %v3651_v24 = vpop.f32.mrb[7].mxu0 }
 0x2be   : > { %vm3853_vm9 = vcmp.ge.f32.partialorder %v3821_v19, 0.0  ;;  %v3886_v25 = vmul.f32 %v22794_v10, %v3821_v19  ;;  %v20566_v27 = vadd.f32 %v3651_v24, %v22727_v55 }
 0x2bf   : > { %v3919_v39 = vsel %vm3854_vm8, %v3822_v0, %v3887_v22  ;;  %v3824_v52 = vadd.f32 %v20565_v23, %v22792_v7  ;;  %v4010_v20 = vld [vmem:[#allocation2 + $0x27] sm:$0x1] }
 0x2c0   : > { %3951 = vst.msk [vmem:[#allocation2 + $0x51] sm:$0xff] %vm260_vm1, %v3919_v39  ;;  %v3918_v6 = vsel %vm3853_vm9, %v3821_v19, %v3886_v25  ;;  %v3823_v8 = vadd.f32 %v20566_v27, %v22792_v7  ;;  %v19023_v9 = vpop.f32.mrb[8].mxu0  ;;  %v3978_v11 = vld [vmem:[#allocation2 + $0x1a] sm:$0x1] }
 0x2c1   : > { %4026 = vst.msk [vmem:[#allocation2 + $0x29] sm:$0x1] %vm309_vm2, %v4010_v20  ;;  %vm3856_vm10 = vcmp.ge.f32.partialorder %v3824_v52, 0.0  ;;  %v3889_v53 = vmul.f32 %v22794_v10, %v3824_v52  ;;  %v20567_v55 = vadd.f32 %v19023_v9, %v22729_v56  ;;  %v3661_v12 = vpop.f32.mrb[9].mxu0  ;;  %3994 = vst.msk [vmem:[#allocation2 + $0x18] sm:$0x1] %vm309_vm2, %v3978_v11 }
 0x2c2   : > { %3950 = vst.msk [vmem:[#allocation2 + $0x49] sm:$0xff] %vm260_vm1, %v3918_v6  ;;  %vm3855_vm11 = vcmp.ge.f32.partialorder %v3823_v8, 0.0  ;;  %v3888_v13 = vmul.f32 %v22794_v10, %v3823_v8  ;;  %v20568_v14 = vadd.f32 %v3661_v12, %v22731_v57 }
 0x2c3   : > { %v3921_v15 = vsel %vm3856_vm10, %v3824_v52, %v3889_v53  ;;  %v3826_v17 = vadd.f32 %v20567_v55, %v22792_v7  ;;  %v4011_v30 = vld [vmem:[#allocation2 + $0x3f] sm:$0x1] }
 0x2c4   : > { %3953 = vst.msk [vmem:[#allocation2 + $0x69] sm:$0xff] %vm260_vm1, %v3921_v15  ;;  %v3920_v35 = vsel %vm3855_vm11, %v3823_v8, %v3888_v13  ;;  %v3825_v36 = vadd.f32 %v20568_v14, %v22792_v7  ;;  %v19026_v38 = vpop.f32.mrb[10].mxu0  ;;  %v3979_v40 = vld [vmem:[#allocation2 + $0x32] sm:$0x1]  ;;  %v22829_v56 = vld [vmem:[#allocation2 + $0x38] sm:$0xff] }
 0x2c5   : > { %4027 = vst.msk [vmem:[#allocation2 + $0x41] sm:$0x1] %vm309_vm2, %v4011_v30  ;;  %vm3858_vm12 = vcmp.ge.f32.partialorder %v3826_v17, 0.0  ;;  %v3891_v57 = vmul.f32 %v22794_v10, %v3826_v17  ;;  %v20569_v45 = vadd.f32 %v19026_v38, %v22733_v58  ;;  %v3671_v46 = vpop.f32.mrb[11].mxu0  ;;  %3995 = vst.msk [vmem:[#allocation2 + $0x30] sm:$0x1] %vm309_vm2, %v3979_v40 }
 0x2c6   : > { %3952 = vst.msk [vmem:[#allocation2 + $0x61] sm:$0xff] %vm260_vm1, %v3920_v35  ;;  %4046 = vst.msk [vmem:[#allocation2 + $0x8] sm:$0xff] %vm260_vm1, %v22829_v56  ;;  %vm3857_vm13 = vcmp.ge.f32.partialorder %v3825_v36, 0.0  ;;  %v3890_v47 = vmul.f32 %v22794_v10, %v3825_v36  ;;  %v20570_v48 = vadd.f32 %v3671_v46, %v22735_v5 }
 0x2c7   : > { %v3923_v54 = vsel %vm3858_vm12, %v3826_v17, %v3891_v57  ;;  %v3828_v60 = vadd.f32 %v20569_v45, %v22792_v7  ;;  %v4012_v16 = vld [vmem:[#allocation2 + $0x57] sm:$0x1] }
 0x2c8   : > { %3955 = vst.msk [vmem:[#allocation2 + $0x81] sm:$0xff] %vm260_vm1, %v3923_v54  ;;  %v3922_v59 = vsel %vm3857_vm13, %v3825_v36, %v3890_v47  ;;  %v3827_v58 = vadd.f32 %v20570_v48, %v22792_v7  ;;  %v19029_v61 = vpop.f32.mrb[12].mxu0 }
 0x2c9   : > { %v3980_v0 = vld [vmem:[#allocation2 + $0x4a] sm:$0x1]  ;;  %4028 = vst.msk [vmem:[#allocation2 + $0x59] sm:$0x1] %vm309_vm2, %v4012_v16  ;;  %vm3860_vm14 = vcmp.ge.f32.partialorder %v3828_v60, 0.0  ;;  %v3893_v18 = vmul.f32 %v22794_v10, %v3828_v60  ;;  %v20571_v5 = vadd.f32 %v19029_v61, %v22742_v62  ;;  %v3681_v19 = vpop.f32.mrb[13].mxu0 }
 0x2ca   : > { %3954 = vst.msk [vmem:[#allocation2 + $0x79] sm:$0xff] %vm260_vm1, %v3922_v59  ;;  %vm3859_vm15 = vcmp.ge.f32.partialorder %v3827_v58, 0.0  ;;  %v3892_v21 = vmul.f32 %v22794_v10, %v3827_v58  ;;  %v20572_v22 = vadd.f32 %v3681_v19, %v22744_v28 }
 0x2cb   : > { %3996 = vst.msk [vmem:[#allocation2 + $0x48] sm:$0x1] %vm309_vm2, %v3980_v0  ;;  %v3925_v23 = vsel %vm3860_vm14, %v3828_v60, %v3893_v18  ;;  %v3830_v24 = vadd.f32 %v20571_v5, %v22792_v7  ;;  %v4013_v53 = vld [vmem:[#allocation2 + $0x6f] sm:$0x1]  ;;  %v22890_v0 = vld [vmem:[#allocation2 + $0x19] sm:$0xff] }
 0x2cc   : > { %v4044_v25 = vld [vmem:[#allocation2 + $0x40] sm:$0x3]  ;;  %3957 = vst.msk [vmem:[#allocation2 + $0x99] sm:$0xff] %vm260_vm1, %v3925_v23  ;;  %v3924_v27 = vsel %vm3859_vm15, %v3827_v58, %v3892_v21  ;;  %v3829_v39 = vadd.f32 %v20572_v22, %v22792_v7  ;;  %v19032_v52 = vpop.f32.mrb[14].mxu0  ;;  %v22853_v20 = vld [vmem:[#allocation2 + $0x30] sm:$0xff] }
 0x2cd   : > { %4047 = vst.msk [vmem:[#allocation2 + $0x10] sm:$0x3] %vm364_vm3, %v4044_v25  ;;  %vm3862_vm4 = vcmp.ge.f32.partialorder %v3830_v24, 0.0  ;;  %v3895_v62 = vmul.f32 %v22794_v10, %v3830_v24  ;;  %v20573_v28 = vadd.f32 %v19032_v52, %v22746_v34  ;;  %v3691_v6 = vpop.f32.mrb[15].mxu0  ;;  %v3981_v8 = vld [vmem:[#allocation2 + $0x62] sm:$0x1] }
 0x2ce   : > { %3956 = vst.msk [vmem:[#allocation2 + $0x91] sm:$0xff] %vm260_vm1, %v3924_v27  ;;  %4045 = vst.msk [vmem:[#allocation2] sm:$0xff] %vm260_vm1, %v22853_v20  ;;  %vm3861_vm5 = vcmp.ge.f32.partialorder %v3829_v39, 0.0  ;;  %v3894_v9 = vmul.f32 %v22794_v10, %v3829_v39  ;;  %v20574_v11 = vadd.f32 %v3691_v6, %v22748_v42  ;;  %v22912_v52 = vld [vmem:[#allocation2 + $0x31] sm:$0xff] }
 0x2cf   : > { %3997 = vst.msk [vmem:[#allocation2 + $0x60] sm:$0x1] %vm309_vm2, %v3981_v8  ;;  %v3927_v55 = vsel %vm3862_vm4, %v3830_v24, %v3895_v62  ;;  %v3832_v12 = vadd.f32 %v20573_v28, %v22792_v7  ;;  %4029 = vst.msk [vmem:[#allocation2 + $0x71] sm:$0x1] %vm309_vm2, %v4013_v53  ;;  %v4014_v13 = vld [vmem:[#allocation2 + $0x87] sm:$0x1] }
 0x2d0   : > { %3959 = vst.msk [vmem:[#allocation2 + $0xb1] sm:$0xff] %vm260_vm1, %v3927_v55  ;;  %v3926_v34 = vsel %vm3861_vm5, %v3829_v39, %v3894_v9  ;;  %v3831_v14 = vadd.f32 %v20574_v11, %v22792_v7  ;;  %v19035_v15 = vpop.f32.mrb[16].mxu0  ;;  %v22905_v24 = vld [vmem:[#allocation2 + $0x21] sm:$0xff] }
 0x2d1   : > { %v3982_v17 = vld [vmem:[#allocation2 + $0x7a] sm:$0x1]  ;;  %4030 = vst.msk [vmem:[#allocation2 + $0x89] sm:$0x1] %vm309_vm2, %v4014_v13  ;;  %vm3864_vm6 = vcmp.ge.f32.partialorder %v3832_v12, 0.0  ;;  %v3897_v42 = vmul.f32 %v22794_v10, %v3832_v12  ;;  %v20575_v30 = vadd.f32 %v19035_v15, %v22750_v43  ;;  %v3701_v35 = vpop.f32.mrb[17].mxu0 }
 0x2d2   : > { %3958 = vst.msk [vmem:[#allocation2 + $0xa9] sm:$0xff] %vm260_vm1, %v3926_v34  ;;  %vm3863_vm7 = vcmp.ge.f32.partialorder %v3831_v14, 0.0  ;;  %v3896_v36 = vmul.f32 %v22794_v10, %v3831_v14  ;;  %v20576_v38 = vadd.f32 %v3701_v35, %v22752_v63  ;;  %v22881_v43 = vld [vmem:[%s26085_s1 + $0x2c] sm:$0xf]  ;;  %v22925_v13 = vld [vmem:[#allocation2 + $0x39] sm:$0xff] }
 0x2d3   : > { %3998 = vst.msk [vmem:[#allocation2 + $0x78] sm:$0x1] %vm309_vm2, %v3982_v17  ;;  %v3929_v40 = vsel %vm3864_vm6, %v3832_v12, %v3897_v42  ;;  %v3834_v57 = vadd.f32 %v20575_v30, %v22792_v7  ;;  %v4015_v25 = vld [vmem:[#allocation2 + $0x9f] sm:$0x1]  ;;  %v22932_v15 = vld [vmem:[#allocation2 + $0x49] sm:$0xff] }
 0x2d4   : > { %3961 = vst.msk [vmem:[#allocation2 + $0xc9] sm:$0xff] %vm260_vm1, %v3929_v40  ;;  %v3928_v45 = vsel %vm3863_vm7, %v3831_v14, %v3896_v36  ;;  %v3833_v46 = vadd.f32 %v20576_v38, %v22792_v7  ;;  %v19038_v47 = vpop.f32.mrb[18].mxu0  ;;  %v4089_v16 = vld [vmem:[#allocation2 + $0x9] sm:$0xff] }
 0x2d5   : > { %v4088_v48 = vld [vmem:[#allocation2 + $0x1] sm:$0xff]  ;;  %3960 = vst.msk [vmem:[#allocation2 + $0xc1] sm:$0xff] %vm260_vm1, %v3928_v45  ;;  %vm3866_vm8 = vcmp.ge.f32.partialorder %v3834_v57, 0.0  ;;  %v3899_v63 = vmul.f32 %v22794_v10, %v3834_v57  ;;  %v20577_v54 = vadd.f32 %v19038_v47, %v22754_v1  ;;  %v3711_v60 = vpop.f32.mrb[19].mxu0  ;;  %v3983_v59 = vld [vmem:[#allocation2 + $0x92] sm:$0x1] }
 0x2d6   : > { %19059 = vmatprep.mubr.msk.f32.mxu1 %vm260_vm1, %v4088_v48  ;;  %vm3865_vm9 = vcmp.ge.f32.partialorder %v3833_v46, 0.0  ;;  %v3898_v58 = vmul.f32 %v22794_v10, %v3833_v46  ;;  %v20578_v61 = vadd.f32 %v3711_v60, %v22756_v26  ;;  %3999 = vst.msk [vmem:[#allocation2 + $0x90] sm:$0x1] %vm309_vm2, %v3983_v59  ;;  %4031 = vst.msk [vmem:[#allocation2 + $0xa1] sm:$0x1] %vm309_vm2, %v4015_v25  ;;  %v22943_v45 = vld [vmem:[#allocation2 + $0x51] sm:$0xff] }
 0x2d7   : > { %19060 = vmatmul.mubr.msk.f32.vlgmr.msra.gmra.mrb[32].mxu1 %vm260_vm1, %v4089_v16  ;;  %v3931_v18 = vsel %vm3866_vm8, %v3834_v57, %v3899_v63  ;;  %v3836_v5 = vadd.f32 %v20577_v54, %v22792_v7  ;;  %v4016_v62 = vld [vmem:[#allocation2 + $0xb7] sm:$0x1]  ;;  %v22950_v48 = vld [vmem:[#allocation2 + $0x61] sm:$0xff] }
 0x2d8   : > { %19108 = vmatpush3.msk.msra.mxu1 %vm536_vm0, %v22777_v51  ;;  %19062 = vmatprep.mubr.msk.f32.mxu1 %vm260_vm1, %v22890_v0  ;;  %3963 = vst.msk [vmem:[#allocation2 + $0xe1] sm:$0xff] %vm260_vm1, %v3931_v18  ;;  %v3930_v1 = vsel %vm3865_vm9, %v3833_v46, %v3898_v58  ;;  %v3835_v26 = vadd.f32 %v20578_v61, %v22792_v7  ;;  %v19041_v19 = vpop.f32.mrb[20].mxu0 }
 0x2d9   : > { %19157 = vmatprep.subr.msk.mxu1 %vm536_vm0, %v22881_v43  ;;  %v3984_v21 = vld [vmem:[#allocation2 + $0xaa] sm:$0x1]  ;;  %3962 = vst.msk [vmem:[#allocation2 + $0xd9] sm:$0xff] %vm260_vm1, %v3930_v1  ;;  %vm3868_vm10 = vcmp.ge.f32.partialorder %v3836_v5, 0.0  ;;  %v3901_v22 = vmul.f32 %v22794_v10, %v3836_v5  ;;  %v20579_v51 = vadd.f32 %v19041_v19, %v22758_v49  ;;  %v3721_v23 = vpop.f32.mrb[21].mxu0  ;;  %v22968_v19 = vld [vmem:[#allocation2 + $0x79] sm:$0xff] }
 0x2da   : > { %4000 = vst.msk [vmem:[#allocation2 + $0xa8] sm:$0x1] %vm309_vm2, %v3984_v21  ;;  %vm3867_vm11 = vcmp.ge.f32.partialorder %v3835_v26, 0.0  ;;  %v3900_v27 = vmul.f32 %v22794_v10, %v3835_v26  ;;  %v20580_v39 = vadd.f32 %v3721_v23, %v22760_v29  ;;  %4032 = vst.msk [vmem:[#allocation2 + $0xb9] sm:$0x1] %vm309_vm2, %v4016_v62 }
 0x2db   : > { %19063 = vmatmul.mubr.msk.f32.gmra.mrb[34].mxu1 %vm260_vm1, %v22905_v24  ;;  %v3933_v49 = vsel %vm3868_vm10, %v3836_v5, %v3901_v22  ;;  %v3838_v28 = vadd.f32 %v20579_v51, %v22792_v7  ;;  %v4017_v6 = vld [vmem:[#allocation2 + $0xcf] sm:$0x1] }
 0x2dc   : > { %19065 = vmatprep.mubr.msk.f32.mxu1 %vm260_vm1, %v22912_v52  ;;  %3965 = vst.msk [vmem:[#allocation2 + $0xf9] sm:$0xff] %vm260_vm1, %v3933_v49  ;;  %v3932_v29 = vsel %vm3867_vm11, %v3835_v26, %v3900_v27  ;;  %v3837_v8 = vadd.f32 %v20580_v39, %v22792_v7  ;;  %v19044_v9 = vpop.f32.mrb[22].mxu0  ;;  %v3985_v11 = vld [vmem:[#allocation2 + $0xc2] sm:$0x1]  ;;  %v22961_v5 = vld [vmem:[#allocation2 + $0x69] sm:$0xff] }
 0x2dd   : > { %4033 = vst.msk [vmem:[#allocation2 + $0xd1] sm:$0x1] %vm309_vm2, %v4017_v6  ;;  %vm3870_vm12 = vcmp.ge.f32.partialorder %v3838_v28, 0.0  ;;  %v3903_v53 = vmul.f32 %v22794_v10, %v3838_v28  ;;  %v20581_v55 = vadd.f32 %v19044_v9, %v22762_v31  ;;  %v3731_v12 = vpop.f32.mrb[23].mxu0  ;;  %4001 = vst.msk [vmem:[#allocation2 + $0xc0] sm:$0x1] %vm309_vm2, %v3985_v11 }
 0x2de   : > { %3964 = vst.msk [vmem:[#allocation2 + $0xf1] sm:$0xff] %vm260_vm1, %v3932_v29  ;;  %vm3869_vm13 = vcmp.ge.f32.partialorder %v3837_v8, 0.0  ;;  %v3902_v34 = vmul.f32 %v22794_v10, %v3837_v8  ;;  %v20582_v14 = vadd.f32 %v3731_v12, %v22764_v32  ;;  %v22979_v49 = vld [vmem:[#allocation2 + $0x81] sm:$0xff]  ;;  %v22986_v29 = vld [vmem:[#allocation2 + $0x91] sm:$0xff] }
 0x2df   : > { %19066 = vmatmul.mubr.msk.f32.gmra.mrb[36].mxu1 %vm260_vm1, %v22925_v13  ;;  %v3935_v17 = vsel %vm3870_vm12, %v3838_v28, %v3903_v53  ;;  %v3840_v42 = vadd.f32 %v20581_v55, %v22792_v7  ;;  %v4018_v31 = vld [vmem:[#allocation2 + $0xe7] sm:$0x1] }
 0x2e0   : > { %19068 = vmatprep.mubr.msk.f32.mxu1 %vm260_vm1, %v22932_v15  ;;  %3967 = vst.msk [vmem:[#allocation2 + $0x111] sm:$0xff] %vm260_vm1, %v3935_v17  ;;  %v3934_v30 = vsel %vm3869_vm13, %v3837_v8, %v3902_v34  ;;  %v3839_v35 = vadd.f32 %v20582_v14, %v22792_v7  ;;  %v19047_v36 = vpop.f32.mrb[24].mxu0  ;;  %v3986_v38 = vld [vmem:[#allocation2 + $0xda] sm:$0x1] }
 0x2e1   : > { %4034 = vst.msk [vmem:[#allocation2 + $0xe9] sm:$0x1] %vm309_vm2, %v4018_v31  ;;  %vm3872_vm14 = vcmp.ge.f32.partialorder %v3840_v42, 0.0  ;;  %v3905_v32 = vmul.f32 %v22794_v10, %v3840_v42  ;;  %v20583_v40 = vadd.f32 %v19047_v36, %v22766_v33  ;;  %v3741_v57 = vpop.f32.mrb[25].mxu0  ;;  %4002 = vst.msk [vmem:[#allocation2 + $0xd8] sm:$0x1] %vm309_vm2, %v3986_v38 }
 0x2e2   : > { %3966 = vst.msk [vmem:[#allocation2 + $0x109] sm:$0xff] %vm260_vm1, %v3934_v30  ;;  %vm3871_vm15 = vcmp.ge.f32.partialorder %v3839_v35, 0.0  ;;  %v3904_v46 = vmul.f32 %v22794_v10, %v3839_v35  ;;  %v20584_v47 = vadd.f32 %v3741_v57, %v22768_v37  ;;  %v22997_v17 = vld [vmem:[#allocation2 + $0x99] sm:$0xff]  ;;  %v23004_v30 = vld [vmem:[#allocation2 + $0xa9] sm:$0xff]  ;;  %v23014_v57 = vld [vmem:[#allocation2 + $0xb1] sm:$0xff] }
 0x2e3   : > { %19069 = vmatmul.mubr.msk.f32.gmra.mrb[38].mxu1 %vm260_vm1, %v22943_v45  ;;  %v3937_v63 = vsel %vm3872_vm14, %v3840_v42, %v3905_v32  ;;  %v3842_v54 = vadd.f32 %v20583_v40, %v22792_v7  ;;  %v4019_v33 = vld [vmem:[#allocation2 + $0xff] sm:$0x1] }
 0x2e4   : > { %19071 = vmatprep.mubr.msk.f32.mxu1 %vm260_vm1, %v22950_v48  ;;  %3969 = vst.msk [vmem:[#allocation2 + $0x129] sm:$0xff] %vm260_vm1, %v3937_v63  ;;  %v3936_v60 = vsel %vm3871_vm15, %v3839_v35, %v3904_v46  ;;  %v3841_v16 = vadd.f32 %v20584_v47, %v22792_v7  ;;  %v19050_v59 = vpop.f32.mrb[26].mxu0  ;;  %v23020_v47 = vld [vmem:[#allocation2 + $0xc1] sm:$0xff] }
 0x2e5   : > { %v3987_v58 = vld [vmem:[#allocation2 + $0xf2] sm:$0x1]  ;;  %4035 = vst.msk [vmem:[#allocation2 + $0x101] sm:$0x1] %vm309_vm2, %v4019_v33  ;;  %vm3874_vm4 = vcmp.ge.f32.partialorder %v3842_v54, 0.0  ;;  %v3907_v37 = vmul.f32 %v22794_v10, %v3842_v54  ;;  %v20585_v61 = vadd.f32 %v19050_v59, %v22770_v41  ;;  %v3751_v18 = vpop.f32.mrb[27].mxu0 }
 0x2e6   : > { %3968 = vst.msk [vmem:[#allocation2 + $0x121] sm:$0xff] %vm260_vm1, %v3936_v60  ;;  %vm3873_vm5 = vcmp.ge.f32.partialorder %v3841_v16, 0.0  ;;  %v3906_v1 = vmul.f32 %v22794_v10, %v3841_v16  ;;  %v20586_v26 = vadd.f32 %v3751_v18, %v22772_v50  ;;  %v23027_v60 = vld [vmem:[#allocation2 + $0xc9] sm:$0xff]  ;;  %v23044_v18 = vld [vmem:[#allocation2 + $0xf1] sm:$0xff] }
 0x2e7   : > { %4003 = vst.msk [vmem:[#allocation2 + $0xf0] sm:$0x1] %vm309_vm2, %v3987_v58  ;;  %19072 = vmatmul.mubr.msk.f32.gmra.mrb[40].mxu1 %vm260_vm1, %v22961_v5  ;;  %v3939_v21 = vsel %vm3874_vm4, %v3842_v54, %v3907_v37  ;;  %v3844_v22 = vadd.f32 %v20585_v61, %v22792_v7  ;;  %v4020_v41 = vld [vmem:[#allocation2 + $0x117] sm:$0x1]  ;;  %v23037_v37 = vld [vmem:[#allocation2 + $0xe1] sm:$0xff] }
 0x2e8   : > { %19074 = vmatprep.mubr.msk.f32.mxu1 %vm260_vm1, %v22968_v19  ;;  %3971 = vst.msk [vmem:[#allocation2 + $0x141] sm:$0xff] %vm260_vm1, %v3939_v21  ;;  %v3938_v51 = vsel %vm3873_vm5, %v3841_v16, %v3906_v1  ;;  %v3843_v23 = vadd.f32 %v20586_v26, %v22792_v7  ;;  %v19053_v25 = vpop.f32.mrb[28].mxu0  ;;  %v23032_v16 = vld [vmem:[#allocation2 + $0xd9] sm:$0xff] }
 0x2e9   : > { %v3988_v27 = vld [vmem:[#allocation2 + $0x10a] sm:$0x1]  ;;  %4036 = vst.msk [vmem:[#allocation2 + $0x119] sm:$0x1] %vm309_vm2, %v4020_v41  ;;  %vm3876_vm6 = vcmp.ge.f32.partialorder %v3844_v22, 0.0  ;;  %v3909_v50 = vmul.f32 %v22794_v10, %v3844_v22  ;;  %v20587_v39 = vadd.f32 %v19053_v25, %v22781_v2  ;;  %v3761_v62 = vpop.f32.mrb[29].mxu0 }
 0x2ea   : > { %3970 = vst.msk [vmem:[#allocation2 + $0x139] sm:$0xff] %vm260_vm1, %v3938_v51  ;;  %vm3875_vm7 = vcmp.ge.f32.partialorder %v3843_v23, 0.0  ;;  %v3908_v28 = vmul.f32 %v22794_v10, %v3843_v23  ;;  %v20588_v6 = vadd.f32 %v3761_v62, %v22783_v44  ;;  %v23051_v21 = vld [vmem:[#allocation2 + $0xf9] sm:$0xff] }
 0x2eb   : > { %4004 = vst.msk [vmem:[#allocation2 + $0x108] sm:$0x1] %vm309_vm2, %v3988_v27  ;;  %19075 = vmatmul.mubr.msk.f32.gmra.mrb[42].mxu1 %vm260_vm1, %v22979_v49  ;;  %v3941_v8 = vsel %vm3876_vm6, %v3844_v22, %v3909_v50  ;;  %v3846_v9 = vadd.f32 %v20587_v39, %v22792_v7  ;;  %v4021_v2 = vld [vmem:[#allocation2 + $0x12f] sm:$0x1] }
 0x2ec   : > { %19077 = vmatprep.mubr.msk.f32.mxu1 %vm260_vm1, %v22986_v29  ;;  %3973 = vst.msk [vmem:[#allocation2 + $0x159] sm:$0xff] %vm260_vm1, %v3941_v8  ;;  %v3940_v11 = vsel %vm3875_vm7, %v3843_v23, %v3908_v28  ;;  %v3845_v53 = vadd.f32 %v20588_v6, %v22792_v7  ;;  %v19056_v55 = vpop.f32.mrb[30].mxu0  ;;  %v23056_v22 = vld [vmem:[#allocation2 + $0x109] sm:$0xff]  ;;  %v23063_v23 = vld [vmem:[#allocation2 + $0x111] sm:$0xff] }
 0x2ed   : > { %v3989_v12 = vld [vmem:[#allocation2 + $0x122] sm:$0x1]  ;;  %4037 = vst.msk [vmem:[#allocation2 + $0x131] sm:$0x1] %vm309_vm2, %v4021_v2  ;;  %vm3878_vm8 = vcmp.ge.f32.partialorder %v3846_v9, 0.0  ;;  %v3911_v44 = vmul.f32 %v22794_v10, %v3846_v9  ;;  %v20589_v34 = vadd.f32 %v19056_v55, %v22785_v3  ;;  %v3771_v14 = vpop.f32.mrb[31].mxu0 }
 0x2ee   : > { %3972 = vst.msk [vmem:[#allocation2 + $0x151] sm:$0xff] %vm260_vm1, %v3940_v11  ;;  %vm3877_vm9 = vcmp.ge.f32.partialorder %v3845_v53, 0.0  ;;  %v3910_v42 = vmul.f32 %v22794_v10, %v3845_v53  ;;  %v20590_v31 = vadd.f32 %v3771_v14, %v22787_v4  ;;  %v23069_v25 = vld [vmem:[#allocation2 + $0x121] sm:$0xff]  ;;  %v23073_v27 = vld [vmem:[#allocation2 + $0x129] sm:$0xff]  ;;  %v23140_v14 = vld [vmem:[#allocation2 + $0x78] sm:$0xff] }
 0x2ef   : > { %4005 = vst.msk [vmem:[#allocation2 + $0x120] sm:$0x1] %vm309_vm2, %v3989_v12  ;;  %19078 = vmatmul.mubr.msk.f32.gmra.mrb[44].mxu1 %vm260_vm1, %v22997_v17  ;;  %v3943_v35 = vsel %vm3878_vm8, %v3846_v9, %v3911_v44  ;;  %v3848_v36 = vadd.f32 %v20589_v34, %v22792_v7  ;;  %v4022_v3 = vld [vmem:[#allocation2 + $0x147] sm:$0x1]  ;;  %v4056_v2 = vld [vmem:[#allocation2 + $0x8] sm:$0xff] }
 0x2f0   : > { %19080 = vmatprep.mubr.msk.f32.mxu1 %vm260_vm1, %v23004_v30  ;;  %3975 = vst.msk [vmem:[#allocation2 + $0x171] sm:$0xff] %vm260_vm1, %v3943_v35  ;;  %v3942_v38 = vsel %vm3877_vm9, %v3845_v53, %v3910_v42  ;;  %v3847_v32 = vadd.f32 %v20590_v31, %v22792_v7  ;;  %v23081_v39 = vld [vmem:[#allocation2 + $0x141] sm:$0xff]  ;;  %v23105_v11 = vld [vmem:[%s26085_s1 + $0x30] sm:$0xf]  ;;  %v23108_v53 = vld [vmem:[#allocation2 + $0x18] sm:$0xff] }
 0x2f1   : > { %v3990_v40 = vld [vmem:[#allocation2 + $0x13a] sm:$0x1]  ;;  %4038 = vst.msk [vmem:[#allocation2 + $0x149] sm:$0x1] %vm309_vm2, %v4022_v3  ;;  %vm3880_vm10 = vcmp.ge.f32.partialorder %v3848_v36, 0.0  ;;  %v3913_v4 = vmul.f32 %v22794_v10, %v3848_v36  ;;  %v4055_v9 = vld [vmem:[#allocation2] sm:$0xff] }
 0x2f2   : > { %3974 = vst.msk [vmem:[#allocation2 + $0x169] sm:$0xff] %vm260_vm1, %v3942_v38  ;;  %vm3879_vm11 = vcmp.ge.f32.partialorder %v3847_v32, 0.0  ;;  %v3912_v46 = vmul.f32 %v22794_v10, %v3847_v32  ;;  %v23077_v50 = vld [vmem:[#allocation2 + $0x139] sm:$0xff]  ;;  %v23124_v12 = vld [vmem:[#allocation2 + $0x48] sm:$0xff]  ;;  %v23148_v31 = vld [vmem:[#allocation2 + $0x90] sm:$0xff] }
 0x2f3   : > { %4006 = vst.msk [vmem:[#allocation2 + $0x138] sm:$0x1] %vm309_vm2, %v3990_v40  ;;  %19081 = vmatmul.mubr.msk.f32.gmra.mrb[46].mxu1 %vm260_vm1, %v23014_v57  ;;  %v3945_v7 = vsel %vm3880_vm10, %v3848_v36, %v3913_v4  ;;  %v4023_v63 = vld [vmem:[#allocation2 + $0x15f] sm:$0x1]  ;;  %v23116_v55 = vld [vmem:[#allocation2 + $0x20] sm:$0xff]  ;;  %v23136_v34 = vld [vmem:[#allocation2 + $0x68] sm:$0xff] }
 0x2f4   : > { %19083 = vmatprep.mubr.msk.f32.mxu1 %vm260_vm1, %v23020_v47  ;;  %3977 = vst.msk [vmem:[#allocation2 + $0x189] sm:$0xff] %vm260_vm1, %v3945_v7  ;;  %v3944_v54 = vsel %vm3879_vm11, %v3847_v32, %v3912_v46  ;;  %v23089_v28 = vld [vmem:[#allocation2 + $0x159] sm:$0xff]  ;;  %v23156_v36 = vld [vmem:[#allocation2 + $0xa8] sm:$0xff]  ;;  %v23160_v3 = vld [vmem:[#allocation2 + $0xb0] sm:$0xff] }
 0x2f5   : > { %v3991_v33 = vld [vmem:[#allocation2 + $0x152] sm:$0x1]  ;;  %4039 = vst.msk [vmem:[#allocation2 + $0x161] sm:$0x1] %vm309_vm2, %v4023_v63  ;;  %v23132_v44 = vld [vmem:[#allocation2 + $0x60] sm:$0xff]  ;;  %v23152_v35 = vld [vmem:[#allocation2 + $0x98] sm:$0xff] }
 0x2f6   : > { %3976 = vst.msk [vmem:[#allocation2 + $0x181] sm:$0xff] %vm260_vm1, %v3944_v54  ;;  %v23085_v62 = vld [vmem:[#allocation2 + $0x151] sm:$0xff]  ;;  %v23144_v42 = vld [vmem:[#allocation2 + $0x80] sm:$0xff]  ;;  %v23168_v32 = vld [vmem:[#allocation2 + $0xc8] sm:$0xff] }
 0x2f7   : > { %4007 = vst.msk [vmem:[#allocation2 + $0x150] sm:$0x1] %vm309_vm2, %v3991_v33  ;;  %19084 = vmatmul.mubr.msk.f32.gmra.mrb[48].mxu1 %vm260_vm1, %v23027_v60  ;;  %v4024_v59 = vld [vmem:[#allocation2 + $0x177] sm:$0x1]  ;;  %v23164_v38 = vld [vmem:[#allocation2 + $0xc0] sm:$0xff]  ;;  %v23172_v40 = vld [vmem:[#allocation2 + $0xd8] sm:$0xff] }
 0x2f8   : > { %19086 = vmatprep.mubr.msk.f32.mxu1 %vm260_vm1, %v23032_v16  ;;  %4040 = vst.msk [vmem:[#allocation2 + $0x179] sm:$0x1] %vm309_vm2, %v4024_v59  ;;  %v23097_v8 = vld [vmem:[#allocation2 + $0x171] sm:$0xff]  ;;  %v23176_v4 = vld [vmem:[#allocation2 + $0xe0] sm:$0xff]  ;;  %v23188_v63 = vld [vmem:[#allocation2 + $0x108] sm:$0xff] }
 0x2f9   : > { %v3992_v58 = vld [vmem:[#allocation2 + $0x16a] sm:$0x1]  ;;  %v23040_v61 = vld [vmem:[#allocation2 + $0x170] sm:$0xff]  ;;  %26524 = vst [vmem:[#allocation63_spill] sm:$0xff] %v23097_v8  ;;  %v23184_v7 = vld [vmem:[#allocation2 + $0xf8] sm:$0xff] }
 0x2fa   : > { %4008 = vst.msk [vmem:[#allocation2 + $0x168] sm:$0x1] %vm309_vm2, %v3992_v58  ;;  %v23093_v6 = vld [vmem:[#allocation2 + $0x169] sm:$0xff]  ;;  %v23196_v33 = vld [vmem:[#allocation2 + $0x120] sm:$0xff]  ;;  %v23204_v58 = vld [vmem:[#allocation2 + $0x138] sm:$0xff] }
 0x2fb   : > { %19087 = vmatmul.mubr.msk.f32.gmra.mrb[50].mxu1 %vm260_vm1, %v23037_v37  ;;  %4052 = vst.msk [vmem:[#allocation2 + $0x1a0] sm:$0xff] %vm260_vm1, %v23040_v61  ;;  %v4025_v1 = vld [vmem:[#allocation2 + $0x18f] sm:$0x1]  ;;  %26523 = vst [vmem:[#allocation34_spill] sm:$0xff] %v23093_v6  ;;  %v23180_v46 = vld [vmem:[#allocation2 + $0xf0] sm:$0xff] }
 0x2fc   : > { %19089 = vmatprep.mubr.msk.f32.mxu1 %vm260_vm1, %v23044_v18  ;;  %4041 = vst.msk [vmem:[#allocation2 + $0x191] sm:$0x1] %vm309_vm2, %v4025_v1  ;;  %v23192_v54 = vld [vmem:[#allocation2 + $0x110] sm:$0xff]  ;;  %v23200_v59 = vld [vmem:[#allocation2 + $0x128] sm:$0xff]  ;;  %v23208_v1 = vld [vmem:[#allocation2 + $0x140] sm:$0xff] }
 0x2fd   : > { %v3993_v26 = vld [vmem:[#allocation2 + $0x182] sm:$0x1]  ;;  %v23228_v10 = vld [vmem:[%s26085_s1 + $0x34] sm:$0xf] }
 0x2fe   : > { %4009 = vst.msk [vmem:[#allocation2 + $0x180] sm:$0x1] %vm309_vm2, %v3993_v26  ;;  %v23212_v26 = vld [vmem:[#allocation2 + $0x150] sm:$0xff] }
 0x2ff   : > { %19090 = vmatmul.mubr.msk.f32.gmra.mrb[52].mxu1 %vm260_vm1, %v23051_v21  ;;  %v4050_v41 = vld [vmem:[#allocation2 + $0x178] sm:$0x3] }
 0x300   : > { %19092 = vmatprep.mubr.msk.f32.mxu1 %vm260_vm1, %v23056_v22  ;;  %4053 = vst.msk [vmem:[#allocation2 + $0x1a8] sm:$0x3] %vm364_vm3, %v4050_v41  ;;  %v23216_v41 = vld [vmem:[#allocation2 + $0x158] sm:$0xff] }
 0x301   : > { %v23060_v51 = vld [vmem:[#allocation2 + $0x168] sm:$0xff] }
 0x302   : > { %4051 = vst.msk [vmem:[#allocation2 + $0x198] sm:$0xff] %vm260_vm1, %v23060_v51 }
 0x303   : > { %19093 = vmatmul.mubr.msk.f32.gmra.mrb[54].mxu1 %vm260_vm1, %v23063_v23 }
 0x304   : > { %19095 = vmatprep.mubr.msk.f32.mxu1 %vm260_vm1, %v23069_v25 }
 0x307   : > { %19096 = vmatmul.mubr.msk.f32.gmra.mrb[56].mxu1 %vm260_vm1, %v23073_v27 }
 0x308   : > { %19098 = vmatprep.mubr.msk.f32.mxu1 %vm260_vm1, %v23077_v50 }
 0x30b   : > { %19099 = vmatmul.mubr.msk.f32.gmra.mrb[58].mxu1 %vm260_vm1, %v23081_v39 }
 0x30c   : > { %19101 = vmatprep.mubr.msk.f32.mxu1 %vm260_vm1, %v23085_v62 }
 0x30f   : > { %19102 = vmatmul.mubr.msk.f32.gmra.mrb[60].mxu1 %vm260_vm1, %v23089_v28 }
 0x310   : > { %19104 = vmatprep.mubr.msk.f32.mxu1 %vm260_vm1, %v23093_v6  ;;  %v23243_v6 = vld [vmem:[#allocation2 + $0x32] sm:$0xff] }
 0x311   : > { %26527 = vst [vmem:[#allocation37_spill] sm:$0xff] %v23243_v6 }
 0x313   : > { %19105 = vmatmul.mubr.msk.f32.gmra.mrb[62].mxu1 %vm260_vm1, %v23097_v8  ;;  %v23231_v8 = vld [vmem:[#allocation2 + $0x1a] sm:$0xff] }
 0x314   : > { %19109 = vmatprep.mubr.msk.f32.mxu1 %vm260_vm1, %v4055_v9  ;;  %v4769_v9 = vld [vmem:[#allocation2 + $0x2] sm:$0xff]  ;;  %26525 = vst [vmem:[#allocation36_spill] sm:$0xff] %v23231_v8 }
 0x317   : > { %19110 = vmatmul.mubr.msk.f32.vlgmr.msra.gmra.mrb[32].mxu1 %vm260_vm1, %v4056_v2  ;;  %v4770_v2 = vld [vmem:[#allocation2 + $0xa] sm:$0xff] }
 0x318   : > { %19158 = vmatpush3.msk.msra.mxu1 %vm536_vm0, %v22881_v43  ;;  %19112 = vmatprep.mubr.msk.f32.mxu1 %vm260_vm1, %v23108_v53  ;;  %v23128_v43 = vld [vmem:[#allocation2 + $0x50] sm:$0xff] }
 0x319   : > { %19207 = vmatprep.subr.msk.mxu1 %vm536_vm0, %v23105_v11 }
 0x31b   : > { %19113 = vmatmul.mubr.msk.f32.gmra.mrb[34].mxu1 %vm260_vm1, %v23116_v55 }
 0x31c   : > { %19115 = vmatprep.mubr.msk.f32.mxu1 %vm260_vm1, %v22853_v20 }
 0x31f   : > { %19116 = vmatmul.mubr.msk.f32.gmra.mrb[36].mxu1 %vm260_vm1, %v22829_v56 }
 0x320   : > { %19118 = vmatprep.mubr.msk.f32.mxu1 %vm260_vm1, %v23124_v12 }
 0x323   : > { %19119 = vmatmul.mubr.msk.f32.gmra.mrb[38].mxu1 %vm260_vm1, %v23128_v43 }
 0x324   : > { %19121 = vmatprep.mubr.msk.f32.mxu1 %vm260_vm1, %v23132_v44 }
 0x327   : > { %19122 = vmatmul.mubr.msk.f32.gmra.mrb[40].mxu1 %vm260_vm1, %v23136_v34 }
 0x328   : > { %19124 = vmatprep.mubr.msk.f32.mxu1 %vm260_vm1, %v23140_v14 }
 0x32b   : > { %19125 = vmatmul.mubr.msk.f32.gmra.mrb[42].mxu1 %vm260_vm1, %v23144_v42 }
 0x32c   : > { %19127 = vmatprep.mubr.msk.f32.mxu1 %vm260_vm1, %v23148_v31 }
 0x32f   : > { %19128 = vmatmul.mubr.msk.f32.gmra.mrb[44].mxu1 %vm260_vm1, %v23152_v35 }
 0x330   : > { %19130 = vmatprep.mubr.msk.f32.mxu1 %vm260_vm1, %v23156_v36 }
 0x333   : > { %19131 = vmatmul.mubr.msk.f32.gmra.mrb[46].mxu1 %vm260_vm1, %v23160_v3 }
 0x334   : > { %19133 = vmatprep.mubr.msk.f32.mxu1 %vm260_vm1, %v23164_v38 }
 0x337   : > { %19134 = vmatmul.mubr.msk.f32.gmra.mrb[48].mxu1 %vm260_vm1, %v23168_v32 }
 0x338   : > { %19136 = vmatprep.mubr.msk.f32.mxu1 %vm260_vm1, %v23172_v40 }
 0x33b   : > { %19137 = vmatmul.mubr.msk.f32.gmra.mrb[50].mxu1 %vm260_vm1, %v23176_v4 }
 0x33c   : > { %19139 = vmatprep.mubr.msk.f32.mxu1 %vm260_vm1, %v23180_v46 }
 0x33f   : > { %19140 = vmatmul.mubr.msk.f32.gmra.mrb[52].mxu1 %vm260_vm1, %v23184_v7 }
 0x340   : > { %19142 = vmatprep.mubr.msk.f32.mxu1 %vm260_vm1, %v23188_v63 }
 0x343   : > { %19143 = vmatmul.mubr.msk.f32.gmra.mrb[54].mxu1 %vm260_vm1, %v23192_v54 }
 0x344   : > { %19145 = vmatprep.mubr.msk.f32.mxu1 %vm260_vm1, %v23196_v33 }
 0x347   : > { %19146 = vmatmul.mubr.msk.f32.gmra.mrb[56].mxu1 %vm260_vm1, %v23200_v59 }
 0x348   : > { %19148 = vmatprep.mubr.msk.f32.mxu1 %vm260_vm1, %v23204_v58 }
 0x34b   : > { %19149 = vmatmul.mubr.msk.f32.gmra.mrb[58].mxu1 %vm260_vm1, %v23208_v1 }
 0x34c   : > { %19151 = vmatprep.mubr.msk.f32.mxu1 %vm260_vm1, %v23212_v26 }
 0x34f   : > { %19152 = vmatmul.mubr.msk.f32.gmra.mrb[60].mxu1 %vm260_vm1, %v23216_v41 }
 0x350   : > { %19154 = vmatprep.mubr.msk.f32.mxu1 %vm260_vm1, %v23060_v51 }
 0x353   : > { %19155 = vmatmul.mubr.msk.f32.gmra.mrb[62].mxu1 %vm260_vm1, %v23040_v61 }
 0x354   : > { %19159 = vmatprep.mubr.msk.f32.mxu1 %vm260_vm1, %v4769_v9  ;;  %v23239_v9 = vld [vmem:[#allocation2 + $0x22] sm:$0xff] }
 0x355   : > { %26526 = vst [vmem:[#allocation64_spill] sm:$0xff] %v23239_v9 }
 0x357   : > { %19160 = vmatmul.mubr.msk.f32.vlgmr.msra.gmra.mrb[32].mxu1 %vm260_vm1, %v4770_v2  ;;  %v23247_v2 = vld [vmem:[#allocation2 + $0x3a] sm:$0xff] }
 0x358   : > { %19208 = vmatpush3.msk.msra.mxu1 %vm536_vm0, %v23105_v11  ;;  %19162 = vmatprep.mubr.msk.f32.mxu1 %vm260_vm1, %v23231_v8  ;;  %26528 = vst [vmem:[#allocation38_spill] sm:$0xff] %v23247_v2  ;;  %v23251_v11 = vld [vmem:[#allocation2 + $0x4a] sm:$0xff]  ;;  %v23255_v8 = vld [vmem:[#allocation2 + $0x52] sm:$0xff] }
 0x359   : > { %19257 = vmatprep.subr.msk.mxu1 %vm536_vm0, %v23228_v10  ;;  %26529 = vst [vmem:[#allocation65_spill] sm:$0xff] %v23251_v11  ;;  %26530 = vst [vmem:[#allocation39_spill] sm:$0xff] %v23255_v8 }
 0x35b   : > { %19163 = vmatmul.mubr.msk.f32.gmra.mrb[34].mxu1 %vm260_vm1, %v23239_v9  ;;  %v23259_v9 = vld [vmem:[#allocation2 + $0x62] sm:$0xff] }
 0x35c   : > { %19165 = vmatprep.mubr.msk.f32.mxu1 %vm260_vm1, %v23243_v6  ;;  %26531 = vst [vmem:[#allocation41_spill] sm:$0xff] %v23259_v9  ;;  %v23263_v6 = vld [vmem:[#allocation2 + $0x6a] sm:$0xff] }
 0x35d   : > { %26532 = vst [vmem:[#allocation66_spill] sm:$0xff] %v23263_v6 }
 0x35f   : > { %19166 = vmatmul.mubr.msk.f32.gmra.mrb[36].mxu1 %vm260_vm1, %v23247_v2  ;;  %v23267_v2 = vld [vmem:[#allocation2 + $0x7a] sm:$0xff] }
 0x360   : > { %19168 = vmatprep.mubr.msk.f32.mxu1 %vm260_vm1, %v23251_v11  ;;  %26533 = vst [vmem:[#allocation43_spill] sm:$0xff] %v23267_v2  ;;  %v23271_v11 = vld [vmem:[#allocation2 + $0x82] sm:$0xff] }
 0x361   : > { %26534 = vst [vmem:[#allocation45_spill] sm:$0xff] %v23271_v11 }
 0x363   : > { %19169 = vmatmul.mubr.msk.f32.gmra.mrb[38].mxu1 %vm260_vm1, %v23255_v8  ;;  %v23275_v8 = vld [vmem:[#allocation2 + $0x92] sm:$0xff] }
 0x364   : > { %19171 = vmatprep.mubr.msk.f32.mxu1 %vm260_vm1, %v23259_v9  ;;  %26535 = vst [vmem:[#allocation46_spill] sm:$0xff] %v23275_v8  ;;  %v23279_v9 = vld [vmem:[#allocation2 + $0x9a] sm:$0xff] }
 0x365   : > { %26536 = vst [vmem:[#allocation47_spill] sm:$0xff] %v23279_v9 }
 0x367   : > { %19172 = vmatmul.mubr.msk.f32.gmra.mrb[40].mxu1 %vm260_vm1, %v23263_v6  ;;  %v23283_v6 = vld [vmem:[#allocation2 + $0xaa] sm:$0xff] }
 0x368   : > { %19174 = vmatprep.mubr.msk.f32.mxu1 %vm260_vm1, %v23267_v2  ;;  %26537 = vst [vmem:[#allocation48_spill] sm:$0xff] %v23283_v6  ;;  %v23287_v2 = vld [vmem:[#allocation2 + $0xb2] sm:$0xff] }
 0x369   : > { %26538 = vst [vmem:[#allocation49_spill] sm:$0xff] %v23287_v2 }
 0x36b   : > { %19175 = vmatmul.mubr.msk.f32.gmra.mrb[42].mxu1 %vm260_vm1, %v23271_v11  ;;  %v23291_v11 = vld [vmem:[#allocation2 + $0xc2] sm:$0xff] }
 0x36c   : > { %19177 = vmatprep.mubr.msk.f32.mxu1 %vm260_vm1, %v23275_v8  ;;  %26539 = vst [vmem:[#allocation50_spill] sm:$0xff] %v23291_v11  ;;  %v23295_v8 = vld [vmem:[#allocation2 + $0xca] sm:$0xff] }
 0x36d   : > { %26540 = vst [vmem:[#allocation51_spill] sm:$0xff] %v23295_v8 }
 0x36f   : > { %19178 = vmatmul.mubr.msk.f32.gmra.mrb[44].mxu1 %vm260_vm1, %v23279_v9  ;;  %v23299_v9 = vld [vmem:[#allocation2 + $0xda] sm:$0xff] }
 0x370   : > { %19180 = vmatprep.mubr.msk.f32.mxu1 %vm260_vm1, %v23283_v6  ;;  %26541 = vst [vmem:[#allocation52_spill] sm:$0xff] %v23299_v9  ;;  %v23303_v6 = vld [vmem:[#allocation2 + $0xe2] sm:$0xff] }
 0x371   : > { %26542 = vst [vmem:[#allocation53_spill] sm:$0xff] %v23303_v6 }
 0x373   : > { %19181 = vmatmul.mubr.msk.f32.gmra.mrb[46].mxu1 %vm260_vm1, %v23287_v2  ;;  %v23307_v2 = vld [vmem:[#allocation2 + $0xf2] sm:$0xff] }
 0x374   : > { %19183 = vmatprep.mubr.msk.f32.mxu1 %vm260_vm1, %v23291_v11  ;;  %26543 = vst [vmem:[#allocation54_spill] sm:$0xff] %v23307_v2  ;;  %v23311_v11 = vld [vmem:[#allocation2 + $0xfa] sm:$0xff] }
 0x375   : > { %26544 = vst [vmem:[#allocation55_spill] sm:$0xff] %v23311_v11 }
 0x377   : > { %19184 = vmatmul.mubr.msk.f32.gmra.mrb[48].mxu1 %vm260_vm1, %v23295_v8  ;;  %v23315_v8 = vld [vmem:[#allocation2 + $0x10a] sm:$0xff] }
 0x378   : > { %19186 = vmatprep.mubr.msk.f32.mxu1 %vm260_vm1, %v23299_v9  ;;  %26545 = vst [vmem:[#allocation56_spill] sm:$0xff] %v23315_v8  ;;  %v23319_v9 = vld [vmem:[#allocation2 + $0x112] sm:$0xff] }
 0x379   : > { %26546 = vst [vmem:[#allocation57_spill] sm:$0xff] %v23319_v9 }
 0x37b   : > { %19187 = vmatmul.mubr.msk.f32.gmra.mrb[50].mxu1 %vm260_vm1, %v23303_v6  ;;  %v23323_v6 = vld [vmem:[#allocation2 + $0x122] sm:$0xff] }
 0x37c   : > { %19189 = vmatprep.mubr.msk.f32.mxu1 %vm260_vm1, %v23307_v2  ;;  %26547 = vst [vmem:[#allocation58_spill] sm:$0xff] %v23323_v6  ;;  %v23327_v2 = vld [vmem:[#allocation2 + $0x12a] sm:$0xff] }
 0x37d   : > { %26548 = vst [vmem:[#allocation59_spill] sm:$0xff] %v23327_v2 }
 0x37f   : > { %19190 = vmatmul.mubr.msk.f32.gmra.mrb[52].mxu1 %vm260_vm1, %v23311_v11  ;;  %v23331_v11 = vld [vmem:[#allocation2 + $0x13a] sm:$0xff] }
 0x380   : > { %19192 = vmatprep.mubr.msk.f32.mxu1 %vm260_vm1, %v23315_v8  ;;  %26549 = vst [vmem:[#allocation44_spill] sm:$0xff] %v23331_v11  ;;  %v23335_v8 = vld [vmem:[#allocation2 + $0x142] sm:$0xff] }
 0x383   : > { %19193 = vmatmul.mubr.msk.f32.gmra.mrb[54].mxu1 %vm260_vm1, %v23319_v9  ;;  %v23339_v9 = vld [vmem:[#allocation2 + $0x152] sm:$0xff] }
 0x384   : > { %19195 = vmatprep.mubr.msk.f32.mxu1 %vm260_vm1, %v23323_v6  ;;  %26550 = vst [vmem:[#allocation42_spill] sm:$0xff] %v23339_v9  ;;  %v23343_v6 = vld [vmem:[#allocation2 + $0x15a] sm:$0xff] }
 0x387   : > { %19196 = vmatmul.mubr.msk.f32.gmra.mrb[56].mxu1 %vm260_vm1, %v23327_v2  ;;  %v23347_v2 = vld [vmem:[#allocation2 + $0x16a] sm:$0xff] }
 0x388   : > { %19198 = vmatprep.mubr.msk.f32.mxu1 %vm260_vm1, %v23331_v11  ;;  %v23351_v11 = vld [vmem:[#allocation2 + $0x172] sm:$0xff] }
 0x38b   : > { %19199 = vmatmul.mubr.msk.f32.gmra.mrb[58].mxu1 %vm260_vm1, %v23335_v8 }
 0x38c   : > { %19201 = vmatprep.mubr.msk.f32.mxu1 %vm260_vm1, %v23339_v9  ;;  %v5935_v9 = vld [vmem:[%s26085_s1 + $0x38] sm:$0xf] }
 0x38f   : > { %19202 = vmatmul.mubr.msk.f32.gmra.mrb[60].mxu1 %vm260_vm1, %v23343_v6 }
 0x390   : > { %19204 = vmatprep.mubr.msk.f32.mxu1 %vm260_vm1, %v23347_v2 }
 0x393   : > { %19205 = vmatmul.mubr.msk.f32.gmra.mrb[62].mxu1 %vm260_vm1, %v23351_v11 }
 0x394   : > { %19209 = vmatprep.mubr.msk.f32.mxu1 %vm260_vm1, %v23108_v53  ;;  %v26576_v53 = vld [vmem:[#allocation59_spill] sm:$0xff] }
 0x397   : > { %19210 = vmatmul.mubr.msk.f32.vlgmr.msra.gmra.mrb[32].mxu1 %vm260_vm1, %v23116_v55  ;;  %v26577_v55 = vld [vmem:[#allocation44_spill] sm:$0xff] }
 0x398   : > { %19258 = vmatpush3.msk.msra.mxu1 %vm536_vm0, %v23228_v10  ;;  %19212 = vmatprep.mubr.msk.f32.mxu1 %vm260_vm1, %v22853_v20  ;;  %v23421_v10 = vld [vmem:[#allocation2 + $0x180] sm:$0xff]  ;;  %v6324_v20 = vld [vmem:[%s26085_s1 + $0x3c] sm:$0xf] }
 0x399   : > { %19307 = vmatprep.subr.msk.mxu1 %vm536_vm0, %v5935_v9 }
 0x39b   : > { %19213 = vmatmul.mubr.msk.f32.gmra.mrb[34].mxu1 %vm260_vm1, %v22829_v56  ;;  %v23425_v56 = vld [vmem:[#allocation2 + $0x188] sm:$0xff] }
 0x39c   : > { %19215 = vmatprep.mubr.msk.f32.mxu1 %vm260_vm1, %v23124_v12 }
 0x39f   : > { %19216 = vmatmul.mubr.msk.f32.gmra.mrb[36].mxu1 %vm260_vm1, %v23128_v43 }
 0x3a0   : > { %19218 = vmatprep.mubr.msk.f32.mxu1 %vm260_vm1, %v23132_v44 }
 0x3a3   : > { %19219 = vmatmul.mubr.msk.f32.gmra.mrb[38].mxu1 %vm260_vm1, %v23136_v34 }
 0x3a4   : > { %19221 = vmatprep.mubr.msk.f32.mxu1 %vm260_vm1, %v23140_v14 }
 0x3a7   : > { %19222 = vmatmul.mubr.msk.f32.gmra.mrb[40].mxu1 %vm260_vm1, %v23144_v42 }
 0x3a8   : > { %19224 = vmatprep.mubr.msk.f32.mxu1 %vm260_vm1, %v23148_v31 }
 0x3ab   : > { %19225 = vmatmul.mubr.msk.f32.gmra.mrb[42].mxu1 %vm260_vm1, %v23152_v35 }
 0x3ac   : > { %19227 = vmatprep.mubr.msk.f32.mxu1 %vm260_vm1, %v23156_v36 }
 0x3af   : > { %19228 = vmatmul.mubr.msk.f32.gmra.mrb[44].mxu1 %vm260_vm1, %v23160_v3 }
 0x3b0   : > { %19230 = vmatprep.mubr.msk.f32.mxu1 %vm260_vm1, %v23164_v38 }
 0x3b3   : > { %19231 = vmatmul.mubr.msk.f32.gmra.mrb[46].mxu1 %vm260_vm1, %v23168_v32 }
 0x3b4   : > { %19233 = vmatprep.mubr.msk.f32.mxu1 %vm260_vm1, %v23172_v40 }
 0x3b7   : > { %19234 = vmatmul.mubr.msk.f32.gmra.mrb[48].mxu1 %vm260_vm1, %v23176_v4 }
 0x3b8   : > { %19236 = vmatprep.mubr.msk.f32.mxu1 %vm260_vm1, %v23180_v46 }
 0x3bb   : > { %19237 = vmatmul.mubr.msk.f32.gmra.mrb[50].mxu1 %vm260_vm1, %v23184_v7 }
 0x3bc   : > { %19239 = vmatprep.mubr.msk.f32.mxu1 %vm260_vm1, %v23188_v63 }
 0x3bf   : > { %19240 = vmatmul.mubr.msk.f32.gmra.mrb[52].mxu1 %vm260_vm1, %v23192_v54 }
 0x3c0   : > { %19242 = vmatprep.mubr.msk.f32.mxu1 %vm260_vm1, %v23196_v33 }
 0x3c3   : > { %19243 = vmatmul.mubr.msk.f32.gmra.mrb[54].mxu1 %vm260_vm1, %v23200_v59 }
 0x3c4   : > { %19245 = vmatprep.mubr.msk.f32.mxu1 %vm260_vm1, %v23204_v58 }
 0x3c7   : > { %19246 = vmatmul.mubr.msk.f32.gmra.mrb[56].mxu1 %vm260_vm1, %v23208_v1 }
 0x3c8   : > { %19248 = vmatprep.mubr.msk.f32.mxu1 %vm260_vm1, %v23212_v26 }
 0x3cb   : > { %19249 = vmatmul.mubr.msk.f32.gmra.mrb[58].mxu1 %vm260_vm1, %v23216_v41 }
 0x3cc   : > { %19251 = vmatprep.mubr.msk.f32.mxu1 %vm260_vm1, %v23060_v51 }
 0x3cf   : > { %19252 = vmatmul.mubr.msk.f32.gmra.mrb[60].mxu1 %vm260_vm1, %v23040_v61 }
 0x3d0   : > { %19254 = vmatprep.mubr.msk.f32.mxu1 %vm260_vm1, %v23421_v10 }
 0x3d3   : > { %19255 = vmatmul.mubr.msk.f32.gmra.mrb[62].mxu1 %vm260_vm1, %v23425_v56 }
 0x3d4   : > { %19259 = vmatprep.mubr.msk.f32.mxu1 %vm260_vm1, %v22890_v0  ;;  %v26551_v0 = vld [vmem:[#allocation34_spill] sm:$0xff] }
 0x3d7   : > { %19260 = vmatmul.mubr.msk.f32.vlgmr.msra.gmra.mrb[32].mxu1 %vm260_vm1, %v22905_v24  ;;  %v26552_v24 = vld [vmem:[#allocation63_spill] sm:$0xff] }
 0x3d8   : > { %19308 = vmatpush3.msk.msra.mxu1 %vm536_vm0, %v5935_v9  ;;  %19262 = vmatprep.mubr.msk.f32.mxu1 %vm260_vm1, %v22912_v52  ;;  %v23494_v52 = vld [vmem:[#allocation2 + $0x181] sm:$0xff] }
 0x3d9   : > { %19357 = vmatprep.subr.msk.mxu1 %vm536_vm0, %v6324_v20  ;;  %v26578_v9 = vld [vmem:[#allocation42_spill] sm:$0xff] }
 0x3db   : > { %19263 = vmatmul.mubr.msk.f32.gmra.mrb[34].mxu1 %vm260_vm1, %v22925_v13  ;;  %v23498_v13 = vld [vmem:[#allocation2 + $0x189] sm:$0xff] }
 0x3dc   : > { %19265 = vmatprep.mubr.msk.f32.mxu1 %vm260_vm1, %v22932_v15  ;;  %v26553_v15 = vld [vmem:[#allocation36_spill] sm:$0xff] }
 0x3df   : > { %19266 = vmatmul.mubr.msk.f32.gmra.mrb[36].mxu1 %vm260_vm1, %v22943_v45  ;;  %v6713_v45 = vld [vmem:[%s26085_s1 + $0x40] sm:$0xf] }
 0x3e0   : > { %19268 = vmatprep.mubr.msk.f32.mxu1 %vm260_vm1, %v22950_v48  ;;  %v26554_v48 = vld [vmem:[#allocation64_spill] sm:$0xff] }
 0x3e3   : > { %19269 = vmatmul.mubr.msk.f32.gmra.mrb[38].mxu1 %vm260_vm1, %v22961_v5  ;;  %v26555_v5 = vld [vmem:[#allocation37_spill] sm:$0xff] }
 0x3e4   : > { %19271 = vmatprep.mubr.msk.f32.mxu1 %vm260_vm1, %v22968_v19  ;;  %v26556_v19 = vld [vmem:[#allocation38_spill] sm:$0xff] }
 0x3e7   : > { %19272 = vmatmul.mubr.msk.f32.gmra.mrb[40].mxu1 %vm260_vm1, %v22979_v49  ;;  %v26557_v49 = vld [vmem:[#allocation65_spill] sm:$0xff] }
 0x3e8   : > { %19274 = vmatprep.mubr.msk.f32.mxu1 %vm260_vm1, %v22986_v29  ;;  %v26558_v29 = vld [vmem:[#allocation39_spill] sm:$0xff] }
 0x3eb   : > { %19275 = vmatmul.mubr.msk.f32.gmra.mrb[42].mxu1 %vm260_vm1, %v22997_v17  ;;  %v26559_v17 = vld [vmem:[#allocation41_spill] sm:$0xff] }
 0x3ec   : > { %19277 = vmatprep.mubr.msk.f32.mxu1 %vm260_vm1, %v23004_v30  ;;  %v26560_v30 = vld [vmem:[#allocation66_spill] sm:$0xff] }
 0x3ef   : > { %19278 = vmatmul.mubr.msk.f32.gmra.mrb[44].mxu1 %vm260_vm1, %v23014_v57  ;;  %v26561_v57 = vld [vmem:[#allocation43_spill] sm:$0xff] }
 0x3f0   : > { %19280 = vmatprep.mubr.msk.f32.mxu1 %vm260_vm1, %v23020_v47  ;;  %v26562_v47 = vld [vmem:[#allocation45_spill] sm:$0xff] }
 0x3f3   : > { %19281 = vmatmul.mubr.msk.f32.gmra.mrb[46].mxu1 %vm260_vm1, %v23027_v60  ;;  %v26563_v60 = vld [vmem:[#allocation46_spill] sm:$0xff] }
 0x3f4   : > { %19283 = vmatprep.mubr.msk.f32.mxu1 %vm260_vm1, %v23032_v16  ;;  %v26564_v16 = vld [vmem:[#allocation47_spill] sm:$0xff] }
 0x3f7   : > { %19284 = vmatmul.mubr.msk.f32.gmra.mrb[48].mxu1 %vm260_vm1, %v23037_v37  ;;  %v26565_v37 = vld [vmem:[#allocation48_spill] sm:$0xff] }
 0x3f8   : > { %19286 = vmatprep.mubr.msk.f32.mxu1 %vm260_vm1, %v23044_v18  ;;  %v26566_v18 = vld [vmem:[#allocation49_spill] sm:$0xff] }
 0x3fb   : > { %19287 = vmatmul.mubr.msk.f32.gmra.mrb[50].mxu1 %vm260_vm1, %v23051_v21  ;;  %v26567_v21 = vld [vmem:[#allocation50_spill] sm:$0xff] }
 0x3fc   : > { %19289 = vmatprep.mubr.msk.f32.mxu1 %vm260_vm1, %v23056_v22  ;;  %v26568_v22 = vld [vmem:[#allocation51_spill] sm:$0xff] }
 0x3ff   : > { %19290 = vmatmul.mubr.msk.f32.gmra.mrb[52].mxu1 %vm260_vm1, %v23063_v23  ;;  %v26569_v23 = vld [vmem:[#allocation52_spill] sm:$0xff] }
 0x400   : > { %19292 = vmatprep.mubr.msk.f32.mxu1 %vm260_vm1, %v23069_v25  ;;  %v26570_v25 = vld [vmem:[#allocation53_spill] sm:$0xff] }
 0x403   : > { %19293 = vmatmul.mubr.msk.f32.gmra.mrb[54].mxu1 %vm260_vm1, %v23073_v27  ;;  %v26571_v27 = vld [vmem:[#allocation54_spill] sm:$0xff] }
 0x404   : > { %19295 = vmatprep.mubr.msk.f32.mxu1 %vm260_vm1, %v23077_v50  ;;  %v26572_v50 = vld [vmem:[#allocation55_spill] sm:$0xff] }
 0x407   : > { %19296 = vmatmul.mubr.msk.f32.gmra.mrb[56].mxu1 %vm260_vm1, %v23081_v39  ;;  %v26573_v39 = vld [vmem:[#allocation56_spill] sm:$0xff] }
 0x408   : > { %19298 = vmatprep.mubr.msk.f32.mxu1 %vm260_vm1, %v23085_v62  ;;  %v26574_v62 = vld [vmem:[#allocation57_spill] sm:$0xff] }
 0x40b   : > { %19299 = vmatmul.mubr.msk.f32.gmra.mrb[58].mxu1 %vm260_vm1, %v23089_v28  ;;  %v26575_v28 = vld [vmem:[#allocation58_spill] sm:$0xff] }
 0x40c   : > { %19301 = vmatprep.mubr.msk.f32.mxu1 %vm260_vm1, %v26551_v0  ;;  %v23571_v0 = vld [vmem:[#allocation2 + $0x18a] sm:$0xff] }
 0x40f   : > { %19302 = vmatmul.mubr.msk.f32.gmra.mrb[60].mxu1 %vm260_vm1, %v26552_v24  ;;  %v6325_v24 = vld [vmem:[#allocation2 + $0x30] sm:$0xff] }
 0x410   : > { %19304 = vmatprep.mubr.msk.f32.mxu1 %vm260_vm1, %v23494_v52 }
 0x413   : > { %19305 = vmatmul.mubr.msk.f32.gmra.mrb[62].mxu1 %vm260_vm1, %v23498_v13 }
 0x414   : > { %19309 = vmatprep.mubr.msk.f32.mxu1 %vm260_vm1, %v26553_v15  ;;  %v6326_v15 = vld [vmem:[#allocation2 + $0x38] sm:$0xff] }
 0x417   : > { %19310 = vmatmul.mubr.msk.f32.vlgmr.msra.gmra.mrb[32].mxu1 %vm260_vm1, %v26554_v48  ;;  %v7102_v48 = vld [vmem:[%s26085_s1 + $0x44] sm:$0xf] }
 0x418   : > { %19358 = vmatpush3.msk.msra.mxu1 %vm536_vm0, %v6324_v20  ;;  %19312 = vmatprep.mubr.msk.f32.mxu1 %vm260_vm1, %v26555_v5  ;;  %v23567_v20 = vld [vmem:[#allocation2 + $0x182] sm:$0xff] }
 0x419   : > { %19407 = vmatprep.subr.msk.mxu1 %vm536_vm0, %v6713_v45 }
 0x41b   : > { %19313 = vmatmul.mubr.msk.f32.gmra.mrb[34].mxu1 %vm260_vm1, %v26556_v19 }
 0x41c   : > { %19315 = vmatprep.mubr.msk.f32.mxu1 %vm260_vm1, %v26557_v49 }
 0x41f   : > { %19316 = vmatmul.mubr.msk.f32.gmra.mrb[36].mxu1 %vm260_vm1, %v26558_v29 }
 0x420   : > { %19318 = vmatprep.mubr.msk.f32.mxu1 %vm260_vm1, %v26559_v17 }
 0x423   : > { %19319 = vmatmul.mubr.msk.f32.gmra.mrb[38].mxu1 %vm260_vm1, %v26560_v30 }
 0x424   : > { %19321 = vmatprep.mubr.msk.f32.mxu1 %vm260_vm1, %v26561_v57 }
 0x427   : > { %19322 = vmatmul.mubr.msk.f32.gmra.mrb[40].mxu1 %vm260_vm1, %v26562_v47 }
 0x428   : > { %19324 = vmatprep.mubr.msk.f32.mxu1 %vm260_vm1, %v26563_v60 }
 0x42b   : > { %19325 = vmatmul.mubr.msk.f32.gmra.mrb[42].mxu1 %vm260_vm1, %v26564_v16 }
 0x42c   : > { %19327 = vmatprep.mubr.msk.f32.mxu1 %vm260_vm1, %v26565_v37 }
 0x42f   : > { %19328 = vmatmul.mubr.msk.f32.gmra.mrb[44].mxu1 %vm260_vm1, %v26566_v18 }
 0x430   : > { %19330 = vmatprep.mubr.msk.f32.mxu1 %vm260_vm1, %v26567_v21 }
 0x433   : > { %19331 = vmatmul.mubr.msk.f32.gmra.mrb[46].mxu1 %vm260_vm1, %v26568_v22 }
 0x434   : > { %19333 = vmatprep.mubr.msk.f32.mxu1 %vm260_vm1, %v26569_v23 }
 0x437   : > { %19334 = vmatmul.mubr.msk.f32.gmra.mrb[48].mxu1 %vm260_vm1, %v26570_v25 }
 0x438   : > { %19336 = vmatprep.mubr.msk.f32.mxu1 %vm260_vm1, %v26571_v27 }
 0x43b   : > { %19337 = vmatmul.mubr.msk.f32.gmra.mrb[50].mxu1 %vm260_vm1, %v26572_v50 }
 0x43c   : > { %19339 = vmatprep.mubr.msk.f32.mxu1 %vm260_vm1, %v26573_v39 }
 0x43f   : > { %19340 = vmatmul.mubr.msk.f32.gmra.mrb[52].mxu1 %vm260_vm1, %v26574_v62 }
 0x440   : > { %19342 = vmatprep.mubr.msk.f32.mxu1 %vm260_vm1, %v26575_v28 }
 0x443   : > { %19343 = vmatmul.mubr.msk.f32.gmra.mrb[54].mxu1 %vm260_vm1, %v26576_v53 }
 0x444   : > { %19345 = vmatprep.mubr.msk.f32.mxu1 %vm260_vm1, %v26577_v55 }
 0x447   : > { %19346 = vmatmul.mubr.msk.f32.gmra.mrb[56].mxu1 %vm260_vm1, %v23335_v8 }
 0x448   : > { %19348 = vmatprep.mubr.msk.f32.mxu1 %vm260_vm1, %v26578_v9 }
 0x44b   : > { %19349 = vmatmul.mubr.msk.f32.gmra.mrb[58].mxu1 %vm260_vm1, %v23343_v6 }
 0x44c   : > { %19351 = vmatprep.mubr.msk.f32.mxu1 %vm260_vm1, %v23347_v2 }
 0x44f   : > { %19352 = vmatmul.mubr.msk.f32.gmra.mrb[60].mxu1 %vm260_vm1, %v23351_v11 }
 0x450   : > { %19354 = vmatprep.mubr.msk.f32.mxu1 %vm260_vm1, %v23567_v20 }
 0x453   : > { %19355 = vmatmul.mubr.msk.f32.gmra.mrb[62].mxu1 %vm260_vm1, %v23571_v0 }
 0x454   : > { %19359 = vmatprep.mubr.msk.f32.mxu1 %vm260_vm1, %v6325_v24  ;;  %v6740_v24 = vld [vmem:[#allocation2 + $0x169] sm:$0xff] }
 0x457   : > { %19360 = vmatmul.mubr.msk.f32.vlgmr.msra.gmra.mrb[32].mxu1 %vm260_vm1, %v6326_v15  ;;  %v6741_v15 = vld [vmem:[#allocation2 + $0x171] sm:$0xff] }
 0x458   : > { %19408 = vmatpush3.msk.msra.mxu1 %vm536_vm0, %v6713_v45  ;;  %19362 = vmatprep.mubr.msk.f32.mxu1 %vm260_vm1, %v23124_v12  ;;  %v6355_v12 = vld [vmem:[#allocation2 + $0x198] sm:$0xff] }
 0x459   : > { %19457 = vmatprep.subr.msk.mxu1 %vm536_vm0, %v7102_v48  ;;  %v6739_v45 = vld [vmem:[#allocation2 + $0x159] sm:$0xff] }
 0x45b   : > { %19363 = vmatmul.mubr.msk.f32.gmra.mrb[34].mxu1 %vm260_vm1, %v23128_v43  ;;  %v6356_v43 = vld [vmem:[#allocation2 + $0x1a0] sm:$0xff] }
 0x45c   : > { %19365 = vmatprep.mubr.msk.f32.mxu1 %vm260_vm1, %v23132_v44  ;;  %v6714_v44 = vld [vmem:[#allocation2 + $0x31] sm:$0xff] }
 0x45f   : > { %19366 = vmatmul.mubr.msk.f32.gmra.mrb[36].mxu1 %vm260_vm1, %v23136_v34  ;;  %v6716_v34 = vld [vmem:[#allocation2 + $0x49] sm:$0xff] }
 0x460   : > { %19368 = vmatprep.mubr.msk.f32.mxu1 %vm260_vm1, %v23140_v14  ;;  %v6717_v14 = vld [vmem:[#allocation2 + $0x51] sm:$0xff] }
 0x463   : > { %19369 = vmatmul.mubr.msk.f32.gmra.mrb[38].mxu1 %vm260_vm1, %v23144_v42  ;;  %v6718_v42 = vld [vmem:[#allocation2 + $0x61] sm:$0xff] }
 0x464   : > { %19371 = vmatprep.mubr.msk.f32.mxu1 %vm260_vm1, %v23148_v31  ;;  %v6719_v31 = vld [vmem:[#allocation2 + $0x69] sm:$0xff] }
 0x467   : > { %19372 = vmatmul.mubr.msk.f32.gmra.mrb[40].mxu1 %vm260_vm1, %v23152_v35  ;;  %v6720_v35 = vld [vmem:[#allocation2 + $0x79] sm:$0xff] }
 0x468   : > { %19374 = vmatprep.mubr.msk.f32.mxu1 %vm260_vm1, %v23156_v36  ;;  %v6721_v36 = vld [vmem:[#allocation2 + $0x81] sm:$0xff] }
 0x46b   : > { %19375 = vmatmul.mubr.msk.f32.gmra.mrb[42].mxu1 %vm260_vm1, %v23160_v3  ;;  %v6722_v3 = vld [vmem:[#allocation2 + $0x91] sm:$0xff] }
 0x46c   : > { %19377 = vmatprep.mubr.msk.f32.mxu1 %vm260_vm1, %v23164_v38  ;;  %v6723_v38 = vld [vmem:[#allocation2 + $0x99] sm:$0xff] }
 0x46f   : > { %19378 = vmatmul.mubr.msk.f32.gmra.mrb[44].mxu1 %vm260_vm1, %v23168_v32  ;;  %v6724_v32 = vld [vmem:[#allocation2 + $0xa9] sm:$0xff] }
 0x470   : > { %19380 = vmatprep.mubr.msk.f32.mxu1 %vm260_vm1, %v23172_v40  ;;  %v6725_v40 = vld [vmem:[#allocation2 + $0xb1] sm:$0xff] }
 0x473   : > { %19381 = vmatmul.mubr.msk.f32.gmra.mrb[46].mxu1 %vm260_vm1, %v23176_v4  ;;  %v6726_v4 = vld [vmem:[#allocation2 + $0xc1] sm:$0xff] }
 0x474   : > { %19383 = vmatprep.mubr.msk.f32.mxu1 %vm260_vm1, %v23180_v46  ;;  %v6727_v46 = vld [vmem:[#allocation2 + $0xc9] sm:$0xff] }
 0x477   : > { %19384 = vmatmul.mubr.msk.f32.gmra.mrb[48].mxu1 %vm260_vm1, %v23184_v7  ;;  %v6728_v7 = vld [vmem:[#allocation2 + $0xd9] sm:$0xff] }
 0x478   : > { %19386 = vmatprep.mubr.msk.f32.mxu1 %vm260_vm1, %v23188_v63  ;;  %v6729_v63 = vld [vmem:[#allocation2 + $0xe1] sm:$0xff] }
 0x47b   : > { %19387 = vmatmul.mubr.msk.f32.gmra.mrb[50].mxu1 %vm260_vm1, %v23192_v54  ;;  %v6730_v54 = vld [vmem:[#allocation2 + $0xf1] sm:$0xff] }
 0x47c   : > { %19389 = vmatprep.mubr.msk.f32.mxu1 %vm260_vm1, %v23196_v33  ;;  %v6731_v33 = vld [vmem:[#allocation2 + $0xf9] sm:$0xff] }
 0x47f   : > { %19390 = vmatmul.mubr.msk.f32.gmra.mrb[52].mxu1 %vm260_vm1, %v23200_v59  ;;  %v6732_v59 = vld [vmem:[#allocation2 + $0x109] sm:$0xff] }
 0x480   : > { %19392 = vmatprep.mubr.msk.f32.mxu1 %vm260_vm1, %v23204_v58  ;;  %v6733_v58 = vld [vmem:[#allocation2 + $0x111] sm:$0xff] }
 0x483   : > { %19393 = vmatmul.mubr.msk.f32.gmra.mrb[54].mxu1 %vm260_vm1, %v23208_v1  ;;  %v6734_v1 = vld [vmem:[#allocation2 + $0x121] sm:$0xff] }
 0x484   : > { %19395 = vmatprep.mubr.msk.f32.mxu1 %vm260_vm1, %v23212_v26  ;;  %v6735_v26 = vld [vmem:[#allocation2 + $0x129] sm:$0xff] }
 0x487   : > { %19396 = vmatmul.mubr.msk.f32.gmra.mrb[56].mxu1 %vm260_vm1, %v23216_v41  ;;  %v6736_v41 = vld [vmem:[#allocation2 + $0x139] sm:$0xff] }
 0x488   : > { %19398 = vmatprep.mubr.msk.f32.mxu1 %vm260_vm1, %v23060_v51  ;;  %v7701_v51 = vld [vmem:[%s26085_s1 + $0x4c] sm:$0xf] }
 0x489   : > { %19507 = vmatprep.subr.msk.mxu0 %vm536_vm0, %v7701_v51 }
 0x48a   : > { %19508 = vmatpush3.msk.msra.mxu0 %vm536_vm0, %v7701_v51  ;;  %v26591_v51 = vld [vmem:[#allocation11_spill] sm:$0xff] }
 0x48b   : > { %19399 = vmatmul.mubr.msk.f32.gmra.mrb[58].mxu1 %vm260_vm1, %v23040_v61  ;;  %v6715_v61 = vld [vmem:[#allocation2 + $0x39] sm:$0xff] }
 0x48c   : > { %19401 = vmatprep.mubr.msk.f32.mxu1 %vm260_vm1, %v23421_v10  ;;  %v6737_v10 = vld [vmem:[#allocation2 + $0x141] sm:$0xff] }
 0x48f   : > { %19402 = vmatmul.mubr.msk.f32.gmra.mrb[60].mxu1 %vm260_vm1, %v23425_v56  ;;  %v6738_v56 = vld [vmem:[#allocation2 + $0x151] sm:$0xff] }
 0x490   : > { %19404 = vmatprep.mubr.msk.f32.mxu1 %vm260_vm1, %v6355_v12  ;;  %v6745_v12 = vld [vmem:[#allocation2 + $0x1a1] sm:$0xff] }
 0x493   : > { %19405 = vmatmul.mubr.msk.f32.gmra.mrb[62].mxu1 %vm260_vm1, %v6356_v43 }
 0x494   : > { %19409 = vmatprep.mubr.msk.f32.mxu1 %vm260_vm1, %v6714_v44 }
 0x497   : > { %19410 = vmatmul.mubr.msk.f32.vlgmr.msra.gmra.mrb[32].mxu1 %vm260_vm1, %v6715_v61 }
 0x498   : > { %19458 = vmatpush3.msk.msra.mxu1 %vm536_vm0, %v7102_v48  ;;  %19412 = vmatprep.mubr.msk.f32.mxu1 %vm260_vm1, %v6716_v34  ;;  %v6744_v48 = vld [vmem:[#allocation2 + $0x199] sm:$0xff] }
 0x499   : > { %v26593_v34 = vld [vmem:[#allocation10_spill] sm:$0xff] }
 0x49b   : > { %19413 = vmatmul.mubr.msk.f32.gmra.mrb[34].mxu1 %vm260_vm1, %v6717_v14 }
 0x49c   : > { %19415 = vmatprep.mubr.msk.f32.mxu1 %vm260_vm1, %v6718_v42 }
 0x49f   : > { %19416 = vmatmul.mubr.msk.f32.gmra.mrb[36].mxu1 %vm260_vm1, %v6719_v31 }
 0x4a0   : > { %19418 = vmatprep.mubr.msk.f32.mxu1 %vm260_vm1, %v6720_v35 }
 0x4a3   : > { %19419 = vmatmul.mubr.msk.f32.gmra.mrb[38].mxu1 %vm260_vm1, %v6721_v36 }
 0x4a4   : > { %19421 = vmatprep.mubr.msk.f32.mxu1 %vm260_vm1, %v6722_v3 }
 0x4a7   : > { %19422 = vmatmul.mubr.msk.f32.gmra.mrb[40].mxu1 %vm260_vm1, %v6723_v38 }
 0x4a8   : > { %19424 = vmatprep.mubr.msk.f32.mxu1 %vm260_vm1, %v6724_v32 }
 0x4ab   : > { %19425 = vmatmul.mubr.msk.f32.gmra.mrb[42].mxu1 %vm260_vm1, %v6725_v40  ;;  %v26595_v40 = vld [vmem:[#allocation13_spill] sm:$0xff] }
 0x4ac   : > { %19427 = vmatprep.mubr.msk.f32.mxu1 %vm260_vm1, %v6726_v4 }
 0x4af   : > { %19428 = vmatmul.mubr.msk.f32.gmra.mrb[44].mxu1 %vm260_vm1, %v6727_v46  ;;  %v26597_v46 = vld [vmem:[#allocation12_spill] sm:$0xff] }
 0x4b0   : > { %19430 = vmatprep.mubr.msk.f32.mxu1 %vm260_vm1, %v6728_v7 }
 0x4b3   : > { %19431 = vmatmul.mubr.msk.f32.gmra.mrb[46].mxu1 %vm260_vm1, %v6729_v63 }
 0x4b4   : > { %19433 = vmatprep.mubr.msk.f32.mxu1 %vm260_vm1, %v6730_v54 }
 0x4b7   : > { %19434 = vmatmul.mubr.msk.f32.gmra.mrb[48].mxu1 %vm260_vm1, %v6731_v33 }
 0x4b8   : > { %19436 = vmatprep.mubr.msk.f32.mxu1 %vm260_vm1, %v6732_v59 }
 0x4bb   : > { %19437 = vmatmul.mubr.msk.f32.gmra.mrb[50].mxu1 %vm260_vm1, %v6733_v58 }
 0x4bc   : > { %19439 = vmatprep.mubr.msk.f32.mxu1 %vm260_vm1, %v6734_v1 }
 0x4bf   : > { %19440 = vmatmul.mubr.msk.f32.gmra.mrb[52].mxu1 %vm260_vm1, %v6735_v26  ;;  %v26599_v26 = vld [vmem:[#allocation15_spill] sm:$0xff] }
 0x4c0   : > { %19442 = vmatprep.mubr.msk.f32.mxu1 %vm260_vm1, %v6736_v41 }
 0x4c3   : > { %19443 = vmatmul.mubr.msk.f32.gmra.mrb[54].mxu1 %vm260_vm1, %v6737_v10  ;;  %v26601_v10 = vld [vmem:[#allocation14_spill] sm:$0xff] }
 0x4c4   : > { %19445 = vmatprep.mubr.msk.f32.mxu1 %vm260_vm1, %v6738_v56 }
 0x4c7   : > { %19446 = vmatmul.mubr.msk.f32.gmra.mrb[56].mxu1 %vm260_vm1, %v6739_v45 }
 0x4c8   : > { %19448 = vmatprep.mubr.msk.f32.mxu1 %vm260_vm1, %v6740_v24 }
 0x4cb   : > { %19449 = vmatmul.mubr.msk.f32.gmra.mrb[58].mxu1 %vm260_vm1, %v6741_v15 }
 0x4cc   : > { %19451 = vmatprep.mubr.msk.f32.mxu1 %vm260_vm1, %v23494_v52  ;;  %v7133_v52 = vld [vmem:[#allocation2 + $0x19a] sm:$0xff] }
 0x4cf   : > { %19452 = vmatmul.mubr.msk.f32.gmra.mrb[60].mxu1 %vm260_vm1, %v23498_v13 }
 0x4d0   : > { %19454 = vmatprep.mubr.msk.f32.mxu1 %vm260_vm1, %v6744_v48 }
 0x4d3   : > { %19455 = vmatmul.mubr.msk.f32.gmra.mrb[62].mxu1 %vm260_vm1, %v6745_v12 }
 0x4d4   : > { %19459 = vmatprep.mubr.msk.f32.mxu1 %vm260_vm1, %v26555_v5 }
 0x4d7   : > { %19460 = vmatmul.mubr.msk.f32.vlgmr.msra.gmra.mrb[32].mxu1 %vm260_vm1, %v26556_v19 }
 0x4d8   : > { %19462 = vmatprep.mubr.msk.f32.mxu1 %vm260_vm1, %v26557_v49  ;;  %v26579_v49 = vld [vmem:[#allocation7_spill] sm:$0xff] }
 0x4db   : > { %19463 = vmatmul.mubr.msk.f32.gmra.mrb[34].mxu1 %vm260_vm1, %v26558_v29 }
 0x4dc   : > { %19465 = vmatprep.mubr.msk.f32.mxu1 %vm260_vm1, %v26559_v17  ;;  %v26581_v17 = vld [vmem:[#allocation6_spill] sm:$0xff] }
 0x4df   : > { %19466 = vmatmul.mubr.msk.f32.gmra.mrb[36].mxu1 %vm260_vm1, %v26560_v30 }
 0x4e0   : > { %19468 = vmatprep.mubr.msk.f32.mxu1 %vm260_vm1, %v26561_v57 }
 0x4e3   : > { %19469 = vmatmul.mubr.msk.f32.gmra.mrb[38].mxu1 %vm260_vm1, %v26562_v47 }
 0x4e4   : > { %19471 = vmatprep.mubr.msk.f32.mxu1 %vm260_vm1, %v26563_v60 }
 0x4e7   : > { %19472 = vmatmul.mubr.msk.f32.gmra.mrb[40].mxu1 %vm260_vm1, %v26564_v16 }
 0x4e8   : > { %19474 = vmatprep.mubr.msk.f32.mxu1 %vm260_vm1, %v26565_v37  ;;  %v26583_v37 = vld [vmem:[#allocation5_spill] sm:$0xff] }
 0x4eb   : > { %19475 = vmatmul.mubr.msk.f32.gmra.mrb[42].mxu1 %vm260_vm1, %v26566_v18 }
 0x4ec   : > { %19477 = vmatprep.mubr.msk.f32.mxu1 %vm260_vm1, %v26567_v21  ;;  %v26585_v21 = vld [vmem:[#allocation4_spill] sm:$0xff] }
 0x4ef   : > { %19478 = vmatmul.mubr.msk.f32.gmra.mrb[44].mxu1 %vm260_vm1, %v26568_v22 }
 0x4f0   : > { %19480 = vmatprep.mubr.msk.f32.mxu1 %vm260_vm1, %v26569_v23 }
 0x4f3   : > { %19481 = vmatmul.mubr.msk.f32.gmra.mrb[46].mxu1 %vm260_vm1, %v26570_v25 }
 0x4f4   : > { %19483 = vmatprep.mubr.msk.f32.mxu1 %vm260_vm1, %v26571_v27 }
 0x4f7   : > { %19484 = vmatmul.mubr.msk.f32.gmra.mrb[48].mxu1 %vm260_vm1, %v26572_v50 }
 0x4f8   : > { %19486 = vmatprep.mubr.msk.f32.mxu1 %vm260_vm1, %v26573_v39  ;;  %v26587_v39 = vld [vmem:[#allocation9_spill] sm:$0xff] }
 0x4fb   : > { %19487 = vmatmul.mubr.msk.f32.gmra.mrb[50].mxu1 %vm260_vm1, %v26574_v62 }
 0x4fc   : > { %19489 = vmatprep.mubr.msk.f32.mxu1 %vm260_vm1, %v26575_v28  ;;  %v26589_v28 = vld [vmem:[#allocation8_spill] sm:$0xff] }
 0x4ff   : > { %19490 = vmatmul.mubr.msk.f32.gmra.mrb[52].mxu1 %vm260_vm1, %v26576_v53 }
 0x500   : > { %19492 = vmatprep.mubr.msk.f32.mxu1 %vm260_vm1, %v26577_v55 }
 0x503   : > { %19493 = vmatmul.mubr.msk.f32.gmra.mrb[54].mxu1 %vm260_vm1, %v23335_v8  ;;  %v7134_v8 = vld [vmem:[#allocation2 + $0x1a2] sm:$0xff] }
 0x504   : > { %19495 = vmatprep.mubr.msk.f32.mxu1 %vm260_vm1, %v26578_v9 }
 0x507   : > { %19496 = vmatmul.mubr.msk.f32.gmra.mrb[56].mxu1 %vm260_vm1, %v23343_v6  ;;  %v23745_v6 = vld [vmem:[%s26085_s1 + $0x48] sm:$0xf] }
 0x508   : > { %19498 = vmatprep.mubr.msk.f32.mxu1 %vm260_vm1, %v23347_v2  ;;  %19557 = vmatprep.subr.msk.mxu0 %vm536_vm0, %v23745_v6  ;;  %v23752_v2 = vld [vmem:[%s26087_s3 + $0x1] ss:$0 sm:$0xff] }
 0x50b   : > { %19499 = vmatmul.mubr.msk.f32.gmra.mrb[58].mxu1 %vm260_vm1, %v23351_v11 }
 0x50c   : > { %19501 = vmatprep.mubr.msk.f32.mxu1 %vm260_vm1, %v23567_v20 }
 0x50f   : > { %19502 = vmatmul.mubr.msk.f32.gmra.mrb[60].mxu1 %vm260_vm1, %v23571_v0 }
 0x510   : > { %19504 = vmatprep.mubr.msk.f32.mxu1 %vm260_vm1, %v7133_v52 }
 0x513   : > { %19505 = vmatmul.mubr.msk.f32.gmra.mrb[62].mxu1 %vm260_vm1, %v7134_v8 }
 0x5aa   : > { %v19461_v11 = vpop.f32.mrb[32].mxu1 }
 0x5ab   : > { %v7497_v13 = vadd.f32 %v19461_v11, %v23752_v2  ;;  %v7300_v5 = vpop.f32.mrb[33].mxu1  ;;  %v26603_v11 = vld [vmem:[#allocation17_spill] sm:$0xff] }
 0x5ac   : > { %v7496_v19 = vadd.f32 %v23752_v2, %v7300_v5 }
 0x5ad   : > { %v23757_v29 = vadd.f32 %v7497_v13, %v26579_v49 }
 0x5ae   : > { %v23760_v30 = vadd.f32 %v7496_v19, %v26581_v17  ;;  %v19464_v57 = vpop.f32.mrb[34].mxu1  ;;  %v26605_v19 = vld [vmem:[#allocation16_spill] sm:$0xff] }
 0x5af   : > { %26580 = vst [vmem:[#allocation60_spill] sm:$0xff] %v23757_v29  ;;  %7561 = vst.msk [vmem:[#allocation2 + $0x21] sm:$0xff] %vm260_vm1, %v23757_v29  ;;  %v7499_v47 = vadd.f32 %v19464_v57, %v23752_v2  ;;  %v7310_v60 = vpop.f32.mrb[35].mxu1 }
 0x5b0   : > { %26582 = vst [vmem:[#allocation61_spill] sm:$0xff] %v23760_v30  ;;  %7560 = vst.msk [vmem:[#allocation2 + $0x19] sm:$0xff] %vm260_vm1, %v23760_v30  ;;  %v7498_v16 = vadd.f32 %v23752_v2, %v7310_v60  ;;  %v24254_v30 = vld [vmem:[%s26085_s1 + $0x58] sm:$0xf] }
 0x5b1   : > { %v23769_v18 = vadd.f32 %v7499_v47, %v26583_v37 }
 0x5b2   : > { %v23772_v22 = vadd.f32 %v7498_v16, %v26585_v21  ;;  %v19467_v23 = vpop.f32.mrb[36].mxu1 }
 0x5b3   : > { %26584 = vst [vmem:[#allocation34_spill] sm:$0xff] %v23769_v18  ;;  %7563 = vst.msk [vmem:[#allocation2 + $0x39] sm:$0xff] %vm260_vm1, %v23769_v18  ;;  %v7501_v25 = vadd.f32 %v19467_v23, %v23752_v2  ;;  %v7320_v27 = vpop.f32.mrb[37].mxu1 }
 0x5b4   : > { %26586 = vst [vmem:[#allocation63_spill] sm:$0xff] %v23772_v22  ;;  %7562 = vst.msk [vmem:[#allocation2 + $0x31] sm:$0xff] %vm260_vm1, %v23772_v22  ;;  %v7500_v50 = vadd.f32 %v23752_v2, %v7320_v27 }
 0x5b5   : > { %v23781_v62 = vadd.f32 %v7501_v25, %v26587_v39 }
 0x5b6   : > { %v23784_v53 = vadd.f32 %v7500_v50, %v26589_v28  ;;  %v19470_v55 = vpop.f32.mrb[38].mxu1  ;;  %v7624_v9 = vld [vmem:[#allocation2 + $0x27] sm:$0x1]  ;;  %v26607_v50 = vld [vmem:[#allocation19_spill] sm:$0xff] }
 0x5b7   : > { %26588 = vst [vmem:[#allocation36_spill] sm:$0xff] %v23781_v62  ;;  %7565 = vst.msk [vmem:[#allocation2 + $0x51] sm:$0xff] %vm260_vm1, %v23781_v62  ;;  %v7503_v20 = vadd.f32 %v19470_v55, %v23752_v2  ;;  %v7330_v0 = vpop.f32.mrb[39].mxu1  ;;  %v7592_v43 = vld [vmem:[#allocation2 + $0x1a] sm:$0x1] }
 0x5b8   : > { %26590 = vst [vmem:[#allocation64_spill] sm:$0xff] %v23784_v53  ;;  %7640 = vst.msk [vmem:[#allocation2 + $0x29] sm:$0x1] %vm309_vm2, %v7624_v9  ;;  %v7502_v44 = vadd.f32 %v23752_v2, %v7330_v0  ;;  %v26609_v9 = vld [vmem:[#allocation18_spill] sm:$0xff] }
 0x5b9   : > { %7564 = vst.msk [vmem:[#allocation2 + $0x49] sm:$0xff] %vm260_vm1, %v23784_v53  ;;  %v23795_v61 = vadd.f32 %v7503_v20, %v26591_v51  ;;  %v26641_v51 = vld [vmem:[#allocation35_spill] sm:$0xff] }
 0x5ba   : > { %7608 = vst.msk [vmem:[#allocation2 + $0x18] sm:$0x1] %vm309_vm2, %v7592_v43  ;;  %v23798_v14 = vadd.f32 %v7502_v44, %v26593_v34  ;;  %v19473_v42 = vpop.f32.mrb[40].mxu1  ;;  %v7625_v31 = vld [vmem:[#allocation2 + $0x3f] sm:$0x1] }
 0x5bb   : > { %26592 = vst [vmem:[#allocation37_spill] sm:$0xff] %v23795_v61  ;;  %7567 = vst.msk [vmem:[#allocation2 + $0x69] sm:$0xff] %vm260_vm1, %v23795_v61  ;;  %v7505_v35 = vadd.f32 %v19473_v42, %v23752_v2  ;;  %v7340_v36 = vpop.f32.mrb[41].mxu1  ;;  %v7593_v3 = vld [vmem:[#allocation2 + $0x32] sm:$0x1]  ;;  %v23803_v38 = vld [vmem:[#allocation2 + $0x38] sm:$0xff] }
 0x5bc   : > { %26594 = vst [vmem:[#allocation38_spill] sm:$0xff] %v23798_v14  ;;  %7641 = vst.msk [vmem:[#allocation2 + $0x41] sm:$0x1] %vm309_vm2, %v7625_v31  ;;  %v7504_v32 = vadd.f32 %v23752_v2, %v7340_v36  ;;  %v23875_v36 = vld [vmem:[%s26085_s1 + $0x50] sm:$0xf] }
 0x5bd   : > { %7566 = vst.msk [vmem:[#allocation2 + $0x61] sm:$0xff] %vm260_vm1, %v23798_v14  ;;  %7660 = vst.msk [vmem:[#allocation2 + $0x8] sm:$0xff] %vm260_vm1, %v23803_v38  ;;  %v23813_v4 = vadd.f32 %v7505_v35, %v26595_v40  ;;  %v26639_v40 = vld [vmem:[#allocation40_spill] sm:$0xff] }
 0x5be   : > { %7609 = vst.msk [vmem:[#allocation2 + $0x30] sm:$0x1] %vm309_vm2, %v7593_v3  ;;  %v23816_v7 = vadd.f32 %v7504_v32, %v26597_v46  ;;  %v19476_v63 = vpop.f32.mrb[42].mxu1  ;;  %v7626_v54 = vld [vmem:[#allocation2 + $0x57] sm:$0x1]  ;;  %v26611_v32 = vld [vmem:[#allocation21_spill] sm:$0xff] }
 0x5bf   : > { %26596 = vst [vmem:[#allocation65_spill] sm:$0xff] %v23813_v4  ;;  %7569 = vst.msk [vmem:[#allocation2 + $0x81] sm:$0xff] %vm260_vm1, %v23813_v4  ;;  %v7507_v33 = vadd.f32 %v19476_v63, %v23752_v2  ;;  %v7350_v59 = vpop.f32.mrb[43].mxu1 }
 0x5c0   : > { %26598 = vst [vmem:[#allocation39_spill] sm:$0xff] %v23816_v7  ;;  %v7594_v58 = vld [vmem:[#allocation2 + $0x4a] sm:$0x1]  ;;  %7642 = vst.msk [vmem:[#allocation2 + $0x59] sm:$0x1] %vm309_vm2, %v7626_v54  ;;  %v7506_v1 = vadd.f32 %v23752_v2, %v7350_v59  ;;  %v23881_v54 = vld [vmem:[#allocation2 + $0x19] sm:$0xff] }
 0x5c1   : > { %7568 = vst.msk [vmem:[#allocation2 + $0x79] sm:$0xff] %vm260_vm1, %v23816_v7  ;;  %v23827_v41 = vadd.f32 %v7507_v33, %v26599_v26  ;;  %v26613_v33 = vld [vmem:[#allocation20_spill] sm:$0xff] }
 0x5c2   : > { %7610 = vst.msk [vmem:[#allocation2 + $0x48] sm:$0x1] %vm309_vm2, %v7594_v58  ;;  %v23830_v56 = vadd.f32 %v7506_v1, %v26601_v10  ;;  %v19479_v45 = vpop.f32.mrb[44].mxu1  ;;  %v7627_v5 = vld [vmem:[#allocation2 + $0x6f] sm:$0x1]  ;;  %v26637_v26 = vld [vmem:[#allocation32_spill] sm:$0xff] }
 0x5c3   : > { %26600 = vst [vmem:[#allocation41_spill] sm:$0xff] %v23827_v41  ;;  %v7658_v24 = vld [vmem:[#allocation2 + $0x40] sm:$0x3]  ;;  %7571 = vst.msk [vmem:[#allocation2 + $0x99] sm:$0xff] %vm260_vm1, %v23827_v41  ;;  %v7509_v15 = vadd.f32 %v19479_v45, %v23752_v2  ;;  %v7360_v48 = vpop.f32.mrb[45].mxu1 }
 0x5c4   : > { %26602 = vst [vmem:[#allocation66_spill] sm:$0xff] %v23830_v56  ;;  %7661 = vst.msk [vmem:[#allocation2 + $0x10] sm:$0x3] %vm364_vm3, %v7658_v24  ;;  %v7508_v52 = vadd.f32 %v23752_v2, %v7360_v48  ;;  %v7595_v8 = vld [vmem:[#allocation2 + $0x62] sm:$0x1] }
 0x5c5   : > { %v23835_v12 = vld [vmem:[#allocation2 + $0x30] sm:$0xff]  ;;  %7570 = vst.msk [vmem:[#allocation2 + $0x91] sm:$0xff] %vm260_vm1, %v23830_v56  ;;  %v23844_v13 = vadd.f32 %v7509_v15, %v26603_v11  ;;  %v26635_v11 = vld [vmem:[#allocation33_spill] sm:$0xff] }
 0x5c6   : > { %7659 = vst.msk [vmem:[#allocation2] sm:$0xff] %vm260_vm1, %v23835_v12  ;;  %v23848_v57 = vadd.f32 %v7508_v52, %v26605_v19  ;;  %v19482_v47 = vpop.f32.mrb[46].mxu1  ;;  %v7628_v60 = vld [vmem:[#allocation2 + $0x87] sm:$0x1]  ;;  %v26615_v52 = vld [vmem:[#allocation23_spill] sm:$0xff] }
 0x5c7   : > { %26604 = vst [vmem:[#allocation43_spill] sm:$0xff] %v23844_v13  ;;  %7611 = vst.msk [vmem:[#allocation2 + $0x60] sm:$0x1] %vm309_vm2, %v7595_v8  ;;  %v7511_v16 = vadd.f32 %v19482_v47, %v23752_v2  ;;  %v7370_v23 = vpop.f32.mrb[47].mxu1 }
 0x5c8   : > { %26606 = vst [vmem:[#allocation45_spill] sm:$0xff] %v23848_v57  ;;  %7643 = vst.msk [vmem:[#allocation2 + $0x71] sm:$0x1] %vm309_vm2, %v7627_v5  ;;  %v7596_v25 = vld [vmem:[#allocation2 + $0x7a] sm:$0x1]  ;;  %v7510_v27 = vadd.f32 %v23752_v2, %v7370_v23  ;;  %v23907_v5 = vld [vmem:[#allocation2 + $0x31] sm:$0xff] }
 0x5c9   : > { %7573 = vst.msk [vmem:[#allocation2 + $0xb1] sm:$0xff] %vm260_vm1, %v23844_v13  ;;  %7572 = vst.msk [vmem:[#allocation2 + $0xa9] sm:$0xff] %vm260_vm1, %v23848_v57  ;;  %v23860_v55 = vadd.f32 %v7511_v16, %v26607_v50  ;;  %v26633_v50 = vld [vmem:[#allocation30_spill] sm:$0xff] }
 0x5ca   : > { %7644 = vst.msk [vmem:[#allocation2 + $0x89] sm:$0x1] %vm309_vm2, %v7628_v60  ;;  %7612 = vst.msk [vmem:[#allocation2 + $0x78] sm:$0x1] %vm309_vm2, %v7596_v25  ;;  %v23863_v20 = vadd.f32 %v7510_v27, %v26609_v9  ;;  %v19485_v0 = vpop.f32.mrb[48].mxu1  ;;  %v26617_v60 = vld [vmem:[#allocation22_spill] sm:$0xff] }
 0x5cb   : > { %26608 = vst [vmem:[#allocation46_spill] sm:$0xff] %v23860_v55  ;;  %7575 = vst.msk [vmem:[#allocation2 + $0xc9] sm:$0xff] %vm260_vm1, %v23860_v55  ;;  %v7513_v43 = vadd.f32 %v19485_v0, %v23752_v2  ;;  %v7380_v44 = vpop.f32.mrb[49].mxu1  ;;  %v7703_v35 = vld [vmem:[#allocation2 + $0x9] sm:$0xff]  ;;  %v7629_v48 = vld [vmem:[#allocation2 + $0x9f] sm:$0x1] }
 0x5cc   : > { %26610 = vst [vmem:[#allocation47_spill] sm:$0xff] %v23863_v20  ;;  %7574 = vst.msk [vmem:[#allocation2 + $0xc1] sm:$0xff] %vm260_vm1, %v23863_v20  ;;  %v7512_v31 = vadd.f32 %v23752_v2, %v7380_v44  ;;  %v7597_v3 = vld [vmem:[#allocation2 + $0x92] sm:$0x1]  ;;  %v8384_v29 = vld [vmem:[#allocation2 + $0xa] sm:$0xff] }
 0x5cd   : > { %v7702_v42 = vld [vmem:[#allocation2 + $0x1] sm:$0xff]  ;;  %v23878_v63 = vadd.f32 %v7513_v43, %v26611_v32  ;;  %7613 = vst.msk [vmem:[#allocation2 + $0x90] sm:$0x1] %vm309_vm2, %v7597_v3  ;;  %7645 = vst.msk [vmem:[#allocation2 + $0xa1] sm:$0x1] %vm309_vm2, %v7629_v48  ;;  %v23931_v3 = vld [vmem:[#allocation2 + $0x49] sm:$0xff] }
 0x5ce   : > { %19509 = vmatprep.mubr.msk.f32.mxu0 %vm260_vm1, %v7702_v42  ;;  %v23885_v59 = vadd.f32 %v7512_v31, %v26613_v33  ;;  %v19488_v58 = vpop.f32.mrb[50].mxu1  ;;  %v23923_v42 = vld [vmem:[#allocation2 + $0x39] sm:$0xff]  ;;  %v26631_v32 = vld [vmem:[#allocation31_spill] sm:$0xff] }
 0x5cf   : > { %26612 = vst [vmem:[#allocation48_spill] sm:$0xff] %v23878_v63  ;;  %19510 = vmatmul.mubr.msk.f32.vlgmr.msra.gmra.mrb[32].mxu0 %vm260_vm1, %v7703_v35  ;;  %7577 = vst.msk [vmem:[#allocation2 + $0xe1] sm:$0xff] %vm260_vm1, %v23878_v63  ;;  %v7515_v1 = vadd.f32 %v19488_v58, %v23752_v2  ;;  %v7390_v45 = vpop.f32.mrb[51].mxu1  ;;  %v26619_v31 = vld [vmem:[#allocation25_spill] sm:$0xff]  ;;  %v26621_v58 = vld [vmem:[#allocation24_spill] sm:$0xff] }
 0x5d0   : > { %26614 = vst [vmem:[#allocation49_spill] sm:$0xff] %v23885_v59  ;;  %19558 = vmatpush3.msk.msra.mxu0 %vm536_vm0, %v23745_v6  ;;  %19512 = vmatprep.mubr.msk.f32.mxu0 %vm260_vm1, %v23881_v54  ;;  %v7598_v24 = vld [vmem:[#allocation2 + $0xaa] sm:$0x1]  ;;  %7576 = vst.msk [vmem:[#allocation2 + $0xd9] sm:$0xff] %vm260_vm1, %v23885_v59  ;;  %v7514_v15 = vadd.f32 %v23752_v2, %v7390_v45  ;;  %v23899_v6 = vld [vmem:[#allocation2 + $0x21] sm:$0xff] }
 0x5d1   : > { %19607 = vmatprep.subr.msk.mxu0 %vm536_vm0, %v23875_v36  ;;  %7614 = vst.msk [vmem:[#allocation2 + $0xa8] sm:$0x1] %vm309_vm2, %v7598_v24  ;;  %v23903_v8 = vadd.f32 %v7515_v1, %v26615_v52  ;;  %v7630_v47 = vld [vmem:[#allocation2 + $0xb7] sm:$0x1]  ;;  %v8383_v22 = vld [vmem:[#allocation2 + $0x2] sm:$0xff] }
 0x5d2   : > { %v23911_v16 = vadd.f32 %v7514_v15, %v26617_v60  ;;  %v19491_v23 = vpop.f32.mrb[52].mxu1  ;;  %7646 = vst.msk [vmem:[#allocation2 + $0xb9] sm:$0x1] %vm309_vm2, %v7630_v47  ;;  %v7631_v25 = vld [vmem:[#allocation2 + $0xcf] sm:$0x1]  ;;  %v26629_v52 = vld [vmem:[#allocation28_spill] sm:$0xff] }
 0x5d3   : > { %26616 = vst [vmem:[#allocation50_spill] sm:$0xff] %v23903_v8  ;;  %19513 = vmatmul.mubr.msk.f32.gmra.mrb[34].mxu0 %vm260_vm1, %v23899_v6  ;;  %7579 = vst.msk [vmem:[#allocation2 + $0xf9] sm:$0xff] %vm260_vm1, %v23903_v8  ;;  %v7517_v27 = vadd.f32 %v19491_v23, %v23752_v2  ;;  %v7400_v0 = vpop.f32.mrb[53].mxu1  ;;  %v7599_v43 = vld [vmem:[#allocation2 + $0xc2] sm:$0x1]  ;;  %v24178_v8 = vld [vmem:[#allocation2 + $0x98] sm:$0xff] }
 0x5d4   : > { %26618 = vst [vmem:[#allocation51_spill] sm:$0xff] %v23911_v16  ;;  %19515 = vmatprep.mubr.msk.f32.mxu0 %vm260_vm1, %v23907_v5  ;;  %7647 = vst.msk [vmem:[#allocation2 + $0xd1] sm:$0x1] %vm309_vm2, %v7631_v25  ;;  %v7516_v44 = vadd.f32 %v23752_v2, %v7400_v0  ;;  %v23945_v25 = vld [vmem:[#allocation2 + $0x51] sm:$0xff]  ;;  %v24194_v55 = vld [vmem:[#allocation2 + $0xc8] sm:$0xff] }
 0x5d5   : > { %7578 = vst.msk [vmem:[#allocation2 + $0xf1] sm:$0xff] %vm260_vm1, %v23911_v16  ;;  %v23927_v35 = vadd.f32 %v7517_v27, %v26619_v31  ;;  %v26623_v27 = vld [vmem:[#allocation27_spill] sm:$0xff]  ;;  %v26627_v31 = vld [vmem:[#allocation29_spill] sm:$0xff]  ;;  %v24186_v63 = vld [vmem:[#allocation2 + $0xb0] sm:$0xff] }
 0x5d6   : > { %7615 = vst.msk [vmem:[#allocation2 + $0xc0] sm:$0x1] %vm309_vm2, %v7599_v43  ;;  %v23934_v1 = vadd.f32 %v7516_v44, %v26621_v58  ;;  %v19494_v45 = vpop.f32.mrb[54].mxu1  ;;  %v7632_v24 = vld [vmem:[#allocation2 + $0xe7] sm:$0x1] }
 0x5d7   : > { %26620 = vst [vmem:[#allocation52_spill] sm:$0xff] %v23927_v35  ;;  %19516 = vmatmul.mubr.msk.f32.gmra.mrb[36].mxu0 %vm260_vm1, %v23923_v42  ;;  %7581 = vst.msk [vmem:[#allocation2 + $0x111] sm:$0xff] %vm260_vm1, %v23927_v35  ;;  %v7519_v15 = vadd.f32 %v19494_v45, %v23752_v2  ;;  %v7410_v48 = vpop.f32.mrb[55].mxu1  ;;  %v7600_v47 = vld [vmem:[#allocation2 + $0xda] sm:$0x1]  ;;  %v23953_v43 = vld [vmem:[#allocation2 + $0x61] sm:$0xff] }
 0x5d8   : > { %26622 = vst [vmem:[#allocation53_spill] sm:$0xff] %v23934_v1  ;;  %19518 = vmatprep.mubr.msk.f32.mxu0 %vm260_vm1, %v23931_v3  ;;  %7648 = vst.msk [vmem:[#allocation2 + $0xe9] sm:$0x1] %vm309_vm2, %v7632_v24  ;;  %v7518_v23 = vadd.f32 %v23752_v2, %v7410_v48  ;;  %v26625_v44 = vld [vmem:[#allocation26_spill] sm:$0xff]  ;;  %v24182_v16 = vld [vmem:[#allocation2 + $0xa8] sm:$0xff] }
 0x5d9   : > { %7580 = vst.msk [vmem:[#allocation2 + $0x109] sm:$0xff] %vm260_vm1, %v23934_v1  ;;  %v23949_v0 = vadd.f32 %v7519_v15, %v26623_v27  ;;  %v24170_v35 = vld [vmem:[#allocation2 + $0x80] sm:$0xff]  ;;  %v24174_v1 = vld [vmem:[#allocation2 + $0x90] sm:$0xff] }
 0x5da   : > { %7616 = vst.msk [vmem:[#allocation2 + $0xd8] sm:$0x1] %vm309_vm2, %v7600_v47  ;;  %v23956_v45 = vadd.f32 %v7518_v23, %v26625_v44  ;;  %v19497_v24 = vpop.f32.mrb[56].mxu1  ;;  %v7633_v48 = vld [vmem:[#allocation2 + $0xff] sm:$0x1]  ;;  %v23967_v44 = vld [vmem:[#allocation2 + $0x69] sm:$0xff] }
 0x5db   : > { %26624 = vst [vmem:[#allocation54_spill] sm:$0xff] %v23949_v0  ;;  %19519 = vmatmul.mubr.msk.f32.gmra.mrb[38].mxu0 %vm260_vm1, %v23945_v25  ;;  %7583 = vst.msk [vmem:[#allocation2 + $0x129] sm:$0xff] %vm260_vm1, %v23949_v0  ;;  %v7521_v47 = vadd.f32 %v19497_v24, %v23752_v2  ;;  %v7420_v15 = vpop.f32.mrb[57].mxu1  ;;  %v23975_v24 = vld [vmem:[#allocation2 + $0x79] sm:$0xff]  ;;  %v24162_v0 = vld [vmem:[#allocation2 + $0x68] sm:$0xff] }
 0x5dc   : > { %26626 = vst [vmem:[#allocation55_spill] sm:$0xff] %v23956_v45  ;;  %19521 = vmatprep.mubr.msk.f32.mxu0 %vm260_vm1, %v23953_v43  ;;  %v7601_v27 = vld [vmem:[#allocation2 + $0xf2] sm:$0x1]  ;;  %7649 = vst.msk [vmem:[#allocation2 + $0x101] sm:$0x1] %vm309_vm2, %v7633_v48  ;;  %v7520_v23 = vadd.f32 %v23752_v2, %v7420_v15  ;;  %v24202_v13 = vld [vmem:[#allocation2 + $0xe0] sm:$0xff] }
 0x5dd   : > { %7582 = vst.msk [vmem:[#allocation2 + $0x121] sm:$0xff] %vm260_vm1, %v23956_v45  ;;  %v23971_v58 = vadd.f32 %v7521_v47, %v26627_v31  ;;  %v24166_v45 = vld [vmem:[#allocation2 + $0x78] sm:$0xff]  ;;  %v24190_v59 = vld [vmem:[#allocation2 + $0xc0] sm:$0xff] }
 0x5de   : > { %7617 = vst.msk [vmem:[#allocation2 + $0xf0] sm:$0x1] %vm309_vm2, %v7601_v27  ;;  %v23978_v60 = vadd.f32 %v7520_v23, %v26629_v52  ;;  %v19500_v48 = vpop.f32.mrb[58].mxu1  ;;  %v7634_v15 = vld [vmem:[#allocation2 + $0x117] sm:$0x1]  ;;  %v23989_v52 = vld [vmem:[#allocation2 + $0x81] sm:$0xff] }
 0x5df   : > { %26628 = vst [vmem:[#allocation56_spill] sm:$0xff] %v23971_v58  ;;  %19522 = vmatmul.mubr.msk.f32.gmra.mrb[40].mxu0 %vm260_vm1, %v23967_v44  ;;  %7585 = vst.msk [vmem:[#allocation2 + $0x141] sm:$0xff] %vm260_vm1, %v23971_v58  ;;  %v7523_v27 = vadd.f32 %v19500_v48, %v23752_v2  ;;  %v7430_v47 = vpop.f32.mrb[59].mxu1  ;;  %v23997_v48 = vld [vmem:[#allocation2 + $0x91] sm:$0xff] }
 0x5e0   : > { %26630 = vst [vmem:[#allocation57_spill] sm:$0xff] %v23978_v60  ;;  %19524 = vmatprep.mubr.msk.f32.mxu0 %vm260_vm1, %v23975_v24  ;;  %v7602_v31 = vld [vmem:[#allocation2 + $0x10a] sm:$0x1]  ;;  %7650 = vst.msk [vmem:[#allocation2 + $0x119] sm:$0x1] %vm309_vm2, %v7634_v15  ;;  %v7522_v23 = vadd.f32 %v23752_v2, %v7430_v47  ;;  %v24089_v21 = vld [vmem:[#allocation2 + $0x111] sm:$0xff] }
 0x5e1   : > { %7584 = vst.msk [vmem:[#allocation2 + $0x139] sm:$0xff] %vm260_vm1, %v23978_v60  ;;  %v23993_v33 = vadd.f32 %v7523_v27, %v26631_v32  ;;  %v24134_v58 = vld [vmem:[#allocation2 + $0x18] sm:$0xff]  ;;  %v24158_v60 = vld [vmem:[#allocation2 + $0x60] sm:$0xff]  ;;  %v24218_v4 = vld [vmem:[#allocation2 + $0x110] sm:$0xff] }
 0x5e2   : > { %7618 = vst.msk [vmem:[#allocation2 + $0x108] sm:$0x1] %vm309_vm2, %v7602_v31  ;;  %v24000_v9 = vadd.f32 %v7522_v23, %v26633_v50  ;;  %v19503_v15 = vpop.f32.mrb[60].mxu1  ;;  %v7635_v47 = vld [vmem:[#allocation2 + $0x12f] sm:$0x1]  ;;  %v24011_v50 = vld [vmem:[#allocation2 + $0x99] sm:$0xff] }
 0x5e3   : > { %26632 = vst [vmem:[#allocation58_spill] sm:$0xff] %v23993_v33  ;;  %19525 = vmatmul.mubr.msk.f32.gmra.mrb[42].mxu0 %vm260_vm1, %v23989_v52  ;;  %7587 = vst.msk [vmem:[#allocation2 + $0x159] sm:$0xff] %vm260_vm1, %v23993_v33  ;;  %v7525_v31 = vadd.f32 %v19503_v15, %v23752_v2  ;;  %v7440_v27 = vpop.f32.mrb[61].mxu1  ;;  %v24019_v15 = vld [vmem:[#allocation2 + $0xa9] sm:$0xff]  ;;  %v24198_v20 = vld [vmem:[#allocation2 + $0xd8] sm:$0xff] }
 0x5e4   : > { %26634 = vst [vmem:[#allocation59_spill] sm:$0xff] %v24000_v9  ;;  %19527 = vmatprep.mubr.msk.f32.mxu0 %vm260_vm1, %v23997_v48  ;;  %v7603_v32 = vld [vmem:[#allocation2 + $0x122] sm:$0x1]  ;;  %7651 = vst.msk [vmem:[#allocation2 + $0x131] sm:$0x1] %vm309_vm2, %v7635_v47  ;;  %v7524_v23 = vadd.f32 %v23752_v2, %v7440_v27  ;;  %v7670_v33 = vld [vmem:[#allocation2 + $0x8] sm:$0xff] }
 0x5e5   : > { %7586 = vst.msk [vmem:[#allocation2 + $0x151] sm:$0xff] %vm260_vm1, %v24000_v9  ;;  %v24015_v19 = vadd.f32 %v7525_v31, %v26635_v11  ;;  %v24131_v9 = vld [vmem:[%s26085_s1 + $0x54] sm:$0xf]  ;;  %v24210_v41 = vld [vmem:[#allocation2 + $0xf8] sm:$0xff]  ;;  %v24226_v61 = vld [vmem:[#allocation2 + $0x128] sm:$0xff] }
 0x5e6   : > { %7619 = vst.msk [vmem:[#allocation2 + $0x120] sm:$0x1] %vm309_vm2, %v7603_v32  ;;  %v24022_v10 = vadd.f32 %v7524_v23, %v26637_v26  ;;  %v19506_v47 = vpop.f32.mrb[62].mxu1  ;;  %v7636_v27 = vld [vmem:[#allocation2 + $0x147] sm:$0x1]  ;;  %v24033_v26 = vld [vmem:[#allocation2 + $0xb1] sm:$0xff] }
 0x5e7   : > { %26636 = vst [vmem:[#allocation44_spill] sm:$0xff] %v24015_v19  ;;  %19528 = vmatmul.mubr.msk.f32.gmra.mrb[44].mxu0 %vm260_vm1, %v24011_v50  ;;  %7589 = vst.msk [vmem:[#allocation2 + $0x171] sm:$0xff] %vm260_vm1, %v24015_v19  ;;  %v7527_v32 = vadd.f32 %v19506_v47, %v23752_v2  ;;  %v7450_v31 = vpop.f32.mrb[63].mxu1  ;;  %v24041_v47 = vld [vmem:[#allocation2 + $0xc1] sm:$0xff]  ;;  %v24206_v57 = vld [vmem:[#allocation2 + $0xf0] sm:$0xff] }
 0x5e8   : > { %26638 = vst [vmem:[#allocation42_spill] sm:$0xff] %v24022_v10  ;;  %19530 = vmatprep.mubr.msk.f32.mxu0 %vm260_vm1, %v24019_v15  ;;  %v7604_v11 = vld [vmem:[#allocation2 + $0x13a] sm:$0x1]  ;;  %7652 = vst.msk [vmem:[#allocation2 + $0x149] sm:$0x1] %vm309_vm2, %v7636_v27  ;;  %v7526_v23 = vadd.f32 %v23752_v2, %v7450_v31  ;;  %v24234_v62 = vld [vmem:[#allocation2 + $0x140] sm:$0xff] }
 0x5e9   : > { %7588 = vst.msk [vmem:[#allocation2 + $0x169] sm:$0xff] %vm260_vm1, %v24022_v10  ;;  %v24037_v46 = vadd.f32 %v7527_v32, %v26639_v40  ;;  %v24058_v32 = vld [vmem:[#allocation2 + $0xd9] sm:$0xff]  ;;  %v24214_v56 = vld [vmem:[#allocation2 + $0x108] sm:$0xff] }
 0x5ea   : > { %7620 = vst.msk [vmem:[#allocation2 + $0x138] sm:$0x1] %vm309_vm2, %v7604_v11  ;;  %v24044_v34 = vadd.f32 %v7526_v23, %v26641_v51  ;;  %v7637_v27 = vld [vmem:[#allocation2 + $0x15f] sm:$0x1]  ;;  %v24053_v11 = vld [vmem:[#allocation2 + $0xc9] sm:$0xff]  ;;  %v7669_v10 = vld [vmem:[#allocation2] sm:$0xff] }
 0x5eb   : > { %26640 = vst [vmem:[#allocation67_spill] sm:$0xff] %v24037_v46  ;;  %19531 = vmatmul.mubr.msk.f32.gmra.mrb[46].mxu0 %vm260_vm1, %v24033_v26  ;;  %7591 = vst.msk [vmem:[#allocation2 + $0x189] sm:$0xff] %vm260_vm1, %v24037_v46  ;;  %v24103_v49 = vld [vmem:[#allocation2 + $0x139] sm:$0xff] }
 0x5ec   : > { %26642 = vst [vmem:[#allocation68_spill] sm:$0xff] %v24044_v34  ;;  %19533 = vmatprep.mubr.msk.f32.mxu0 %vm260_vm1, %v24041_v47  ;;  %v7605_v2 = vld [vmem:[#allocation2 + $0x152] sm:$0x1]  ;;  %7653 = vst.msk [vmem:[#allocation2 + $0x161] sm:$0x1] %vm309_vm2, %v7637_v27  ;;  %v24063_v27 = vld [vmem:[#allocation2 + $0xe1] sm:$0xff] }
 0x5ed   : > { %7590 = vst.msk [vmem:[#allocation2 + $0x181] sm:$0xff] %vm260_vm1, %v24044_v34  ;;  %v24111_v17 = vld [vmem:[#allocation2 + $0x151] sm:$0xff]  ;;  %v24115_v46 = vld [vmem:[#allocation2 + $0x159] sm:$0xff] }
 0x5ee   : > { %7621 = vst.msk [vmem:[#allocation2 + $0x150] sm:$0x1] %vm309_vm2, %v7605_v2  ;;  %v7638_v31 = vld [vmem:[#allocation2 + $0x177] sm:$0x1]  ;;  %v24222_v7 = vld [vmem:[#allocation2 + $0x120] sm:$0xff]  ;;  %v24242_v18 = vld [vmem:[#allocation2 + $0x158] sm:$0xff] }
 0x5ef   : > { %19534 = vmatmul.mubr.msk.f32.gmra.mrb[48].mxu0 %vm260_vm1, %v24053_v11  ;;  %7654 = vst.msk [vmem:[#allocation2 + $0x179] sm:$0x1] %vm309_vm2, %v7638_v31  ;;  %v24070_v2 = vld [vmem:[#allocation2 + $0xf1] sm:$0xff]  ;;  %v24077_v31 = vld [vmem:[#allocation2 + $0xf9] sm:$0xff] }
 0x5f0   : > { %19536 = vmatprep.mubr.msk.f32.mxu0 %vm260_vm1, %v24058_v32  ;;  %v7606_v23 = vld [vmem:[#allocation2 + $0x16a] sm:$0x1]  ;;  %v24066_v40 = vld [vmem:[#allocation2 + $0x170] sm:$0xff] }
 0x5f1   : > { %7622 = vst.msk [vmem:[#allocation2 + $0x168] sm:$0x1] %vm309_vm2, %v7606_v23  ;;  %v24082_v23 = vld [vmem:[#allocation2 + $0x109] sm:$0xff]  ;;  %v24123_v19 = vld [vmem:[#allocation2 + $0x171] sm:$0xff] }
 0x5f2   : > { %7666 = vst.msk [vmem:[#allocation2 + $0x1a0] sm:$0xff] %vm260_vm1, %v24066_v40  ;;  %v7639_v51 = vld [vmem:[#allocation2 + $0x18f] sm:$0x1]  ;;  %26644 = vst [vmem:[#allocation70_spill] sm:$0xff] %v24123_v19  ;;  %v24230_v14 = vld [vmem:[#allocation2 + $0x138] sm:$0xff] }
 0x5f3   : > { %19537 = vmatmul.mubr.msk.f32.gmra.mrb[50].mxu0 %vm260_vm1, %v24063_v27  ;;  %7655 = vst.msk [vmem:[#allocation2 + $0x191] sm:$0x1] %vm309_vm2, %v7639_v51  ;;  %v24099_v51 = vld [vmem:[#allocation2 + $0x129] sm:$0xff] }
 0x5f4   : > { %19539 = vmatprep.mubr.msk.f32.mxu0 %vm260_vm1, %v24070_v2  ;;  %v7607_v39 = vld [vmem:[#allocation2 + $0x182] sm:$0x1]  ;;  %v24119_v34 = vld [vmem:[#allocation2 + $0x169] sm:$0xff] }
 0x5f5   : > { %7623 = vst.msk [vmem:[#allocation2 + $0x180] sm:$0x1] %vm309_vm2, %v7607_v39  ;;  %v24095_v39 = vld [vmem:[#allocation2 + $0x121] sm:$0xff]  ;;  %26643 = vst [vmem:[#allocation69_spill] sm:$0xff] %v24119_v34  ;;  %v24238_v53 = vld [vmem:[#allocation2 + $0x150] sm:$0xff] }
 0x5f6   : > { %v7664_v28 = vld [vmem:[#allocation2 + $0x178] sm:$0x3] }
 0x5f7   : > { %19540 = vmatmul.mubr.msk.f32.gmra.mrb[52].mxu0 %vm260_vm1, %v24077_v31  ;;  %7667 = vst.msk [vmem:[#allocation2 + $0x1a8] sm:$0x3] %vm364_vm3, %v7664_v28  ;;  %v24107_v28 = vld [vmem:[#allocation2 + $0x141] sm:$0xff] }
 0x5f8   : > { %19542 = vmatprep.mubr.msk.f32.mxu0 %vm260_vm1, %v24082_v23  ;;  %v24086_v37 = vld [vmem:[#allocation2 + $0x168] sm:$0xff] }
 0x5f9   : > { %7665 = vst.msk [vmem:[#allocation2 + $0x198] sm:$0xff] %vm260_vm1, %v24086_v37 }
 0x5fb   : > { %19543 = vmatmul.mubr.msk.f32.gmra.mrb[54].mxu0 %vm260_vm1, %v24089_v21 }
 0x5fc   : > { %19545 = vmatprep.mubr.msk.f32.mxu0 %vm260_vm1, %v24095_v39 }
 0x5ff   : > { %19546 = vmatmul.mubr.msk.f32.gmra.mrb[56].mxu0 %vm260_vm1, %v24099_v51 }
 0x600   : > { %19548 = vmatprep.mubr.msk.f32.mxu0 %vm260_vm1, %v24103_v49 }
 0x603   : > { %19549 = vmatmul.mubr.msk.f32.gmra.mrb[58].mxu0 %vm260_vm1, %v24107_v28 }
 0x604   : > { %19551 = vmatprep.mubr.msk.f32.mxu0 %vm260_vm1, %v24111_v17 }
 0x607   : > { %19552 = vmatmul.mubr.msk.f32.gmra.mrb[60].mxu0 %vm260_vm1, %v24115_v46 }
 0x608   : > { %19554 = vmatprep.mubr.msk.f32.mxu0 %vm260_vm1, %v24119_v34  ;;  %v24269_v34 = vld [vmem:[#allocation2 + $0x32] sm:$0xff] }
 0x609   : > { %26647 = vst [vmem:[#allocation73_spill] sm:$0xff] %v24269_v34 }
 0x60b   : > { %19555 = vmatmul.mubr.msk.f32.gmra.mrb[62].mxu0 %vm260_vm1, %v24123_v19  ;;  %v24257_v19 = vld [vmem:[#allocation2 + $0x1a] sm:$0xff] }
 0x60c   : > { %19559 = vmatprep.mubr.msk.f32.mxu0 %vm260_vm1, %v7669_v10  ;;  %v24142_v10 = vld [vmem:[#allocation2 + $0x20] sm:$0xff]  ;;  %26645 = vst [vmem:[#allocation71_spill] sm:$0xff] %v24257_v19 }
 0x60f   : > { %19560 = vmatmul.mubr.msk.f32.vlgmr.msra.gmra.mrb[32].mxu0 %vm260_vm1, %v7670_v33  ;;  %v24150_v33 = vld [vmem:[#allocation2 + $0x48] sm:$0xff] }
 0x610   : > { %19608 = vmatpush3.msk.msra.mxu0 %vm536_vm0, %v23875_v36  ;;  %19562 = vmatprep.mubr.msk.f32.mxu0 %vm260_vm1, %v24134_v58  ;;  %v24154_v36 = vld [vmem:[#allocation2 + $0x50] sm:$0xff] }
 0x611   : > { %19657 = vmatprep.subr.msk.mxu0 %vm536_vm0, %v24131_v9 }
 0x613   : > { %19563 = vmatmul.mubr.msk.f32.gmra.mrb[34].mxu0 %vm260_vm1, %v24142_v10 }
 0x614   : > { %19565 = vmatprep.mubr.msk.f32.mxu0 %vm260_vm1, %v23835_v12 }
 0x617   : > { %19566 = vmatmul.mubr.msk.f32.gmra.mrb[36].mxu0 %vm260_vm1, %v23803_v38 }
 0x618   : > { %19568 = vmatprep.mubr.msk.f32.mxu0 %vm260_vm1, %v24150_v33 }
 0x61b   : > { %19569 = vmatmul.mubr.msk.f32.gmra.mrb[38].mxu0 %vm260_vm1, %v24154_v36 }
 0x61c   : > { %19571 = vmatprep.mubr.msk.f32.mxu0 %vm260_vm1, %v24158_v60 }
 0x61f   : > { %19572 = vmatmul.mubr.msk.f32.gmra.mrb[40].mxu0 %vm260_vm1, %v24162_v0 }
 0x620   : > { %19574 = vmatprep.mubr.msk.f32.mxu0 %vm260_vm1, %v24166_v45 }
 0x623   : > { %19575 = vmatmul.mubr.msk.f32.gmra.mrb[42].mxu0 %vm260_vm1, %v24170_v35 }
 0x624   : > { %19577 = vmatprep.mubr.msk.f32.mxu0 %vm260_vm1, %v24174_v1 }
 0x627   : > { %19578 = vmatmul.mubr.msk.f32.gmra.mrb[44].mxu0 %vm260_vm1, %v24178_v8 }
 0x628   : > { %19580 = vmatprep.mubr.msk.f32.mxu0 %vm260_vm1, %v24182_v16 }
 0x62b   : > { %19581 = vmatmul.mubr.msk.f32.gmra.mrb[46].mxu0 %vm260_vm1, %v24186_v63 }
 0x62c   : > { %19583 = vmatprep.mubr.msk.f32.mxu0 %vm260_vm1, %v24190_v59 }
 0x62f   : > { %19584 = vmatmul.mubr.msk.f32.gmra.mrb[48].mxu0 %vm260_vm1, %v24194_v55 }
 0x630   : > { %19586 = vmatprep.mubr.msk.f32.mxu0 %vm260_vm1, %v24198_v20 }
 0x633   : > { %19587 = vmatmul.mubr.msk.f32.gmra.mrb[50].mxu0 %vm260_vm1, %v24202_v13 }
 0x634   : > { %19589 = vmatprep.mubr.msk.f32.mxu0 %vm260_vm1, %v24206_v57 }
 0x637   : > { %19590 = vmatmul.mubr.msk.f32.gmra.mrb[52].mxu0 %vm260_vm1, %v24210_v41 }
 0x638   : > { %19592 = vmatprep.mubr.msk.f32.mxu0 %vm260_vm1, %v24214_v56 }
 0x63b   : > { %19593 = vmatmul.mubr.msk.f32.gmra.mrb[54].mxu0 %vm260_vm1, %v24218_v4 }
 0x63c   : > { %19595 = vmatprep.mubr.msk.f32.mxu0 %vm260_vm1, %v24222_v7 }
 0x63f   : > { %19596 = vmatmul.mubr.msk.f32.gmra.mrb[56].mxu0 %vm260_vm1, %v24226_v61 }
 0x640   : > { %19598 = vmatprep.mubr.msk.f32.mxu0 %vm260_vm1, %v24230_v14 }
 0x643   : > { %19599 = vmatmul.mubr.msk.f32.gmra.mrb[58].mxu0 %vm260_vm1, %v24234_v62 }
 0x644   : > { %19601 = vmatprep.mubr.msk.f32.mxu0 %vm260_vm1, %v24238_v53 }
 0x647   : > { %19602 = vmatmul.mubr.msk.f32.gmra.mrb[60].mxu0 %vm260_vm1, %v24242_v18 }
 0x648   : > { %19604 = vmatprep.mubr.msk.f32.mxu0 %vm260_vm1, %v24086_v37 }
 0x64b   : > { %19605 = vmatmul.mubr.msk.f32.gmra.mrb[62].mxu0 %vm260_vm1, %v24066_v40 }
 0x64c   : > { %19609 = vmatprep.mubr.msk.f32.mxu0 %vm260_vm1, %v8383_v22  ;;  %v24265_v22 = vld [vmem:[#allocation2 + $0x22] sm:$0xff] }
 0x64d   : > { %26646 = vst [vmem:[#allocation72_spill] sm:$0xff] %v24265_v22 }
 0x64f   : > { %19610 = vmatmul.mubr.msk.f32.vlgmr.msra.gmra.mrb[32].mxu0 %vm260_vm1, %v8384_v29  ;;  %v24273_v29 = vld [vmem:[#allocation2 + $0x3a] sm:$0xff] }
 0x650   : > { %19658 = vmatpush3.msk.msra.mxu0 %vm536_vm0, %v24131_v9  ;;  %19612 = vmatprep.mubr.msk.f32.mxu0 %vm260_vm1, %v24257_v19  ;;  %26648 = vst [vmem:[#allocation74_spill] sm:$0xff] %v24273_v29  ;;  %v24277_v9 = vld [vmem:[#allocation2 + $0x4a] sm:$0xff]  ;;  %v24281_v19 = vld [vmem:[#allocation2 + $0x52] sm:$0xff] }
 0x651   : > { %19707 = vmatprep.subr.msk.mxu0 %vm536_vm0, %v24254_v30  ;;  %26649 = vst [vmem:[#allocation75_spill] sm:$0xff] %v24277_v9  ;;  %26650 = vst [vmem:[#allocation76_spill] sm:$0xff] %v24281_v19 }
 0x653   : > { %19613 = vmatmul.mubr.msk.f32.gmra.mrb[34].mxu0 %vm260_vm1, %v24265_v22  ;;  %v24285_v22 = vld [vmem:[#allocation2 + $0x62] sm:$0xff] }
 0x654   : > { %19615 = vmatprep.mubr.msk.f32.mxu0 %vm260_vm1, %v24269_v34  ;;  %26651 = vst [vmem:[#allocation77_spill] sm:$0xff] %v24285_v22  ;;  %v24289_v34 = vld [vmem:[#allocation2 + $0x6a] sm:$0xff] }
 0x655   : > { %26652 = vst [vmem:[#allocation78_spill] sm:$0xff] %v24289_v34 }
 0x657   : > { %19616 = vmatmul.mubr.msk.f32.gmra.mrb[36].mxu0 %vm260_vm1, %v24273_v29  ;;  %v24293_v29 = vld [vmem:[#allocation2 + $0x7a] sm:$0xff] }
 0x658   : > { %19618 = vmatprep.mubr.msk.f32.mxu0 %vm260_vm1, %v24277_v9  ;;  %26653 = vst [vmem:[#allocation79_spill] sm:$0xff] %v24293_v29  ;;  %v24297_v9 = vld [vmem:[#allocation2 + $0x82] sm:$0xff] }
 0x659   : > { %26654 = vst [vmem:[#allocation80_spill] sm:$0xff] %v24297_v9 }
 0x65b   : > { %19619 = vmatmul.mubr.msk.f32.gmra.mrb[38].mxu0 %vm260_vm1, %v24281_v19  ;;  %v24301_v19 = vld [vmem:[#allocation2 + $0x92] sm:$0xff] }
 0x65c   : > { %19621 = vmatprep.mubr.msk.f32.mxu0 %vm260_vm1, %v24285_v22  ;;  %26655 = vst [vmem:[#allocation81_spill] sm:$0xff] %v24301_v19  ;;  %v24305_v22 = vld [vmem:[#allocation2 + $0x9a] sm:$0xff] }
 0x65d   : > { %26656 = vst [vmem:[#allocation82_spill] sm:$0xff] %v24305_v22 }
 0x65f   : > { %19622 = vmatmul.mubr.msk.f32.gmra.mrb[40].mxu0 %vm260_vm1, %v24289_v34  ;;  %v24309_v34 = vld [vmem:[#allocation2 + $0xaa] sm:$0xff] }
 0x660   : > { %19624 = vmatprep.mubr.msk.f32.mxu0 %vm260_vm1, %v24293_v29  ;;  %26657 = vst [vmem:[#allocation83_spill] sm:$0xff] %v24309_v34  ;;  %v24313_v29 = vld [vmem:[#allocation2 + $0xb2] sm:$0xff] }
 0x661   : > { %26658 = vst [vmem:[#allocation84_spill] sm:$0xff] %v24313_v29 }
 0x663   : > { %19625 = vmatmul.mubr.msk.f32.gmra.mrb[42].mxu0 %vm260_vm1, %v24297_v9  ;;  %v24317_v9 = vld [vmem:[#allocation2 + $0xc2] sm:$0xff] }
 0x664   : > { %19627 = vmatprep.mubr.msk.f32.mxu0 %vm260_vm1, %v24301_v19  ;;  %26659 = vst [vmem:[#allocation85_spill] sm:$0xff] %v24317_v9  ;;  %v24321_v19 = vld [vmem:[#allocation2 + $0xca] sm:$0xff] }
 0x665   : > { %26660 = vst [vmem:[#allocation86_spill] sm:$0xff] %v24321_v19 }
 0x667   : > { %19628 = vmatmul.mubr.msk.f32.gmra.mrb[44].mxu0 %vm260_vm1, %v24305_v22  ;;  %v24325_v22 = vld [vmem:[#allocation2 + $0xda] sm:$0xff] }
 0x668   : > { %19630 = vmatprep.mubr.msk.f32.mxu0 %vm260_vm1, %v24309_v34  ;;  %26661 = vst [vmem:[#allocation87_spill] sm:$0xff] %v24325_v22  ;;  %v24329_v34 = vld [vmem:[#allocation2 + $0xe2] sm:$0xff] }
 0x669   : > { %26662 = vst [vmem:[#allocation88_spill] sm:$0xff] %v24329_v34 }
 0x66b   : > { %19631 = vmatmul.mubr.msk.f32.gmra.mrb[46].mxu0 %vm260_vm1, %v24313_v29  ;;  %v24333_v29 = vld [vmem:[#allocation2 + $0xf2] sm:$0xff] }
 0x66c   : > { %19633 = vmatprep.mubr.msk.f32.mxu0 %vm260_vm1, %v24317_v9  ;;  %26663 = vst [vmem:[#allocation89_spill] sm:$0xff] %v24333_v29  ;;  %v24337_v9 = vld [vmem:[#allocation2 + $0xfa] sm:$0xff] }
 0x66d   : > { %26664 = vst [vmem:[#allocation90_spill] sm:$0xff] %v24337_v9 }
 0x66f   : > { %19634 = vmatmul.mubr.msk.f32.gmra.mrb[48].mxu0 %vm260_vm1, %v24321_v19  ;;  %v24341_v19 = vld [vmem:[#allocation2 + $0x10a] sm:$0xff] }
 0x670   : > { %19636 = vmatprep.mubr.msk.f32.mxu0 %vm260_vm1, %v24325_v22  ;;  %26665 = vst [vmem:[#allocation91_spill] sm:$0xff] %v24341_v19  ;;  %v24345_v22 = vld [vmem:[#allocation2 + $0x112] sm:$0xff] }
 0x671   : > { %26666 = vst [vmem:[#allocation92_spill] sm:$0xff] %v24345_v22 }
 0x673   : > { %19637 = vmatmul.mubr.msk.f32.gmra.mrb[50].mxu0 %vm260_vm1, %v24329_v34  ;;  %v24349_v34 = vld [vmem:[#allocation2 + $0x122] sm:$0xff] }
 0x674   : > { %19639 = vmatprep.mubr.msk.f32.mxu0 %vm260_vm1, %v24333_v29  ;;  %26667 = vst [vmem:[#allocation93_spill] sm:$0xff] %v24349_v34  ;;  %v24353_v29 = vld [vmem:[#allocation2 + $0x12a] sm:$0xff] }
 0x675   : > { %26668 = vst [vmem:[#allocation94_spill] sm:$0xff] %v24353_v29 }
 0x677   : > { %19640 = vmatmul.mubr.msk.f32.gmra.mrb[52].mxu0 %vm260_vm1, %v24337_v9  ;;  %v24357_v9 = vld [vmem:[#allocation2 + $0x13a] sm:$0xff] }
 0x678   : > { %19642 = vmatprep.mubr.msk.f32.mxu0 %vm260_vm1, %v24341_v19  ;;  %26669 = vst [vmem:[#allocation95_spill] sm:$0xff] %v24357_v9  ;;  %v24361_v19 = vld [vmem:[#allocation2 + $0x142] sm:$0xff] }
 0x67b   : > { %19643 = vmatmul.mubr.msk.f32.gmra.mrb[54].mxu0 %vm260_vm1, %v24345_v22  ;;  %v24365_v22 = vld [vmem:[#allocation2 + $0x152] sm:$0xff] }
 0x67c   : > { %19645 = vmatprep.mubr.msk.f32.mxu0 %vm260_vm1, %v24349_v34  ;;  %26670 = vst [vmem:[#allocation96_spill] sm:$0xff] %v24365_v22  ;;  %v24369_v34 = vld [vmem:[#allocation2 + $0x15a] sm:$0xff] }
 0x67f   : > { %19646 = vmatmul.mubr.msk.f32.gmra.mrb[56].mxu0 %vm260_vm1, %v24353_v29  ;;  %v24373_v29 = vld [vmem:[#allocation2 + $0x16a] sm:$0xff] }
 0x680   : > { %19648 = vmatprep.mubr.msk.f32.mxu0 %vm260_vm1, %v24357_v9  ;;  %v24377_v9 = vld [vmem:[#allocation2 + $0x172] sm:$0xff] }
 0x683   : > { %19649 = vmatmul.mubr.msk.f32.gmra.mrb[58].mxu0 %vm260_vm1, %v24361_v19 }
 0x684   : > { %19651 = vmatprep.mubr.msk.f32.mxu0 %vm260_vm1, %v24365_v22  ;;  %v9549_v22 = vld [vmem:[%s26085_s1 + $0x5c] sm:$0xf] }
 0x687   : > { %19652 = vmatmul.mubr.msk.f32.gmra.mrb[60].mxu0 %vm260_vm1, %v24369_v34 }
 0x688   : > { %19654 = vmatprep.mubr.msk.f32.mxu0 %vm260_vm1, %v24373_v29 }
 0x68b   : > { %19655 = vmatmul.mubr.msk.f32.gmra.mrb[62].mxu0 %vm260_vm1, %v24377_v9 }
 0x68c   : > { %19659 = vmatprep.mubr.msk.f32.mxu0 %vm260_vm1, %v24134_v58  ;;  %v26680_v58 = vld [vmem:[#allocation78_spill] sm:$0xff] }
 0x68f   : > { %19660 = vmatmul.mubr.msk.f32.vlgmr.msra.gmra.mrb[32].mxu0 %vm260_vm1, %v24142_v10  ;;  %v26697_v10 = vld [vmem:[#allocation95_spill] sm:$0xff] }
 0x690   : > { %19708 = vmatpush3.msk.msra.mxu0 %vm536_vm0, %v24254_v30  ;;  %19662 = vmatprep.mubr.msk.f32.mxu0 %vm260_vm1, %v23835_v12  ;;  %v24447_v30 = vld [vmem:[#allocation2 + $0x180] sm:$0xff] }
 0x691   : > { %19757 = vmatprep.subr.msk.mxu0 %vm536_vm0, %v9549_v22  ;;  %v9938_v12 = vld [vmem:[%s26085_s1 + $0x60] sm:$0xf] }
 0x693   : > { %19663 = vmatmul.mubr.msk.f32.gmra.mrb[34].mxu0 %vm260_vm1, %v23803_v38  ;;  %v24451_v38 = vld [vmem:[#allocation2 + $0x188] sm:$0xff] }
 0x694   : > { %19665 = vmatprep.mubr.msk.f32.mxu0 %vm260_vm1, %v24150_v33 }
 0x697   : > { %19666 = vmatmul.mubr.msk.f32.gmra.mrb[36].mxu0 %vm260_vm1, %v24154_v36 }
 0x698   : > { %19668 = vmatprep.mubr.msk.f32.mxu0 %vm260_vm1, %v24158_v60 }
 0x69b   : > { %19669 = vmatmul.mubr.msk.f32.gmra.mrb[38].mxu0 %vm260_vm1, %v24162_v0 }
 0x69c   : > { %19671 = vmatprep.mubr.msk.f32.mxu0 %vm260_vm1, %v24166_v45 }
 0x69f   : > { %19672 = vmatmul.mubr.msk.f32.gmra.mrb[40].mxu0 %vm260_vm1, %v24170_v35 }
 0x6a0   : > { %19674 = vmatprep.mubr.msk.f32.mxu0 %vm260_vm1, %v24174_v1 }
 0x6a3   : > { %19675 = vmatmul.mubr.msk.f32.gmra.mrb[42].mxu0 %vm260_vm1, %v24178_v8 }
 0x6a4   : > { %19677 = vmatprep.mubr.msk.f32.mxu0 %vm260_vm1, %v24182_v16 }
 0x6a7   : > { %19678 = vmatmul.mubr.msk.f32.gmra.mrb[44].mxu0 %vm260_vm1, %v24186_v63 }
 0x6a8   : > { %19680 = vmatprep.mubr.msk.f32.mxu0 %vm260_vm1, %v24190_v59 }
 0x6ab   : > { %19681 = vmatmul.mubr.msk.f32.gmra.mrb[46].mxu0 %vm260_vm1, %v24194_v55 }
 0x6ac   : > { %19683 = vmatprep.mubr.msk.f32.mxu0 %vm260_vm1, %v24198_v20 }
 0x6af   : > { %19684 = vmatmul.mubr.msk.f32.gmra.mrb[48].mxu0 %vm260_vm1, %v24202_v13 }
 0x6b0   : > { %19686 = vmatprep.mubr.msk.f32.mxu0 %vm260_vm1, %v24206_v57 }
 0x6b3   : > { %19687 = vmatmul.mubr.msk.f32.gmra.mrb[50].mxu0 %vm260_vm1, %v24210_v41 }
 0x6b4   : > { %19689 = vmatprep.mubr.msk.f32.mxu0 %vm260_vm1, %v24214_v56 }
 0x6b7   : > { %19690 = vmatmul.mubr.msk.f32.gmra.mrb[52].mxu0 %vm260_vm1, %v24218_v4 }
 0x6b8   : > { %19692 = vmatprep.mubr.msk.f32.mxu0 %vm260_vm1, %v24222_v7 }
 0x6bb   : > { %19693 = vmatmul.mubr.msk.f32.gmra.mrb[54].mxu0 %vm260_vm1, %v24226_v61 }
 0x6bc   : > { %19695 = vmatprep.mubr.msk.f32.mxu0 %vm260_vm1, %v24230_v14 }
 0x6bf   : > { %19696 = vmatmul.mubr.msk.f32.gmra.mrb[56].mxu0 %vm260_vm1, %v24234_v62 }
 0x6c0   : > { %19698 = vmatprep.mubr.msk.f32.mxu0 %vm260_vm1, %v24238_v53 }
 0x6c3   : > { %19699 = vmatmul.mubr.msk.f32.gmra.mrb[58].mxu0 %vm260_vm1, %v24242_v18 }
 0x6c4   : > { %19701 = vmatprep.mubr.msk.f32.mxu0 %vm260_vm1, %v24086_v37 }
 0x6c7   : > { %19702 = vmatmul.mubr.msk.f32.gmra.mrb[60].mxu0 %vm260_vm1, %v24066_v40 }
 0x6c8   : > { %19704 = vmatprep.mubr.msk.f32.mxu0 %vm260_vm1, %v24447_v30 }
 0x6cb   : > { %19705 = vmatmul.mubr.msk.f32.gmra.mrb[62].mxu0 %vm260_vm1, %v24451_v38 }
 0x6cc   : > { %19709 = vmatprep.mubr.msk.f32.mxu0 %vm260_vm1, %v23881_v54  ;;  %v26674_v54 = vld [vmem:[#allocation72_spill] sm:$0xff] }
 0x6cf   : > { %19710 = vmatmul.mubr.msk.f32.vlgmr.msra.gmra.mrb[32].mxu0 %vm260_vm1, %v23899_v6  ;;  %v26675_v6 = vld [vmem:[#allocation73_spill] sm:$0xff] }
 0x6d0   : > { %19758 = vmatpush3.msk.msra.mxu0 %vm536_vm0, %v9549_v22  ;;  %19712 = vmatprep.mubr.msk.f32.mxu0 %vm260_vm1, %v23907_v5  ;;  %v26677_v5 = vld [vmem:[#allocation75_spill] sm:$0xff]  ;;  %v26698_v22 = vld [vmem:[#allocation96_spill] sm:$0xff] }
 0x6d1   : > { %19807 = vmatprep.subr.msk.mxu0 %vm536_vm0, %v9938_v12 }
 0x6d3   : > { %19713 = vmatmul.mubr.msk.f32.gmra.mrb[34].mxu0 %vm260_vm1, %v23923_v42  ;;  %v26678_v42 = vld [vmem:[#allocation76_spill] sm:$0xff] }
 0x6d4   : > { %19715 = vmatprep.mubr.msk.f32.mxu0 %vm260_vm1, %v23931_v3  ;;  %v26679_v3 = vld [vmem:[#allocation77_spill] sm:$0xff] }
 0x6d7   : > { %19716 = vmatmul.mubr.msk.f32.gmra.mrb[36].mxu0 %vm260_vm1, %v23945_v25  ;;  %v26681_v25 = vld [vmem:[#allocation79_spill] sm:$0xff] }
 0x6d8   : > { %19718 = vmatprep.mubr.msk.f32.mxu0 %vm260_vm1, %v23953_v43  ;;  %v26682_v43 = vld [vmem:[#allocation80_spill] sm:$0xff] }
 0x6db   : > { %19719 = vmatmul.mubr.msk.f32.gmra.mrb[38].mxu0 %vm260_vm1, %v23967_v44  ;;  %v26683_v44 = vld [vmem:[#allocation81_spill] sm:$0xff] }
 0x6dc   : > { %19721 = vmatprep.mubr.msk.f32.mxu0 %vm260_vm1, %v23975_v24  ;;  %v26684_v24 = vld [vmem:[#allocation82_spill] sm:$0xff] }
 0x6df   : > { %19722 = vmatmul.mubr.msk.f32.gmra.mrb[40].mxu0 %vm260_vm1, %v23989_v52  ;;  %v26676_v52 = vld [vmem:[#allocation74_spill] sm:$0xff] }
 0x6e0   : > { %19724 = vmatprep.mubr.msk.f32.mxu0 %vm260_vm1, %v23997_v48  ;;  %v26685_v48 = vld [vmem:[#allocation83_spill] sm:$0xff] }
 0x6e3   : > { %19725 = vmatmul.mubr.msk.f32.gmra.mrb[42].mxu0 %vm260_vm1, %v24011_v50  ;;  %v24520_v50 = vld [vmem:[#allocation2 + $0x181] sm:$0xff] }
 0x6e4   : > { %19727 = vmatprep.mubr.msk.f32.mxu0 %vm260_vm1, %v24019_v15  ;;  %v26686_v15 = vld [vmem:[#allocation84_spill] sm:$0xff] }
 0x6e7   : > { %19728 = vmatmul.mubr.msk.f32.gmra.mrb[44].mxu0 %vm260_vm1, %v24033_v26  ;;  %v26671_v26 = vld [vmem:[#allocation69_spill] sm:$0xff] }
 0x6e8   : > { %19730 = vmatprep.mubr.msk.f32.mxu0 %vm260_vm1, %v24041_v47  ;;  %v26687_v47 = vld [vmem:[#allocation85_spill] sm:$0xff] }
 0x6eb   : > { %19731 = vmatmul.mubr.msk.f32.gmra.mrb[46].mxu0 %vm260_vm1, %v24053_v11  ;;  %v26688_v11 = vld [vmem:[#allocation86_spill] sm:$0xff] }
 0x6ec   : > { %19733 = vmatprep.mubr.msk.f32.mxu0 %vm260_vm1, %v24058_v32  ;;  %v26689_v32 = vld [vmem:[#allocation87_spill] sm:$0xff] }
 0x6ef   : > { %19734 = vmatmul.mubr.msk.f32.gmra.mrb[48].mxu0 %vm260_vm1, %v24063_v27  ;;  %v26690_v27 = vld [vmem:[#allocation88_spill] sm:$0xff] }
 0x6f0   : > { %19736 = vmatprep.mubr.msk.f32.mxu0 %vm260_vm1, %v24070_v2  ;;  %v26691_v2 = vld [vmem:[#allocation89_spill] sm:$0xff] }
 0x6f3   : > { %19737 = vmatmul.mubr.msk.f32.gmra.mrb[50].mxu0 %vm260_vm1, %v24077_v31  ;;  %v26692_v31 = vld [vmem:[#allocation90_spill] sm:$0xff] }
 0x6f4   : > { %19739 = vmatprep.mubr.msk.f32.mxu0 %vm260_vm1, %v24082_v23  ;;  %v26693_v23 = vld [vmem:[#allocation91_spill] sm:$0xff] }
 0x6f7   : > { %19740 = vmatmul.mubr.msk.f32.gmra.mrb[52].mxu0 %vm260_vm1, %v24089_v21  ;;  %v26672_v21 = vld [vmem:[#allocation70_spill] sm:$0xff] }
 0x6f8   : > { %19742 = vmatprep.mubr.msk.f32.mxu0 %vm260_vm1, %v24095_v39  ;;  %v26694_v39 = vld [vmem:[#allocation92_spill] sm:$0xff] }
 0x6fb   : > { %19743 = vmatmul.mubr.msk.f32.gmra.mrb[54].mxu0 %vm260_vm1, %v24099_v51  ;;  %v26695_v51 = vld [vmem:[#allocation93_spill] sm:$0xff] }
 0x6fc   : > { %19745 = vmatprep.mubr.msk.f32.mxu0 %vm260_vm1, %v24103_v49  ;;  %v24524_v49 = vld [vmem:[#allocation2 + $0x189] sm:$0xff] }
 0x6ff   : > { %19746 = vmatmul.mubr.msk.f32.gmra.mrb[56].mxu0 %vm260_vm1, %v24107_v28  ;;  %v26696_v28 = vld [vmem:[#allocation94_spill] sm:$0xff] }
 0x700   : > { %19748 = vmatprep.mubr.msk.f32.mxu0 %vm260_vm1, %v24111_v17  ;;  %v26673_v17 = vld [vmem:[#allocation71_spill] sm:$0xff] }
 0x703   : > { %19749 = vmatmul.mubr.msk.f32.gmra.mrb[58].mxu0 %vm260_vm1, %v24115_v46  ;;  %v10327_v46 = vld [vmem:[%s26085_s1 + $0x64] sm:$0xf] }
 0x704   : > { %19751 = vmatprep.mubr.msk.f32.mxu0 %vm260_vm1, %v26671_v26  ;;  %v24597_v26 = vld [vmem:[#allocation2 + $0x18a] sm:$0xff] }
 0x707   : > { %19752 = vmatmul.mubr.msk.f32.gmra.mrb[60].mxu0 %vm260_vm1, %v26672_v21  ;;  %v9939_v21 = vld [vmem:[#allocation2 + $0x30] sm:$0xff] }
 0x708   : > { %19754 = vmatprep.mubr.msk.f32.mxu0 %vm260_vm1, %v24520_v50 }
 0x70b   : > { %19755 = vmatmul.mubr.msk.f32.gmra.mrb[62].mxu0 %vm260_vm1, %v24524_v49 }
 0x70c   : > { %19759 = vmatprep.mubr.msk.f32.mxu0 %vm260_vm1, %v26673_v17  ;;  %v9940_v17 = vld [vmem:[#allocation2 + $0x38] sm:$0xff] }
 0x70f   : > { %19760 = vmatmul.mubr.msk.f32.vlgmr.msra.gmra.mrb[32].mxu0 %vm260_vm1, %v26674_v54  ;;  %v10716_v54 = vld [vmem:[%s26085_s1 + $0x68] sm:$0xf] }
 0x710   : > { %19808 = vmatpush3.msk.msra.mxu0 %vm536_vm0, %v9938_v12  ;;  %19762 = vmatprep.mubr.msk.f32.mxu0 %vm260_vm1, %v26675_v6  ;;  %v24593_v12 = vld [vmem:[#allocation2 + $0x182] sm:$0xff] }
 0x711   : > { %19857 = vmatprep.subr.msk.mxu0 %vm536_vm0, %v10327_v46 }
 0x713   : > { %19763 = vmatmul.mubr.msk.f32.gmra.mrb[34].mxu0 %vm260_vm1, %v26676_v52 }
 0x714   : > { %19765 = vmatprep.mubr.msk.f32.mxu0 %vm260_vm1, %v26677_v5 }
 0x717   : > { %19766 = vmatmul.mubr.msk.f32.gmra.mrb[36].mxu0 %vm260_vm1, %v26678_v42 }
 0x718   : > { %19768 = vmatprep.mubr.msk.f32.mxu0 %vm260_vm1, %v26679_v3 }
 0x71b   : > { %19769 = vmatmul.mubr.msk.f32.gmra.mrb[38].mxu0 %vm260_vm1, %v26680_v58 }
 0x71c   : > { %19771 = vmatprep.mubr.msk.f32.mxu0 %vm260_vm1, %v26681_v25 }
 0x71f   : > { %19772 = vmatmul.mubr.msk.f32.gmra.mrb[40].mxu0 %vm260_vm1, %v26682_v43 }
 0x720   : > { %19774 = vmatprep.mubr.msk.f32.mxu0 %vm260_vm1, %v26683_v44 }
 0x723   : > { %19775 = vmatmul.mubr.msk.f32.gmra.mrb[42].mxu0 %vm260_vm1, %v26684_v24 }
 0x724   : > { %19777 = vmatprep.mubr.msk.f32.mxu0 %vm260_vm1, %v26685_v48 }
 0x727   : > { %19778 = vmatmul.mubr.msk.f32.gmra.mrb[44].mxu0 %vm260_vm1, %v26686_v15 }
 0x728   : > { %19780 = vmatprep.mubr.msk.f32.mxu0 %vm260_vm1, %v26687_v47 }
 0x72b   : > { %19781 = vmatmul.mubr.msk.f32.gmra.mrb[46].mxu0 %vm260_vm1, %v26688_v11 }
 0x72c   : > { %19783 = vmatprep.mubr.msk.f32.mxu0 %vm260_vm1, %v26689_v32 }
 0x72f   : > { %19784 = vmatmul.mubr.msk.f32.gmra.mrb[48].mxu0 %vm260_vm1, %v26690_v27 }
 0x730   : > { %19786 = vmatprep.mubr.msk.f32.mxu0 %vm260_vm1, %v26691_v2 }
 0x733   : > { %19787 = vmatmul.mubr.msk.f32.gmra.mrb[50].mxu0 %vm260_vm1, %v26692_v31 }
 0x734   : > { %19789 = vmatprep.mubr.msk.f32.mxu0 %vm260_vm1, %v26693_v23 }
 0x737   : > { %19790 = vmatmul.mubr.msk.f32.gmra.mrb[52].mxu0 %vm260_vm1, %v26694_v39 }
 0x738   : > { %19792 = vmatprep.mubr.msk.f32.mxu0 %vm260_vm1, %v26695_v51 }
 0x73b   : > { %19793 = vmatmul.mubr.msk.f32.gmra.mrb[54].mxu0 %vm260_vm1, %v26696_v28 }
 0x73c   : > { %19795 = vmatprep.mubr.msk.f32.mxu0 %vm260_vm1, %v26697_v10 }
 0x73f   : > { %19796 = vmatmul.mubr.msk.f32.gmra.mrb[56].mxu0 %vm260_vm1, %v24361_v19 }
 0x740   : > { %19798 = vmatprep.mubr.msk.f32.mxu0 %vm260_vm1, %v26698_v22 }
 0x743   : > { %19799 = vmatmul.mubr.msk.f32.gmra.mrb[58].mxu0 %vm260_vm1, %v24369_v34 }
 0x744   : > { %19801 = vmatprep.mubr.msk.f32.mxu0 %vm260_vm1, %v24373_v29 }
 0x747   : > { %19802 = vmatmul.mubr.msk.f32.gmra.mrb[60].mxu0 %vm260_vm1, %v24377_v9 }
 0x748   : > { %19804 = vmatprep.mubr.msk.f32.mxu0 %vm260_vm1, %v24593_v12 }
 0x74b   : > { %19805 = vmatmul.mubr.msk.f32.gmra.mrb[62].mxu0 %vm260_vm1, %v24597_v26 }
 0x74c   : > { %19809 = vmatprep.mubr.msk.f32.mxu0 %vm260_vm1, %v9939_v21  ;;  %v10354_v21 = vld [vmem:[#allocation2 + $0x169] sm:$0xff] }
 0x74f   : > { %19810 = vmatmul.mubr.msk.f32.vlgmr.msra.gmra.mrb[32].mxu0 %vm260_vm1, %v9940_v17  ;;  %v10355_v17 = vld [vmem:[#allocation2 + $0x171] sm:$0xff] }
 0x750   : > { %19858 = vmatpush3.msk.msra.mxu0 %vm536_vm0, %v10327_v46  ;;  %19812 = vmatprep.mubr.msk.f32.mxu0 %vm260_vm1, %v24150_v33  ;;  %v10349_v33 = vld [vmem:[#allocation2 + $0x129] sm:$0xff]  ;;  %v10353_v46 = vld [vmem:[#allocation2 + $0x159] sm:$0xff] }
 0x751   : > { %19907 = vmatprep.subr.msk.mxu0 %vm536_vm0, %v10716_v54 }
 0x753   : > { %19813 = vmatmul.mubr.msk.f32.gmra.mrb[34].mxu0 %vm260_vm1, %v24154_v36  ;;  %v10350_v36 = vld [vmem:[#allocation2 + $0x139] sm:$0xff] }
 0x754   : > { %19815 = vmatprep.mubr.msk.f32.mxu0 %vm260_vm1, %v24158_v60  ;;  %v10343_v60 = vld [vmem:[#allocation2 + $0xe1] sm:$0xff] }
 0x757   : > { %19816 = vmatmul.mubr.msk.f32.gmra.mrb[36].mxu0 %vm260_vm1, %v24162_v0  ;;  %v10347_v0 = vld [vmem:[#allocation2 + $0x111] sm:$0xff] }
 0x758   : > { %19818 = vmatprep.mubr.msk.f32.mxu0 %vm260_vm1, %v24166_v45  ;;  %v10348_v45 = vld [vmem:[#allocation2 + $0x121] sm:$0xff] }
 0x75b   : > { %19819 = vmatmul.mubr.msk.f32.gmra.mrb[38].mxu0 %vm260_vm1, %v24170_v35  ;;  %v10345_v35 = vld [vmem:[#allocation2 + $0xf9] sm:$0xff] }
 0x75c   : > { %19821 = vmatprep.mubr.msk.f32.mxu0 %vm260_vm1, %v24174_v1  ;;  %v10346_v1 = vld [vmem:[#allocation2 + $0x109] sm:$0xff] }
 0x75f   : > { %19822 = vmatmul.mubr.msk.f32.gmra.mrb[40].mxu0 %vm260_vm1, %v24178_v8  ;;  %v10342_v8 = vld [vmem:[#allocation2 + $0xd9] sm:$0xff] }
 0x760   : > { %19824 = vmatprep.mubr.msk.f32.mxu0 %vm260_vm1, %v24182_v16  ;;  %v10344_v16 = vld [vmem:[#allocation2 + $0xf1] sm:$0xff] }
 0x763   : > { %19825 = vmatmul.mubr.msk.f32.gmra.mrb[42].mxu0 %vm260_vm1, %v24186_v63  ;;  %v10340_v63 = vld [vmem:[#allocation2 + $0xc1] sm:$0xff] }
 0x764   : > { %19827 = vmatprep.mubr.msk.f32.mxu0 %vm260_vm1, %v24190_v59  ;;  %v10341_v59 = vld [vmem:[#allocation2 + $0xc9] sm:$0xff] }
 0x767   : > { %19828 = vmatmul.mubr.msk.f32.gmra.mrb[44].mxu0 %vm260_vm1, %v24194_v55  ;;  %v10338_v55 = vld [vmem:[#allocation2 + $0xa9] sm:$0xff] }
 0x768   : > { %19830 = vmatprep.mubr.msk.f32.mxu0 %vm260_vm1, %v24198_v20  ;;  %v10339_v20 = vld [vmem:[#allocation2 + $0xb1] sm:$0xff] }
 0x76b   : > { %19831 = vmatmul.mubr.msk.f32.gmra.mrb[46].mxu0 %vm260_vm1, %v24202_v13  ;;  %v10336_v13 = vld [vmem:[#allocation2 + $0x91] sm:$0xff] }
 0x76c   : > { %19833 = vmatprep.mubr.msk.f32.mxu0 %vm260_vm1, %v24206_v57  ;;  %v10337_v57 = vld [vmem:[#allocation2 + $0x99] sm:$0xff] }
 0x76f   : > { %19834 = vmatmul.mubr.msk.f32.gmra.mrb[48].mxu0 %vm260_vm1, %v24210_v41  ;;  %v10334_v41 = vld [vmem:[#allocation2 + $0x79] sm:$0xff] }
 0x770   : > { %19836 = vmatprep.mubr.msk.f32.mxu0 %vm260_vm1, %v24214_v56  ;;  %v10335_v56 = vld [vmem:[#allocation2 + $0x81] sm:$0xff] }
 0x773   : > { %19837 = vmatmul.mubr.msk.f32.gmra.mrb[50].mxu0 %vm260_vm1, %v24218_v4  ;;  %v10332_v4 = vld [vmem:[#allocation2 + $0x61] sm:$0xff] }
 0x774   : > { %19839 = vmatprep.mubr.msk.f32.mxu0 %vm260_vm1, %v24222_v7  ;;  %v10333_v7 = vld [vmem:[#allocation2 + $0x69] sm:$0xff] }
 0x777   : > { %19840 = vmatmul.mubr.msk.f32.gmra.mrb[52].mxu0 %vm260_vm1, %v24226_v61  ;;  %v9969_v61 = vld [vmem:[#allocation2 + $0x198] sm:$0xff] }
 0x778   : > { %19842 = vmatprep.mubr.msk.f32.mxu0 %vm260_vm1, %v24230_v14  ;;  %v10330_v14 = vld [vmem:[#allocation2 + $0x49] sm:$0xff] }
 0x77b   : > { %19843 = vmatmul.mubr.msk.f32.gmra.mrb[54].mxu0 %vm260_vm1, %v24234_v62  ;;  %v9970_v62 = vld [vmem:[#allocation2 + $0x1a0] sm:$0xff] }
 0x77c   : > { %19845 = vmatprep.mubr.msk.f32.mxu0 %vm260_vm1, %v24238_v53  ;;  %v10328_v53 = vld [vmem:[#allocation2 + $0x31] sm:$0xff] }
 0x77f   : > { %19846 = vmatmul.mubr.msk.f32.gmra.mrb[56].mxu0 %vm260_vm1, %v24242_v18  ;;  %v10329_v18 = vld [vmem:[#allocation2 + $0x39] sm:$0xff] }
 0x780   : > { %19848 = vmatprep.mubr.msk.f32.mxu0 %vm260_vm1, %v24086_v37  ;;  %v24670_v37 = vld [vmem:[%s26086_s2 + $0x4] sm:$0xf] }
 0x783   : > { %19849 = vmatmul.mubr.msk.f32.gmra.mrb[58].mxu0 %vm260_vm1, %v24066_v40  ;;  %v10331_v40 = vld [vmem:[#allocation2 + $0x51] sm:$0xff] }
 0x784   : > { %19851 = vmatprep.mubr.msk.f32.mxu0 %vm260_vm1, %v24447_v30  ;;  %v10351_v30 = vld [vmem:[#allocation2 + $0x141] sm:$0xff] }
 0x787   : > { %19852 = vmatmul.mubr.msk.f32.gmra.mrb[60].mxu0 %vm260_vm1, %v24451_v38  ;;  %v10352_v38 = vld [vmem:[#allocation2 + $0x151] sm:$0xff] }
 0x788   : > { %19854 = vmatprep.mubr.msk.f32.mxu0 %vm260_vm1, %v9969_v61  ;;  %v10359_v61 = vld [vmem:[#allocation2 + $0x1a1] sm:$0xff] }
 0x78b   : > { %19855 = vmatmul.mubr.msk.f32.gmra.mrb[62].mxu0 %vm260_vm1, %v9970_v62  ;;  %v11379_v62 = vld [vmem:[%s26085_s1 + $0x70] sm:$0xf] }
 0x78c   : > { %19859 = vmatprep.mubr.msk.f32.mxu0 %vm260_vm1, %v10328_v53  ;;  %19957 = vmatprep.subr.msk.mxu1 %vm536_vm0, %v11379_v62  ;;  %v26729_v53 = vld [vmem:[#allocation68_spill] sm:$0xff] }
 0x78d   : > { %19958 = vmatpush3.msk.msra.mxu1 %vm536_vm0, %v11379_v62 }
 0x78f   : > { %19860 = vmatmul.mubr.msk.f32.vlgmr.msra.gmra.mrb[32].mxu0 %vm260_vm1, %v10329_v18  ;;  %v24842_v18 = vld [vmem:[%s26085_s1 + $0x6c] sm:$0xf] }
 0x790   : > { %19908 = vmatpush3.msk.msra.mxu0 %vm536_vm0, %v10716_v54  ;;  %19862 = vmatprep.mubr.msk.f32.mxu0 %vm260_vm1, %v10330_v14  ;;  %v10358_v54 = vld [vmem:[#allocation2 + $0x199] sm:$0xff] }
 0x791   : > { %20407 = vmatprep.subr.msk.mxu0 %vm536_vm0, %v24670_v37  ;;  %20007 = vmatprep.subr.msk.mxu1 %vm536_vm0, %v24842_v18  ;;  %v26731_v14 = vld [vmem:[#allocation6_spill] sm:$0xff] }
 0x793   : > { %19863 = vmatmul.mubr.msk.f32.gmra.mrb[34].mxu0 %vm260_vm1, %v10331_v40  ;;  %v24853_v40 = vld [vmem:[%s26087_s3 + $0x2] ss:$0 sm:$0xff] }
 0x794   : > { %19865 = vmatprep.mubr.msk.f32.mxu0 %vm260_vm1, %v10332_v4 }
 0x797   : > { %19866 = vmatmul.mubr.msk.f32.gmra.mrb[36].mxu0 %vm260_vm1, %v10333_v7 }
 0x798   : > { %19868 = vmatprep.mubr.msk.f32.mxu0 %vm260_vm1, %v10334_v41 }
 0x79b   : > { %19869 = vmatmul.mubr.msk.f32.gmra.mrb[38].mxu0 %vm260_vm1, %v10335_v56 }
 0x79c   : > { %19871 = vmatprep.mubr.msk.f32.mxu0 %vm260_vm1, %v10336_v13  ;;  %v26732_v13 = vld [vmem:[#allocation62_spill] sm:$0xff] }
 0x79f   : > { %19872 = vmatmul.mubr.msk.f32.gmra.mrb[40].mxu0 %vm260_vm1, %v10337_v57 }
 0x7a0   : > { %19874 = vmatprep.mubr.msk.f32.mxu0 %vm260_vm1, %v10338_v55 }
 0x7a3   : > { %19875 = vmatmul.mubr.msk.f32.gmra.mrb[42].mxu0 %vm260_vm1, %v10339_v20 }
 0x7a4   : > { %19877 = vmatprep.mubr.msk.f32.mxu0 %vm260_vm1, %v10340_v63 }
 0x7a7   : > { %19878 = vmatmul.mubr.msk.f32.gmra.mrb[44].mxu0 %vm260_vm1, %v10341_v59 }
 0x7a8   : > { %19880 = vmatprep.mubr.msk.f32.mxu0 %vm260_vm1, %v10342_v8 }
 0x7ab   : > { %19881 = vmatmul.mubr.msk.f32.gmra.mrb[46].mxu0 %vm260_vm1, %v10343_v60 }
 0x7ac   : > { %19883 = vmatprep.mubr.msk.f32.mxu0 %vm260_vm1, %v10344_v16 }
 0x7af   : > { %19884 = vmatmul.mubr.msk.f32.gmra.mrb[48].mxu0 %vm260_vm1, %v10345_v35 }
 0x7b0   : > { %19886 = vmatprep.mubr.msk.f32.mxu0 %vm260_vm1, %v10346_v1 }
 0x7b3   : > { %19887 = vmatmul.mubr.msk.f32.gmra.mrb[50].mxu0 %vm260_vm1, %v10347_v0 }
 0x7b4   : > { %19889 = vmatprep.mubr.msk.f32.mxu0 %vm260_vm1, %v10348_v45 }
 0x7b7   : > { %19890 = vmatmul.mubr.msk.f32.gmra.mrb[52].mxu0 %vm260_vm1, %v10349_v33 }
 0x7b8   : > { %19892 = vmatprep.mubr.msk.f32.mxu0 %vm260_vm1, %v10350_v36 }
 0x7bb   : > { %19893 = vmatmul.mubr.msk.f32.gmra.mrb[54].mxu0 %vm260_vm1, %v10351_v30 }
 0x7bc   : > { %19895 = vmatprep.mubr.msk.f32.mxu0 %vm260_vm1, %v10352_v38 }
 0x7bf   : > { %19896 = vmatmul.mubr.msk.f32.gmra.mrb[56].mxu0 %vm260_vm1, %v10353_v46 }
 0x7c0   : > { %19898 = vmatprep.mubr.msk.f32.mxu0 %vm260_vm1, %v10354_v21 }
 0x7c3   : > { %19899 = vmatmul.mubr.msk.f32.gmra.mrb[58].mxu0 %vm260_vm1, %v10355_v17 }
 0x7c4   : > { %19901 = vmatprep.mubr.msk.f32.mxu0 %vm260_vm1, %v24520_v50  ;;  %v10747_v50 = vld [vmem:[#allocation2 + $0x19a] sm:$0xff] }
 0x7c7   : > { %19902 = vmatmul.mubr.msk.f32.gmra.mrb[60].mxu0 %vm260_vm1, %v24524_v49  ;;  %v26699_v49 = vld [vmem:[#allocation61_spill] sm:$0xff] }
 0x7c8   : > { %19904 = vmatprep.mubr.msk.f32.mxu0 %vm260_vm1, %v10358_v54 }
 0x7cb   : > { %19905 = vmatmul.mubr.msk.f32.gmra.mrb[62].mxu0 %vm260_vm1, %v10359_v61 }
 0x7cc   : > { %19909 = vmatprep.mubr.msk.f32.mxu0 %vm260_vm1, %v26675_v6  ;;  %v26703_v6 = vld [vmem:[#allocation64_spill] sm:$0xff] }
 0x7cf   : > { %19910 = vmatmul.mubr.msk.f32.vlgmr.msra.gmra.mrb[32].mxu0 %vm260_vm1, %v26676_v52  ;;  %v26704_v52 = vld [vmem:[#allocation36_spill] sm:$0xff] }
 0x7d0   : > { %19912 = vmatprep.mubr.msk.f32.mxu0 %vm260_vm1, %v26677_v5  ;;  %20408 = vmatpush3.msk.msra.mxu0 %vm536_vm0, %v24670_v37  ;;  %v26705_v5 = vld [vmem:[#allocation38_spill] sm:$0xff]  ;;  %v26730_v37 = vld [vmem:[#allocation67_spill] sm:$0xff] }
 0x7d3   : > { %19913 = vmatmul.mubr.msk.f32.gmra.mrb[34].mxu0 %vm260_vm1, %v26678_v42  ;;  %v26706_v42 = vld [vmem:[#allocation37_spill] sm:$0xff] }
 0x7d4   : > { %19915 = vmatprep.mubr.msk.f32.mxu0 %vm260_vm1, %v26679_v3  ;;  %v26707_v3 = vld [vmem:[#allocation39_spill] sm:$0xff] }
 0x7d7   : > { %19916 = vmatmul.mubr.msk.f32.gmra.mrb[36].mxu0 %vm260_vm1, %v26680_v58  ;;  %v26708_v58 = vld [vmem:[#allocation65_spill] sm:$0xff] }
 0x7d8   : > { %19918 = vmatprep.mubr.msk.f32.mxu0 %vm260_vm1, %v26681_v25  ;;  %v26709_v25 = vld [vmem:[#allocation66_spill] sm:$0xff] }
 0x7db   : > { %19919 = vmatmul.mubr.msk.f32.gmra.mrb[38].mxu0 %vm260_vm1, %v26682_v43  ;;  %v26710_v43 = vld [vmem:[#allocation41_spill] sm:$0xff] }
 0x7dc   : > { %19921 = vmatprep.mubr.msk.f32.mxu0 %vm260_vm1, %v26683_v44  ;;  %v26711_v44 = vld [vmem:[#allocation45_spill] sm:$0xff] }
 0x7df   : > { %19922 = vmatmul.mubr.msk.f32.gmra.mrb[40].mxu0 %vm260_vm1, %v26684_v24  ;;  %v26712_v24 = vld [vmem:[#allocation43_spill] sm:$0xff] }
 0x7e0   : > { %19924 = vmatprep.mubr.msk.f32.mxu0 %vm260_vm1, %v26685_v48  ;;  %v26713_v48 = vld [vmem:[#allocation47_spill] sm:$0xff] }
 0x7e3   : > { %19925 = vmatmul.mubr.msk.f32.gmra.mrb[42].mxu0 %vm260_vm1, %v26686_v15  ;;  %v26714_v15 = vld [vmem:[#allocation46_spill] sm:$0xff] }
 0x7e4   : > { %19927 = vmatprep.mubr.msk.f32.mxu0 %vm260_vm1, %v26687_v47  ;;  %v26715_v47 = vld [vmem:[#allocation49_spill] sm:$0xff] }
 0x7e7   : > { %19928 = vmatmul.mubr.msk.f32.gmra.mrb[44].mxu0 %vm260_vm1, %v26688_v11  ;;  %v26716_v11 = vld [vmem:[#allocation48_spill] sm:$0xff] }
 0x7e8   : > { %19930 = vmatprep.mubr.msk.f32.mxu0 %vm260_vm1, %v26689_v32  ;;  %v26717_v32 = vld [vmem:[#allocation51_spill] sm:$0xff] }
 0x7eb   : > { %19931 = vmatmul.mubr.msk.f32.gmra.mrb[46].mxu0 %vm260_vm1, %v26690_v27  ;;  %v26718_v27 = vld [vmem:[#allocation50_spill] sm:$0xff] }
 0x7ec   : > { %19933 = vmatprep.mubr.msk.f32.mxu0 %vm260_vm1, %v26691_v2  ;;  %v26719_v2 = vld [vmem:[#allocation53_spill] sm:$0xff] }
 0x7ef   : > { %19934 = vmatmul.mubr.msk.f32.gmra.mrb[48].mxu0 %vm260_vm1, %v26692_v31  ;;  %v26720_v31 = vld [vmem:[#allocation52_spill] sm:$0xff] }
 0x7f0   : > { %19936 = vmatprep.mubr.msk.f32.mxu0 %vm260_vm1, %v26693_v23  ;;  %v26721_v23 = vld [vmem:[#allocation55_spill] sm:$0xff] }
 0x7f3   : > { %19937 = vmatmul.mubr.msk.f32.gmra.mrb[50].mxu0 %vm260_vm1, %v26694_v39  ;;  %v26722_v39 = vld [vmem:[#allocation54_spill] sm:$0xff] }
 0x7f4   : > { %19939 = vmatprep.mubr.msk.f32.mxu0 %vm260_vm1, %v26695_v51  ;;  %v26723_v51 = vld [vmem:[#allocation57_spill] sm:$0xff] }
 0x7f7   : > { %19940 = vmatmul.mubr.msk.f32.gmra.mrb[52].mxu0 %vm260_vm1, %v26696_v28  ;;  %v26724_v28 = vld [vmem:[#allocation56_spill] sm:$0xff] }
 0x7f8   : > { %19942 = vmatprep.mubr.msk.f32.mxu0 %vm260_vm1, %v26697_v10  ;;  %v26725_v10 = vld [vmem:[#allocation59_spill] sm:$0xff] }
 0x7fb   : > { %19943 = vmatmul.mubr.msk.f32.gmra.mrb[54].mxu0 %vm260_vm1, %v24361_v19  ;;  %v10748_v19 = vld [vmem:[#allocation2 + $0x1a2] sm:$0xff] }
 0x7fc   : > { %19945 = vmatprep.mubr.msk.f32.mxu0 %vm260_vm1, %v26698_v22  ;;  %v26726_v22 = vld [vmem:[#allocation58_spill] sm:$0xff] }
 0x7ff   : > { %19946 = vmatmul.mubr.msk.f32.gmra.mrb[56].mxu0 %vm260_vm1, %v24369_v34  ;;  %v26700_v34 = vld [vmem:[#allocation60_spill] sm:$0xff] }
 0x800   : > { %19948 = vmatprep.mubr.msk.f32.mxu0 %vm260_vm1, %v24373_v29  ;;  %v26701_v29 = vld [vmem:[#allocation63_spill] sm:$0xff] }
 0x803   : > { %19949 = vmatmul.mubr.msk.f32.gmra.mrb[58].mxu0 %vm260_vm1, %v24377_v9  ;;  %v26702_v9 = vld [vmem:[#allocation34_spill] sm:$0xff] }
 0x804   : > { %19951 = vmatprep.mubr.msk.f32.mxu0 %vm260_vm1, %v24593_v12  ;;  %v26727_v12 = vld [vmem:[#allocation42_spill] sm:$0xff] }
 0x807   : > { %19952 = vmatmul.mubr.msk.f32.gmra.mrb[60].mxu0 %vm260_vm1, %v24597_v26  ;;  %v26728_v26 = vld [vmem:[#allocation44_spill] sm:$0xff] }
 0x808   : > { %19954 = vmatprep.mubr.msk.f32.mxu0 %vm260_vm1, %v10747_v50 }
 0x80b   : > { %19955 = vmatmul.mubr.msk.f32.gmra.mrb[62].mxu0 %vm260_vm1, %v10748_v19 }
 0x80c   : > { %20409 = vmatprep.mubr.msk.f32.mxu0 %vm260_vm1, %v26699_v49  ;;  %v25259_v49 = vld [vmem:[%s26085_s1 + $0x7c] sm:$0xf] }
 0x80f   : > { %20410 = vmatmul.mubr.msk.f32.vlgmr.msra.gmra.mrb[64].mxu0 %vm260_vm1, %v26700_v34 }
 0x810   : > { %20412 = vmatprep.mubr.msk.f32.mxu0 %vm260_vm1, %v26701_v29 }
 0x813   : > { %20413 = vmatmul.mubr.msk.f32.gmra.mrb[66].mxu0 %vm260_vm1, %v26702_v9 }
 0x814   : > { %20415 = vmatprep.mubr.msk.f32.mxu0 %vm260_vm1, %v26703_v6 }
 0x817   : > { %20416 = vmatmul.mubr.msk.f32.gmra.mrb[68].mxu0 %vm260_vm1, %v26704_v52 }
 0x818   : > { %20418 = vmatprep.mubr.msk.f32.mxu0 %vm260_vm1, %v26705_v5 }
 0x81b   : > { %20419 = vmatmul.mubr.msk.f32.gmra.mrb[70].mxu0 %vm260_vm1, %v26706_v42 }
 0x81c   : > { %20421 = vmatprep.mubr.msk.f32.mxu0 %vm260_vm1, %v26707_v3 }
 0x81f   : > { %20422 = vmatmul.mubr.msk.f32.gmra.mrb[72].mxu0 %vm260_vm1, %v26708_v58 }
 0x820   : > { %20424 = vmatprep.mubr.msk.f32.mxu0 %vm260_vm1, %v26709_v25 }
 0x823   : > { %20425 = vmatmul.mubr.msk.f32.gmra.mrb[74].mxu0 %vm260_vm1, %v26710_v43 }
 0x824   : > { %20427 = vmatprep.mubr.msk.f32.mxu0 %vm260_vm1, %v26711_v44 }
 0x827   : > { %20428 = vmatmul.mubr.msk.f32.gmra.mrb[76].mxu0 %vm260_vm1, %v26712_v24 }
 0x828   : > { %20430 = vmatprep.mubr.msk.f32.mxu0 %vm260_vm1, %v26713_v48 }
 0x82b   : > { %20431 = vmatmul.mubr.msk.f32.gmra.mrb[78].mxu0 %vm260_vm1, %v26714_v15 }
 0x82c   : > { %20433 = vmatprep.mubr.msk.f32.mxu0 %vm260_vm1, %v26715_v47 }
 0x82f   : > { %20434 = vmatmul.mubr.msk.f32.gmra.mrb[80].mxu0 %vm260_vm1, %v26716_v11 }
 0x830   : > { %20436 = vmatprep.mubr.msk.f32.mxu0 %vm260_vm1, %v26717_v32 }
 0x833   : > { %20437 = vmatmul.mubr.msk.f32.gmra.mrb[82].mxu0 %vm260_vm1, %v26718_v27 }
 0x834   : > { %20439 = vmatprep.mubr.msk.f32.mxu0 %vm260_vm1, %v26719_v2 }
 0x837   : > { %20440 = vmatmul.mubr.msk.f32.gmra.mrb[84].mxu0 %vm260_vm1, %v26720_v31 }
 0x838   : > { %20442 = vmatprep.mubr.msk.f32.mxu0 %vm260_vm1, %v26721_v23 }
 0x83b   : > { %20443 = vmatmul.mubr.msk.f32.gmra.mrb[86].mxu0 %vm260_vm1, %v26722_v39 }
 0x83c   : > { %20445 = vmatprep.mubr.msk.f32.mxu0 %vm260_vm1, %v26723_v51 }
 0x83f   : > { %20446 = vmatmul.mubr.msk.f32.gmra.mrb[88].mxu0 %vm260_vm1, %v26724_v28 }
 0x840   : > { %20448 = vmatprep.mubr.msk.f32.mxu0 %vm260_vm1, %v26725_v10  ;;  %v25136_v10 = vld [vmem:[%s26085_s1 + $0x78] sm:$0xf] }
 0x843   : > { %20449 = vmatmul.mubr.msk.f32.gmra.mrb[90].mxu0 %vm260_vm1, %v26726_v22 }
 0x844   : > { %20451 = vmatprep.mubr.msk.f32.mxu0 %vm260_vm1, %v26727_v12 }
 0x847   : > { %20452 = vmatmul.mubr.msk.f32.gmra.mrb[92].mxu0 %vm260_vm1, %v26728_v26 }
 0x848   : > { %20454 = vmatprep.mubr.msk.f32.mxu0 %vm260_vm1, %v26729_v53 }
 0x84b   : > { %20455 = vmatmul.mubr.msk.f32.gmra.mrb[94].mxu0 %vm260_vm1, %v26730_v37 }
 0x84c   : > { %20459 = vmatprep.mubr.msk.f32.mxu0 %vm260_vm1, %v26731_v14 }
 0x8a2   : > { %v19911_v4 = vpop.f32.mrb[32].mxu0 }
 0x8a3   : > { %v11111_v7 = vadd.f32 %v19911_v4, %v24853_v40  ;;  %v10914_v41 = vpop.f32.mrb[33].mxu0 }
 0x8a4   : > { %v11110_v56 = vadd.f32 %v24853_v40, %v10914_v41 }
 0x8a5   : > { %vm11143_vm12 = vcmp.ge.f32.partialorder %v11111_v7, 0.0  ;;  %v11175_v57 = vmul.f32 %v11111_v7, %v26732_v13 }
 0x8a6   : > { %vm11142_vm13 = vcmp.ge.f32.partialorder %v11110_v56, 0.0  ;;  %v11174_v55 = vmul.f32 %v11110_v56, %v26732_v13  ;;  %v19914_v20 = vpop.f32.mrb[34].mxu0 }
 0x8a7   : > { %v11207_v63 = vsel %vm11143_vm12, %v11111_v7, %v11175_v57  ;;  %v11113_v59 = vadd.f32 %v19914_v20, %v24853_v40  ;;  %v10924_v8 = vpop.f32.mrb[35].mxu0 }
 0x8a8   : > { %11239 = vst.msk [vmem:[#allocation2 + $0x21] sm:$0xff] %vm260_vm1, %v11207_v63  ;;  %v11206_v60 = vsel %vm11142_vm13, %v11110_v56, %v11174_v55  ;;  %v11112_v16 = vadd.f32 %v24853_v40, %v10924_v8 }
 0x8a9   : > { %11238 = vst.msk [vmem:[#allocation2 + $0x19] sm:$0xff] %vm260_vm1, %v11206_v60  ;;  %vm11145_vm14 = vcmp.ge.f32.partialorder %v11113_v59, 0.0  ;;  %v11177_v35 = vmul.f32 %v11113_v59, %v26732_v13 }
 0x8aa   : > { %vm11144_vm15 = vcmp.ge.f32.partialorder %v11112_v16, 0.0  ;;  %v11176_v1 = vmul.f32 %v11112_v16, %v26732_v13  ;;  %v19917_v0 = vpop.f32.mrb[36].mxu0 }
 0x8ab   : > { %v11209_v45 = vsel %vm11145_vm14, %v11113_v59, %v11177_v35  ;;  %v11115_v33 = vadd.f32 %v19917_v0, %v24853_v40  ;;  %v10934_v36 = vpop.f32.mrb[37].mxu0 }
 0x8ac   : > { %11241 = vst.msk [vmem:[#allocation2 + $0x39] sm:$0xff] %vm260_vm1, %v11209_v45  ;;  %v11208_v30 = vsel %vm11144_vm15, %v11112_v16, %v11176_v1  ;;  %v11114_v38 = vadd.f32 %v24853_v40, %v10934_v36 }
 0x8ad   : > { %11240 = vst.msk [vmem:[#allocation2 + $0x31] sm:$0xff] %vm260_vm1, %v11208_v30  ;;  %vm11147_vm4 = vcmp.ge.f32.partialorder %v11115_v33, 0.0  ;;  %v11179_v46 = vmul.f32 %v11115_v33, %v26732_v13 }
 0x8ae   : > { %vm11146_vm5 = vcmp.ge.f32.partialorder %v11114_v38, 0.0  ;;  %v11178_v21 = vmul.f32 %v11114_v38, %v26732_v13  ;;  %v19920_v17 = vpop.f32.mrb[38].mxu0 }
 0x8af   : > { %v11211_v54 = vsel %vm11147_vm4, %v11115_v33, %v11179_v46  ;;  %v11117_v61 = vadd.f32 %v19920_v17, %v24853_v40  ;;  %v10944_v62 = vpop.f32.mrb[39].mxu0  ;;  %v11302_v50 = vld [vmem:[#allocation2 + $0x27] sm:$0x1] }
 0x8b0   : > { %11243 = vst.msk [vmem:[#allocation2 + $0x51] sm:$0xff] %vm260_vm1, %v11211_v54  ;;  %v11210_v19 = vsel %vm11146_vm5, %v11114_v38, %v11178_v21  ;;  %v11116_v4 = vadd.f32 %v24853_v40, %v10944_v62  ;;  %v11270_v7 = vld [vmem:[#allocation2 + $0x1a] sm:$0x1] }
 0x8b1   : > { %11318 = vst.msk [vmem:[#allocation2 + $0x29] sm:$0x1] %vm309_vm2, %v11302_v50  ;;  %vm11149_vm6 = vcmp.ge.f32.partialorder %v11117_v61, 0.0  ;;  %v11181_v41 = vmul.f32 %v11117_v61, %v26732_v13  ;;  %11286 = vst.msk [vmem:[#allocation2 + $0x18] sm:$0x1] %vm309_vm2, %v11270_v7 }
 0x8b2   : > { %11242 = vst.msk [vmem:[#allocation2 + $0x49] sm:$0xff] %vm260_vm1, %v11210_v19  ;;  %vm11148_vm7 = vcmp.ge.f32.partialorder %v11116_v4, 0.0  ;;  %v11180_v56 = vmul.f32 %v11116_v4, %v26732_v13  ;;  %v19923_v57 = vpop.f32.mrb[40].mxu0 }
 0x8b3   : > { %v11213_v55 = vsel %vm11149_vm6, %v11117_v61, %v11181_v41  ;;  %v11119_v20 = vadd.f32 %v19923_v57, %v24853_v40  ;;  %v10954_v63 = vpop.f32.mrb[41].mxu0  ;;  %v11303_v59 = vld [vmem:[#allocation2 + $0x3f] sm:$0x1] }
 0x8b4   : > { %11245 = vst.msk [vmem:[#allocation2 + $0x69] sm:$0xff] %vm260_vm1, %v11213_v55  ;;  %v11212_v8 = vsel %vm11148_vm7, %v11116_v4, %v11180_v56  ;;  %v11118_v60 = vadd.f32 %v24853_v40, %v10954_v63  ;;  %v11271_v16 = vld [vmem:[#allocation2 + $0x32] sm:$0x1]  ;;  %v24882_v35 = vld [vmem:[#allocation2 + $0x38] sm:$0xff] }
 0x8b5   : > { %11319 = vst.msk [vmem:[#allocation2 + $0x41] sm:$0x1] %vm309_vm2, %v11303_v59  ;;  %vm11151_vm8 = vcmp.ge.f32.partialorder %v11119_v20, 0.0  ;;  %v11183_v1 = vmul.f32 %v11119_v20, %v26732_v13  ;;  %11287 = vst.msk [vmem:[#allocation2 + $0x30] sm:$0x1] %vm309_vm2, %v11271_v16 }
 0x8b6   : > { %11244 = vst.msk [vmem:[#allocation2 + $0x61] sm:$0xff] %vm260_vm1, %v11212_v8  ;;  %11338 = vst.msk [vmem:[#allocation2 + $0x8] sm:$0xff] %vm260_vm1, %v24882_v35  ;;  %vm11150_vm9 = vcmp.ge.f32.partialorder %v11118_v60, 0.0  ;;  %v11182_v0 = vmul.f32 %v11118_v60, %v26732_v13  ;;  %v19926_v45 = vpop.f32.mrb[42].mxu0 }
 0x8b7   : > { %v11215_v33 = vsel %vm11151_vm8, %v11119_v20, %v11183_v1  ;;  %v11121_v36 = vadd.f32 %v19926_v45, %v24853_v40  ;;  %v10964_v30 = vpop.f32.mrb[43].mxu0  ;;  %v11304_v38 = vld [vmem:[#allocation2 + $0x57] sm:$0x1] }
 0x8b8   : > { %11247 = vst.msk [vmem:[#allocation2 + $0x81] sm:$0xff] %vm260_vm1, %v11215_v33  ;;  %v11214_v46 = vsel %vm11150_vm9, %v11118_v60, %v11182_v0  ;;  %v11120_v21 = vadd.f32 %v24853_v40, %v10964_v30  ;;  %v25139_v28 = vld [vmem:[#allocation2 + $0x18] sm:$0xff] }
 0x8b9   : > { %v11272_v17 = vld [vmem:[#allocation2 + $0x4a] sm:$0x1]  ;;  %11320 = vst.msk [vmem:[#allocation2 + $0x59] sm:$0x1] %vm309_vm2, %v11304_v38  ;;  %vm11153_vm10 = vcmp.ge.f32.partialorder %v11121_v36, 0.0  ;;  %v11185_v54 = vmul.f32 %v11121_v36, %v26732_v13 }
 0x8ba   : > { %11246 = vst.msk [vmem:[#allocation2 + $0x79] sm:$0xff] %vm260_vm1, %v11214_v46  ;;  %vm11152_vm11 = vcmp.ge.f32.partialorder %v11120_v21, 0.0  ;;  %v11184_v61 = vmul.f32 %v11120_v21, %v26732_v13  ;;  %v19929_v62 = vpop.f32.mrb[44].mxu0 }
 0x8bb   : > { %11288 = vst.msk [vmem:[#allocation2 + $0x48] sm:$0x1] %vm309_vm2, %v11272_v17  ;;  %v11217_v50 = vsel %vm11153_vm10, %v11121_v36, %v11185_v54  ;;  %v11123_v19 = vadd.f32 %v19929_v62, %v24853_v40  ;;  %v10974_v4 = vpop.f32.mrb[45].mxu0  ;;  %v11305_v8 = vld [vmem:[#allocation2 + $0x6f] sm:$0x1] }
 0x8bc   : > { %v11336_v7 = vld [vmem:[#allocation2 + $0x40] sm:$0x3]  ;;  %11249 = vst.msk [vmem:[#allocation2 + $0x99] sm:$0xff] %vm260_vm1, %v11217_v50  ;;  %v11216_v41 = vsel %vm11152_vm11, %v11120_v21, %v11184_v61  ;;  %v11122_v56 = vadd.f32 %v24853_v40, %v10974_v4  ;;  %v24902_v57 = vld [vmem:[#allocation2 + $0x30] sm:$0xff] }
 0x8bd   : > { %11339 = vst.msk [vmem:[#allocation2 + $0x10] sm:$0x3] %vm364_vm3, %v11336_v7  ;;  %vm11155_vm12 = vcmp.ge.f32.partialorder %v11123_v19, 0.0  ;;  %v11187_v55 = vmul.f32 %v11123_v19, %v26732_v13  ;;  %v11273_v20 = vld [vmem:[#allocation2 + $0x62] sm:$0x1]  ;;  %v11348_v22 = vld [vmem:[#allocation2 + $0x8] sm:$0xff] }
 0x8be   : > { %11248 = vst.msk [vmem:[#allocation2 + $0x91] sm:$0xff] %vm260_vm1, %v11216_v41  ;;  %11337 = vst.msk [vmem:[#allocation2] sm:$0xff] %vm260_vm1, %v24902_v57  ;;  %vm11154_vm13 = vcmp.ge.f32.partialorder %v11122_v56, 0.0  ;;  %v11186_v63 = vmul.f32 %v11122_v56, %v26732_v13  ;;  %v19932_v59 = vpop.f32.mrb[46].mxu0  ;;  %v24929_v7 = vld [vmem:[%s26085_s1 + $0x74] sm:$0xf] }
 0x8bf   : > { %11289 = vst.msk [vmem:[#allocation2 + $0x60] sm:$0x1] %vm309_vm2, %v11273_v20  ;;  %v11219_v60 = vsel %vm11155_vm12, %v11123_v19, %v11187_v55  ;;  %v11125_v16 = vadd.f32 %v19932_v59, %v24853_v40  ;;  %v10984_v1 = vpop.f32.mrb[47].mxu0  ;;  %11321 = vst.msk [vmem:[#allocation2 + $0x71] sm:$0x1] %vm309_vm2, %v11305_v8  ;;  %v24933_v20 = vld [vmem:[#allocation2 + $0x19] sm:$0xff] }
 0x8c0   : > { %v11306_v0 = vld [vmem:[#allocation2 + $0x87] sm:$0x1]  ;;  %11251 = vst.msk [vmem:[#allocation2 + $0xb1] sm:$0xff] %vm260_vm1, %v11219_v60  ;;  %v11218_v45 = vsel %vm11154_vm13, %v11122_v56, %v11186_v63  ;;  %v11124_v33 = vadd.f32 %v24853_v40, %v10984_v1  ;;  %v25167_v39 = vld [vmem:[#allocation2 + $0x68] sm:$0xff] }
 0x8c1   : > { %v11274_v36 = vld [vmem:[#allocation2 + $0x7a] sm:$0x1]  ;;  %11322 = vst.msk [vmem:[#allocation2 + $0x89] sm:$0x1] %vm309_vm2, %v11306_v0  ;;  %vm11157_vm14 = vcmp.ge.f32.partialorder %v11125_v16, 0.0  ;;  %v11189_v30 = vmul.f32 %v11125_v16, %v26732_v13  ;;  %v25175_v31 = vld [vmem:[#allocation2 + $0x80] sm:$0xff] }
 0x8c2   : > { %11250 = vst.msk [vmem:[#allocation2 + $0xa9] sm:$0xff] %vm260_vm1, %v11218_v45  ;;  %vm11156_vm15 = vcmp.ge.f32.partialorder %v11124_v33, 0.0  ;;  %v11188_v38 = vmul.f32 %v11124_v33, %v26732_v13  ;;  %v19935_v46 = vpop.f32.mrb[48].mxu0  ;;  %v24947_v45 = vld [vmem:[#allocation2 + $0x21] sm:$0xff] }
 0x8c3   : > { %11290 = vst.msk [vmem:[#allocation2 + $0x78] sm:$0x1] %vm309_vm2, %v11274_v36  ;;  %v11221_v21 = vsel %vm11157_vm14, %v11125_v16, %v11189_v30  ;;  %v11127_v17 = vadd.f32 %v19935_v46, %v24853_v40  ;;  %v10994_v54 = vpop.f32.mrb[49].mxu0  ;;  %v24953_v30 = vld [vmem:[#allocation2 + $0x31] sm:$0xff] }
 0x8c4   : > { %11253 = vst.msk [vmem:[#allocation2 + $0xc9] sm:$0xff] %vm260_vm1, %v11221_v21  ;;  %v11220_v61 = vsel %vm11156_vm15, %v11124_v33, %v11188_v38  ;;  %v11126_v62 = vadd.f32 %v24853_v40, %v10994_v54  ;;  %v11381_v4 = vld [vmem:[#allocation2 + $0x9] sm:$0xff] }
 0x8c5   : > { %v11380_v50 = vld [vmem:[#allocation2 + $0x1] sm:$0xff]  ;;  %11252 = vst.msk [vmem:[#allocation2 + $0xc1] sm:$0xff] %vm260_vm1, %v11220_v61  ;;  %vm11159_vm4 = vcmp.ge.f32.partialorder %v11127_v17, 0.0  ;;  %v11191_v19 = vmul.f32 %v11127_v17, %v26732_v13  ;;  %v11275_v41 = vld [vmem:[#allocation2 + $0x92] sm:$0x1]  ;;  %v25183_v27 = vld [vmem:[#allocation2 + $0x98] sm:$0xff] }
 0x8c6   : > { %19959 = vmatprep.mubr.msk.f32.mxu1 %vm260_vm1, %v11380_v50  ;;  %vm11158_vm5 = vcmp.ge.f32.partialorder %v11126_v62, 0.0  ;;  %v11190_v56 = vmul.f32 %v11126_v62, %v26732_v13  ;;  %v19938_v55 = vpop.f32.mrb[50].mxu0  ;;  %11291 = vst.msk [vmem:[#allocation2 + $0x90] sm:$0x1] %vm309_vm2, %v11275_v41  ;;  %v11347_v12 = vld [vmem:[#allocation2] sm:$0xff]  ;;  %v12062_v34 = vld [vmem:[#allocation2 + $0xa] sm:$0xff] }
 0x8c7   : > { %19960 = vmatmul.mubr.msk.f32.vlgmr.msra.gmra.mrb[64].mxu1 %vm260_vm1, %v11381_v4  ;;  %v11223_v63 = vsel %vm11159_vm4, %v11127_v17, %v11191_v19  ;;  %v11129_v59 = vadd.f32 %v19938_v55, %v24853_v40  ;;  %v11004_v8 = vpop.f32.mrb[51].mxu0  ;;  %v11308_v38 = vld [vmem:[#allocation2 + $0xb7] sm:$0x1]  ;;  %v24965_v4 = vld [vmem:[#allocation2 + $0x39] sm:$0xff]  ;;  %v24971_v55 = vld [vmem:[#allocation2 + $0x49] sm:$0xff] }
 0x8c8   : > { %20008 = vmatpush3.msk.msra.mxu1 %vm536_vm0, %v24842_v18  ;;  %19962 = vmatprep.mubr.msk.f32.mxu1 %vm260_vm1, %v24933_v20  ;;  %11255 = vst.msk [vmem:[#allocation2 + $0xe1] sm:$0xff] %vm260_vm1, %v11223_v63  ;;  %v11222_v60 = vsel %vm11158_vm5, %v11126_v62, %v11190_v56  ;;  %v11128_v16 = vadd.f32 %v24853_v40, %v11004_v8  ;;  %v11307_v18 = vld [vmem:[#allocation2 + $0x9f] sm:$0x1]  ;;  %v25163_v51 = vld [vmem:[#allocation2 + $0x60] sm:$0xff] }
 0x8c9   : > { %20057 = vmatprep.subr.msk.mxu1 %vm536_vm0, %v24929_v7  ;;  %v11276_v1 = vld [vmem:[#allocation2 + $0xaa] sm:$0x1]  ;;  %11254 = vst.msk [vmem:[#allocation2 + $0xd9] sm:$0xff] %vm260_vm1, %v11222_v60  ;;  %vm11161_vm6 = vcmp.ge.f32.partialorder %v11129_v59, 0.0  ;;  %v11193_v0 = vmul.f32 %v11129_v59, %v26732_v13  ;;  %v25191_v11 = vld [vmem:[#allocation2 + $0xb0] sm:$0xff]  ;;  %v12061_v29 = vld [vmem:[#allocation2 + $0x2] sm:$0xff] }
 0x8ca   : > { %11292 = vst.msk [vmem:[#allocation2 + $0xa8] sm:$0x1] %vm309_vm2, %v11276_v1  ;;  %vm11160_vm7 = vcmp.ge.f32.partialorder %v11128_v16, 0.0  ;;  %v11192_v33 = vmul.f32 %v11128_v16, %v26732_v13  ;;  %v19941_v36 = vpop.f32.mrb[52].mxu0  ;;  %11323 = vst.msk [vmem:[#allocation2 + $0xa1] sm:$0x1] %vm309_vm2, %v11307_v18 }
 0x8cb   : > { %19963 = vmatmul.mubr.msk.f32.gmra.mrb[66].mxu1 %vm260_vm1, %v24947_v45  ;;  %v11225_v46 = vsel %vm11161_vm6, %v11129_v59, %v11193_v0  ;;  %v11131_v21 = vadd.f32 %v19941_v36, %v24853_v40  ;;  %v11014_v17 = vpop.f32.mrb[53].mxu0  ;;  %11324 = vst.msk [vmem:[#allocation2 + $0xb9] sm:$0x1] %vm309_vm2, %v11308_v38  ;;  %v11309_v54 = vld [vmem:[#allocation2 + $0xcf] sm:$0x1]  ;;  %v25171_v23 = vld [vmem:[#allocation2 + $0x78] sm:$0xff] }
 0x8cc   : > { %19965 = vmatprep.mubr.msk.f32.mxu1 %vm260_vm1, %v24953_v30  ;;  %11257 = vst.msk [vmem:[#allocation2 + $0xf9] sm:$0xff] %vm260_vm1, %v11225_v46  ;;  %v11224_v61 = vsel %vm11160_vm7, %v11128_v16, %v11192_v33  ;;  %v11130_v62 = vadd.f32 %v24853_v40, %v11014_v17  ;;  %v11277_v50 = vld [vmem:[#allocation2 + $0xc2] sm:$0x1]  ;;  %v24981_v33 = vld [vmem:[#allocation2 + $0x51] sm:$0xff]  ;;  %v25199_v15 = vld [vmem:[#allocation2 + $0xc8] sm:$0xff] }
 0x8cd   : > { %11325 = vst.msk [vmem:[#allocation2 + $0xd1] sm:$0x1] %vm309_vm2, %v11309_v54  ;;  %vm11163_vm8 = vcmp.ge.f32.partialorder %v11131_v21, 0.0  ;;  %v11195_v19 = vmul.f32 %v11131_v21, %v26732_v13  ;;  %11293 = vst.msk [vmem:[#allocation2 + $0xc0] sm:$0x1] %vm309_vm2, %v11277_v50  ;;  %v24987_v46 = vld [vmem:[#allocation2 + $0x61] sm:$0xff] }
 0x8ce   : > { %11256 = vst.msk [vmem:[#allocation2 + $0xf1] sm:$0xff] %vm260_vm1, %v11224_v61  ;;  %vm11162_vm9 = vcmp.ge.f32.partialorder %v11130_v62, 0.0  ;;  %v11194_v41 = vmul.f32 %v11130_v62, %v26732_v13  ;;  %v19944_v56 = vpop.f32.mrb[54].mxu0  ;;  %v25179_v2 = vld [vmem:[#allocation2 + $0x90] sm:$0xff] }
 0x8cf   : > { %19966 = vmatmul.mubr.msk.f32.gmra.mrb[68].mxu1 %vm260_vm1, %v24965_v4  ;;  %v11227_v63 = vsel %vm11163_vm8, %v11131_v21, %v11195_v19  ;;  %v11133_v59 = vadd.f32 %v19944_v56, %v24853_v40  ;;  %v11024_v8 = vpop.f32.mrb[55].mxu0  ;;  %v11310_v60 = vld [vmem:[#allocation2 + $0xe7] sm:$0x1]  ;;  %v24997_v56 = vld [vmem:[#allocation2 + $0x69] sm:$0xff] }
 0x8d0   : > { %19968 = vmatprep.mubr.msk.f32.mxu1 %vm260_vm1, %v24971_v55  ;;  %11259 = vst.msk [vmem:[#allocation2 + $0x111] sm:$0xff] %vm260_vm1, %v11227_v63  ;;  %v11226_v16 = vsel %vm11162_vm9, %v11130_v62, %v11194_v41  ;;  %v11132_v1 = vadd.f32 %v24853_v40, %v11024_v8  ;;  %v11278_v0 = vld [vmem:[#allocation2 + $0xda] sm:$0x1]  ;;  %v25207_v24 = vld [vmem:[#allocation2 + $0xe0] sm:$0xff] }
 0x8d1   : > { %11326 = vst.msk [vmem:[#allocation2 + $0xe9] sm:$0x1] %vm309_vm2, %v11310_v60  ;;  %vm11165_vm10 = vcmp.ge.f32.partialorder %v11133_v59, 0.0  ;;  %v11197_v18 = vmul.f32 %v11133_v59, %v26732_v13  ;;  %11294 = vst.msk [vmem:[#allocation2 + $0xd8] sm:$0x1] %vm309_vm2, %v11278_v0  ;;  %v25003_v8 = vld [vmem:[#allocation2 + $0x79] sm:$0xff] }
 0x8d2   : > { %11258 = vst.msk [vmem:[#allocation2 + $0x109] sm:$0xff] %vm260_vm1, %v11226_v16  ;;  %vm11164_vm11 = vcmp.ge.f32.partialorder %v11132_v1, 0.0  ;;  %v11196_v36 = vmul.f32 %v11132_v1, %v26732_v13  ;;  %v19947_v38 = vpop.f32.mrb[56].mxu0  ;;  %v25187_v32 = vld [vmem:[#allocation2 + $0xa8] sm:$0xff] }
 0x8d3   : > { %19969 = vmatmul.mubr.msk.f32.gmra.mrb[70].mxu1 %vm260_vm1, %v24981_v33  ;;  %v11229_v21 = vsel %vm11165_vm10, %v11133_v59, %v11197_v18  ;;  %v11135_v17 = vadd.f32 %v19947_v38, %v24853_v40  ;;  %v11034_v54 = vpop.f32.mrb[57].mxu0  ;;  %v11311_v61 = vld [vmem:[#allocation2 + $0xff] sm:$0x1] }
 0x8d4   : > { %19971 = vmatprep.mubr.msk.f32.mxu1 %vm260_vm1, %v24987_v46  ;;  %11261 = vst.msk [vmem:[#allocation2 + $0x129] sm:$0xff] %vm260_vm1, %v11229_v21  ;;  %v11228_v62 = vsel %vm11164_vm11, %v11132_v1, %v11196_v36  ;;  %v11134_v50 = vadd.f32 %v24853_v40, %v11034_v54  ;;  %v25195_v47 = vld [vmem:[#allocation2 + $0xc0] sm:$0xff] }
 0x8d5   : > { %v11279_v19 = vld [vmem:[#allocation2 + $0xf2] sm:$0x1]  ;;  %11327 = vst.msk [vmem:[#allocation2 + $0x101] sm:$0x1] %vm309_vm2, %v11311_v61  ;;  %vm11167_vm12 = vcmp.ge.f32.partialorder %v11135_v17, 0.0  ;;  %v11199_v41 = vmul.f32 %v11135_v17, %v26732_v13  ;;  %v25215_v43 = vld [vmem:[#allocation2 + $0xf8] sm:$0xff] }
 0x8d6   : > { %11260 = vst.msk [vmem:[#allocation2 + $0x121] sm:$0xff] %vm260_vm1, %v11228_v62  ;;  %vm11166_vm13 = vcmp.ge.f32.partialorder %v11134_v50, 0.0  ;;  %v11198_v63 = vmul.f32 %v11134_v50, %v26732_v13  ;;  %v19950_v59 = vpop.f32.mrb[58].mxu0  ;;  %v25019_v62 = vld [vmem:[#allocation2 + $0x91] sm:$0xff] }
 0x8d7   : > { %11295 = vst.msk [vmem:[#allocation2 + $0xf0] sm:$0x1] %vm309_vm2, %v11279_v19  ;;  %19972 = vmatmul.mubr.msk.f32.gmra.mrb[72].mxu1 %vm260_vm1, %v24997_v56  ;;  %v11231_v60 = vsel %vm11167_vm12, %v11135_v17, %v11199_v41  ;;  %v11137_v16 = vadd.f32 %v19950_v59, %v24853_v40  ;;  %v11044_v1 = vpop.f32.mrb[59].mxu0  ;;  %v11312_v0 = vld [vmem:[#allocation2 + $0x117] sm:$0x1]  ;;  %v25013_v17 = vld [vmem:[#allocation2 + $0x81] sm:$0xff] }
 0x8d8   : > { %19974 = vmatprep.mubr.msk.f32.mxu1 %vm260_vm1, %v25003_v8  ;;  %11263 = vst.msk [vmem:[#allocation2 + $0x141] sm:$0xff] %vm260_vm1, %v11231_v60  ;;  %v11230_v18 = vsel %vm11166_vm13, %v11134_v50, %v11198_v63  ;;  %v11136_v36 = vadd.f32 %v24853_v40, %v11044_v1  ;;  %v25203_v48 = vld [vmem:[#allocation2 + $0xd8] sm:$0xff] }
 0x8d9   : > { %v11280_v38 = vld [vmem:[#allocation2 + $0x10a] sm:$0x1]  ;;  %11328 = vst.msk [vmem:[#allocation2 + $0x119] sm:$0x1] %vm309_vm2, %v11312_v0  ;;  %vm11169_vm14 = vcmp.ge.f32.partialorder %v11137_v16, 0.0  ;;  %v11201_v21 = vmul.f32 %v11137_v16, %v26732_v13  ;;  %v25029_v0 = vld [vmem:[#allocation2 + $0x99] sm:$0xff] }
 0x8da   : > { %11262 = vst.msk [vmem:[#allocation2 + $0x139] sm:$0xff] %vm260_vm1, %v11230_v18  ;;  %vm11168_vm15 = vcmp.ge.f32.partialorder %v11136_v36, 0.0  ;;  %v11200_v54 = vmul.f32 %v11136_v36, %v26732_v13  ;;  %v19953_v61 = vpop.f32.mrb[60].mxu0  ;;  %v25223_v58 = vld [vmem:[#allocation2 + $0x110] sm:$0xff] }
 0x8db   : > { %11296 = vst.msk [vmem:[#allocation2 + $0x108] sm:$0x1] %vm309_vm2, %v11280_v38  ;;  %19975 = vmatmul.mubr.msk.f32.gmra.mrb[74].mxu1 %vm260_vm1, %v25013_v17  ;;  %v11233_v50 = vsel %vm11169_vm14, %v11137_v16, %v11201_v21  ;;  %v11139_v19 = vadd.f32 %v19953_v61, %v24853_v40  ;;  %v11054_v41 = vpop.f32.mrb[61].mxu0  ;;  %v11313_v63 = vld [vmem:[#allocation2 + $0x12f] sm:$0x1] }
 0x8dc   : > { %19977 = vmatprep.mubr.msk.f32.mxu1 %vm260_vm1, %v25019_v62  ;;  %11265 = vst.msk [vmem:[#allocation2 + $0x159] sm:$0xff] %vm260_vm1, %v11233_v50  ;;  %v11232_v59 = vsel %vm11168_vm15, %v11136_v36, %v11200_v54  ;;  %v11138_v60 = vadd.f32 %v24853_v40, %v11054_v41  ;;  %v25035_v36 = vld [vmem:[#allocation2 + $0xa9] sm:$0xff] }
 0x8dd   : > { %v11281_v1 = vld [vmem:[#allocation2 + $0x122] sm:$0x1]  ;;  %11329 = vst.msk [vmem:[#allocation2 + $0x131] sm:$0x1] %vm309_vm2, %v11313_v63  ;;  %vm11171_vm4 = vcmp.ge.f32.partialorder %v11139_v19, 0.0  ;;  %v11203_v16 = vmul.f32 %v11139_v19, %v26732_v13  ;;  %v25231_v42 = vld [vmem:[#allocation2 + $0x128] sm:$0xff] }
 0x8de   : > { %11264 = vst.msk [vmem:[#allocation2 + $0x151] sm:$0xff] %vm260_vm1, %v11232_v59  ;;  %vm11170_vm5 = vcmp.ge.f32.partialorder %v11138_v60, 0.0  ;;  %v11202_v18 = vmul.f32 %v11138_v60, %v26732_v13  ;;  %v19956_v38 = vpop.f32.mrb[62].mxu0  ;;  %v25211_v44 = vld [vmem:[#allocation2 + $0xf0] sm:$0xff] }
 0x8df   : > { %11297 = vst.msk [vmem:[#allocation2 + $0x120] sm:$0x1] %vm309_vm2, %v11281_v1  ;;  %19978 = vmatmul.mubr.msk.f32.gmra.mrb[76].mxu1 %vm260_vm1, %v25029_v0  ;;  %v11235_v21 = vsel %vm11171_vm4, %v11139_v19, %v11203_v16  ;;  %v11141_v54 = vadd.f32 %v19956_v38, %v24853_v40  ;;  %v11064_v61 = vpop.f32.mrb[63].mxu0  ;;  %v11314_v50 = vld [vmem:[#allocation2 + $0x147] sm:$0x1]  ;;  %v25045_v1 = vld [vmem:[#allocation2 + $0xb1] sm:$0xff] }
 0x8e0   : > { %19980 = vmatprep.mubr.msk.f32.mxu1 %vm260_vm1, %v25035_v36  ;;  %11267 = vst.msk [vmem:[#allocation2 + $0x171] sm:$0xff] %vm260_vm1, %v11235_v21  ;;  %v11234_v41 = vsel %vm11170_vm5, %v11138_v60, %v11202_v18  ;;  %v11140_v63 = vadd.f32 %v24853_v40, %v11064_v61  ;;  %v25051_v60 = vld [vmem:[#allocation2 + $0xc1] sm:$0xff]  ;;  %v25058_v61 = vld [vmem:[#allocation2 + $0xc9] sm:$0xff] }
 0x8e1   : > { %v11282_v59 = vld [vmem:[#allocation2 + $0x13a] sm:$0x1]  ;;  %11330 = vst.msk [vmem:[#allocation2 + $0x149] sm:$0x1] %vm309_vm2, %v11314_v50  ;;  %vm11173_vm6 = vcmp.ge.f32.partialorder %v11141_v54, 0.0  ;;  %v11205_v19 = vmul.f32 %v11141_v54, %v26732_v13  ;;  %v25239_v52 = vld [vmem:[#allocation2 + $0x140] sm:$0xff] }
 0x8e2   : > { %11266 = vst.msk [vmem:[#allocation2 + $0x169] sm:$0xff] %vm260_vm1, %v11234_v41  ;;  %vm11172_vm7 = vcmp.ge.f32.partialorder %v11140_v63, 0.0  ;;  %v11204_v16 = vmul.f32 %v11140_v63, %v26732_v13  ;;  %v25063_v13 = vld [vmem:[#allocation2 + $0xd9] sm:$0xff]  ;;  %v25068_v41 = vld [vmem:[#allocation2 + $0xe1] sm:$0xff] }
 0x8e3   : > { %11298 = vst.msk [vmem:[#allocation2 + $0x138] sm:$0x1] %vm309_vm2, %v11282_v59  ;;  %19981 = vmatmul.mubr.msk.f32.gmra.mrb[78].mxu1 %vm260_vm1, %v25045_v1  ;;  %v11237_v40 = vsel %vm11173_vm6, %v11141_v54, %v11205_v19  ;;  %v11315_v18 = vld [vmem:[#allocation2 + $0x15f] sm:$0x1]  ;;  %v25075_v59 = vld [vmem:[#allocation2 + $0xf1] sm:$0xff]  ;;  %v25219_v25 = vld [vmem:[#allocation2 + $0x108] sm:$0xff] }
 0x8e4   : > { %19983 = vmatprep.mubr.msk.f32.mxu1 %vm260_vm1, %v25051_v60  ;;  %11269 = vst.msk [vmem:[#allocation2 + $0x189] sm:$0xff] %vm260_vm1, %v11237_v40  ;;  %v11236_v38 = vsel %vm11172_vm7, %v11140_v63, %v11204_v16  ;;  %v25082_v40 = vld [vmem:[#allocation2 + $0xf9] sm:$0xff] }
 0x8e5   : > { %v11283_v21 = vld [vmem:[#allocation2 + $0x152] sm:$0x1]  ;;  %11331 = vst.msk [vmem:[#allocation2 + $0x161] sm:$0x1] %vm309_vm2, %v11315_v18  ;;  %v25087_v18 = vld [vmem:[#allocation2 + $0x109] sm:$0xff]  ;;  %v25120_v37 = vld [vmem:[#allocation2 + $0x159] sm:$0xff] }
 0x8e6   : > { %11268 = vst.msk [vmem:[#allocation2 + $0x181] sm:$0xff] %vm260_vm1, %v11236_v38  ;;  %v25116_v14 = vld [vmem:[#allocation2 + $0x151] sm:$0xff]  ;;  %v25227_v3 = vld [vmem:[#allocation2 + $0x120] sm:$0xff] }
 0x8e7   : > { %11299 = vst.msk [vmem:[#allocation2 + $0x150] sm:$0x1] %vm309_vm2, %v11283_v21  ;;  %19984 = vmatmul.mubr.msk.f32.gmra.mrb[80].mxu1 %vm260_vm1, %v25058_v61  ;;  %v11316_v54 = vld [vmem:[#allocation2 + $0x177] sm:$0x1]  ;;  %v25247_v9 = vld [vmem:[#allocation2 + $0x158] sm:$0xff] }
 0x8e8   : > { %19986 = vmatprep.mubr.msk.f32.mxu1 %vm260_vm1, %v25063_v13  ;;  %11332 = vst.msk [vmem:[#allocation2 + $0x179] sm:$0x1] %vm309_vm2, %v11316_v54  ;;  %v25094_v54 = vld [vmem:[#allocation2 + $0x111] sm:$0xff] }
 0x8e9   : > { %v11284_v50 = vld [vmem:[#allocation2 + $0x16a] sm:$0x1]  ;;  %v25071_v63 = vld [vmem:[#allocation2 + $0x170] sm:$0xff] }
 0x8ea   : > { %11300 = vst.msk [vmem:[#allocation2 + $0x168] sm:$0x1] %vm309_vm2, %v11284_v50  ;;  %v25100_v50 = vld [vmem:[#allocation2 + $0x121] sm:$0xff]  ;;  %v25124_v53 = vld [vmem:[#allocation2 + $0x169] sm:$0xff]  ;;  %v25128_v26 = vld [vmem:[#allocation2 + $0x171] sm:$0xff] }
 0x8eb   : > { %19987 = vmatmul.mubr.msk.f32.gmra.mrb[82].mxu1 %vm260_vm1, %v25068_v41  ;;  %11344 = vst.msk [vmem:[#allocation2 + $0x1a0] sm:$0xff] %vm260_vm1, %v25071_v63  ;;  %v11317_v19 = vld [vmem:[#allocation2 + $0x18f] sm:$0x1]  ;;  %26733 = vst [vmem:[#allocation69_spill] sm:$0xff] %v25124_v53  ;;  %v25235_v5 = vld [vmem:[#allocation2 + $0x138] sm:$0xff] }
 0x8ec   : > { %19989 = vmatprep.mubr.msk.f32.mxu1 %vm260_vm1, %v25075_v59  ;;  %11333 = vst.msk [vmem:[#allocation2 + $0x191] sm:$0x1] %vm309_vm2, %v11317_v19  ;;  %v25104_v19 = vld [vmem:[#allocation2 + $0x129] sm:$0xff]  ;;  %26734 = vst [vmem:[#allocation70_spill] sm:$0xff] %v25128_v26 }
 0x8ed   : > { %v11285_v16 = vld [vmem:[#allocation2 + $0x182] sm:$0x1] }
 0x8ee   : > { %11301 = vst.msk [vmem:[#allocation2 + $0x180] sm:$0x1] %vm309_vm2, %v11285_v16  ;;  %v25108_v16 = vld [vmem:[#allocation2 + $0x139] sm:$0xff]  ;;  %v25243_v6 = vld [vmem:[#allocation2 + $0x150] sm:$0xff] }
 0x8ef   : > { %19990 = vmatmul.mubr.msk.f32.gmra.mrb[84].mxu1 %vm260_vm1, %v25082_v40  ;;  %v11342_v38 = vld [vmem:[#allocation2 + $0x178] sm:$0x3] }
 0x8f0   : > { %19992 = vmatprep.mubr.msk.f32.mxu1 %vm260_vm1, %v25087_v18  ;;  %11345 = vst.msk [vmem:[#allocation2 + $0x1a8] sm:$0x3] %vm364_vm3, %v11342_v38  ;;  %v25112_v38 = vld [vmem:[#allocation2 + $0x141] sm:$0xff] }
 0x8f1   : > { %v25091_v21 = vld [vmem:[#allocation2 + $0x168] sm:$0xff] }
 0x8f2   : > { %11343 = vst.msk [vmem:[#allocation2 + $0x198] sm:$0xff] %vm260_vm1, %v25091_v21 }
 0x8f3   : > { %19993 = vmatmul.mubr.msk.f32.gmra.mrb[86].mxu1 %vm260_vm1, %v25094_v54 }
 0x8f4   : > { %19995 = vmatprep.mubr.msk.f32.mxu1 %vm260_vm1, %v25100_v50 }
 0x8f7   : > { %19996 = vmatmul.mubr.msk.f32.gmra.mrb[88].mxu1 %vm260_vm1, %v25104_v19 }
 0x8f8   : > { %19998 = vmatprep.mubr.msk.f32.mxu1 %vm260_vm1, %v25108_v16 }
 0x8fb   : > { %19999 = vmatmul.mubr.msk.f32.gmra.mrb[90].mxu1 %vm260_vm1, %v25112_v38 }
 0x8fc   : > { %20001 = vmatprep.mubr.msk.f32.mxu1 %vm260_vm1, %v25116_v14 }
 0x8ff   : > { %20002 = vmatmul.mubr.msk.f32.gmra.mrb[92].mxu1 %vm260_vm1, %v25120_v37 }
 0x900   : > { %20004 = vmatprep.mubr.msk.f32.mxu1 %vm260_vm1, %v25124_v53  ;;  %v25274_v53 = vld [vmem:[#allocation2 + $0x32] sm:$0xff] }
 0x901   : > { %26737 = vst [vmem:[#allocation73_spill] sm:$0xff] %v25274_v53 }
 0x903   : > { %20005 = vmatmul.mubr.msk.f32.gmra.mrb[94].mxu1 %vm260_vm1, %v25128_v26  ;;  %v25262_v26 = vld [vmem:[#allocation2 + $0x1a] sm:$0xff] }
 0x904   : > { %20009 = vmatprep.mubr.msk.f32.mxu1 %vm260_vm1, %v11347_v12  ;;  %v25147_v12 = vld [vmem:[#allocation2 + $0x20] sm:$0xff]  ;;  %26735 = vst [vmem:[#allocation71_spill] sm:$0xff] %v25262_v26 }
 0x907   : > { %20010 = vmatmul.mubr.msk.f32.vlgmr.msra.gmra.mrb[64].mxu1 %vm260_vm1, %v11348_v22  ;;  %v25155_v22 = vld [vmem:[#allocation2 + $0x48] sm:$0xff] }
 0x908   : > { %20058 = vmatpush3.msk.msra.mxu1 %vm536_vm0, %v24929_v7  ;;  %20012 = vmatprep.mubr.msk.f32.mxu1 %vm260_vm1, %v25139_v28  ;;  %v25159_v7 = vld [vmem:[#allocation2 + $0x50] sm:$0xff] }
 0x909   : > { %20107 = vmatprep.subr.msk.mxu1 %vm536_vm0, %v25136_v10 }
 0x90b   : > { %20013 = vmatmul.mubr.msk.f32.gmra.mrb[66].mxu1 %vm260_vm1, %v25147_v12 }
 0x90c   : > { %20015 = vmatprep.mubr.msk.f32.mxu1 %vm260_vm1, %v24902_v57 }
 0x90f   : > { %20016 = vmatmul.mubr.msk.f32.gmra.mrb[68].mxu1 %vm260_vm1, %v24882_v35 }
 0x910   : > { %20018 = vmatprep.mubr.msk.f32.mxu1 %vm260_vm1, %v25155_v22 }
 0x913   : > { %20019 = vmatmul.mubr.msk.f32.gmra.mrb[70].mxu1 %vm260_vm1, %v25159_v7 }
 0x914   : > { %20021 = vmatprep.mubr.msk.f32.mxu1 %vm260_vm1, %v25163_v51 }
 0x917   : > { %20022 = vmatmul.mubr.msk.f32.gmra.mrb[72].mxu1 %vm260_vm1, %v25167_v39 }
 0x918   : > { %20024 = vmatprep.mubr.msk.f32.mxu1 %vm260_vm1, %v25171_v23 }
 0x91b   : > { %20025 = vmatmul.mubr.msk.f32.gmra.mrb[74].mxu1 %vm260_vm1, %v25175_v31 }
 0x91c   : > { %20027 = vmatprep.mubr.msk.f32.mxu1 %vm260_vm1, %v25179_v2 }
 0x91f   : > { %20028 = vmatmul.mubr.msk.f32.gmra.mrb[76].mxu1 %vm260_vm1, %v25183_v27 }
 0x920   : > { %20030 = vmatprep.mubr.msk.f32.mxu1 %vm260_vm1, %v25187_v32 }
 0x923   : > { %20031 = vmatmul.mubr.msk.f32.gmra.mrb[78].mxu1 %vm260_vm1, %v25191_v11 }
 0x924   : > { %20033 = vmatprep.mubr.msk.f32.mxu1 %vm260_vm1, %v25195_v47 }
 0x927   : > { %20034 = vmatmul.mubr.msk.f32.gmra.mrb[80].mxu1 %vm260_vm1, %v25199_v15 }
 0x928   : > { %20036 = vmatprep.mubr.msk.f32.mxu1 %vm260_vm1, %v25203_v48 }
 0x92b   : > { %20037 = vmatmul.mubr.msk.f32.gmra.mrb[82].mxu1 %vm260_vm1, %v25207_v24 }
 0x92c   : > { %20039 = vmatprep.mubr.msk.f32.mxu1 %vm260_vm1, %v25211_v44 }
 0x92f   : > { %20040 = vmatmul.mubr.msk.f32.gmra.mrb[84].mxu1 %vm260_vm1, %v25215_v43 }
 0x930   : > { %20042 = vmatprep.mubr.msk.f32.mxu1 %vm260_vm1, %v25219_v25 }
 0x933   : > { %20043 = vmatmul.mubr.msk.f32.gmra.mrb[86].mxu1 %vm260_vm1, %v25223_v58 }
 0x934   : > { %20045 = vmatprep.mubr.msk.f32.mxu1 %vm260_vm1, %v25227_v3 }
 0x937   : > { %20046 = vmatmul.mubr.msk.f32.gmra.mrb[88].mxu1 %vm260_vm1, %v25231_v42 }
 0x938   : > { %20048 = vmatprep.mubr.msk.f32.mxu1 %vm260_vm1, %v25235_v5 }
 0x93b   : > { %20049 = vmatmul.mubr.msk.f32.gmra.mrb[90].mxu1 %vm260_vm1, %v25239_v52 }
 0x93c   : > { %20051 = vmatprep.mubr.msk.f32.mxu1 %vm260_vm1, %v25243_v6 }
 0x93f   : > { %20052 = vmatmul.mubr.msk.f32.gmra.mrb[92].mxu1 %vm260_vm1, %v25247_v9 }
 0x940   : > { %20054 = vmatprep.mubr.msk.f32.mxu1 %vm260_vm1, %v25091_v21 }
 0x943   : > { %20055 = vmatmul.mubr.msk.f32.gmra.mrb[94].mxu1 %vm260_vm1, %v25071_v63 }
 0x944   : > { %20059 = vmatprep.mubr.msk.f32.mxu1 %vm260_vm1, %v12061_v29  ;;  %v25270_v29 = vld [vmem:[#allocation2 + $0x22] sm:$0xff] }
 0x945   : > { %26736 = vst [vmem:[#allocation72_spill] sm:$0xff] %v25270_v29 }
 0x947   : > { %20060 = vmatmul.mubr.msk.f32.vlgmr.msra.gmra.mrb[64].mxu1 %vm260_vm1, %v12062_v34  ;;  %v25278_v34 = vld [vmem:[#allocation2 + $0x3a] sm:$0xff] }
 0x948   : > { %20108 = vmatpush3.msk.msra.mxu1 %vm536_vm0, %v25136_v10  ;;  %20062 = vmatprep.mubr.msk.f32.mxu1 %vm260_vm1, %v25262_v26  ;;  %26738 = vst [vmem:[#allocation74_spill] sm:$0xff] %v25278_v34  ;;  %v25282_v10 = vld [vmem:[#allocation2 + $0x4a] sm:$0xff]  ;;  %v25286_v26 = vld [vmem:[#allocation2 + $0x52] sm:$0xff] }
 0x949   : > { %20157 = vmatprep.subr.msk.mxu1 %vm536_vm0, %v25259_v49  ;;  %26739 = vst [vmem:[#allocation75_spill] sm:$0xff] %v25282_v10  ;;  %26740 = vst [vmem:[#allocation76_spill] sm:$0xff] %v25286_v26 }
 0x94b   : > { %20063 = vmatmul.mubr.msk.f32.gmra.mrb[66].mxu1 %vm260_vm1, %v25270_v29  ;;  %v25290_v29 = vld [vmem:[#allocation2 + $0x62] sm:$0xff] }
 0x94c   : > { %20065 = vmatprep.mubr.msk.f32.mxu1 %vm260_vm1, %v25274_v53  ;;  %26741 = vst [vmem:[#allocation77_spill] sm:$0xff] %v25290_v29  ;;  %v25294_v53 = vld [vmem:[#allocation2 + $0x6a] sm:$0xff] }
 0x94d   : > { %26742 = vst [vmem:[#allocation78_spill] sm:$0xff] %v25294_v53 }
 0x94f   : > { %20066 = vmatmul.mubr.msk.f32.gmra.mrb[68].mxu1 %vm260_vm1, %v25278_v34  ;;  %v25298_v34 = vld [vmem:[#allocation2 + $0x7a] sm:$0xff] }
 0x950   : > { %20068 = vmatprep.mubr.msk.f32.mxu1 %vm260_vm1, %v25282_v10  ;;  %26743 = vst [vmem:[#allocation79_spill] sm:$0xff] %v25298_v34  ;;  %v25302_v10 = vld [vmem:[#allocation2 + $0x82] sm:$0xff] }
 0x951   : > { %26744 = vst [vmem:[#allocation80_spill] sm:$0xff] %v25302_v10 }
 0x953   : > { %20069 = vmatmul.mubr.msk.f32.gmra.mrb[70].mxu1 %vm260_vm1, %v25286_v26  ;;  %v25306_v26 = vld [vmem:[#allocation2 + $0x92] sm:$0xff] }
 0x954   : > { %20071 = vmatprep.mubr.msk.f32.mxu1 %vm260_vm1, %v25290_v29  ;;  %26745 = vst [vmem:[#allocation81_spill] sm:$0xff] %v25306_v26  ;;  %v25310_v29 = vld [vmem:[#allocation2 + $0x9a] sm:$0xff] }
 0x955   : > { %26746 = vst [vmem:[#allocation82_spill] sm:$0xff] %v25310_v29 }
 0x957   : > { %20072 = vmatmul.mubr.msk.f32.gmra.mrb[72].mxu1 %vm260_vm1, %v25294_v53  ;;  %v25314_v53 = vld [vmem:[#allocation2 + $0xaa] sm:$0xff] }
 0x958   : > { %20074 = vmatprep.mubr.msk.f32.mxu1 %vm260_vm1, %v25298_v34  ;;  %26747 = vst [vmem:[#allocation83_spill] sm:$0xff] %v25314_v53  ;;  %v25318_v34 = vld [vmem:[#allocation2 + $0xb2] sm:$0xff] }
 0x959   : > { %26748 = vst [vmem:[#allocation84_spill] sm:$0xff] %v25318_v34 }
 0x95b   : > { %20075 = vmatmul.mubr.msk.f32.gmra.mrb[74].mxu1 %vm260_vm1, %v25302_v10  ;;  %v25322_v10 = vld [vmem:[#allocation2 + $0xc2] sm:$0xff] }
 0x95c   : > { %20077 = vmatprep.mubr.msk.f32.mxu1 %vm260_vm1, %v25306_v26  ;;  %26749 = vst [vmem:[#allocation85_spill] sm:$0xff] %v25322_v10  ;;  %v25326_v26 = vld [vmem:[#allocation2 + $0xca] sm:$0xff] }
 0x95d   : > { %26750 = vst [vmem:[#allocation86_spill] sm:$0xff] %v25326_v26 }
 0x95f   : > { %20078 = vmatmul.mubr.msk.f32.gmra.mrb[76].mxu1 %vm260_vm1, %v25310_v29  ;;  %v25330_v29 = vld [vmem:[#allocation2 + $0xda] sm:$0xff] }
 0x960   : > { %20080 = vmatprep.mubr.msk.f32.mxu1 %vm260_vm1, %v25314_v53  ;;  %26751 = vst [vmem:[#allocation87_spill] sm:$0xff] %v25330_v29  ;;  %v25334_v53 = vld [vmem:[#allocation2 + $0xe2] sm:$0xff] }
 0x961   : > { %26752 = vst [vmem:[#allocation88_spill] sm:$0xff] %v25334_v53 }
 0x963   : > { %20081 = vmatmul.mubr.msk.f32.gmra.mrb[78].mxu1 %vm260_vm1, %v25318_v34  ;;  %v25338_v34 = vld [vmem:[#allocation2 + $0xf2] sm:$0xff] }
 0x964   : > { %20083 = vmatprep.mubr.msk.f32.mxu1 %vm260_vm1, %v25322_v10  ;;  %26753 = vst [vmem:[#allocation89_spill] sm:$0xff] %v25338_v34  ;;  %v25342_v10 = vld [vmem:[#allocation2 + $0xfa] sm:$0xff] }
 0x965   : > { %26754 = vst [vmem:[#allocation90_spill] sm:$0xff] %v25342_v10 }
 0x967   : > { %20084 = vmatmul.mubr.msk.f32.gmra.mrb[80].mxu1 %vm260_vm1, %v25326_v26  ;;  %v25346_v26 = vld [vmem:[#allocation2 + $0x10a] sm:$0xff] }
 0x968   : > { %20086 = vmatprep.mubr.msk.f32.mxu1 %vm260_vm1, %v25330_v29  ;;  %26755 = vst [vmem:[#allocation91_spill] sm:$0xff] %v25346_v26  ;;  %v25350_v29 = vld [vmem:[#allocation2 + $0x112] sm:$0xff] }
 0x969   : > { %26756 = vst [vmem:[#allocation92_spill] sm:$0xff] %v25350_v29 }
 0x96b   : > { %20087 = vmatmul.mubr.msk.f32.gmra.mrb[82].mxu1 %vm260_vm1, %v25334_v53  ;;  %v25354_v53 = vld [vmem:[#allocation2 + $0x122] sm:$0xff] }
 0x96c   : > { %20089 = vmatprep.mubr.msk.f32.mxu1 %vm260_vm1, %v25338_v34  ;;  %26757 = vst [vmem:[#allocation93_spill] sm:$0xff] %v25354_v53  ;;  %v25358_v34 = vld [vmem:[#allocation2 + $0x12a] sm:$0xff] }
 0x96d   : > { %26758 = vst [vmem:[#allocation94_spill] sm:$0xff] %v25358_v34 }
 0x96f   : > { %20090 = vmatmul.mubr.msk.f32.gmra.mrb[84].mxu1 %vm260_vm1, %v25342_v10  ;;  %v25362_v10 = vld [vmem:[#allocation2 + $0x13a] sm:$0xff] }
 0x970   : > { %20092 = vmatprep.mubr.msk.f32.mxu1 %vm260_vm1, %v25346_v26  ;;  %26759 = vst [vmem:[#allocation95_spill] sm:$0xff] %v25362_v10  ;;  %v25366_v26 = vld [vmem:[#allocation2 + $0x142] sm:$0xff] }
 0x973   : > { %20093 = vmatmul.mubr.msk.f32.gmra.mrb[86].mxu1 %vm260_vm1, %v25350_v29  ;;  %v25370_v29 = vld [vmem:[#allocation2 + $0x152] sm:$0xff] }
 0x974   : > { %20095 = vmatprep.mubr.msk.f32.mxu1 %vm260_vm1, %v25354_v53  ;;  %26760 = vst [vmem:[#allocation96_spill] sm:$0xff] %v25370_v29  ;;  %v25374_v53 = vld [vmem:[#allocation2 + $0x15a] sm:$0xff] }
 0x977   : > { %20096 = vmatmul.mubr.msk.f32.gmra.mrb[88].mxu1 %vm260_vm1, %v25358_v34  ;;  %v25378_v34 = vld [vmem:[#allocation2 + $0x16a] sm:$0xff] }
 0x978   : > { %20098 = vmatprep.mubr.msk.f32.mxu1 %vm260_vm1, %v25362_v10  ;;  %v25382_v10 = vld [vmem:[#allocation2 + $0x172] sm:$0xff] }
 0x97b   : > { %20099 = vmatmul.mubr.msk.f32.gmra.mrb[90].mxu1 %vm260_vm1, %v25366_v26 }
 0x97c   : > { %20101 = vmatprep.mubr.msk.f32.mxu1 %vm260_vm1, %v25370_v29  ;;  %v13227_v29 = vld [vmem:[%s26085_s1 + $0x80] sm:$0xf] }
 0x97f   : > { %20102 = vmatmul.mubr.msk.f32.gmra.mrb[92].mxu1 %vm260_vm1, %v25374_v53 }
 0x980   : > { %20104 = vmatprep.mubr.msk.f32.mxu1 %vm260_vm1, %v25378_v34 }
 0x983   : > { %20105 = vmatmul.mubr.msk.f32.gmra.mrb[94].mxu1 %vm260_vm1, %v25382_v10 }
 0x984   : > { %20109 = vmatprep.mubr.msk.f32.mxu1 %vm260_vm1, %v25139_v28  ;;  %v25456_v28 = vld [vmem:[#allocation2 + $0x188] sm:$0xff] }
 0x987   : > { %20110 = vmatmul.mubr.msk.f32.vlgmr.msra.gmra.mrb[64].mxu1 %vm260_vm1, %v25147_v12  ;;  %v26787_v12 = vld [vmem:[#allocation95_spill] sm:$0xff] }
 0x988   : > { %20158 = vmatpush3.msk.msra.mxu1 %vm536_vm0, %v25259_v49  ;;  %20112 = vmatprep.mubr.msk.f32.mxu1 %vm260_vm1, %v24902_v57  ;;  %v25452_v49 = vld [vmem:[#allocation2 + $0x180] sm:$0xff]  ;;  %v26761_v57 = vld [vmem:[#allocation69_spill] sm:$0xff] }
 0x989   : > { %20207 = vmatprep.subr.msk.mxu1 %vm536_vm0, %v13227_v29 }
 0x98b   : > { %20113 = vmatmul.mubr.msk.f32.gmra.mrb[66].mxu1 %vm260_vm1, %v24882_v35  ;;  %v13616_v35 = vld [vmem:[%s26085_s1 + $0x84] sm:$0xf] }
 0x98c   : > { %20115 = vmatprep.mubr.msk.f32.mxu1 %vm260_vm1, %v25155_v22 }
 0x98f   : > { %20116 = vmatmul.mubr.msk.f32.gmra.mrb[68].mxu1 %vm260_vm1, %v25159_v7 }
 0x990   : > { %20118 = vmatprep.mubr.msk.f32.mxu1 %vm260_vm1, %v25163_v51 }
 0x993   : > { %20119 = vmatmul.mubr.msk.f32.gmra.mrb[70].mxu1 %vm260_vm1, %v25167_v39 }
 0x994   : > { %20121 = vmatprep.mubr.msk.f32.mxu1 %vm260_vm1, %v25171_v23 }
 0x997   : > { %20122 = vmatmul.mubr.msk.f32.gmra.mrb[72].mxu1 %vm260_vm1, %v25175_v31 }
 0x998   : > { %20124 = vmatprep.mubr.msk.f32.mxu1 %vm260_vm1, %v25179_v2 }
 0x99b   : > { %20125 = vmatmul.mubr.msk.f32.gmra.mrb[74].mxu1 %vm260_vm1, %v25183_v27 }
 0x99c   : > { %20127 = vmatprep.mubr.msk.f32.mxu1 %vm260_vm1, %v25187_v32 }
 0x99f   : > { %20128 = vmatmul.mubr.msk.f32.gmra.mrb[76].mxu1 %vm260_vm1, %v25191_v11 }
 0x9a0   : > { %20130 = vmatprep.mubr.msk.f32.mxu1 %vm260_vm1, %v25195_v47 }
 0x9a3   : > { %20131 = vmatmul.mubr.msk.f32.gmra.mrb[78].mxu1 %vm260_vm1, %v25199_v15 }
 0x9a4   : > { %20133 = vmatprep.mubr.msk.f32.mxu1 %vm260_vm1, %v25203_v48 }
 0x9a7   : > { %20134 = vmatmul.mubr.msk.f32.gmra.mrb[80].mxu1 %vm260_vm1, %v25207_v24 }
 0x9a8   : > { %20136 = vmatprep.mubr.msk.f32.mxu1 %vm260_vm1, %v25211_v44 }
 0x9ab   : > { %20137 = vmatmul.mubr.msk.f32.gmra.mrb[82].mxu1 %vm260_vm1, %v25215_v43 }
 0x9ac   : > { %20139 = vmatprep.mubr.msk.f32.mxu1 %vm260_vm1, %v25219_v25 }
 0x9af   : > { %20140 = vmatmul.mubr.msk.f32.gmra.mrb[84].mxu1 %vm260_vm1, %v25223_v58 }
 0x9b0   : > { %20142 = vmatprep.mubr.msk.f32.mxu1 %vm260_vm1, %v25227_v3 }
 0x9b3   : > { %20143 = vmatmul.mubr.msk.f32.gmra.mrb[86].mxu1 %vm260_vm1, %v25231_v42 }
 0x9b4   : > { %20145 = vmatprep.mubr.msk.f32.mxu1 %vm260_vm1, %v25235_v5 }
 0x9b7   : > { %20146 = vmatmul.mubr.msk.f32.gmra.mrb[88].mxu1 %vm260_vm1, %v25239_v52 }
 0x9b8   : > { %20148 = vmatprep.mubr.msk.f32.mxu1 %vm260_vm1, %v25243_v6 }
 0x9bb   : > { %20149 = vmatmul.mubr.msk.f32.gmra.mrb[90].mxu1 %vm260_vm1, %v25247_v9 }
 0x9bc   : > { %20151 = vmatprep.mubr.msk.f32.mxu1 %vm260_vm1, %v25091_v21 }
 0x9bf   : > { %20152 = vmatmul.mubr.msk.f32.gmra.mrb[92].mxu1 %vm260_vm1, %v25071_v63 }
 0x9c0   : > { %20154 = vmatprep.mubr.msk.f32.mxu1 %vm260_vm1, %v25452_v49 }
 0x9c3   : > { %20155 = vmatmul.mubr.msk.f32.gmra.mrb[94].mxu1 %vm260_vm1, %v25456_v28 }
 0x9c4   : > { %20159 = vmatprep.mubr.msk.f32.mxu1 %vm260_vm1, %v24933_v20  ;;  %v26762_v20 = vld [vmem:[#allocation70_spill] sm:$0xff] }
 0x9c7   : > { %20160 = vmatmul.mubr.msk.f32.vlgmr.msra.gmra.mrb[64].mxu1 %vm260_vm1, %v24947_v45  ;;  %v25525_v45 = vld [vmem:[#allocation2 + $0x181] sm:$0xff] }
 0x9c8   : > { %20208 = vmatpush3.msk.msra.mxu1 %vm536_vm0, %v13227_v29  ;;  %20162 = vmatprep.mubr.msk.f32.mxu1 %vm260_vm1, %v24953_v30  ;;  %v25529_v30 = vld [vmem:[#allocation2 + $0x189] sm:$0xff] }
 0x9c9   : > { %20257 = vmatprep.subr.msk.mxu1 %vm536_vm0, %v13616_v35  ;;  %v26788_v29 = vld [vmem:[#allocation96_spill] sm:$0xff] }
 0x9cb   : > { %20163 = vmatmul.mubr.msk.f32.gmra.mrb[66].mxu1 %vm260_vm1, %v24965_v4  ;;  %v26764_v4 = vld [vmem:[#allocation72_spill] sm:$0xff] }
 0x9cc   : > { %20165 = vmatprep.mubr.msk.f32.mxu1 %vm260_vm1, %v24971_v55  ;;  %v26765_v55 = vld [vmem:[#allocation73_spill] sm:$0xff] }
 0x9cf   : > { %20166 = vmatmul.mubr.msk.f32.gmra.mrb[68].mxu1 %vm260_vm1, %v24981_v33  ;;  %v26766_v33 = vld [vmem:[#allocation74_spill] sm:$0xff] }
 0x9d0   : > { %20168 = vmatprep.mubr.msk.f32.mxu1 %vm260_vm1, %v24987_v46  ;;  %v26767_v46 = vld [vmem:[#allocation75_spill] sm:$0xff] }
 0x9d3   : > { %20169 = vmatmul.mubr.msk.f32.gmra.mrb[70].mxu1 %vm260_vm1, %v24997_v56  ;;  %v26768_v56 = vld [vmem:[#allocation76_spill] sm:$0xff] }
 0x9d4   : > { %20171 = vmatprep.mubr.msk.f32.mxu1 %vm260_vm1, %v25003_v8  ;;  %v26769_v8 = vld [vmem:[#allocation77_spill] sm:$0xff] }
 0x9d7   : > { %20172 = vmatmul.mubr.msk.f32.gmra.mrb[72].mxu1 %vm260_vm1, %v25013_v17  ;;  %v26770_v17 = vld [vmem:[#allocation78_spill] sm:$0xff] }
 0x9d8   : > { %20174 = vmatprep.mubr.msk.f32.mxu1 %vm260_vm1, %v25019_v62  ;;  %v26771_v62 = vld [vmem:[#allocation79_spill] sm:$0xff] }
 0x9db   : > { %20175 = vmatmul.mubr.msk.f32.gmra.mrb[74].mxu1 %vm260_vm1, %v25029_v0  ;;  %v26772_v0 = vld [vmem:[#allocation80_spill] sm:$0xff] }
 0x9dc   : > { %20177 = vmatprep.mubr.msk.f32.mxu1 %vm260_vm1, %v25035_v36  ;;  %v26773_v36 = vld [vmem:[#allocation81_spill] sm:$0xff] }
 0x9df   : > { %20178 = vmatmul.mubr.msk.f32.gmra.mrb[76].mxu1 %vm260_vm1, %v25045_v1  ;;  %v26774_v1 = vld [vmem:[#allocation82_spill] sm:$0xff] }
 0x9e0   : > { %20180 = vmatprep.mubr.msk.f32.mxu1 %vm260_vm1, %v25051_v60  ;;  %v26775_v60 = vld [vmem:[#allocation83_spill] sm:$0xff] }
 0x9e3   : > { %20181 = vmatmul.mubr.msk.f32.gmra.mrb[78].mxu1 %vm260_vm1, %v25058_v61  ;;  %v26776_v61 = vld [vmem:[#allocation84_spill] sm:$0xff] }
 0x9e4   : > { %20183 = vmatprep.mubr.msk.f32.mxu1 %vm260_vm1, %v25063_v13  ;;  %v26777_v13 = vld [vmem:[#allocation85_spill] sm:$0xff] }
 0x9e7   : > { %20184 = vmatmul.mubr.msk.f32.gmra.mrb[80].mxu1 %vm260_vm1, %v25068_v41  ;;  %v26778_v41 = vld [vmem:[#allocation86_spill] sm:$0xff] }
 0x9e8   : > { %20186 = vmatprep.mubr.msk.f32.mxu1 %vm260_vm1, %v25075_v59  ;;  %v26779_v59 = vld [vmem:[#allocation87_spill] sm:$0xff] }
 0x9eb   : > { %20187 = vmatmul.mubr.msk.f32.gmra.mrb[82].mxu1 %vm260_vm1, %v25082_v40  ;;  %v26780_v40 = vld [vmem:[#allocation88_spill] sm:$0xff] }
 0x9ec   : > { %20189 = vmatprep.mubr.msk.f32.mxu1 %vm260_vm1, %v25087_v18  ;;  %v26781_v18 = vld [vmem:[#allocation89_spill] sm:$0xff] }
 0x9ef   : > { %20190 = vmatmul.mubr.msk.f32.gmra.mrb[84].mxu1 %vm260_vm1, %v25094_v54  ;;  %v26782_v54 = vld [vmem:[#allocation90_spill] sm:$0xff] }
 0x9f0   : > { %20192 = vmatprep.mubr.msk.f32.mxu1 %vm260_vm1, %v25100_v50  ;;  %v26783_v50 = vld [vmem:[#allocation91_spill] sm:$0xff] }
 0x9f3   : > { %20193 = vmatmul.mubr.msk.f32.gmra.mrb[86].mxu1 %vm260_vm1, %v25104_v19  ;;  %v26784_v19 = vld [vmem:[#allocation92_spill] sm:$0xff] }
 0x9f4   : > { %20195 = vmatprep.mubr.msk.f32.mxu1 %vm260_vm1, %v25108_v16  ;;  %v26785_v16 = vld [vmem:[#allocation93_spill] sm:$0xff] }
 0x9f7   : > { %20196 = vmatmul.mubr.msk.f32.gmra.mrb[88].mxu1 %vm260_vm1, %v25112_v38  ;;  %v26786_v38 = vld [vmem:[#allocation94_spill] sm:$0xff] }
 0x9f8   : > { %20198 = vmatprep.mubr.msk.f32.mxu1 %vm260_vm1, %v25116_v14  ;;  %v26763_v14 = vld [vmem:[#allocation71_spill] sm:$0xff] }
 0x9fb   : > { %20199 = vmatmul.mubr.msk.f32.gmra.mrb[90].mxu1 %vm260_vm1, %v25120_v37  ;;  %v14005_v37 = vld [vmem:[%s26085_s1 + $0x88] sm:$0xf] }
 0x9fc   : > { %20201 = vmatprep.mubr.msk.f32.mxu1 %vm260_vm1, %v26761_v57  ;;  %v25602_v57 = vld [vmem:[#allocation2 + $0x18a] sm:$0xff] }
 0x9ff   : > { %20202 = vmatmul.mubr.msk.f32.gmra.mrb[92].mxu1 %vm260_vm1, %v26762_v20  ;;  %v13617_v20 = vld [vmem:[#allocation2 + $0x30] sm:$0xff] }
 0xa00   : > { %20204 = vmatprep.mubr.msk.f32.mxu1 %vm260_vm1, %v25525_v45 }
 0xa03   : > { %20205 = vmatmul.mubr.msk.f32.gmra.mrb[94].mxu1 %vm260_vm1, %v25529_v30 }
 0xa04   : > { %20209 = vmatprep.mubr.msk.f32.mxu1 %vm260_vm1, %v26763_v14  ;;  %v13618_v14 = vld [vmem:[#allocation2 + $0x38] sm:$0xff] }
 0xa07   : > { %20210 = vmatmul.mubr.msk.f32.vlgmr.msra.gmra.mrb[64].mxu1 %vm260_vm1, %v26764_v4  ;;  %v14394_v4 = vld [vmem:[%s26085_s1 + $0x8c] sm:$0xf] }
 0xa08   : > { %20258 = vmatpush3.msk.msra.mxu1 %vm536_vm0, %v13616_v35  ;;  %20212 = vmatprep.mubr.msk.f32.mxu1 %vm260_vm1, %v26765_v55  ;;  %v25598_v35 = vld [vmem:[#allocation2 + $0x182] sm:$0xff] }
 0xa09   : > { %20307 = vmatprep.subr.msk.mxu1 %vm536_vm0, %v14005_v37 }
 0xa0b   : > { %20213 = vmatmul.mubr.msk.f32.gmra.mrb[66].mxu1 %vm260_vm1, %v26766_v33 }
 0xa0c   : > { %20215 = vmatprep.mubr.msk.f32.mxu1 %vm260_vm1, %v26767_v46 }
 0xa0f   : > { %20216 = vmatmul.mubr.msk.f32.gmra.mrb[68].mxu1 %vm260_vm1, %v26768_v56 }
 0xa10   : > { %20218 = vmatprep.mubr.msk.f32.mxu1 %vm260_vm1, %v26769_v8 }
 0xa13   : > { %20219 = vmatmul.mubr.msk.f32.gmra.mrb[70].mxu1 %vm260_vm1, %v26770_v17 }
 0xa14   : > { %20221 = vmatprep.mubr.msk.f32.mxu1 %vm260_vm1, %v26771_v62 }
 0xa17   : > { %20222 = vmatmul.mubr.msk.f32.gmra.mrb[72].mxu1 %vm260_vm1, %v26772_v0 }
 0xa18   : > { %20224 = vmatprep.mubr.msk.f32.mxu1 %vm260_vm1, %v26773_v36 }
 0xa1b   : > { %20225 = vmatmul.mubr.msk.f32.gmra.mrb[74].mxu1 %vm260_vm1, %v26774_v1 }
 0xa1c   : > { %20227 = vmatprep.mubr.msk.f32.mxu1 %vm260_vm1, %v26775_v60 }
 0xa1f   : > { %20228 = vmatmul.mubr.msk.f32.gmra.mrb[76].mxu1 %vm260_vm1, %v26776_v61 }
 0xa20   : > { %20230 = vmatprep.mubr.msk.f32.mxu1 %vm260_vm1, %v26777_v13 }
 0xa23   : > { %20231 = vmatmul.mubr.msk.f32.gmra.mrb[78].mxu1 %vm260_vm1, %v26778_v41 }
 0xa24   : > { %20233 = vmatprep.mubr.msk.f32.mxu1 %vm260_vm1, %v26779_v59 }
 0xa27   : > { %20234 = vmatmul.mubr.msk.f32.gmra.mrb[80].mxu1 %vm260_vm1, %v26780_v40 }
 0xa28   : > { %20236 = vmatprep.mubr.msk.f32.mxu1 %vm260_vm1, %v26781_v18 }
 0xa2b   : > { %20237 = vmatmul.mubr.msk.f32.gmra.mrb[82].mxu1 %vm260_vm1, %v26782_v54 }
 0xa2c   : > { %20239 = vmatprep.mubr.msk.f32.mxu1 %vm260_vm1, %v26783_v50 }
 0xa2f   : > { %20240 = vmatmul.mubr.msk.f32.gmra.mrb[84].mxu1 %vm260_vm1, %v26784_v19 }
 0xa30   : > { %20242 = vmatprep.mubr.msk.f32.mxu1 %vm260_vm1, %v26785_v16 }
 0xa33   : > { %20243 = vmatmul.mubr.msk.f32.gmra.mrb[86].mxu1 %vm260_vm1, %v26786_v38 }
 0xa34   : > { %20245 = vmatprep.mubr.msk.f32.mxu1 %vm260_vm1, %v26787_v12 }
 0xa37   : > { %20246 = vmatmul.mubr.msk.f32.gmra.mrb[88].mxu1 %vm260_vm1, %v25366_v26 }
 0xa38   : > { %20248 = vmatprep.mubr.msk.f32.mxu1 %vm260_vm1, %v26788_v29 }
 0xa3b   : > { %20249 = vmatmul.mubr.msk.f32.gmra.mrb[90].mxu1 %vm260_vm1, %v25374_v53 }
 0xa3c   : > { %20251 = vmatprep.mubr.msk.f32.mxu1 %vm260_vm1, %v25378_v34 }
 0xa3f   : > { %20252 = vmatmul.mubr.msk.f32.gmra.mrb[92].mxu1 %vm260_vm1, %v25382_v10 }
 0xa40   : > { %20254 = vmatprep.mubr.msk.f32.mxu1 %vm260_vm1, %v25598_v35 }
 0xa43   : > { %20255 = vmatmul.mubr.msk.f32.gmra.mrb[94].mxu1 %vm260_vm1, %v25602_v57 }
 0xa44   : > { %20259 = vmatprep.mubr.msk.f32.mxu1 %vm260_vm1, %v13617_v20  ;;  %v14019_v20 = vld [vmem:[#allocation2 + $0xc9] sm:$0xff] }
 0xa47   : > { %20260 = vmatmul.mubr.msk.f32.vlgmr.msra.gmra.mrb[64].mxu1 %vm260_vm1, %v13618_v14  ;;  %v26801_v14 = vld [vmem:[#allocation17_spill] sm:$0xff] }
 0xa48   : > { %20308 = vmatpush3.msk.msra.mxu1 %vm536_vm0, %v14005_v37  ;;  %20262 = vmatprep.mubr.msk.f32.mxu1 %vm260_vm1, %v25155_v22  ;;  %v26798_v22 = vld [vmem:[#allocation14_spill] sm:$0xff]  ;;  %v26800_v37 = vld [vmem:[#allocation16_spill] sm:$0xff] }
 0xa49   : > { %20357 = vmatprep.subr.msk.mxu1 %vm536_vm0, %v14394_v4 }
 0xa4b   : > { %20263 = vmatmul.mubr.msk.f32.gmra.mrb[66].mxu1 %vm260_vm1, %v25159_v7  ;;  %v14017_v7 = vld [vmem:[#allocation2 + $0xb1] sm:$0xff] }
 0xa4c   : > { %20265 = vmatprep.mubr.msk.f32.mxu1 %vm260_vm1, %v25163_v51  ;;  %v14015_v51 = vld [vmem:[#allocation2 + $0x99] sm:$0xff] }
 0xa4f   : > { %20266 = vmatmul.mubr.msk.f32.gmra.mrb[68].mxu1 %vm260_vm1, %v25167_v39  ;;  %v26796_v39 = vld [vmem:[#allocation12_spill] sm:$0xff] }
 0xa50   : > { %20268 = vmatprep.mubr.msk.f32.mxu1 %vm260_vm1, %v25171_v23  ;;  %v14014_v23 = vld [vmem:[#allocation2 + $0x91] sm:$0xff] }
 0xa53   : > { %20269 = vmatmul.mubr.msk.f32.gmra.mrb[70].mxu1 %vm260_vm1, %v25175_v31  ;;  %v26795_v31 = vld [vmem:[#allocation11_spill] sm:$0xff] }
 0xa54   : > { %20271 = vmatprep.mubr.msk.f32.mxu1 %vm260_vm1, %v25179_v2  ;;  %v14013_v2 = vld [vmem:[#allocation2 + $0x81] sm:$0xff] }
 0xa57   : > { %20272 = vmatmul.mubr.msk.f32.gmra.mrb[72].mxu1 %vm260_vm1, %v25183_v27  ;;  %v26794_v27 = vld [vmem:[#allocation10_spill] sm:$0xff] }
 0xa58   : > { %20274 = vmatprep.mubr.msk.f32.mxu1 %vm260_vm1, %v25187_v32  ;;  %v14012_v32 = vld [vmem:[#allocation2 + $0x79] sm:$0xff] }
 0xa5b   : > { %20275 = vmatmul.mubr.msk.f32.gmra.mrb[74].mxu1 %vm260_vm1, %v25191_v11  ;;  %v26793_v11 = vld [vmem:[#allocation9_spill] sm:$0xff] }
 0xa5c   : > { %20277 = vmatprep.mubr.msk.f32.mxu1 %vm260_vm1, %v25195_v47  ;;  %v14011_v47 = vld [vmem:[#allocation2 + $0x69] sm:$0xff] }
 0xa5f   : > { %20278 = vmatmul.mubr.msk.f32.gmra.mrb[76].mxu1 %vm260_vm1, %v25199_v15  ;;  %v26792_v15 = vld [vmem:[#allocation8_spill] sm:$0xff] }
 0xa60   : > { %20280 = vmatprep.mubr.msk.f32.mxu1 %vm260_vm1, %v25203_v48  ;;  %v14010_v48 = vld [vmem:[#allocation2 + $0x61] sm:$0xff] }
 0xa63   : > { %20281 = vmatmul.mubr.msk.f32.gmra.mrb[78].mxu1 %vm260_vm1, %v25207_v24  ;;  %v26791_v24 = vld [vmem:[#allocation5_spill] sm:$0xff] }
 0xa64   : > { %20283 = vmatprep.mubr.msk.f32.mxu1 %vm260_vm1, %v25211_v44  ;;  %v14009_v44 = vld [vmem:[#allocation2 + $0x51] sm:$0xff] }
 0xa67   : > { %20284 = vmatmul.mubr.msk.f32.gmra.mrb[80].mxu1 %vm260_vm1, %v25215_v43  ;;  %v26790_v43 = vld [vmem:[#allocation4_spill] sm:$0xff] }
 0xa68   : > { %20286 = vmatprep.mubr.msk.f32.mxu1 %vm260_vm1, %v25219_v25  ;;  %v14008_v25 = vld [vmem:[#allocation2 + $0x49] sm:$0xff] }
 0xa6b   : > { %20287 = vmatmul.mubr.msk.f32.gmra.mrb[82].mxu1 %vm260_vm1, %v25223_v58  ;;  %v26789_v58 = vld [vmem:[#allocation7_spill] sm:$0xff] }
 0xa6c   : > { %20289 = vmatprep.mubr.msk.f32.mxu1 %vm260_vm1, %v25227_v3  ;;  %v14007_v3 = vld [vmem:[#allocation2 + $0x39] sm:$0xff] }
 0xa6f   : > { %20290 = vmatmul.mubr.msk.f32.gmra.mrb[84].mxu1 %vm260_vm1, %v25231_v42  ;;  %v15502_v42 = vld [vmem:[%s26086_s2 + $0x8] sm:$0xf] }
 0xa70   : > { %20292 = vmatprep.mubr.msk.f32.mxu1 %vm260_vm1, %v25235_v5  ;;  %v13647_v5 = vld [vmem:[#allocation2 + $0x198] sm:$0xff] }
 0xa73   : > { %20293 = vmatmul.mubr.msk.f32.gmra.mrb[86].mxu1 %vm260_vm1, %v25239_v52  ;;  %v13648_v52 = vld [vmem:[#allocation2 + $0x1a0] sm:$0xff] }
 0xa74   : > { %20295 = vmatprep.mubr.msk.f32.mxu1 %vm260_vm1, %v25243_v6  ;;  %v14006_v6 = vld [vmem:[#allocation2 + $0x31] sm:$0xff] }
 0xa77   : > { %20296 = vmatmul.mubr.msk.f32.gmra.mrb[88].mxu1 %vm260_vm1, %v25247_v9  ;;  %v14852_v9 = vld [vmem:[%s26086_s2] sm:$0xf] }
 0xa78   : > { %20298 = vmatprep.mubr.msk.f32.mxu1 %vm260_vm1, %v25091_v21  ;;  %20457 = vmatprep.subr.msk.mxu0 %vm536_vm0, %v14852_v9  ;;  %v14016_v21 = vld [vmem:[#allocation2 + $0xa9] sm:$0xff] }
 0xa79   : > { %20458 = vmatpush3.msk.msra.mxu0 %vm536_vm0, %v14852_v9  ;;  %v14022_v9 = vld [vmem:[#allocation2 + $0xf1] sm:$0xff] }
 0xa7a   : > { %20507 = vmatprep.subr.msk.mxu0 %vm536_vm0, %v15502_v42  ;;  %20460 = vmatmul.mubr.msk.f32.vlgmr.msra.gmra.mrb[64].mxu0 %vm260_vm1, %v26789_v58 }
 0xa7b   : > { %20299 = vmatmul.mubr.msk.f32.gmra.mrb[90].mxu1 %vm260_vm1, %v25071_v63  ;;  %20508 = vmatpush3.msk.msra.mxu0 %vm536_vm0, %v15502_v42  ;;  %v26797_v63 = vld [vmem:[#allocation13_spill] sm:$0xff]  ;;  %v26804_v42 = vld [vmem:[#allocation20_spill] sm:$0xff] }
 0xa7c   : > { %20301 = vmatprep.mubr.msk.f32.mxu1 %vm260_vm1, %v25452_v49  ;;  %20462 = vmatprep.mubr.msk.f32.mxu0 %vm260_vm1, %v26790_v43  ;;  %v26799_v49 = vld [vmem:[#allocation15_spill] sm:$0xff] }
 0xa7e   : > { %20463 = vmatmul.mubr.msk.f32.gmra.mrb[66].mxu0 %vm260_vm1, %v26791_v24 }
 0xa7f   : > { %20302 = vmatmul.mubr.msk.f32.gmra.mrb[92].mxu1 %vm260_vm1, %v25456_v28  ;;  %20465 = vmatprep.mubr.msk.f32.mxu0 %vm260_vm1, %v26792_v15  ;;  %v14018_v28 = vld [vmem:[#allocation2 + $0xc1] sm:$0xff] }
 0xa80   : > { %20304 = vmatprep.mubr.msk.f32.mxu1 %vm260_vm1, %v13647_v5  ;;  %v26802_v5 = vld [vmem:[#allocation18_spill] sm:$0xff] }
 0xa82   : > { %20466 = vmatmul.mubr.msk.f32.gmra.mrb[68].mxu0 %vm260_vm1, %v26793_v11 }
 0xa83   : > { %20305 = vmatmul.mubr.msk.f32.gmra.mrb[94].mxu1 %vm260_vm1, %v13648_v52  ;;  %20468 = vmatprep.mubr.msk.f32.mxu0 %vm260_vm1, %v26794_v27  ;;  %v14021_v52 = vld [vmem:[#allocation2 + $0xe1] sm:$0xff] }
 0xa84   : > { %20309 = vmatprep.mubr.msk.f32.mxu1 %vm260_vm1, %v14006_v6  ;;  %v26803_v6 = vld [vmem:[#allocation19_spill] sm:$0xff] }
 0xa86   : > { %20469 = vmatmul.mubr.msk.f32.gmra.mrb[70].mxu0 %vm260_vm1, %v26795_v31 }
 0xa87   : > { %20310 = vmatmul.mubr.msk.f32.vlgmr.msra.gmra.mrb[64].mxu1 %vm260_vm1, %v14007_v3  ;;  %20471 = vmatprep.mubr.msk.f32.mxu0 %vm260_vm1, %v26796_v39  ;;  %v14023_v3 = vld [vmem:[#allocation2 + $0xf9] sm:$0xff] }
 0xa88   : > { %20358 = vmatpush3.msk.msra.mxu1 %vm536_vm0, %v14394_v4  ;;  %20312 = vmatprep.mubr.msk.f32.mxu1 %vm260_vm1, %v14008_v25  ;;  %v14020_v4 = vld [vmem:[#allocation2 + $0xd9] sm:$0xff] }
 0xa89   : > { %v26805_v25 = vld [vmem:[#allocation21_spill] sm:$0xff] }
 0xa8a   : > { %20472 = vmatmul.mubr.msk.f32.gmra.mrb[72].mxu0 %vm260_vm1, %v26797_v63 }
 0xa8b   : > { %20313 = vmatmul.mubr.msk.f32.gmra.mrb[66].mxu1 %vm260_vm1, %v14009_v44  ;;  %20474 = vmatprep.mubr.msk.f32.mxu0 %vm260_vm1, %v26798_v22  ;;  %v14024_v44 = vld [vmem:[#allocation2 + $0x109] sm:$0xff] }
 0xa8c   : > { %20315 = vmatprep.mubr.msk.f32.mxu1 %vm260_vm1, %v14010_v48  ;;  %v26806_v48 = vld [vmem:[#allocation22_spill] sm:$0xff] }
 0xa8e   : > { %20475 = vmatmul.mubr.msk.f32.gmra.mrb[74].mxu0 %vm260_vm1, %v26799_v49 }
 0xa8f   : > { %20316 = vmatmul.mubr.msk.f32.gmra.mrb[68].mxu1 %vm260_vm1, %v14011_v47  ;;  %20477 = vmatprep.mubr.msk.f32.mxu0 %vm260_vm1, %v26800_v37  ;;  %v14025_v47 = vld [vmem:[#allocation2 + $0x111] sm:$0xff] }
 0xa90   : > { %20318 = vmatprep.mubr.msk.f32.mxu1 %vm260_vm1, %v14012_v32  ;;  %v26807_v32 = vld [vmem:[#allocation23_spill] sm:$0xff] }
 0xa92   : > { %20478 = vmatmul.mubr.msk.f32.gmra.mrb[76].mxu0 %vm260_vm1, %v26801_v14 }
 0xa93   : > { %20319 = vmatmul.mubr.msk.f32.gmra.mrb[70].mxu1 %vm260_vm1, %v14013_v2  ;;  %20480 = vmatprep.mubr.msk.f32.mxu0 %vm260_vm1, %v26802_v5  ;;  %v14026_v2 = vld [vmem:[#allocation2 + $0x121] sm:$0xff] }
 0xa94   : > { %20321 = vmatprep.mubr.msk.f32.mxu1 %vm260_vm1, %v14014_v23  ;;  %v26808_v23 = vld [vmem:[#allocation24_spill] sm:$0xff] }
 0xa96   : > { %20481 = vmatmul.mubr.msk.f32.gmra.mrb[78].mxu0 %vm260_vm1, %v26803_v6 }
 0xa97   : > { %20322 = vmatmul.mubr.msk.f32.gmra.mrb[72].mxu1 %vm260_vm1, %v14015_v51  ;;  %20483 = vmatprep.mubr.msk.f32.mxu0 %vm260_vm1, %v26804_v42  ;;  %v14027_v51 = vld [vmem:[#allocation2 + $0x129] sm:$0xff] }
 0xa98   : > { %20324 = vmatprep.mubr.msk.f32.mxu1 %vm260_vm1, %v14016_v21  ;;  %v26809_v21 = vld [vmem:[#allocation25_spill] sm:$0xff] }
 0xa9a   : > { %20484 = vmatmul.mubr.msk.f32.gmra.mrb[80].mxu0 %vm260_vm1, %v26805_v25 }
 0xa9b   : > { %20325 = vmatmul.mubr.msk.f32.gmra.mrb[74].mxu1 %vm260_vm1, %v14017_v7  ;;  %20486 = vmatprep.mubr.msk.f32.mxu0 %vm260_vm1, %v26806_v48  ;;  %v14028_v7 = vld [vmem:[#allocation2 + $0x139] sm:$0xff] }
 0xa9c   : > { %20327 = vmatprep.mubr.msk.f32.mxu1 %vm260_vm1, %v14018_v28  ;;  %v26810_v28 = vld [vmem:[#allocation26_spill] sm:$0xff] }
 0xa9e   : > { %20487 = vmatmul.mubr.msk.f32.gmra.mrb[82].mxu0 %vm260_vm1, %v26807_v32 }
 0xa9f   : > { %20328 = vmatmul.mubr.msk.f32.gmra.mrb[76].mxu1 %vm260_vm1, %v14019_v20  ;;  %20489 = vmatprep.mubr.msk.f32.mxu0 %vm260_vm1, %v26808_v23  ;;  %v14029_v20 = vld [vmem:[#allocation2 + $0x141] sm:$0xff] }
 0xaa0   : > { %20330 = vmatprep.mubr.msk.f32.mxu1 %vm260_vm1, %v14020_v4  ;;  %v26811_v4 = vld [vmem:[#allocation27_spill] sm:$0xff] }
 0xaa2   : > { %20490 = vmatmul.mubr.msk.f32.gmra.mrb[84].mxu0 %vm260_vm1, %v26809_v21 }
 0xaa3   : > { %20331 = vmatmul.mubr.msk.f32.gmra.mrb[78].mxu1 %vm260_vm1, %v14021_v52  ;;  %20492 = vmatprep.mubr.msk.f32.mxu0 %vm260_vm1, %v26810_v28  ;;  %v14030_v52 = vld [vmem:[#allocation2 + $0x151] sm:$0xff] }
 0xaa4   : > { %20333 = vmatprep.mubr.msk.f32.mxu1 %vm260_vm1, %v14022_v9  ;;  %v26812_v9 = vld [vmem:[#allocation28_spill] sm:$0xff] }
 0xaa6   : > { %20493 = vmatmul.mubr.msk.f32.gmra.mrb[86].mxu0 %vm260_vm1, %v26811_v4 }
 0xaa7   : > { %20334 = vmatmul.mubr.msk.f32.gmra.mrb[80].mxu1 %vm260_vm1, %v14023_v3  ;;  %20495 = vmatprep.mubr.msk.f32.mxu0 %vm260_vm1, %v26812_v9  ;;  %v14031_v3 = vld [vmem:[#allocation2 + $0x159] sm:$0xff] }
 0xaa8   : > { %20336 = vmatprep.mubr.msk.f32.mxu1 %vm260_vm1, %v14024_v44  ;;  %v26813_v44 = vld [vmem:[#allocation29_spill] sm:$0xff] }
 0xaaa   : > { %20496 = vmatmul.mubr.msk.f32.gmra.mrb[88].mxu0 %vm260_vm1, %v26813_v44 }
 0xaab   : > { %20337 = vmatmul.mubr.msk.f32.gmra.mrb[82].mxu1 %vm260_vm1, %v14025_v47  ;;  %v14032_v47 = vld [vmem:[#allocation2 + $0x169] sm:$0xff] }
 0xaac   : > { %20339 = vmatprep.mubr.msk.f32.mxu1 %vm260_vm1, %v14026_v2  ;;  %v26814_v2 = vld [vmem:[#allocation30_spill] sm:$0xff] }
 0xaad   : > { %20498 = vmatprep.mubr.msk.f32.mxu0 %vm260_vm1, %v26814_v2  ;;  %v14037_v2 = vld [vmem:[#allocation2 + $0x1a1] sm:$0xff] }
 0xaaf   : > { %20340 = vmatmul.mubr.msk.f32.gmra.mrb[84].mxu1 %vm260_vm1, %v14027_v51  ;;  %v14033_v51 = vld [vmem:[#allocation2 + $0x171] sm:$0xff] }
 0xab0   : > { %20342 = vmatprep.mubr.msk.f32.mxu1 %vm260_vm1, %v14028_v7  ;;  %v26815_v7 = vld [vmem:[#allocation31_spill] sm:$0xff] }
 0xab1   : > { %20499 = vmatmul.mubr.msk.f32.gmra.mrb[90].mxu0 %vm260_vm1, %v26815_v7 }
 0xab3   : > { %20343 = vmatmul.mubr.msk.f32.gmra.mrb[86].mxu1 %vm260_vm1, %v14029_v20  ;;  %v26816_v20 = vld [vmem:[#allocation32_spill] sm:$0xff] }
 0xab4   : > { %20345 = vmatprep.mubr.msk.f32.mxu1 %vm260_vm1, %v14030_v52  ;;  %20501 = vmatprep.mubr.msk.f32.mxu0 %vm260_vm1, %v26816_v20  ;;  %v26817_v52 = vld [vmem:[#allocation33_spill] sm:$0xff] }
 0xab5   : > { %20502 = vmatmul.mubr.msk.f32.gmra.mrb[92].mxu0 %vm260_vm1, %v26817_v52 }
 0xab7   : > { %20346 = vmatmul.mubr.msk.f32.gmra.mrb[88].mxu1 %vm260_vm1, %v14031_v3  ;;  %v14036_v3 = vld [vmem:[#allocation2 + $0x199] sm:$0xff] }
 0xab8   : > { %20348 = vmatprep.mubr.msk.f32.mxu1 %vm260_vm1, %v14032_v47  ;;  %v26818_v47 = vld [vmem:[#allocation35_spill] sm:$0xff] }
 0xab9   : > { %20504 = vmatprep.mubr.msk.f32.mxu0 %vm260_vm1, %v26818_v47 }
 0xabb   : > { %20349 = vmatmul.mubr.msk.f32.gmra.mrb[90].mxu1 %vm260_vm1, %v14033_v51  ;;  %v26819_v51 = vld [vmem:[#allocation40_spill] sm:$0xff] }
 0xabc   : > { %20351 = vmatprep.mubr.msk.f32.mxu1 %vm260_vm1, %v25525_v45  ;;  %20505 = vmatmul.mubr.msk.f32.gmra.mrb[94].mxu0 %vm260_vm1, %v26819_v51  ;;  %v14425_v45 = vld [vmem:[#allocation2 + $0x19a] sm:$0xff] }
 0xabf   : > { %20352 = vmatmul.mubr.msk.f32.gmra.mrb[92].mxu1 %vm260_vm1, %v25529_v30 }
 0xac0   : > { %20354 = vmatprep.mubr.msk.f32.mxu1 %vm260_vm1, %v14036_v3 }
 0xac3   : > { %20355 = vmatmul.mubr.msk.f32.gmra.mrb[94].mxu1 %vm260_vm1, %v14037_v2 }
 0xac4   : > { %20359 = vmatprep.mubr.msk.f32.mxu1 %vm260_vm1, %v26765_v55 }
 0xac7   : > { %20360 = vmatmul.mubr.msk.f32.vlgmr.msra.gmra.mrb[64].mxu1 %vm260_vm1, %v26766_v33  ;;  %v26820_v33 = vld [vmem:[#allocation61_spill] sm:$0xff] }
 0xac8   : > { %20362 = vmatprep.mubr.msk.f32.mxu1 %vm260_vm1, %v26767_v46 }
 0xacb   : > { %20363 = vmatmul.mubr.msk.f32.gmra.mrb[66].mxu1 %vm260_vm1, %v26768_v56 }
 0xacc   : > { %20365 = vmatprep.mubr.msk.f32.mxu1 %vm260_vm1, %v26769_v8  ;;  %v26821_v8 = vld [vmem:[#allocation60_spill] sm:$0xff] }
 0xacf   : > { %20366 = vmatmul.mubr.msk.f32.gmra.mrb[68].mxu1 %vm260_vm1, %v26770_v17 }
 0xad0   : > { %20368 = vmatprep.mubr.msk.f32.mxu1 %vm260_vm1, %v26771_v62 }
 0xad3   : > { %20369 = vmatmul.mubr.msk.f32.gmra.mrb[70].mxu1 %vm260_vm1, %v26772_v0 }
 0xad4   : > { %20371 = vmatprep.mubr.msk.f32.mxu1 %vm260_vm1, %v26773_v36 }
 0xad7   : > { %20372 = vmatmul.mubr.msk.f32.gmra.mrb[72].mxu1 %vm260_vm1, %v26774_v1  ;;  %v26822_v1 = vld [vmem:[#allocation63_spill] sm:$0xff] }
 0xad8   : > { %20374 = vmatprep.mubr.msk.f32.mxu1 %vm260_vm1, %v26775_v60 }
 0xadb   : > { %20375 = vmatmul.mubr.msk.f32.gmra.mrb[74].mxu1 %vm260_vm1, %v26776_v61 }
 0xadc   : > { %20377 = vmatprep.mubr.msk.f32.mxu1 %vm260_vm1, %v26777_v13  ;;  %v26823_v13 = vld [vmem:[#allocation34_spill] sm:$0xff] }
 0xadf   : > { %20378 = vmatmul.mubr.msk.f32.gmra.mrb[76].mxu1 %vm260_vm1, %v26778_v41 }
 0xae0   : > { %20380 = vmatprep.mubr.msk.f32.mxu1 %vm260_vm1, %v26779_v59 }
 0xae3   : > { %20381 = vmatmul.mubr.msk.f32.gmra.mrb[78].mxu1 %vm260_vm1, %v26780_v40 }
 0xae4   : > { %20383 = vmatprep.mubr.msk.f32.mxu1 %vm260_vm1, %v26781_v18 }
 0xae7   : > { %20384 = vmatmul.mubr.msk.f32.gmra.mrb[80].mxu1 %vm260_vm1, %v26782_v54  ;;  %v26824_v54 = vld [vmem:[#allocation64_spill] sm:$0xff] }
 0xae8   : > { %20386 = vmatprep.mubr.msk.f32.mxu1 %vm260_vm1, %v26783_v50 }
 0xaeb   : > { %20387 = vmatmul.mubr.msk.f32.gmra.mrb[82].mxu1 %vm260_vm1, %v26784_v19 }
 0xaec   : > { %20389 = vmatprep.mubr.msk.f32.mxu1 %vm260_vm1, %v26785_v16  ;;  %v26825_v16 = vld [vmem:[#allocation36_spill] sm:$0xff] }
 0xaef   : > { %20390 = vmatmul.mubr.msk.f32.gmra.mrb[84].mxu1 %vm260_vm1, %v26786_v38 }
 0xaf0   : > { %20392 = vmatprep.mubr.msk.f32.mxu1 %vm260_vm1, %v26787_v12 }
 0xaf3   : > { %20393 = vmatmul.mubr.msk.f32.gmra.mrb[86].mxu1 %vm260_vm1, %v25366_v26  ;;  %v14426_v26 = vld [vmem:[#allocation2 + $0x1a2] sm:$0xff] }
 0xaf4   : > { %20395 = vmatprep.mubr.msk.f32.mxu1 %vm260_vm1, %v26788_v29 }
 0xaf7   : > { %20396 = vmatmul.mubr.msk.f32.gmra.mrb[88].mxu1 %vm260_vm1, %v25374_v53  ;;  %v25843_v53 = vld [vmem:[%s26087_s3 + $0x3] ss:$0 sm:$0xff] }
 0xaf8   : > { %20398 = vmatprep.mubr.msk.f32.mxu1 %vm260_vm1, %v25378_v34 }
 0xafb   : > { %20399 = vmatmul.mubr.msk.f32.gmra.mrb[90].mxu1 %vm260_vm1, %v25382_v10 }
 0xafc   : > { %20401 = vmatprep.mubr.msk.f32.mxu1 %vm260_vm1, %v25598_v35 }
 0xaff   : > { %20402 = vmatmul.mubr.msk.f32.gmra.mrb[92].mxu1 %vm260_vm1, %v25602_v57  ;;  %v26826_v57 = vld [vmem:[#allocation38_spill] sm:$0xff] }
 0xb00   : > { %20404 = vmatprep.mubr.msk.f32.mxu1 %vm260_vm1, %v14425_v45  ;;  %v26827_v45 = vld [vmem:[#allocation37_spill] sm:$0xff] }
 0xb03   : > { %20405 = vmatmul.mubr.msk.f32.gmra.mrb[94].mxu1 %vm260_vm1, %v14426_v26 }
 0xb9a   : > { %v20361_v34 = vpop.f32.mrb[64].mxu1 }
 0xb9b   : > { %v14789_v10 = vadd.f32 %v20361_v34, %v25843_v53  ;;  %v14592_v30 = vpop.f32.mrb[65].mxu1 }
 0xb9c   : > { %v14788_v55 = vadd.f32 %v25843_v53, %v14592_v30 }
 0xb9d   : > { %v14821_v17 = vadd.f32 %v14789_v10, %v26821_v8 }
 0xb9e   : > { %v14820_v46 = vadd.f32 %v14788_v55, %v26820_v33  ;;  %v20364_v56 = vpop.f32.mrb[66].mxu1  ;;  %v26828_v55 = vld [vmem:[#allocation39_spill] sm:$0xff] }
 0xb9f   : > { %v14791_v62 = vadd.f32 %v20364_v56, %v25843_v53  ;;  %v14602_v0 = vpop.f32.mrb[67].mxu1  ;;  %v26829_v56 = vld [vmem:[#allocation65_spill] sm:$0xff] }
 0xba0   : > { %v14790_v36 = vadd.f32 %v25843_v53, %v14602_v0  ;;  %20509 = vmatprep.mubr.msk.f32.mxu0 %vm260_vm1, %v14820_v46 }
 0xba1   : > { %20510 = vmatmul.mubr.msk.f32.vlgmr.msra.gmra.mrb[64].mxu0 %vm260_vm1, %v14821_v17  ;;  %v14823_v41 = vadd.f32 %v14791_v62, %v26823_v13 }
 0xba2   : > { %v14822_v60 = vadd.f32 %v14790_v36, %v26822_v1  ;;  %v20367_v61 = vpop.f32.mrb[68].mxu1  ;;  %v26830_v36 = vld [vmem:[#allocation66_spill] sm:$0xff] }
 0xba3   : > { %v14793_v59 = vadd.f32 %v20367_v61, %v25843_v53  ;;  %v14612_v40 = vpop.f32.mrb[69].mxu1  ;;  %v26831_v61 = vld [vmem:[#allocation41_spill] sm:$0xff] }
 0xba4   : > { %v14792_v18 = vadd.f32 %v25843_v53, %v14612_v40  ;;  %20512 = vmatprep.mubr.msk.f32.mxu0 %vm260_vm1, %v14822_v60 }
 0xba5   : > { %20513 = vmatmul.mubr.msk.f32.gmra.mrb[66].mxu0 %vm260_vm1, %v14823_v41  ;;  %v14825_v38 = vadd.f32 %v14793_v59, %v26825_v16 }
 0xba6   : > { %v14824_v50 = vadd.f32 %v14792_v18, %v26824_v54  ;;  %v20370_v19 = vpop.f32.mrb[70].mxu1  ;;  %v26832_v18 = vld [vmem:[#allocation45_spill] sm:$0xff] }
 0xba7   : > { %v14795_v12 = vadd.f32 %v20370_v19, %v25843_v53  ;;  %v14622_v29 = vpop.f32.mrb[71].mxu1  ;;  %v26833_v19 = vld [vmem:[#allocation43_spill] sm:$0xff] }
 0xba8   : > { %v14794_v35 = vadd.f32 %v25843_v53, %v14622_v29  ;;  %20515 = vmatprep.mubr.msk.f32.mxu0 %vm260_vm1, %v14824_v50 }
 0xba9   : > { %20516 = vmatmul.mubr.msk.f32.gmra.mrb[68].mxu0 %vm260_vm1, %v14825_v38  ;;  %v14827_v26 = vadd.f32 %v14795_v12, %v26827_v45 }
 0xbaa   : > { %v14826_v2 = vadd.f32 %v14794_v35, %v26826_v57  ;;  %v20373_v3 = vpop.f32.mrb[72].mxu1  ;;  %v26834_v35 = vld [vmem:[#allocation47_spill] sm:$0xff] }
 0xbab   : > { %v14797_v34 = vadd.f32 %v20373_v3, %v25843_v53  ;;  %v14632_v10 = vpop.f32.mrb[73].mxu1  ;;  %v26835_v3 = vld [vmem:[#allocation46_spill] sm:$0xff] }
 0xbac   : > { %v14796_v30 = vadd.f32 %v25843_v53, %v14632_v10  ;;  %20518 = vmatprep.mubr.msk.f32.mxu0 %vm260_vm1, %v14826_v2 }
 0xbad   : > { %20519 = vmatmul.mubr.msk.f32.gmra.mrb[70].mxu0 %vm260_vm1, %v14827_v26  ;;  %v14829_v8 = vadd.f32 %v14797_v34, %v26829_v56 }
 0xbae   : > { %v14828_v33 = vadd.f32 %v14796_v30, %v26828_v55  ;;  %v20376_v46 = vpop.f32.mrb[74].mxu1  ;;  %v26836_v30 = vld [vmem:[#allocation49_spill] sm:$0xff] }
 0xbaf   : > { %v14799_v17 = vadd.f32 %v20376_v46, %v25843_v53  ;;  %v14642_v62 = vpop.f32.mrb[75].mxu1  ;;  %v26837_v46 = vld [vmem:[#allocation48_spill] sm:$0xff] }
 0xbb0   : > { %v14798_v0 = vadd.f32 %v25843_v53, %v14642_v62  ;;  %20521 = vmatprep.mubr.msk.f32.mxu0 %vm260_vm1, %v14828_v33 }
 0xbb1   : > { %20522 = vmatmul.mubr.msk.f32.gmra.mrb[72].mxu0 %vm260_vm1, %v14829_v8  ;;  %v14831_v13 = vadd.f32 %v14799_v17, %v26831_v61 }
 0xbb2   : > { %v14830_v1 = vadd.f32 %v14798_v0, %v26830_v36  ;;  %v20379_v60 = vpop.f32.mrb[76].mxu1  ;;  %v26838_v0 = vld [vmem:[#allocation51_spill] sm:$0xff] }
 0xbb3   : > { %v14801_v41 = vadd.f32 %v20379_v60, %v25843_v53  ;;  %v14652_v59 = vpop.f32.mrb[77].mxu1  ;;  %v26839_v60 = vld [vmem:[#allocation50_spill] sm:$0xff] }
 0xbb4   : > { %v14800_v40 = vadd.f32 %v25843_v53, %v14652_v59  ;;  %20524 = vmatprep.mubr.msk.f32.mxu0 %vm260_vm1, %v14830_v1 }
 0xbb5   : > { %20525 = vmatmul.mubr.msk.f32.gmra.mrb[74].mxu0 %vm260_vm1, %v14831_v13  ;;  %v14833_v16 = vadd.f32 %v14801_v41, %v26833_v19 }
 0xbb6   : > { %v14832_v54 = vadd.f32 %v14800_v40, %v26832_v18  ;;  %v20382_v50 = vpop.f32.mrb[78].mxu1  ;;  %v26840_v40 = vld [vmem:[#allocation53_spill] sm:$0xff] }
 0xbb7   : > { %v14803_v38 = vadd.f32 %v20382_v50, %v25843_v53  ;;  %v14662_v12 = vpop.f32.mrb[79].mxu1  ;;  %v26841_v50 = vld [vmem:[#allocation52_spill] sm:$0xff] }
 0xbb8   : > { %v14802_v29 = vadd.f32 %v25843_v53, %v14662_v12  ;;  %20527 = vmatprep.mubr.msk.f32.mxu0 %vm260_vm1, %v14832_v54 }
 0xbb9   : > { %20528 = vmatmul.mubr.msk.f32.gmra.mrb[76].mxu0 %vm260_vm1, %v14833_v16  ;;  %v14835_v45 = vadd.f32 %v14803_v38, %v26835_v3 }
 0xbba   : > { %v14834_v57 = vadd.f32 %v14802_v29, %v26834_v35  ;;  %v20385_v2 = vpop.f32.mrb[80].mxu1  ;;  %v26842_v29 = vld [vmem:[#allocation55_spill] sm:$0xff] }
 0xbbb   : > { %v14805_v26 = vadd.f32 %v20385_v2, %v25843_v53  ;;  %v14672_v34 = vpop.f32.mrb[81].mxu1  ;;  %v26843_v2 = vld [vmem:[#allocation54_spill] sm:$0xff] }
 0xbbc   : > { %v14804_v10 = vadd.f32 %v25843_v53, %v14672_v34  ;;  %20530 = vmatprep.mubr.msk.f32.mxu0 %vm260_vm1, %v14834_v57 }
 0xbbd   : > { %20531 = vmatmul.mubr.msk.f32.gmra.mrb[78].mxu0 %vm260_vm1, %v14835_v45  ;;  %v14837_v56 = vadd.f32 %v14805_v26, %v26837_v46 }
 0xbbe   : > { %v14836_v55 = vadd.f32 %v14804_v10, %v26836_v30  ;;  %v20388_v33 = vpop.f32.mrb[82].mxu1  ;;  %v26844_v10 = vld [vmem:[#allocation57_spill] sm:$0xff] }
 0xbbf   : > { %v14807_v8 = vadd.f32 %v20388_v33, %v25843_v53  ;;  %v14682_v17 = vpop.f32.mrb[83].mxu1  ;;  %v26845_v33 = vld [vmem:[#allocation56_spill] sm:$0xff] }
 0xbc0   : > { %v14806_v62 = vadd.f32 %v25843_v53, %v14682_v17  ;;  %20533 = vmatprep.mubr.msk.f32.mxu0 %vm260_vm1, %v14836_v55 }
 0xbc1   : > { %20534 = vmatmul.mubr.msk.f32.gmra.mrb[80].mxu0 %vm260_vm1, %v14837_v56  ;;  %v14839_v61 = vadd.f32 %v14807_v8, %v26839_v60 }
 0xbc2   : > { %v14838_v36 = vadd.f32 %v14806_v62, %v26838_v0  ;;  %v20391_v1 = vpop.f32.mrb[84].mxu1  ;;  %v26846_v62 = vld [vmem:[#allocation59_spill] sm:$0xff] }
 0xbc3   : > { %v14809_v13 = vadd.f32 %v20391_v1, %v25843_v53  ;;  %v14692_v41 = vpop.f32.mrb[85].mxu1  ;;  %v26847_v1 = vld [vmem:[#allocation58_spill] sm:$0xff] }
 0xbc4   : > { %v14808_v59 = vadd.f32 %v25843_v53, %v14692_v41  ;;  %20536 = vmatprep.mubr.msk.f32.mxu0 %vm260_vm1, %v14838_v36 }
 0xbc5   : > { %20537 = vmatmul.mubr.msk.f32.gmra.mrb[82].mxu0 %vm260_vm1, %v14839_v61  ;;  %v14841_v19 = vadd.f32 %v14809_v13, %v26841_v50 }
 0xbc6   : > { %v14840_v18 = vadd.f32 %v14808_v59, %v26840_v40  ;;  %v20394_v54 = vpop.f32.mrb[86].mxu1  ;;  %v26848_v59 = vld [vmem:[#allocation42_spill] sm:$0xff] }
 0xbc7   : > { %v14811_v16 = vadd.f32 %v20394_v54, %v25843_v53  ;;  %v14702_v38 = vpop.f32.mrb[87].mxu1  ;;  %v26849_v54 = vld [vmem:[#allocation44_spill] sm:$0xff] }
 0xbc8   : > { %v14810_v12 = vadd.f32 %v25843_v53, %v14702_v38  ;;  %20539 = vmatprep.mubr.msk.f32.mxu0 %vm260_vm1, %v14840_v18 }
 0xbc9   : > { %20540 = vmatmul.mubr.msk.f32.gmra.mrb[84].mxu0 %vm260_vm1, %v14841_v19  ;;  %v14843_v3 = vadd.f32 %v14811_v16, %v26843_v2  ;;  %v25944_v2 = vld [vmem:[%s26087_s3 + $0x4] ss:$0 sm:$0xff] }
 0xbca   : > { %v14842_v35 = vadd.f32 %v14810_v12, %v26842_v29  ;;  %v20397_v57 = vpop.f32.mrb[88].mxu1  ;;  %v26850_v12 = vld [vmem:[#allocation68_spill] sm:$0xff] }
 0xbcb   : > { %v14813_v45 = vadd.f32 %v20397_v57, %v25843_v53  ;;  %v14712_v26 = vpop.f32.mrb[89].mxu1 }
 0xbcc   : > { %v14812_v34 = vadd.f32 %v25843_v53, %v14712_v26  ;;  %20542 = vmatprep.mubr.msk.f32.mxu0 %vm260_vm1, %v14842_v35  ;;  %v26851_v35 = vld [vmem:[#allocation67_spill] sm:$0xff] }
 0xbcd   : > { %20543 = vmatmul.mubr.msk.f32.gmra.mrb[86].mxu0 %vm260_vm1, %v14843_v3  ;;  %v14845_v46 = vadd.f32 %v14813_v45, %v26845_v33 }
 0xbce   : > { %v14844_v30 = vadd.f32 %v14812_v34, %v26844_v10  ;;  %v20400_v55 = vpop.f32.mrb[90].mxu1  ;;  %v26852_v10 = vld [vmem:[#allocation6_spill] sm:$0xff] }
 0xbcf   : > { %v14815_v56 = vadd.f32 %v20400_v55, %v25843_v53  ;;  %v14722_v8 = vpop.f32.mrb[91].mxu1 }
 0xbd0   : > { %v14814_v17 = vadd.f32 %v25843_v53, %v14722_v8  ;;  %20545 = vmatprep.mubr.msk.f32.mxu0 %vm260_vm1, %v14844_v30 }
 0xbd1   : > { %20546 = vmatmul.mubr.msk.f32.gmra.mrb[88].mxu0 %vm260_vm1, %v14845_v46  ;;  %v14847_v60 = vadd.f32 %v14815_v56, %v26847_v1 }
 0xbd2   : > { %v14846_v0 = vadd.f32 %v14814_v17, %v26846_v62  ;;  %v20403_v36 = vpop.f32.mrb[92].mxu1 }
 0xbd3   : > { %v14817_v61 = vadd.f32 %v20403_v36, %v25843_v53  ;;  %v14732_v13 = vpop.f32.mrb[93].mxu1 }
 0xbd4   : > { %v14816_v41 = vadd.f32 %v25843_v53, %v14732_v13  ;;  %20548 = vmatprep.mubr.msk.f32.mxu0 %vm260_vm1, %v14846_v0 }
 0xbd5   : > { %20549 = vmatmul.mubr.msk.f32.gmra.mrb[90].mxu0 %vm260_vm1, %v14847_v60  ;;  %v14849_v50 = vadd.f32 %v14817_v61, %v26849_v54 }
 0xbd6   : > { %v14848_v40 = vadd.f32 %v14816_v41, %v26848_v59  ;;  %v20406_v18 = vpop.f32.mrb[94].mxu1 }
 0xbd7   : > { %v14819_v19 = vadd.f32 %v20406_v18, %v25843_v53  ;;  %v14742_v16 = vpop.f32.mrb[95].mxu1 }
 0xbd8   : > { %v14818_v38 = vadd.f32 %v25843_v53, %v14742_v16  ;;  %20551 = vmatprep.mubr.msk.f32.mxu0 %vm260_vm1, %v14848_v40 }
 0xbd9   : > { %20552 = vmatmul.mubr.msk.f32.gmra.mrb[92].mxu0 %vm260_vm1, %v14849_v50  ;;  %v14851_v57 = vadd.f32 %v14819_v19, %v26851_v35 }
 0xbda   : > { %v14850_v29 = vadd.f32 %v14818_v38, %v26850_v12 }
 0xbdc   : > { %20554 = vmatprep.mubr.msk.f32.mxu0 %vm260_vm1, %v14850_v29 }
 0xbdd   : > { %20555 = vmatmul.mubr.msk.f32.gmra.mrb[94].mxu0 %vm260_vm1, %v14851_v57 }
 0xc74   : > { %v20511_v3 = vpop.f32.mrb[64].mxu0 }
 0xc75   : > { %v15865_v53 = vadd.f32 %v20511_v3, %v25944_v2  ;;  %v15668_v45 = vpop.f32.mrb[65].mxu0 }
 0xc76   : > { %v15864_v26 = vadd.f32 %v25944_v2, %v15668_v45 }
 0xc77   : > { %v15897_v34 = vadd.f32 %v15865_v53, %v26789_v58 }
 0xc78   : > { %v15896_v30 = vadd.f32 %v15864_v26, %v26852_v10  ;;  %v20514_v55 = vpop.f32.mrb[66].mxu0 }
 0xc79   : > { %15929 = vst.msk [vmem:[%s25952_s4 + $0x8] sm:$0xff] %vm260_vm1, %v15897_v34  ;;  %v15867_v33 = vadd.f32 %v20514_v55, %v25944_v2  ;;  %v15678_v46 = vpop.f32.mrb[67].mxu0 }
 0xc7a   : > { %15928 = vst.msk [vmem:[%s25952_s4] sm:$0xff] %vm260_vm1, %v15896_v30  ;;  %v15866_v56 = vadd.f32 %v25944_v2, %v15678_v46 }
 0xc7b   : > { %v15899_v8 = vadd.f32 %v15867_v33, %v26791_v24 }
 0xc7c   : > { %v15898_v17 = vadd.f32 %v15866_v56, %v26790_v43  ;;  %v20517_v62 = vpop.f32.mrb[68].mxu0 }
 0xc7d   : > { %15931 = vst.msk [vmem:[%s25952_s4 + $0x18] sm:$0xff] %vm260_vm1, %v15899_v8  ;;  %v15869_v58 = vadd.f32 %v20517_v62, %v25944_v2  ;;  %v15688_v0 = vpop.f32.mrb[69].mxu0 }
 0xc7e   : > { %15930 = vst.msk [vmem:[%s25952_s4 + $0x10] sm:$0xff] %vm260_vm1, %v15898_v17  ;;  %v15868_v36 = vadd.f32 %v25944_v2, %v15688_v0 }
 0xc7f   : > { %v15901_v1 = vadd.f32 %v15869_v58, %v26793_v11 }
 0xc80   : > { %v15900_v60 = vadd.f32 %v15868_v36, %v26792_v15  ;;  %v20520_v61 = vpop.f32.mrb[70].mxu0 }
 0xc81   : > { %15933 = vst.msk [vmem:[%s25952_s4 + $0x28] sm:$0xff] %vm260_vm1, %v15901_v1  ;;  %v15871_v43 = vadd.f32 %v20520_v61, %v25944_v2  ;;  %v15698_v24 = vpop.f32.mrb[71].mxu0 }
 0xc82   : > { %15932 = vst.msk [vmem:[%s25952_s4 + $0x20] sm:$0xff] %vm260_vm1, %v15900_v60  ;;  %v15870_v13 = vadd.f32 %v25944_v2, %v15698_v24 }
 0xc83   : > { %v15903_v41 = vadd.f32 %v15871_v43, %v26795_v31 }
 0xc84   : > { %v15902_v59 = vadd.f32 %v15870_v13, %v26794_v27  ;;  %v20523_v40 = vpop.f32.mrb[72].mxu0 }
 0xc85   : > { %15935 = vst.msk [vmem:[%s25952_s4 + $0x38] sm:$0xff] %vm260_vm1, %v15903_v41  ;;  %v15873_v15 = vadd.f32 %v20523_v40, %v25944_v2  ;;  %v15708_v11 = vpop.f32.mrb[73].mxu0 }
 0xc86   : > { %15934 = vst.msk [vmem:[%s25952_s4 + $0x30] sm:$0xff] %vm260_vm1, %v15902_v59  ;;  %v15872_v18 = vadd.f32 %v25944_v2, %v15708_v11 }
 0xc87   : > { %v15905_v54 = vadd.f32 %v15873_v15, %v26797_v63 }
 0xc88   : > { %v15904_v50 = vadd.f32 %v15872_v18, %v26796_v39  ;;  %v20526_v19 = vpop.f32.mrb[74].mxu0  ;;  %v26853_v18 = vld [vmem:[#allocation30_spill] sm:$0xff] }
 0xc89   : > { %15937 = vst.msk [vmem:[%s25952_s4 + $0x48] sm:$0xff] %vm260_vm1, %v15905_v54  ;;  %v15875_v27 = vadd.f32 %v20526_v19, %v25944_v2  ;;  %v15718_v31 = vpop.f32.mrb[75].mxu0 }
 0xc8a   : > { %15936 = vst.msk [vmem:[%s25952_s4 + $0x40] sm:$0xff] %vm260_vm1, %v15904_v50  ;;  %v15874_v16 = vadd.f32 %v25944_v2, %v15718_v31 }
 0xc8b   : > { %v15907_v38 = vadd.f32 %v15875_v27, %v26799_v49 }
 0xc8c   : > { %v15906_v12 = vadd.f32 %v15874_v16, %v26798_v22  ;;  %v20529_v29 = vpop.f32.mrb[76].mxu0 }
 0xc8d   : > { %15939 = vst.msk [vmem:[%s25952_s4 + $0x58] sm:$0xff] %vm260_vm1, %v15907_v38  ;;  %v15877_v39 = vadd.f32 %v20529_v29, %v25944_v2  ;;  %v15728_v63 = vpop.f32.mrb[77].mxu0 }
 0xc8e   : > { %15938 = vst.msk [vmem:[%s25952_s4 + $0x50] sm:$0xff] %vm260_vm1, %v15906_v12  ;;  %v15876_v35 = vadd.f32 %v25944_v2, %v15728_v63 }
 0xc8f   : > { %v15909_v57 = vadd.f32 %v15877_v39, %v26801_v14 }
 0xc90   : > { %v15908_v3 = vadd.f32 %v15876_v35, %v26800_v37  ;;  %v20532_v53 = vpop.f32.mrb[78].mxu0 }
 0xc91   : > { %15941 = vst.msk [vmem:[%s25952_s4 + $0x68] sm:$0xff] %vm260_vm1, %v15909_v57  ;;  %v15879_v22 = vadd.f32 %v20532_v53, %v25944_v2  ;;  %v15738_v49 = vpop.f32.mrb[79].mxu0 }
 0xc92   : > { %15940 = vst.msk [vmem:[%s25952_s4 + $0x60] sm:$0xff] %vm260_vm1, %v15908_v3  ;;  %v15878_v45 = vadd.f32 %v25944_v2, %v15738_v49 }
 0xc93   : > { %v15911_v26 = vadd.f32 %v15879_v22, %v26803_v6 }
 0xc94   : > { %v15910_v34 = vadd.f32 %v15878_v45, %v26802_v5  ;;  %v20535_v10 = vpop.f32.mrb[80].mxu0 }
 0xc95   : > { %15943 = vst.msk [vmem:[%s25952_s4 + $0x78] sm:$0xff] %vm260_vm1, %v15911_v26  ;;  %v15881_v37 = vadd.f32 %v20535_v10, %v25944_v2  ;;  %v15748_v14 = vpop.f32.mrb[81].mxu0 }
 0xc96   : > { %15942 = vst.msk [vmem:[%s25952_s4 + $0x70] sm:$0xff] %vm260_vm1, %v15910_v34  ;;  %v15880_v30 = vadd.f32 %v25944_v2, %v15748_v14 }
 0xc97   : > { %v15913_v55 = vadd.f32 %v15881_v37, %v26805_v25 }
 0xc98   : > { %v15912_v33 = vadd.f32 %v15880_v30, %v26804_v42  ;;  %v20538_v46 = vpop.f32.mrb[82].mxu0 }
 0xc99   : > { %15945 = vst.msk [vmem:[%s25952_s4 + $0x88] sm:$0xff] %vm260_vm1, %v15913_v55  ;;  %v15883_v5 = vadd.f32 %v20538_v46, %v25944_v2  ;;  %v15758_v6 = vpop.f32.mrb[83].mxu0 }
 0xc9a   : > { %15944 = vst.msk [vmem:[%s25952_s4 + $0x80] sm:$0xff] %vm260_vm1, %v15912_v33  ;;  %v15882_v56 = vadd.f32 %v25944_v2, %v15758_v6 }
 0xc9b   : > { %v15915_v8 = vadd.f32 %v15883_v5, %v26807_v32 }
 0xc9c   : > { %v15914_v17 = vadd.f32 %v15882_v56, %v26806_v48  ;;  %v20541_v62 = vpop.f32.mrb[84].mxu0 }
 0xc9d   : > { %15947 = vst.msk [vmem:[%s25952_s4 + $0x98] sm:$0xff] %vm260_vm1, %v15915_v8  ;;  %v15885_v42 = vadd.f32 %v20541_v62, %v25944_v2  ;;  %v15768_v25 = vpop.f32.mrb[85].mxu0 }
 0xc9e   : > { %15946 = vst.msk [vmem:[%s25952_s4 + $0x90] sm:$0xff] %vm260_vm1, %v15914_v17  ;;  %v15884_v58 = vadd.f32 %v25944_v2, %v15768_v25 }
 0xc9f   : > { %v15917_v0 = vadd.f32 %v15885_v42, %v26809_v21 }
 0xca0   : > { %v15916_v36 = vadd.f32 %v15884_v58, %v26808_v23  ;;  %v20544_v1 = vpop.f32.mrb[86].mxu0 }
 0xca1   : > { %15949 = vst.msk [vmem:[%s25952_s4 + $0xa8] sm:$0xff] %vm260_vm1, %v15917_v0  ;;  %v15887_v48 = vadd.f32 %v20544_v1, %v25944_v2  ;;  %v15778_v32 = vpop.f32.mrb[87].mxu0 }
 0xca2   : > { %15948 = vst.msk [vmem:[%s25952_s4 + $0xa0] sm:$0xff] %vm260_vm1, %v15916_v36  ;;  %v15886_v60 = vadd.f32 %v25944_v2, %v15778_v32 }
 0xca3   : > { %v15919_v61 = vadd.f32 %v15887_v48, %v26811_v4 }
 0xca4   : > { %v15918_v43 = vadd.f32 %v15886_v60, %v26810_v28  ;;  %v20547_v24 = vpop.f32.mrb[88].mxu0 }
 0xca5   : > { %15951 = vst.msk [vmem:[%s25952_s4 + $0xb8] sm:$0xff] %vm260_vm1, %v15919_v61  ;;  %v15889_v23 = vadd.f32 %v20547_v24, %v25944_v2  ;;  %v15788_v21 = vpop.f32.mrb[89].mxu0 }
 0xca6   : > { %15950 = vst.msk [vmem:[%s25952_s4 + $0xb0] sm:$0xff] %vm260_vm1, %v15918_v43  ;;  %v15888_v13 = vadd.f32 %v25944_v2, %v15788_v21 }
 0xca7   : > { %v15921_v41 = vadd.f32 %v15889_v23, %v26813_v44 }
 0xca8   : > { %v15920_v59 = vadd.f32 %v15888_v13, %v26812_v9  ;;  %v20550_v40 = vpop.f32.mrb[90].mxu0 }
 0xca9   : > { %15953 = vst.msk [vmem:[%s25952_s4 + $0xc8] sm:$0xff] %vm260_vm1, %v15921_v41  ;;  %v15891_v28 = vadd.f32 %v20550_v40, %v25944_v2  ;;  %v15798_v4 = vpop.f32.mrb[91].mxu0 }
 0xcaa   : > { %15952 = vst.msk [vmem:[%s25952_s4 + $0xc0] sm:$0xff] %vm260_vm1, %v15920_v59  ;;  %v15890_v15 = vadd.f32 %v25944_v2, %v15798_v4 }
 0xcab   : > { %v15923_v11 = vadd.f32 %v15891_v28, %v26815_v7 }
 0xcac   : > { %v15922_v54 = vadd.f32 %v15890_v15, %v26853_v18  ;;  %v20553_v50 = vpop.f32.mrb[92].mxu0 }
 0xcad   : > { %15955 = vst.msk [vmem:[%s25952_s4 + $0xd8] sm:$0xff] %vm260_vm1, %v15923_v11  ;;  %v15893_v9 = vadd.f32 %v20553_v50, %v25944_v2  ;;  %v15808_v44 = vpop.f32.mrb[93].mxu0 }
 0xcae   : > { %15954 = vst.msk [vmem:[%s25952_s4 + $0xd0] sm:$0xff] %vm260_vm1, %v15922_v54  ;;  %v15892_v19 = vadd.f32 %v25944_v2, %v15808_v44 }
 0xcaf   : > { %v15925_v27 = vadd.f32 %v15893_v9, %v26817_v52 }
 0xcb0   : > { %v15924_v31 = vadd.f32 %v15892_v19, %v26816_v20  ;;  %v20556_v16 = vpop.f32.mrb[94].mxu0 }
 0xcb1   : > { %15957 = vst.msk [vmem:[%s25952_s4 + $0xe8] sm:$0xff] %vm260_vm1, %v15925_v27  ;;  %v15895_v7 = vadd.f32 %v20556_v16, %v25944_v2  ;;  %v15818_v38 = vpop.f32.mrb[95].mxu0 }
 0xcb2   : > { %15956 = vst.msk [vmem:[%s25952_s4 + $0xe0] sm:$0xff] %vm260_vm1, %v15924_v31  ;;  %v15894_v12 = vadd.f32 %v25944_v2, %v15818_v38 }
 0xcb3   : > { %v15927_v29 = vadd.f32 %v15895_v7, %v26819_v51 }
 0xcb4   : > { %v15926_v39 = vadd.f32 %v15894_v12, %v26818_v47 }
 0xcb5   : > { %15959 = vst.msk [vmem:[%s25952_s4 + $0xf8] sm:$0xff] %vm260_vm1, %v15927_v29 }
 0xcb6   : > { %15958 = vst.msk [vmem:[%s25952_s4 + $0xf0] sm:$0xff] %vm260_vm1, %v15926_v39 }
 0xcb7 PF: > { %s16_s20 = sadd.s32 1, %s21661_s20  }
 0xcb8   : > { %p13_p4 = scmp.ge.s32.totalorder %s16_s20, 4  }
 0xcba   :  { %15 = sbr.rel (!%p13_p4) target bundleno = 2 (0x2), region = 74 }

</bundles_post_ra>
